<compile_context>
chip_gen: v5e
topology: v5e:2x2
jax: 0.10.0
libtpu: 0.0.40
codegen_flags: <defaults>
</compile_context>

<pallas_src>
import jax
import jax.numpy as jnp
from jax.experimental import pallas as pl
from jax.experimental.pallas import tpu as pltpu

SELU_ALPHA = 1.6732632423543772
SELU_SCALE = 1.0507009873554805
BN_EPS = 1e-5


def _selu(x):
    return SELU_SCALE * jnp.where(x > 0, x, SELU_ALPHA * (jnp.exp(x) - 1.0))


def _batchnorm_train(x, gamma, beta):
    # BatchNorm1d in training mode: batch mean, biased batch variance.
    mean = jnp.mean(x, axis=0, keepdims=True)
    var = jnp.mean(jnp.square(x - mean), axis=0, keepdims=True)
    return (x - mean) * jax.lax.rsqrt(var + BN_EPS) * gamma + beta


def rubik_mlp_kernel(x_ref,
                     w0_ref, b0_ref,
                     w1_ref, b1_ref, g1_ref, be1_ref,
                     w2_ref, b2_ref, g2_ref, be2_ref,
                     w3_ref, b3_ref,
                     w4_ref, b4_ref,
                     o_ref):
    bf16 = jnp.bfloat16

    # input_layer: (B, 1152) x (1152, 1024), f32 accumulation on the MXU.
    h = jnp.dot(x_ref[...], w0_ref[...],
                preferred_element_type=jnp.float32) + b0_ref[...]
    # fc1 -> bn1 -> selu
    h = jnp.dot(h.astype(bf16), w1_ref[...],
                preferred_element_type=jnp.float32) + b1_ref[...]
    h = _selu(_batchnorm_train(h, g1_ref[...], be1_ref[...]))
    # fc2 -> bn2 -> selu
    h = jnp.dot(h.astype(bf16), w2_ref[...],
                preferred_element_type=jnp.float32) + b2_ref[...]
    h = _selu(_batchnorm_train(h, g2_ref[...], be2_ref[...]))
    # fc3 -> selu
    h = _selu(jnp.dot(h.astype(bf16), w3_ref[...],
                      preferred_element_type=jnp.float32) + b3_ref[...])
    # fc4 (128 -> 1): broadcast-mul + lane reduce on the VPU/XLU (no N=1 matmul)
    o_ref[...] = jnp.sum(h * w4_ref[...], axis=-1, keepdims=True) + b4_ref[...]


def prepare_params(params):
    """One-time pad/cast of the f32 module parameters into the kernel layout.

    This must run once at init, NOT per forward call: re-padding/casting the
    weights per call costs ~3x the kernel's own HBM traffic.
    """
    (w0, b0, w1, b1, g1, be1, w2, b2, g2, be2, w3, b3, w4, b4) = params
    K = w0.shape[0]
    K_pad = ((K + 127) // 128) * 128        # 1089 -> 1152 (9 * 128)
    w0_p = jnp.pad(w0, ((0, K_pad - K), (0, 0))).astype(jnp.bfloat16)
    args = (w0_p, b0,
            w1.astype(jnp.bfloat16), b1, g1, be1,
            w2.astype(jnp.bfloat16), b2, g2, be2,
            w3.astype(jnp.bfloat16), b3,
            w4.reshape(1, -1), b4)           # (1, 128) f32 row, used on the VPU
    return {"k_pad": K_pad, "args": tuple(jax.device_put(a) for a in args)}


def rubik_forward(x, prepared):
    """x: (B, 1089) f32; prepared: output of prepare_params()."""
    K_pad = prepared["k_pad"]
    wargs = prepared["args"]
    B, K = x.shape
    # Per-call input pad/cast is tiny (~tens of KB); weights were pre-cast.
    # Zero-padding both x and W0 keeps the padded matmul numerically exact.
    x_p = jnp.pad(x, ((0, 0), (0, K_pad - K))).astype(jnp.bfloat16)

    def full_spec(a):
        nd = a.ndim
        return pl.BlockSpec(a.shape, lambda i, _nd=nd: (0,) * _nd)

    in_specs = [full_spec(x_p)] + [full_spec(a) for a in wargs]
    out_spec = pl.BlockSpec((B, 1), lambda i: (0, 0))

    return pl.pallas_call(
        rubik_mlp_kernel,
        out_shape=jax.ShapeDtypeStruct((B, 1), jnp.float32),
        grid=(1,),                           # single step: everything resident
        in_specs=in_specs,
        out_specs=out_spec,
        compiler_params=pltpu.CompilerParams(
            dimension_semantics=("arbitrary",),
            vmem_limit_bytes=32 * 1024 * 1024),
    )(x_p, *wargs)


def init_params(key, inputs_size=33 * 33):
    dims = [inputs_size, 1024, 512, 256, 128, 1]
    keys = jax.random.split(key, 2 * (len(dims) - 1))
    params = []
    k_idx = 0
    for li, (din, dout) in enumerate(zip(dims[:-1], dims[1:])):
        w = jax.random.normal(keys[k_idx], (din, dout), jnp.float32) * 0.02
        b = jax.random.normal(keys[k_idx + 1], (1, dout), jnp.float32) * 0.01
        k_idx += 2
        params.extend([w, b])
        # BatchNorm params follow fc1 / fc2; PyTorch init: gamma=1, beta=0.
        if li in (1, 2):
            params.append(jnp.ones((1, dout), jnp.float32))   # gamma
            params.append(jnp.zeros((1, dout), jnp.float32))  # beta
    return tuple(params)


def reference_forward_bf16(x, params):
    # Mirrors the kernel's numerics: bf16 matmul inputs, f32 accumulation,
    # f32 BatchNorm / SELU / bias.
    (w0, b0, w1, b1, g1, be1, w2, b2, g2, be2, w3, b3, w4, b4) = params

    def mm(a, w):
        return jnp.dot(a.astype(jnp.bfloat16), w.astype(jnp.bfloat16),
                       preferred_element_type=jnp.float32)

    h = mm(x, w0) + b0
    h = _selu(_batchnorm_train(mm(h, w1) + b1, g1, be1))
    h = _selu(_batchnorm_train(mm(h, w2) + b2, g2, be2))
    h = _selu(mm(h, w3) + b3)
    return jnp.sum(h * w4.reshape(1, -1), axis=-1, keepdims=True) + b4


def reference_forward_f32(x, params):
    # Pure-f32 reference: the true PyTorch-module numerics.
    (w0, b0, w1, b1, g1, be1, w2, b2, g2, be2, w3, b3, w4, b4) = params
    h = jnp.dot(x, w0) + b0
    h = _selu(_batchnorm_train(jnp.dot(h, w1) + b1, g1, be1))
    h = _selu(_batchnorm_train(jnp.dot(h, w2) + b2, g2, be2))
    h = _selu(jnp.dot(h, w3) + b3)
    return jnp.dot(h, w4) + b4


if __name__ == "__main__":
    key = jax.random.PRNGKey(0)
    k_x, k_p = jax.random.split(key)

    B = 8
    INPUTS_SIZE = 33 * 33  # 1089, module default
    x = jax.random.normal(k_x, (B, INPUTS_SIZE), jnp.float32)
    params = init_params(k_p, INPUTS_SIZE)
    prepared = prepare_params(params)      # one-time weight pad/cast (perf fix)

    out = jax.block_until_ready(rubik_forward(x, prepared))
    assert out.shape == (B, 1), out.shape

    # Tight check against the bf16-consistent reference (kernel numerics).
    ref_bf16 = reference_forward_bf16(x, params)
    assert jnp.allclose(out, ref_bf16, rtol=1e-3, atol=1e-3), (
        float(jnp.max(jnp.abs(out - ref_bf16))))

    # Loose check against the true f32 module numerics (measures bf16 drift).
    ref_f32 = reference_forward_f32(x, params)
    assert jnp.allclose(out, ref_f32, rtol=2e-2, atol=2e-2), (
        float(jnp.max(jnp.abs(out - ref_f32))))

    print("KERNEL_OK")
</pallas_src>

<mosaic_0001>
module attributes {stable_mosaic.version = 11 : i64} {
  func.func @rubik_mlp_kernel(%arg0: i32, %arg1: memref<8x1152xbf16, #tpu.memory_space<vmem>>, %arg2: memref<1152x1024xbf16, #tpu.memory_space<vmem>>, %arg3: memref<1x1024xf32, #tpu.memory_space<vmem>>, %arg4: memref<1024x512xbf16, #tpu.memory_space<vmem>>, %arg5: memref<1x512xf32, #tpu.memory_space<vmem>>, %arg6: memref<1x512xf32, #tpu.memory_space<vmem>>, %arg7: memref<1x512xf32, #tpu.memory_space<vmem>>, %arg8: memref<512x256xbf16, #tpu.memory_space<vmem>>, %arg9: memref<1x256xf32, #tpu.memory_space<vmem>>, %arg10: memref<1x256xf32, #tpu.memory_space<vmem>>, %arg11: memref<1x256xf32, #tpu.memory_space<vmem>>, %arg12: memref<256x128xbf16, #tpu.memory_space<vmem>>, %arg13: memref<1x128xf32, #tpu.memory_space<vmem>>, %arg14: memref<1x128xf32, #tpu.memory_space<vmem>>, %arg15: memref<1x1xf32, #tpu.memory_space<vmem>>, %arg16: memref<8x1xf32, #tpu.memory_space<vmem>>) attributes {dimension_semantics = [#tpu.dimension_semantics<arbitrary>], iteration_bounds = array<i64: 1>, scalar_prefetch = 0 : i64, scratch_operands = 0 : i64, tpu.core_type = #tpu.core_type<tc>, window_params = [{pipeline_mode = #tpu.pipeline_mode<synchronous>, transform_indices = @transform_0, window_bounds = array<i64: 8, 1152>}, {pipeline_mode = #tpu.pipeline_mode<synchronous>, transform_indices = @transform_1, window_bounds = array<i64: 1152, 1024>}, {pipeline_mode = #tpu.pipeline_mode<synchronous>, transform_indices = @transform_2, window_bounds = array<i64: 1, 1024>}, {pipeline_mode = #tpu.pipeline_mode<synchronous>, transform_indices = @transform_3, window_bounds = array<i64: 1024, 512>}, {pipeline_mode = #tpu.pipeline_mode<synchronous>, transform_indices = @transform_4, window_bounds = array<i64: 1, 512>}, {pipeline_mode = #tpu.pipeline_mode<synchronous>, transform_indices = @transform_5, window_bounds = array<i64: 1, 512>}, {pipeline_mode = #tpu.pipeline_mode<synchronous>, transform_indices = @transform_6, window_bounds = array<i64: 1, 512>}, {pipeline_mode = #tpu.pipeline_mode<synchronous>, transform_indices = @transform_7, window_bounds = array<i64: 512, 256>}, {pipeline_mode = #tpu.pipeline_mode<synchronous>, transform_indices = @transform_8, window_bounds = array<i64: 1, 256>}, {pipeline_mode = #tpu.pipeline_mode<synchronous>, transform_indices = @transform_9, window_bounds = array<i64: 1, 256>}, {pipeline_mode = #tpu.pipeline_mode<synchronous>, transform_indices = @transform_10, window_bounds = array<i64: 1, 256>}, {pipeline_mode = #tpu.pipeline_mode<synchronous>, transform_indices = @transform_11, window_bounds = array<i64: 256, 128>}, {pipeline_mode = #tpu.pipeline_mode<synchronous>, transform_indices = @transform_12, window_bounds = array<i64: 1, 128>}, {pipeline_mode = #tpu.pipeline_mode<synchronous>, transform_indices = @transform_13, window_bounds = array<i64: 1, 128>}, {pipeline_mode = #tpu.pipeline_mode<synchronous>, transform_indices = @transform_14, window_bounds = array<i64: 1, 1>}, {pipeline_mode = #tpu.pipeline_mode<synchronous>, transform_indices = @transform_15, window_bounds = array<i64: 8, 1>}]} {
    %c0 = arith.constant 0 : index
    %c0_0 = arith.constant 0 : index
    %0 = vector.load %arg1[%c0, %c0_0] : memref<8x1152xbf16, #tpu.memory_space<vmem>>, vector<8x1152xbf16>
    %c0_1 = arith.constant 0 : index
    %c0_2 = arith.constant 0 : index
    %1 = vector.load %arg2[%c0_1, %c0_2] : memref<1152x1024xbf16, #tpu.memory_space<vmem>>, vector<1152x1024xbf16>
    %cst = arith.constant dense<0.000000e+00> : vector<8x1024xf32>
    %2 = tpu.matmul %0, %1, %cst {dimension_numbers = #tpu.dot_dimension_numbers<[1], [0], [0], [1], [0, 0, 1, 1], [], []>} : vector<8x1152xbf16>, vector<1152x1024xbf16>, vector<8x1024xf32> -> vector<8x1024xf32>
    %c0_3 = arith.constant 0 : index
    %c0_4 = arith.constant 0 : index
    %3 = vector.load %arg3[%c0_3, %c0_4] : memref<1x1024xf32, #tpu.memory_space<vmem>>, vector<1x1024xf32>
    %4 = vector.broadcast %3 : vector<1x1024xf32> to vector<8x1024xf32>
    %5 = arith.addf %2, %4 : vector<8x1024xf32>
    %6 = arith.truncf %5 : vector<8x1024xf32> to vector<8x1024xbf16>
    %c0_5 = arith.constant 0 : index
    %c0_6 = arith.constant 0 : index
    %7 = vector.load %arg4[%c0_5, %c0_6] : memref<1024x512xbf16, #tpu.memory_space<vmem>>, vector<1024x512xbf16>
    %cst_7 = arith.constant dense<0.000000e+00> : vector<8x512xf32>
    %8 = tpu.matmul %6, %7, %cst_7 {dimension_numbers = #tpu.dot_dimension_numbers<[1], [0], [0], [1], [0, 0, 1, 1], [], []>} : vector<8x1024xbf16>, vector<1024x512xbf16>, vector<8x512xf32> -> vector<8x512xf32>
    %c0_8 = arith.constant 0 : index
    %c0_9 = arith.constant 0 : index
    %9 = vector.load %arg5[%c0_8, %c0_9] : memref<1x512xf32, #tpu.memory_space<vmem>>, vector<1x512xf32>
    %10 = vector.broadcast %9 : vector<1x512xf32> to vector<8x512xf32>
    %11 = arith.addf %8, %10 : vector<8x512xf32>
    %c0_10 = arith.constant 0 : index
    %c0_11 = arith.constant 0 : index
    %12 = vector.load %arg6[%c0_10, %c0_11] : memref<1x512xf32, #tpu.memory_space<vmem>>, vector<1x512xf32>
    %c0_12 = arith.constant 0 : index
    %c0_13 = arith.constant 0 : index
    %13 = vector.load %arg7[%c0_12, %c0_13] : memref<1x512xf32, #tpu.memory_space<vmem>>, vector<1x512xf32>
    %cst_14 = arith.constant dense<0.000000e+00> : vector<512xf32>
    %14 = vector.multi_reduction <add>, %11, %cst_14 [0] : vector<8x512xf32> to vector<512xf32>
    %15 = vector.shape_cast %14 : vector<512xf32> to vector<1x512xf32>
    %cst_15 = arith.constant 8.000000e+00 : f32
    %16 = vector.broadcast %cst_15 : f32 to vector<1x512xf32>
    %17 = arith.divf %15, %16 : vector<1x512xf32>
    %18 = vector.broadcast %17 : vector<1x512xf32> to vector<8x512xf32>
    %19 = arith.subf %11, %18 : vector<8x512xf32>
    %20 = arith.mulf %19, %19 : vector<8x512xf32>
    %cst_16 = arith.constant dense<0.000000e+00> : vector<512xf32>
    %21 = vector.multi_reduction <add>, %20, %cst_16 [0] : vector<8x512xf32> to vector<512xf32>
    %22 = vector.shape_cast %21 : vector<512xf32> to vector<1x512xf32>
    %cst_17 = arith.constant 8.000000e+00 : f32
    %23 = vector.broadcast %cst_17 : f32 to vector<1x512xf32>
    %24 = arith.divf %22, %23 : vector<1x512xf32>
    %25 = vector.broadcast %17 : vector<1x512xf32> to vector<8x512xf32>
    %26 = arith.subf %11, %25 : vector<8x512xf32>
    %cst_18 = arith.constant 9.99999974E-6 : f32
    %27 = vector.broadcast %cst_18 : f32 to vector<1x512xf32>
    %28 = arith.addf %24, %27 : vector<1x512xf32>
    %29 = math.rsqrt %28 : vector<1x512xf32>
    %30 = vector.broadcast %29 : vector<1x512xf32> to vector<8x512xf32>
    %31 = arith.mulf %26, %30 : vector<8x512xf32>
    %32 = vector.broadcast %12 : vector<1x512xf32> to vector<8x512xf32>
    %33 = arith.mulf %31, %32 : vector<8x512xf32>
    %34 = vector.broadcast %13 : vector<1x512xf32> to vector<8x512xf32>
    %35 = arith.addf %33, %34 : vector<8x512xf32>
    %cst_19 = arith.constant 0.000000e+00 : f32
    %36 = vector.broadcast %cst_19 : f32 to vector<8x512xf32>
    %37 = arith.cmpf ogt, %35, %36 : vector<8x512xf32>
    %38 = math.exp %35 : vector<8x512xf32>
    %cst_20 = arith.constant 1.000000e+00 : f32
    %39 = vector.broadcast %cst_20 : f32 to vector<8x512xf32>
    %40 = arith.subf %38, %39 : vector<8x512xf32>
    %cst_21 = arith.constant 1.67326319 : f32
    %41 = vector.broadcast %cst_21 : f32 to vector<8x512xf32>
    %42 = arith.mulf %41, %40 : vector<8x512xf32>
    %43 = arith.select %37, %35, %42 : vector<8x512xi1>, vector<8x512xf32>
    %cst_22 = arith.constant 1.05070102 : f32
    %44 = vector.broadcast %cst_22 : f32 to vector<8x512xf32>
    %45 = arith.mulf %44, %43 : vector<8x512xf32>
    %46 = arith.truncf %45 : vector<8x512xf32> to vector<8x512xbf16>
    %c0_23 = arith.constant 0 : index
    %c0_24 = arith.constant 0 : index
    %47 = vector.load %arg8[%c0_23, %c0_24] : memref<512x256xbf16, #tpu.memory_space<vmem>>, vector<512x256xbf16>
    %cst_25 = arith.constant dense<0.000000e+00> : vector<8x256xf32>
    %48 = tpu.matmul %46, %47, %cst_25 {dimension_numbers = #tpu.dot_dimension_numbers<[1], [0], [0], [1], [0, 0, 1, 1], [], []>} : vector<8x512xbf16>, vector<512x256xbf16>, vector<8x256xf32> -> vector<8x256xf32>
    %c0_26 = arith.constant 0 : index
    %c0_27 = arith.constant 0 : index
    %49 = vector.load %arg9[%c0_26, %c0_27] : memref<1x256xf32, #tpu.memory_space<vmem>>, vector<1x256xf32>
    %50 = vector.broadcast %49 : vector<1x256xf32> to vector<8x256xf32>
    %51 = arith.addf %48, %50 : vector<8x256xf32>
    %c0_28 = arith.constant 0 : index
    %c0_29 = arith.constant 0 : index
    %52 = vector.load %arg10[%c0_28, %c0_29] : memref<1x256xf32, #tpu.memory_space<vmem>>, vector<1x256xf32>
    %c0_30 = arith.constant 0 : index
    %c0_31 = arith.constant 0 : index
    %53 = vector.load %arg11[%c0_30, %c0_31] : memref<1x256xf32, #tpu.memory_space<vmem>>, vector<1x256xf32>
    %cst_32 = arith.constant dense<0.000000e+00> : vector<256xf32>
    %54 = vector.multi_reduction <add>, %51, %cst_32 [0] : vector<8x256xf32> to vector<256xf32>
    %55 = vector.shape_cast %54 : vector<256xf32> to vector<1x256xf32>
    %cst_33 = arith.constant 8.000000e+00 : f32
    %56 = vector.broadcast %cst_33 : f32 to vector<1x256xf32>
    %57 = arith.divf %55, %56 : vector<1x256xf32>
    %58 = vector.broadcast %57 : vector<1x256xf32> to vector<8x256xf32>
    %59 = arith.subf %51, %58 : vector<8x256xf32>
    %60 = arith.mulf %59, %59 : vector<8x256xf32>
    %cst_34 = arith.constant dense<0.000000e+00> : vector<256xf32>
    %61 = vector.multi_reduction <add>, %60, %cst_34 [0] : vector<8x256xf32> to vector<256xf32>
    %62 = vector.shape_cast %61 : vector<256xf32> to vector<1x256xf32>
    %cst_35 = arith.constant 8.000000e+00 : f32
    %63 = vector.broadcast %cst_35 : f32 to vector<1x256xf32>
    %64 = arith.divf %62, %63 : vector<1x256xf32>
    %65 = vector.broadcast %57 : vector<1x256xf32> to vector<8x256xf32>
    %66 = arith.subf %51, %65 : vector<8x256xf32>
    %cst_36 = arith.constant 9.99999974E-6 : f32
    %67 = vector.broadcast %cst_36 : f32 to vector<1x256xf32>
    %68 = arith.addf %64, %67 : vector<1x256xf32>
    %69 = math.rsqrt %68 : vector<1x256xf32>
    %70 = vector.broadcast %69 : vector<1x256xf32> to vector<8x256xf32>
    %71 = arith.mulf %66, %70 : vector<8x256xf32>
    %72 = vector.broadcast %52 : vector<1x256xf32> to vector<8x256xf32>
    %73 = arith.mulf %71, %72 : vector<8x256xf32>
    %74 = vector.broadcast %53 : vector<1x256xf32> to vector<8x256xf32>
    %75 = arith.addf %73, %74 : vector<8x256xf32>
    %cst_37 = arith.constant 0.000000e+00 : f32
    %76 = vector.broadcast %cst_37 : f32 to vector<8x256xf32>
    %77 = arith.cmpf ogt, %75, %76 : vector<8x256xf32>
    %78 = math.exp %75 : vector<8x256xf32>
    %cst_38 = arith.constant 1.000000e+00 : f32
    %79 = vector.broadcast %cst_38 : f32 to vector<8x256xf32>
    %80 = arith.subf %78, %79 : vector<8x256xf32>
    %cst_39 = arith.constant 1.67326319 : f32
    %81 = vector.broadcast %cst_39 : f32 to vector<8x256xf32>
    %82 = arith.mulf %81, %80 : vector<8x256xf32>
    %83 = arith.select %77, %75, %82 : vector<8x256xi1>, vector<8x256xf32>
    %cst_40 = arith.constant 1.05070102 : f32
    %84 = vector.broadcast %cst_40 : f32 to vector<8x256xf32>
    %85 = arith.mulf %84, %83 : vector<8x256xf32>
    %86 = arith.truncf %85 : vector<8x256xf32> to vector<8x256xbf16>
    %c0_41 = arith.constant 0 : index
    %c0_42 = arith.constant 0 : index
    %87 = vector.load %arg12[%c0_41, %c0_42] : memref<256x128xbf16, #tpu.memory_space<vmem>>, vector<256x128xbf16>
    %cst_43 = arith.constant dense<0.000000e+00> : vector<8x128xf32>
    %88 = tpu.matmul %86, %87, %cst_43 {dimension_numbers = #tpu.dot_dimension_numbers<[1], [0], [0], [1], [0, 0, 1, 1], [], []>} : vector<8x256xbf16>, vector<256x128xbf16>, vector<8x128xf32> -> vector<8x128xf32>
    %c0_44 = arith.constant 0 : index
    %c0_45 = arith.constant 0 : index
    %89 = vector.load %arg13[%c0_44, %c0_45] : memref<1x128xf32, #tpu.memory_space<vmem>>, vector<1x128xf32>
    %90 = vector.broadcast %89 : vector<1x128xf32> to vector<8x128xf32>
    %91 = arith.addf %88, %90 : vector<8x128xf32>
    %cst_46 = arith.constant 0.000000e+00 : f32
    %92 = vector.broadcast %cst_46 : f32 to vector<8x128xf32>
    %93 = arith.cmpf ogt, %91, %92 : vector<8x128xf32>
    %94 = math.exp %91 : vector<8x128xf32>
    %cst_47 = arith.constant 1.000000e+00 : f32
    %95 = vector.broadcast %cst_47 : f32 to vector<8x128xf32>
    %96 = arith.subf %94, %95 : vector<8x128xf32>
    %cst_48 = arith.constant 1.67326319 : f32
    %97 = vector.broadcast %cst_48 : f32 to vector<8x128xf32>
    %98 = arith.mulf %97, %96 : vector<8x128xf32>
    %99 = arith.select %93, %91, %98 : vector<8x128xi1>, vector<8x128xf32>
    %cst_49 = arith.constant 1.05070102 : f32
    %100 = vector.broadcast %cst_49 : f32 to vector<8x128xf32>
    %101 = arith.mulf %100, %99 : vector<8x128xf32>
    %c0_50 = arith.constant 0 : index
    %c0_51 = arith.constant 0 : index
    %102 = vector.load %arg14[%c0_50, %c0_51] : memref<1x128xf32, #tpu.memory_space<vmem>>, vector<1x128xf32>
    %103 = vector.broadcast %102 : vector<1x128xf32> to vector<8x128xf32>
    %104 = arith.mulf %101, %103 : vector<8x128xf32>
    %cst_52 = arith.constant dense<0.000000e+00> : vector<8xf32>
    %105 = vector.multi_reduction <add>, %104, %cst_52 [1] : vector<8x128xf32> to vector<8xf32>
    %106 = vector.shape_cast %105 : vector<8xf32> to vector<8x1xf32>
    %c0_53 = arith.constant 0 : index
    %c0_54 = arith.constant 0 : index
    %107 = vector.load %arg15[%c0_53, %c0_54] : memref<1x1xf32, #tpu.memory_space<vmem>>, vector<1x1xf32>
    %108 = vector.broadcast %107 : vector<1x1xf32> to vector<8x1xf32>
    %109 = arith.addf %106, %108 : vector<8x1xf32>
    %c0_55 = arith.constant 0 : index
    %c0_56 = arith.constant 0 : index
    %110 = vector.load %arg16[%c0_55, %c0_56] : memref<8x1xf32, #tpu.memory_space<vmem>>, vector<8x1xf32>
    tpu.vector_store %arg16[%c0_55, %c0_56], %109 {strides = array<i32>} : memref<8x1xf32, #tpu.memory_space<vmem>>, vector<8x1xf32>,
    return
  }
  func.func @transform_0(%arg0: i32) -> (i32, i32) {
    %c0_i32 = arith.constant 0 : i32
    %c0_i32_0 = arith.constant 0 : i32
    %c0_i32_1 = arith.constant 0 : i32
    return %c0_i32, %c0_i32_0 : i32, i32
  }
  func.func @transform_1(%arg0: i32) -> (i32, i32) {
    %c0_i32 = arith.constant 0 : i32
    %c0_i32_0 = arith.constant 0 : i32
    %c0_i32_1 = arith.constant 0 : i32
    return %c0_i32, %c0_i32_0 : i32, i32
  }
  func.func @transform_2(%arg0: i32) -> (i32, i32) {
    %c0_i32 = arith.constant 0 : i32
    %c0_i32_0 = arith.constant 0 : i32
    %c0_i32_1 = arith.constant 0 : i32
    return %c0_i32, %c0_i32_0 : i32, i32
  }
  func.func @transform_3(%arg0: i32) -> (i32, i32) {
    %c0_i32 = arith.constant 0 : i32
    %c0_i32_0 = arith.constant 0 : i32
    %c0_i32_1 = arith.constant 0 : i32
    return %c0_i32, %c0_i32_0 : i32, i32
  }
  func.func @transform_4(%arg0: i32) -> (i32, i32) {
    %c0_i32 = arith.constant 0 : i32
    %c0_i32_0 = arith.constant 0 : i32
    %c0_i32_1 = arith.constant 0 : i32
    return %c0_i32, %c0_i32_0 : i32, i32
  }
  func.func @transform_5(%arg0: i32) -> (i32, i32) {
    %c0_i32 = arith.constant 0 : i32
    %c0_i32_0 = arith.constant 0 : i32
    %c0_i32_1 = arith.constant 0 : i32
    return %c0_i32, %c0_i32_0 : i32, i32
  }
  func.func @transform_6(%arg0: i32) -> (i32, i32) {
    %c0_i32 = arith.constant 0 : i32
    %c0_i32_0 = arith.constant 0 : i32
    %c0_i32_1 = arith.constant 0 : i32
    return %c0_i32, %c0_i32_0 : i32, i32
  }
  func.func @transform_7(%arg0: i32) -> (i32, i32) {
    %c0_i32 = arith.constant 0 : i32
    %c0_i32_0 = arith.constant 0 : i32
    %c0_i32_1 = arith.constant 0 : i32
    return %c0_i32, %c0_i32_0 : i32, i32
  }
  func.func @transform_8(%arg0: i32) -> (i32, i32) {
    %c0_i32 = arith.constant 0 : i32
    %c0_i32_0 = arith.constant 0 : i32
    %c0_i32_1 = arith.constant 0 : i32
    return %c0_i32, %c0_i32_0 : i32, i32
  }
  func.func @transform_9(%arg0: i32) -> (i32, i32) {
    %c0_i32 = arith.constant 0 : i32
    %c0_i32_0 = arith.constant 0 : i32
    %c0_i32_1 = arith.constant 0 : i32
    return %c0_i32, %c0_i32_0 : i32, i32
  }
  func.func @transform_10(%arg0: i32) -> (i32, i32) {
    %c0_i32 = arith.constant 0 : i32
    %c0_i32_0 = arith.constant 0 : i32
    %c0_i32_1 = arith.constant 0 : i32
    return %c0_i32, %c0_i32_0 : i32, i32
  }
  func.func @transform_11(%arg0: i32) -> (i32, i32) {
    %c0_i32 = arith.constant 0 : i32
    %c0_i32_0 = arith.constant 0 : i32
    %c0_i32_1 = arith.constant 0 : i32
    return %c0_i32, %c0_i32_0 : i32, i32
  }
  func.func @transform_12(%arg0: i32) -> (i32, i32) {
    %c0_i32 = arith.constant 0 : i32
    %c0_i32_0 = arith.constant 0 : i32
    %c0_i32_1 = arith.constant 0 : i32
    return %c0_i32, %c0_i32_0 : i32, i32
  }
  func.func @transform_13(%arg0: i32) -> (i32, i32) {
    %c0_i32 = arith.constant 0 : i32
    %c0_i32_0 = arith.constant 0 : i32
    %c0_i32_1 = arith.constant 0 : i32
    return %c0_i32, %c0_i32_0 : i32, i32
  }
  func.func @transform_14(%arg0: i32) -> (i32, i32) {
    %c0_i32 = arith.constant 0 : i32
    %c0_i32_0 = arith.constant 0 : i32
    %c0_i32_1 = arith.constant 0 : i32
    return %c0_i32, %c0_i32_0 : i32, i32
  }
  func.func @transform_15(%arg0: i32) -> (i32, i32) {
    %c0_i32 = arith.constant 0 : i32
    %c0_i32_0 = arith.constant 0 : i32
    %c0_i32_1 = arith.constant 0 : i32
    return %c0_i32, %c0_i32_0 : i32, i32
  }
}

</mosaic_0001>

<bundles_post_ra>
// kernel: tpu_custom_call.1
= control target key start
LH: loop header
LB: loop body
LE: loop exit
PB: predicated region body
PF: predicated region fallthrough
CT: control target
= control target key end

     0   :  { %s13102_s0 = inlined_call_operand.hbm [shape: bf16[8,1152], index: 0, kind: input, shape index: {}]   ;;  %s13103_s1 = inlined_call_operand.hbm [shape: bf16[1152,1024], index: 1, kind: input, shape index: {}]   ;;  %s13104_s2 = inlined_call_operand.hbm [shape: f32[1,1024], index: 2, kind: input, shape index: {}]   ;;  %s13105_s3 = inlined_call_operand.hbm [shape: bf16[1024,512], index: 3, kind: input, shape index: {}]   ;;  %s13106_s4 = inlined_call_operand.hbm [shape: f32[1,512], index: 4, kind: input, shape index: {}]   ;;  %s13107_s5 = inlined_call_operand.hbm [shape: f32[1,512], index: 5, kind: input, shape index: {}]   ;;  %s13108_s6 = inlined_call_operand.hbm [shape: f32[1,512], index: 6, kind: input, shape index: {}]   ;;  %s13109_s7 = inlined_call_operand.hbm [shape: bf16[512,256], index: 7, kind: input, shape index: {}]   ;;  %s13110_s8 = inlined_call_operand.hbm [shape: f32[1,256], index: 8, kind: input, shape index: {}]   ;;  %s13111_s9 = inlined_call_operand.hbm [shape: f32[1,256], index: 9, kind: input, shape index: {}]   ;;  %s13112_s10 = inlined_call_operand.hbm [shape: f32[1,256], index: 10, kind: input, shape index: {}]   ;;  %s13113_s11 = inlined_call_operand.hbm [shape: bf16[256,128], index: 11, kind: input, shape index: {}]   ;;  %s13114_s12 = inlined_call_operand.hbm [shape: f32[1,128], index: 12, kind: input, shape index: {}]   ;;  %s13115_s13 = inlined_call_operand.hbm [shape: f32[1,128], index: 13, kind: input, shape index: {}]   ;;  %s13116_s14 = inlined_call_operand.<no memory space> [shape: f32[1,1], index: 14, kind: input, shape index: {}]   ;;  %s13117_s15 = inlined_call_operand.vmem [shape: f32[8,1], index: 15, kind: output, shape index: {}]  }
   0x1   :  { %v20_v0 = vstv %s13116_s14 }
   0x2   :  { %21 = vst [vmem:[#allocation2] sm:$0x1] %v20_v0 }
   0x3   :  { %22 = vsyncpa [#allocation4], 0 }
   0x4   :  { %23 = vsyncpa [#allocation6], 0 }
   0x5   :  { %24 = vsyncpa [#allocation9], 0 }
   0x6   :  { %25 = vsyncpa [#allocation12], 0 }
   0x7   :  { %26 = vsyncpa [#allocation15], 0 }
   0x8   :  { %27 = vsyncpa [#allocation18], 0 }
   0x9   :  { %28 = vsyncpa [#allocation21], 0  ;;  %s45_s22 = sshll.u32 %s13103_s1, 4  ;;  %s46_s22 = int_to_ptr.hbm [resolvable:$true] %s45_s22 }
   0xa   :  { %29 = vsyncpa [#allocation24], 0  ;;  %s12596_s23 = smov [#allocation5]   ;;  %s69_s14 = sshll.u32 %s13105_s3, 4  ;;  %s70_s14 = int_to_ptr.hbm [resolvable:$true] %s69_s14 }
   0xb   :  { %s47_s24 = sshll.u32 %s12596_s23, 4  ;;  %s12597_s27 = smov 512   ;;  %s48_s24 = int_to_ptr.vmem [resolvable:$true] %s47_s24 }
   0xc   :  { %s12598_s28 = smov 32   ;;  %s12599_s29 = smov [#allocation8]  }
   0xd   :  { %53 = dma.hbm_to_vmem [thread:$0]  %s46_s22, 73728, %s48_s24, [#allocation6], %s12597_s27, %s12597_s27, %s12598_s28  }
   0xe   :  { %s71_s30 = sshll.u32 %s12599_s29, 4  ;;  %s12600_s16 = smov 256   ;;  %s72_s30 = int_to_ptr.vmem [resolvable:$true] %s71_s30 }
   0xf   :  { %s12601_s17 = smov 16   ;;  %s94_s19 = sshll.u32 %s13107_s5, 4  ;;  %s95_s19 = int_to_ptr.hbm [resolvable:$true] %s94_s19 }
  0x10   :  { %77 = dma.hbm_to_vmem [thread:$0]  %s70_s14, 32768, %s72_s30, [#allocation9], %s12600_s16, %s12600_s16, %s12601_s17  }
  0x11   :  { %s12602_s20 = smov [#allocation11]   ;;  %s115_s25 = sshll.u32 %s13109_s7, 4  ;;  %s116_s25 = int_to_ptr.hbm [resolvable:$true] %s115_s25 }
  0x12   :  { %s96_s21 = sshll.u32 %s12602_s20, 4  ;;  %s12603_s22 = smov [#allocation14]   ;;  %s97_s21 = int_to_ptr.vmem [resolvable:$true] %s96_s21 }
  0x13   :  { %99 = dma.hbm_to_vmem [thread:$0]  %s95_s19, 64, %s97_s21, [#allocation12]  }
  0x14   :  { %s117_s24 = sshll.u32 %s12603_s22, 4  ;;  %s12604_s26 = smov 128   ;;  %s118_s24 = int_to_ptr.vmem [resolvable:$true] %s117_s24 }
  0x15   :  { %s12605_s27 = smov 8   ;;  %s140_s5 = sshll.u32 %s13111_s9, 4  ;;  %s141_s5 = int_to_ptr.hbm [resolvable:$true] %s140_s5 }
  0x16   :  { %123 = dma.hbm_to_vmem [thread:$0]  %s116_s25, 8192, %s118_s24, [#allocation15], %s12604_s26, %s12604_s26, %s12605_s27  }
  0x17   :  { %s12606_s29 = smov [#allocation17]   ;;  %s161_s7 = sshll.u32 %s13113_s11, 4  ;;  %s162_s7 = int_to_ptr.hbm [resolvable:$true] %s161_s7 }
  0x18   :  { %s142_s30 = sshll.u32 %s12606_s29, 4  ;;  %s12607_s1 = smov [#allocation20]   ;;  %s143_s30 = int_to_ptr.vmem [resolvable:$true] %s142_s30 }
  0x19   :  { %145 = dma.hbm_to_vmem [thread:$0]  %s141_s5, 32, %s143_s30, [#allocation18]  }
  0x1a   :  { %s163_s18 = sshll.u32 %s12607_s1, 4  ;;  %s12608_s19 = smov 64   ;;  %s164_s18 = int_to_ptr.vmem [resolvable:$true] %s163_s18 }
  0x1b   :  { %s12609_s20 = smov 4   ;;  %s35_s9 = sshll.u32 %s13102_s0, 4  ;;  %s36_s9 = int_to_ptr.hbm [resolvable:$true] %s35_s9 }
  0x1c   :  { %169 = dma.hbm_to_vmem [thread:$0]  %s162_s7, 2048, %s164_s18, [#allocation21], %s12608_s19, %s12608_s19, %s12609_s20  }
  0x1d   :  { %s12610_s3 = smov [#allocation3]   ;;  %s59_s11 = sshll.u32 %s13104_s2, 4  ;;  %s60_s11 = int_to_ptr.hbm [resolvable:$true] %s59_s11 }
  0x1e   :  { %s37_s25 = sshll.u32 %s12610_s3, 4  ;;  %s12611_s26 = smov [#allocation7]   ;;  %s38_s25 = int_to_ptr.vmem [resolvable:$true] %s37_s25 }
  0x1f   :  { %40 = dma.hbm_to_vmem [thread:$0]  %s36_s9, 576, %s38_s25, [#allocation4]  }
  0x20   :  { %s61_s27 = sshll.u32 %s12611_s26, 4  ;;  %s83_s5 = sshll.u32 %s13106_s4, 4  ;;  %s62_s27 = int_to_ptr.vmem [resolvable:$true] %s61_s27  ;;  %s84_s5 = int_to_ptr.hbm [resolvable:$true] %s83_s5 }
  0x21   :  { %64 = dma.hbm_to_vmem [thread:$0]  %s60_s11, 128, %s62_s27, [#allocation6]  }
  0x22   :  { %s105_s30 = sshll.u32 %s13108_s6, 4  ;;  %s12612_s16 = smov [#allocation10]   ;;  %s106_s30 = int_to_ptr.hbm [resolvable:$true] %s105_s30 }
  0x23   :  { %s85_s17 = sshll.u32 %s12612_s16, 4  ;;  %s12613_s2 = smov [#allocation13]   ;;  %s86_s17 = int_to_ptr.vmem [resolvable:$true] %s85_s17 }
  0x24   :  { %88 = dma.hbm_to_vmem [thread:$0]  %s84_s5, 64, %s86_s17, [#allocation9]  }
  0x25   :  { %s107_s7 = sshll.u32 %s12613_s2, 4  ;;  %s129_s19 = sshll.u32 %s13110_s8, 4  ;;  %s108_s7 = int_to_ptr.vmem [resolvable:$true] %s107_s7  ;;  %s130_s19 = int_to_ptr.hbm [resolvable:$true] %s129_s19 }
  0x26   :  { %110 = dma.hbm_to_vmem [thread:$0]  %s106_s30, 64, %s108_s7, [#allocation12]  }
  0x27   :  { %s151_s21 = sshll.u32 %s13112_s10, 4  ;;  %s12614_s23 = smov [#allocation16]   ;;  %s152_s21 = int_to_ptr.hbm [resolvable:$true] %s151_s21 }
  0x28   :  { %s131_s6 = sshll.u32 %s12614_s23, 4  ;;  %s12615_s9 = smov [#allocation19]   ;;  %s132_s6 = int_to_ptr.vmem [resolvable:$true] %s131_s6 }
  0x29   :  { %134 = dma.hbm_to_vmem [thread:$0]  %s130_s19, 32, %s132_s6, [#allocation15]  }
  0x2a   :  { %s153_s3 = sshll.u32 %s12615_s9, 4  ;;  %s175_s24 = sshll.u32 %s13114_s12, 4  ;;  %s154_s3 = int_to_ptr.vmem [resolvable:$true] %s153_s3  ;;  %s176_s24 = int_to_ptr.hbm [resolvable:$true] %s175_s24 }
  0x2b   :  { %156 = dma.hbm_to_vmem [thread:$0]  %s152_s21, 32, %s154_s3, [#allocation18]  }
  0x2c   :  { %s186_s26 = sshll.u32 %s13115_s13, 4  ;;  %s12616_s27 = smov [#allocation22]   ;;  %s187_s26 = int_to_ptr.hbm [resolvable:$true] %s186_s26 }
  0x2d   :  { %s177_s10 = sshll.u32 %s12616_s27, 4  ;;  %s12617_s14 = smov [#allocation23]   ;;  %s178_s10 = int_to_ptr.vmem [resolvable:$true] %s177_s10 }
  0x2e   :  { %180 = dma.hbm_to_vmem [thread:$0]  %s176_s24, 16, %s178_s10, [#allocation21]  }
  0x2f   :  { %s188_s28 = sshll.u32 %s12617_s14, 4  ;;  %s189_s28 = int_to_ptr.vmem [resolvable:$true] %s188_s28 }
  0x30   :  { %191 = dma.hbm_to_vmem [thread:$0]  %s187_s26, 16, %s189_s28, [#allocation24]  }
  0x31   :  { %12580 = dma.done.wait [#allocation4], 576  }
  0x32   :  { %12581 = vsyncadd [#allocation4], 4294966720 }
  0x33   :  { %12582 = dma.done.wait [#allocation6], 73856  }
  0x34   :  { %12583 = vsyncadd [#allocation6], 4294893440 }
  0x35   :  { %12584 = dma.done.wait [#allocation9], 32832  }
  0x36   :  { %12585 = vsyncadd [#allocation9], 4294934464 }
  0x37   :  { %12586 = dma.done.wait [#allocation12], 128  }
  0x38   :  { %12587 = vsyncadd [#allocation12], 4294967168 }
  0x39   :  { %12588 = dma.done.wait [#allocation15], 8224  }
  0x3a   :  { %12589 = vsyncadd [#allocation15], 4294959072 }
  0x3b   :  { %12590 = dma.done.wait [#allocation18], 64  }
  0x3c   :  { %12591 = vsyncadd [#allocation18], 4294967232 }
  0x3d   :  { %12592 = dma.done.wait [#allocation21], 2064  }
  0x3e   :  { %12593 = vsyncadd [#allocation21], 4294965232 }
  0x3f   :  { %12594 = dma.done.wait [#allocation24], 16  }
  0x40   :  { %12595 = vsyncadd [#allocation24], 4294967280  ;;  %v7845_v1 = vld [vmem:[#allocation5 + $0x1c0] sm:$0xf] }
  0x41   :  { %v11334_v2 = vld [vmem:[#allocation5 + $0x1dc] sm:$0xf0] }
  0x42   :  { %v8101_v3 = vld [vmem:[#allocation5 + $0x3c0] sm:$0xf]  ;;  %v7846_v4 = vor.u32 %v11334_v2, %v7845_v1 }
  0x43   :  { %v11398_v5 = vld [vmem:[#allocation5 + $0x3dc] sm:$0xf0] }
  0x44   :  { %v8357_v6 = vld [vmem:[#allocation5 + $0x5c0] sm:$0xf]  ;;  %v8102_v8 = vor.u32 %v11398_v5, %v8101_v3  ;;  %3761 = vmatpush.bf16.msra.mxu0 %v7846_v4 }
  0x45   :  { %v11462_v7 = vld [vmem:[#allocation5 + $0x5dc] sm:$0xf0] }
  0x46   :  { %v8358_v9 = vor.u32 %v11462_v7, %v8357_v6  ;;  %v8613_v10 = vld [vmem:[#allocation5 + $0x7c0] sm:$0xf]  ;;  %3774 = vmatpush.bf16.msra.mxu1 %v8102_v8 }
  0x47   :  { %v11526_v11 = vld [vmem:[#allocation5 + $0x7dc] sm:$0xf0] }
  0x48   :  { %v7813_v12 = vld [vmem:[#allocation5 + $0x180] sm:$0xf]  ;;  %v8614_v13 = vor.u32 %v11526_v11, %v8613_v10  ;;  %3787 = vmatpush.bf16.msra.mxu2 %v8358_v9 }
  0x49   :  { %v11326_v14 = vld [vmem:[#allocation5 + $0x19c] sm:$0xf0] }
  0x4a   :  { %v8069_v15 = vld [vmem:[#allocation5 + $0x380] sm:$0xf]  ;;  %v7814_v17 = vor.u32 %v11326_v14, %v7813_v12  ;;  %3800 = vmatpush.bf16.msra.mxu3 %v8614_v13 }
  0x4b   :  { %v11390_v16 = vld [vmem:[#allocation5 + $0x39c] sm:$0xf0] }
  0x4c   :  { %v8070_v18 = vor.u32 %v11390_v16, %v8069_v15  ;;  %v8325_v19 = vld [vmem:[#allocation5 + $0x580] sm:$0xf]  ;;  %3762 = vmatpush.bf16.msra.mxu0 %v7814_v17 }
  0x4d   :  { %v11454_v20 = vld [vmem:[#allocation5 + $0x59c] sm:$0xf0] }
  0x4e   :  { %v8581_v21 = vld [vmem:[#allocation5 + $0x780] sm:$0xf]  ;;  %v8326_v22 = vor.u32 %v11454_v20, %v8325_v19  ;;  %3775 = vmatpush.bf16.msra.mxu1 %v8070_v18 }
  0x4f   :  { %v11518_v23 = vld [vmem:[#allocation5 + $0x79c] sm:$0xf0] }
  0x50   :  { %v7781_v24 = vld [vmem:[#allocation5 + $0x140] sm:$0xf]  ;;  %v8582_v26 = vor.u32 %v11518_v23, %v8581_v21  ;;  %3788 = vmatpush.bf16.msra.mxu2 %v8326_v22 }
  0x51   :  { %v11318_v25 = vld [vmem:[#allocation5 + $0x15c] sm:$0xf0] }
  0x52   :  { %v8037_v27 = vld [vmem:[#allocation5 + $0x340] sm:$0xf]  ;;  %v7782_v30 = vor.u32 %v11318_v25, %v7781_v24  ;;  %3801 = vmatpush.bf16.msra.mxu3 %v8582_v26 }
  0x53   :  { %v11382_v28 = vld [vmem:[#allocation5 + $0x35c] sm:$0xf0] }
  0x54   :  { %v8293_v29 = vld [vmem:[#allocation5 + $0x540] sm:$0xf]  ;;  %v8038_v34 = vor.u32 %v11382_v28, %v8037_v27  ;;  %3763 = vmatpush.bf16.msra.mxu0 %v7782_v30 }
  0x55   :  { %v11446_v31 = vld [vmem:[#allocation5 + $0x55c] sm:$0xf0] }
  0x56   :  { %v8549_v32 = vld [vmem:[#allocation5 + $0x740] sm:$0xf]  ;;  %v8294_v35 = vor.u32 %v11446_v31, %v8293_v29  ;;  %3776 = vmatpush.bf16.msra.mxu1 %v8038_v34 }
  0x57   :  { %v11510_v33 = vld [vmem:[#allocation5 + $0x75c] sm:$0xf0] }
  0x58   :  { %v7749_v36 = vld [vmem:[#allocation5 + $0x100] sm:$0xf]  ;;  %v8550_v39 = vor.u32 %v11510_v33, %v8549_v32  ;;  %3789 = vmatpush.bf16.msra.mxu2 %v8294_v35 }
  0x59   :  { %v11310_v37 = vld [vmem:[#allocation5 + $0x11c] sm:$0xf0] }
  0x5a   :  { %v8005_v38 = vld [vmem:[#allocation5 + $0x300] sm:$0xf]  ;;  %v7750_v45 = vor.u32 %v11310_v37, %v7749_v36  ;;  %3802 = vmatpush.bf16.msra.mxu3 %v8550_v39 }
  0x5b   :  { %v11374_v40 = vld [vmem:[#allocation5 + $0x31c] sm:$0xf0] }
  0x5c   :  { %v8261_v41 = vld [vmem:[#allocation5 + $0x500] sm:$0xf]  ;;  %v8006_v46 = vor.u32 %v11374_v40, %v8005_v38  ;;  %3764 = vmatpush.bf16.msra.mxu0 %v7750_v45 }
  0x5d   :  { %v11438_v42 = vld [vmem:[#allocation5 + $0x51c] sm:$0xf0] }
  0x5e   :  { %v8517_v43 = vld [vmem:[#allocation5 + $0x700] sm:$0xf]  ;;  %v8262_v47 = vor.u32 %v11438_v42, %v8261_v41  ;;  %3777 = vmatpush.bf16.msra.mxu1 %v8006_v46 }
  0x5f   :  { %v11502_v44 = vld [vmem:[#allocation5 + $0x71c] sm:$0xf0] }
  0x60   :  { %v7717_v48 = vld [vmem:[#allocation5 + $0xc0] sm:$0xf]  ;;  %v8518_v51 = vor.u32 %v11502_v44, %v8517_v43  ;;  %3790 = vmatpush.bf16.msra.mxu2 %v8262_v47 }
  0x61   :  { %v11302_v49 = vld [vmem:[#allocation5 + $0xdc] sm:$0xf0] }
  0x62   :  { %v7973_v50 = vld [vmem:[#allocation5 + $0x2c0] sm:$0xf]  ;;  %v7718_v57 = vor.u32 %v11302_v49, %v7717_v48  ;;  %3803 = vmatpush.bf16.msra.mxu3 %v8518_v51 }
  0x63   :  { %v11366_v52 = vld [vmem:[#allocation5 + $0x2dc] sm:$0xf0] }
  0x64   :  { %v8229_v53 = vld [vmem:[#allocation5 + $0x4c0] sm:$0xf]  ;;  %v7974_v58 = vor.u32 %v11366_v52, %v7973_v50  ;;  %3765 = vmatpush.bf16.msra.mxu0 %v7718_v57 }
  0x65   :  { %v11430_v54 = vld [vmem:[#allocation5 + $0x4dc] sm:$0xf0] }
  0x66   :  { %v8485_v55 = vld [vmem:[#allocation5 + $0x6c0] sm:$0xf]  ;;  %v8230_v59 = vor.u32 %v11430_v54, %v8229_v53  ;;  %3778 = vmatpush.bf16.msra.mxu1 %v7974_v58 }
  0x67   :  { %v11494_v56 = vld [vmem:[#allocation5 + $0x6dc] sm:$0xf0] }
  0x68   :  { %v7685_v60 = vld [vmem:[#allocation5 + $0x80] sm:$0xf]  ;;  %v8486_v63 = vor.u32 %v11494_v56, %v8485_v55  ;;  %3791 = vmatpush.bf16.msra.mxu2 %v8230_v59 }
  0x69   :  { %v11294_v61 = vld [vmem:[#allocation5 + $0x9c] sm:$0xf0] }
  0x6a   :  { %v7941_v62 = vld [vmem:[#allocation5 + $0x280] sm:$0xf]  ;;  %v7686_v5 = vor.u32 %v11294_v61, %v7685_v60  ;;  %3804 = vmatpush.bf16.msra.mxu3 %v8486_v63 }
  0x6b   :  { %v11358_v0 = vld [vmem:[#allocation5 + $0x29c] sm:$0xf0] }
  0x6c   :  { %v8197_v1 = vld [vmem:[#allocation5 + $0x480] sm:$0xf]  ;;  %v7942_v6 = vor.u32 %v11358_v0, %v7941_v62  ;;  %3766 = vmatpush.bf16.msra.mxu0 %v7686_v5 }
  0x6d   :  { %v11422_v2 = vld [vmem:[#allocation5 + $0x49c] sm:$0xf0] }
  0x6e   :  { %v8453_v3 = vld [vmem:[#allocation5 + $0x680] sm:$0xf]  ;;  %v8198_v7 = vor.u32 %v11422_v2, %v8197_v1  ;;  %3779 = vmatpush.bf16.msra.mxu1 %v7942_v6 }
  0x6f   :  { %v11486_v4 = vld [vmem:[#allocation5 + $0x69c] sm:$0xf0] }
  0x70   :  { %v7653_v8 = vld [vmem:[#allocation5 + $0x40] sm:$0xf]  ;;  %v8454_v11 = vor.u32 %v11486_v4, %v8453_v3  ;;  %3792 = vmatpush.bf16.msra.mxu2 %v8198_v7  ;;  %v251_v3 = vld [vmem:[#allocation3 + $0x8] sm:$0xff] }
  0x71   :  { %v11286_v9 = vld [vmem:[#allocation5 + $0x5c] sm:$0xf0] }
  0x72   :  { %v7909_v10 = vld [vmem:[#allocation5 + $0x240] sm:$0xf]  ;;  %v7654_v17 = vor.u32 %v11286_v9, %v7653_v8  ;;  %3805 = vmatpush.bf16.msra.mxu3 %v8454_v11  ;;  %v856_v9 = vunpack.c.l.b16 %v251_v3  ;;  %v857_v11 = vunpack.c.h.b16 %v251_v3 }
  0x73   :  { %v11350_v12 = vld [vmem:[#allocation5 + $0x25c] sm:$0xf0] }
  0x74   :  { %v8165_v13 = vld [vmem:[#allocation5 + $0x440] sm:$0xf]  ;;  %v7910_v20 = vor.u32 %v11350_v12, %v7909_v10  ;;  %3767 = vmatpush.bf16.msra.mxu0 %v7654_v17 }
  0x75   :  { %v11414_v14 = vld [vmem:[#allocation5 + $0x45c] sm:$0xf0] }
  0x76   :  { %v8421_v15 = vld [vmem:[#allocation5 + $0x640] sm:$0xf]  ;;  %v8166_v21 = vor.u32 %v11414_v14, %v8165_v13  ;;  %3780 = vmatpush.bf16.msra.mxu1 %v7910_v20 }
  0x77   :  { %v11478_v16 = vld [vmem:[#allocation5 + $0x65c] sm:$0xf0] }
  0x78   :  { %v7621_v18 = vld [vmem:[#allocation5] sm:$0xf]  ;;  %v8422_v25 = vor.u32 %v11478_v16, %v8421_v15  ;;  %3793 = vmatpush.bf16.msra.mxu2 %v8166_v21  ;;  %v12748_v21 = vpack.c.b16 %v857_v11, %v857_v11  ;;  %v11330_v11 = vld [vmem:[#allocation5 + $0x1c4] sm:$0xf] }
  0x79   :  { %v11278_v19 = vld [vmem:[#allocation5 + $0x1c] sm:$0xf0] }
  0x7a   :  { %v7877_v22 = vld [vmem:[#allocation5 + $0x200] sm:$0xf]  ;;  %v7622_v32 = vor.u32 %v11278_v19, %v7621_v18  ;;  %3806 = vmatpush.bf16.msra.mxu3 %v8422_v25  ;;  %v12744_v19 = vpack.c.b16 %v856_v9, %v856_v9 }
  0x7b   :  { %v11342_v23 = vld [vmem:[#allocation5 + $0x21c] sm:$0xf0] }
  0x7c   :  { %v8133_v24 = vld [vmem:[#allocation5 + $0x400] sm:$0xf]  ;;  %v7878_v36 = vor.u32 %v11342_v23, %v7877_v22  ;;  %3768 = vmatpush.bf16.msra.mxu0 %v7622_v32 }
  0x7d   :  { %v11406_v26 = vld [vmem:[#allocation5 + $0x41c] sm:$0xf0] }
  0x7e   :  { %v8389_v27 = vld [vmem:[#allocation5 + $0x600] sm:$0xf]  ;;  %v8134_v37 = vor.u32 %v11406_v26, %v8133_v24  ;;  %3781 = vmatpush.bf16.msra.mxu1 %v7878_v36 }
  0x7f   :  { %v11470_v28 = vld [vmem:[#allocation5 + $0x61c] sm:$0xf0] }
  0x80   :  { %v8869_v29 = vld [vmem:[#allocation5 + $0x9c0] sm:$0xf]  ;;  %v8390_v40 = vor.u32 %v11470_v28, %v8389_v27  ;;  %3794 = vmatpush.bf16.msra.mxu2 %v8134_v37 }
  0x81   :  { %v11590_v30 = vld [vmem:[#allocation5 + $0x9dc] sm:$0xf0] }
  0x82   :  { %v9125_v31 = vld [vmem:[#allocation5 + $0xbc0] sm:$0xf]  ;;  %v8870_v41 = vor.u32 %v11590_v30, %v8869_v29  ;;  %3807 = vmatpush.bf16.msra.mxu3 %v8390_v40 }
  0x83   :  { %v11654_v33 = vld [vmem:[#allocation5 + $0xbdc] sm:$0xf0]  ;;  %3795 = vmatmul.bf16.vlgmr.msra.gmra.mxu2 %v12744_v19 }
  0x84   :  { %v9381_v34 = vld [vmem:[#allocation5 + $0xdc0] sm:$0xf]  ;;  %v9126_v42 = vor.u32 %v11654_v33, %v9125_v31  ;;  %3813 = vmatpush.bf16.msrb.mxu0 %v8870_v41 }
  0x85   :  { %v11718_v35 = vld [vmem:[#allocation5 + $0xddc] sm:$0xf0]  ;;  %3808 = vmatmul.bf16.vlgmr.msra.gmra.mxu3 %v12748_v21 }
  0x86   :  { %v9637_v38 = vld [vmem:[#allocation5 + $0xfc0] sm:$0xf]  ;;  %v9382_v43 = vor.u32 %v11718_v35, %v9381_v34  ;;  %3826 = vmatpush.bf16.msrb.mxu1 %v9126_v42 }
  0x87   :  { %v11782_v39 = vld [vmem:[#allocation5 + $0xfdc] sm:$0xf0] }
  0x88   :  { %v8837_v44 = vld [vmem:[#allocation5 + $0x980] sm:$0xf]  ;;  %v9638_v47 = vor.u32 %v11782_v39, %v9637_v38  ;;  %3839 = vmatpush.bf16.msrb.mxu2 %v9382_v43 }
  0x89   :  { %v11582_v45 = vld [vmem:[#allocation5 + $0x99c] sm:$0xf0] }
  0x8a   :  { %v9093_v46 = vld [vmem:[#allocation5 + $0xb80] sm:$0xf]  ;;  %v8838_v53 = vor.u32 %v11582_v45, %v8837_v44  ;;  %3852 = vmatpush.bf16.msrb.mxu3 %v9638_v47 }
  0x8b   :  { %v11646_v48 = vld [vmem:[#allocation5 + $0xb9c] sm:$0xf0] }
  0x8c   :  { %v9349_v49 = vld [vmem:[#allocation5 + $0xd80] sm:$0xf]  ;;  %v9094_v55 = vor.u32 %v11646_v48, %v9093_v46  ;;  %3814 = vmatpush.bf16.msrb.mxu0 %v8838_v53 }
  0x8d   :  { %v11710_v50 = vld [vmem:[#allocation5 + $0xd9c] sm:$0xf0] }
  0x8e   :  { %v9605_v51 = vld [vmem:[#allocation5 + $0xf80] sm:$0xf]  ;;  %v9350_v56 = vor.u32 %v11710_v50, %v9349_v49  ;;  %3827 = vmatpush.bf16.msrb.mxu1 %v9094_v55 }
  0x8f   :  { %v11774_v52 = vld [vmem:[#allocation5 + $0xf9c] sm:$0xf0] }
  0x90   :  { %v8805_v54 = vld [vmem:[#allocation5 + $0x940] sm:$0xf]  ;;  %v9606_v60 = vor.u32 %v11774_v52, %v9605_v51  ;;  %3840 = vmatpush.bf16.msrb.mxu2 %v9350_v56 }
  0x91   :  { %v11574_v57 = vld [vmem:[#allocation5 + $0x95c] sm:$0xf0] }
  0x92   :  { %v9061_v58 = vld [vmem:[#allocation5 + $0xb40] sm:$0xf]  ;;  %v8806_v1 = vor.u32 %v11574_v57, %v8805_v54  ;;  %3853 = vmatpush.bf16.msrb.mxu3 %v9606_v60 }
  0x93   :  { %v11638_v59 = vld [vmem:[#allocation5 + $0xb5c] sm:$0xf0] }
  0x94   :  { %v9317_v61 = vld [vmem:[#allocation5 + $0xd40] sm:$0xf]  ;;  %v9062_v2 = vor.u32 %v11638_v59, %v9061_v58  ;;  %3815 = vmatpush.bf16.msrb.mxu0 %v8806_v1 }
  0x95   :  { %v11702_v62 = vld [vmem:[#allocation5 + $0xd5c] sm:$0xf0] }
  0x96   :  { %v9573_v63 = vld [vmem:[#allocation5 + $0xf40] sm:$0xf]  ;;  %v9318_v5 = vor.u32 %v11702_v62, %v9317_v61  ;;  %3828 = vmatpush.bf16.msrb.mxu1 %v9062_v2 }
  0x97   :  { %v11766_v0 = vld [vmem:[#allocation5 + $0xf5c] sm:$0xf0] }
  0x98   :  { %v250_v4 = vld [vmem:[#allocation3] sm:$0xff]  ;;  %v9574_v12 = vor.u32 %v11766_v0, %v9573_v63  ;;  %3841 = vmatpush.bf16.msrb.mxu2 %v9318_v5 }
  0x99   :  { %v8773_v6 = vld [vmem:[#allocation5 + $0x900] sm:$0xf]  ;;  %v854_v10 = vunpack.c.l.b16 %v250_v4  ;;  %v855_v16 = vunpack.c.h.b16 %v250_v4  ;;  %v253_v4 = vld [vmem:[#allocation3 + $0x18] sm:$0xff] }
  0x9a   :  { %v11566_v7 = vld [vmem:[#allocation5 + $0x91c] sm:$0xf0]  ;;  %3854 = vmatpush.bf16.msrb.mxu3 %v9574_v12 }
  0x9b   :  { %v9029_v8 = vld [vmem:[#allocation5 + $0xb00] sm:$0xf]  ;;  %v12746_v20 = vpack.c.b16 %v854_v10, %v854_v10  ;;  %v8774_v22 = vor.u32 %v11566_v7, %v8773_v6  ;;  %v12750_v23 = vpack.c.b16 %v855_v16, %v855_v16  ;;  %v860_v16 = vunpack.c.l.b16 %v253_v4 }
  0x9c   :  { %v11630_v13 = vld [vmem:[#allocation5 + $0xb1c] sm:$0xf0] }
  0x9d   :  { %v9285_v14 = vld [vmem:[#allocation5 + $0xd00] sm:$0xf]  ;;  %v9030_v24 = vor.u32 %v11630_v13, %v9029_v8  ;;  %3769 = vmatmul.bf16.vlgmr.msra.gmra.mxu0 %v12746_v20  ;;  %3782 = vmatmul.bf16.vlgmr.msra.gmra.mxu1 %v12750_v23  ;;  %v252_v8 = vld [vmem:[#allocation3 + $0x10] sm:$0xff]  ;;  %v7847_v13 = vld [vmem:[#allocation5 + $0x1e0] sm:$0xf0] }
  0x9e   :  { %v11694_v15 = vld [vmem:[#allocation5 + $0xd1c] sm:$0xf0]  ;;  %3816 = vmatpush.bf16.msrb.mxu0 %v8774_v22  ;;  %v11458_v22 = vld [vmem:[#allocation5 + $0x5c4] sm:$0xf] }
  0x9f   :  { %v9541_v17 = vld [vmem:[#allocation5 + $0xf00] sm:$0xf]  ;;  %v9286_v25 = vor.u32 %v11694_v15, %v9285_v14  ;;  %3829 = vmatpush.bf16.msrb.mxu1 %v9030_v24  ;;  %v11394_v14 = vld [vmem:[#allocation5 + $0x3c4] sm:$0xf] }
  0xa0   :  { %v11758_v18 = vld [vmem:[#allocation5 + $0xf1c] sm:$0xf0]  ;;  %v8103_v15 = vld [vmem:[#allocation5 + $0x3e0] sm:$0xf0] }
  0xa1   :  { %v8741_v26 = vld [vmem:[#allocation5 + $0x8c0] sm:$0xf]  ;;  %v9542_v29 = vor.u32 %v11758_v18, %v9541_v17  ;;  %3842 = vmatpush.bf16.msrb.mxu2 %v9286_v25  ;;  %v8359_v24 = vld [vmem:[#allocation5 + $0x5e0] sm:$0xf0]  ;;  %v858_v25 = vunpack.c.l.b16 %v252_v8 }
  0xa2   :  { %v11558_v27 = vld [vmem:[#allocation5 + $0x8dc] sm:$0xf0] }
  0xa3   :  { %v8997_v28 = vld [vmem:[#allocation5 + $0xac0] sm:$0xf]  ;;  %v8742_v35 = vor.u32 %v11558_v27, %v8741_v26  ;;  %3855 = vmatpush.bf16.msrb.mxu3 %v9542_v29  ;;  %v861_v26 = vunpack.c.h.b16 %v253_v4  ;;  %v859_v29 = vunpack.c.h.b16 %v252_v8  ;;  %v8263_v4 = vld [vmem:[#allocation5 + $0x520] sm:$0xf0] }
  0xa4   :  { %v11622_v30 = vld [vmem:[#allocation5 + $0xadc] sm:$0xf0] }
  0xa5   :  { %v9253_v31 = vld [vmem:[#allocation5 + $0xcc0] sm:$0xf]  ;;  %v8998_v36 = vor.u32 %v11622_v30, %v8997_v28  ;;  %3817 = vmatpush.bf16.msrb.mxu0 %v8742_v35  ;;  %v7850_v30 = vor.u32 %v11330_v11, %v7847_v13  ;;  %v8362_v35 = vor.u32 %v11458_v22, %v8359_v24  ;;  %v11362_v13 = vld [vmem:[#allocation5 + $0x2c4] sm:$0xf] }
  0xa6   :  { %v11686_v32 = vld [vmem:[#allocation5 + $0xcdc] sm:$0xf0] }
  0xa7   :  { %v9509_v33 = vld [vmem:[#allocation5 + $0xec0] sm:$0xf]  ;;  %v9254_v37 = vor.u32 %v11686_v32, %v9253_v31  ;;  %3830 = vmatpush.bf16.msrb.mxu1 %v8998_v36  ;;  %v8106_v31 = vor.u32 %v11394_v14, %v8103_v15  ;;  %v7815_v36 = vld [vmem:[#allocation5 + $0x1a0] sm:$0xf0] }
  0xa8   :  { %v11750_v34 = vld [vmem:[#allocation5 + $0xedc] sm:$0xf0]  ;;  %v7975_v14 = vld [vmem:[#allocation5 + $0x2e0] sm:$0xf0] }
  0xa9   :  { %v8709_v38 = vld [vmem:[#allocation5 + $0x880] sm:$0xf]  ;;  %v9510_v41 = vor.u32 %v11750_v34, %v9509_v33  ;;  %3843 = vmatpush.bf16.msrb.mxu2 %v9254_v37  ;;  %v11322_v34 = vld [vmem:[#allocation5 + $0x184] sm:$0xf]  ;;  %v7978_v22 = vor.u32 %v11362_v13, %v7975_v14 }
  0xaa   :  { %v11550_v39 = vld [vmem:[#allocation5 + $0x89c] sm:$0xf0]  ;;  %v11386_v37 = vld [vmem:[#allocation5 + $0x384] sm:$0xf] }
  0xab   :  { %v8965_v40 = vld [vmem:[#allocation5 + $0xa80] sm:$0xf]  ;;  %v8710_v47 = vor.u32 %v11550_v39, %v8709_v38  ;;  %3856 = vmatpush.bf16.msrb.mxu3 %v9510_v41  ;;  %v8071_v38 = vld [vmem:[#allocation5 + $0x3a0] sm:$0xf0]  ;;  %v12756_v39 = vpack.c.b16 %v860_v16, %v860_v16 }
  0xac   :  { %v11614_v42 = vld [vmem:[#allocation5 + $0xa9c] sm:$0xf0]  ;;  %v8327_v41 = vld [vmem:[#allocation5 + $0x5a0] sm:$0xf0] }
  0xad   :  { %v9221_v43 = vld [vmem:[#allocation5 + $0xc80] sm:$0xf]  ;;  %v8966_v48 = vor.u32 %v11614_v42, %v8965_v40  ;;  %3818 = vmatpush.bf16.msrb.mxu0 %v8710_v47  ;;  %v11450_v40 = vld [vmem:[#allocation5 + $0x584] sm:$0xf]  ;;  %v12758_v42 = vpack.c.b16 %v858_v25, %v858_v25  ;;  %v8074_v47 = vor.u32 %v11386_v37, %v8071_v38 }
  0xae   :  { %v11678_v44 = vld [vmem:[#allocation5 + $0xc9c] sm:$0xf0]  ;;  %v11426_v15 = vld [vmem:[#allocation5 + $0x4c4] sm:$0xf] }
  0xaf   :  { %v9477_v45 = vld [vmem:[#allocation5 + $0xe80] sm:$0xf]  ;;  %v9222_v49 = vor.u32 %v11678_v44, %v9221_v43  ;;  %3831 = vmatpush.bf16.msrb.mxu1 %v8966_v48  ;;  %v12760_v43 = vpack.c.b16 %v861_v26, %v861_v26  ;;  %v8231_v16 = vld [vmem:[#allocation5 + $0x4e0] sm:$0xf0] }
  0xb0   :  { %v11742_v46 = vld [vmem:[#allocation5 + $0xe9c] sm:$0xf0]  ;;  %v11290_v26 = vld [vmem:[#allocation5 + $0x84] sm:$0xf] }
  0xb1   :  { %v8677_v50 = vld [vmem:[#allocation5 + $0x840] sm:$0xf]  ;;  %v9478_v53 = vor.u32 %v11742_v46, %v9477_v45  ;;  %3844 = vmatpush.bf16.msrb.mxu2 %v9222_v49  ;;  %v12762_v45 = vpack.c.b16 %v859_v29, %v859_v29  ;;  %v7818_v46 = vor.u32 %v11322_v34, %v7815_v36  ;;  %v11354_v29 = vld [vmem:[#allocation5 + $0x284] sm:$0xf] }
  0xb2   :  { %v11542_v51 = vld [vmem:[#allocation5 + $0x85c] sm:$0xf0]  ;;  %v11282_v38 = vld [vmem:[#allocation5 + $0x44] sm:$0xf] }
  0xb3   :  { %v8933_v52 = vld [vmem:[#allocation5 + $0xa40] sm:$0xf]  ;;  %v8678_v60 = vor.u32 %v11542_v51, %v8677_v50  ;;  %3857 = vmatpush.bf16.msrb.mxu3 %v9478_v53  ;;  %v11314_v50 = vld [vmem:[#allocation5 + $0x144] sm:$0xf]  ;;  %v8330_v51 = vor.u32 %v11450_v40, %v8327_v41 }
  0xb4   :  { %v11606_v54 = vld [vmem:[#allocation5 + $0xa5c] sm:$0xf0]  ;;  %v11378_v53 = vld [vmem:[#allocation5 + $0x344] sm:$0xf] }
  0xb5   :  { %v9189_v55 = vld [vmem:[#allocation5 + $0xc40] sm:$0xf]  ;;  %v8934_v0 = vor.u32 %v11606_v54, %v8933_v52  ;;  %3819 = vmatpush.bf16.msrb.mxu0 %v8678_v60  ;;  %v7783_v52 = vld [vmem:[#allocation5 + $0x160] sm:$0xf0] }
  0xb6   :  { %v11670_v56 = vld [vmem:[#allocation5 + $0xc5c] sm:$0xf0]  ;;  %v8039_v54 = vld [vmem:[#allocation5 + $0x360] sm:$0xf0] }
  0xb7   :  { %v9445_v57 = vld [vmem:[#allocation5 + $0xe40] sm:$0xf]  ;;  %v9190_v1 = vor.u32 %v11670_v56, %v9189_v55  ;;  %3832 = vmatpush.bf16.msrb.mxu1 %v8934_v0  ;;  %v11442_v55 = vld [vmem:[#allocation5 + $0x544] sm:$0xf] }
  0xb8   :  { %v11734_v58 = vld [vmem:[#allocation5 + $0xe5c] sm:$0xf0]  ;;  %v8295_v56 = vld [vmem:[#allocation5 + $0x560] sm:$0xf0] }
  0xb9   :  { %v8645_v59 = vld [vmem:[#allocation5 + $0x800] sm:$0xf]  ;;  %v9446_v5 = vor.u32 %v11734_v58, %v9445_v57  ;;  %3845 = vmatpush.bf16.msrb.mxu2 %v9190_v1  ;;  %v7786_v58 = vor.u32 %v11314_v50, %v7783_v52  ;;  %v7751_v0 = vld [vmem:[#allocation5 + $0x120] sm:$0xf0] }
  0xba   :  { %v11534_v61 = vld [vmem:[#allocation5 + $0x81c] sm:$0xf0]  ;;  %v11370_v1 = vld [vmem:[#allocation5 + $0x304] sm:$0xf] }
  0xbb   :  { %v8901_v62 = vld [vmem:[#allocation5 + $0xa00] sm:$0xf]  ;;  %v8646_v12 = vor.u32 %v11534_v61, %v8645_v59  ;;  %3858 = vmatpush.bf16.msrb.mxu3 %v9446_v5  ;;  %v8042_v59 = vor.u32 %v11378_v53, %v8039_v54  ;;  %v7655_v40 = vld [vmem:[#allocation5 + $0x60] sm:$0xf0] }
  0xbc   :  { %v11598_v63 = vld [vmem:[#allocation5 + $0xa1c] sm:$0xf0]  ;;  %v11274_v52 = vld [vmem:[#allocation5 + $0x4] sm:$0xf]  ;;  %v7658_v53 = vor.u32 %v11282_v38, %v7655_v40 }
  0xbd   :  { %v9157_v2 = vld [vmem:[#allocation5 + $0xc00] sm:$0xf]  ;;  %v8902_v17 = vor.u32 %v11598_v63, %v8901_v62  ;;  %3820 = vmatpush.bf16.msrb.mxu0 %v8646_v12  ;;  %v11306_v62 = vld [vmem:[#allocation5 + $0x104] sm:$0xf]  ;;  %v8298_v63 = vor.u32 %v11442_v55, %v8295_v56 }
  0xbe   :  { %v11662_v3 = vld [vmem:[#allocation5 + $0xc1c] sm:$0xf0]  ;;  %v7719_v12 = vld [vmem:[#allocation5 + $0xe0] sm:$0xf0] }
  0xbf   :  { %v9413_v6 = vld [vmem:[#allocation5 + $0xe00] sm:$0xf]  ;;  %v9158_v18 = vor.u32 %v11662_v3, %v9157_v2  ;;  %3833 = vmatpush.bf16.msrb.mxu1 %v8902_v17  ;;  %v8007_v2 = vld [vmem:[#allocation5 + $0x320] sm:$0xf0] }
  0xc0   :  { %v11726_v7 = vld [vmem:[#allocation5 + $0xe1c] sm:$0xf0]  ;;  %3821 = vmatmul.bf16.vlgmr.msrb.gmra.mxu0 %v12758_v42  ;;  %v11434_v3 = vld [vmem:[#allocation5 + $0x504] sm:$0xf] }
  0xc1   :  { %v9893_v9 = vld [vmem:[#allocation5 + $0x11c0] sm:$0xf]  ;;  %v9414_v27 = vor.u32 %v11726_v7, %v9413_v6  ;;  %3846 = vmatpush.bf16.msrb.mxu2 %v9158_v18  ;;  %v7754_v6 = vor.u32 %v11306_v62, %v7751_v0  ;;  %v8010_v7 = vor.u32 %v11370_v1, %v8007_v2  ;;  %v8266_v11 = vor.u32 %v11434_v3, %v8263_v4  ;;  %v7623_v55 = vld [vmem:[#allocation5 + $0x20] sm:$0xf0] }
  0xc2   :  { %v11846_v10 = vld [vmem:[#allocation5 + $0x11dc] sm:$0xf0]  ;;  %3834 = vmatmul.bf16.vlgmr.msrb.gmra.mxu1 %v12762_v45  ;;  %v11338_v56 = vld [vmem:[#allocation5 + $0x204] sm:$0xf] }
  0xc3   :  { %v9894_v28 = vor.u32 %v11846_v10, %v9893_v9  ;;  %v9861_v32 = vld [vmem:[#allocation5 + $0x1180] sm:$0xf]  ;;  %3859 = vmatpush.bf16.msrb.mxu3 %v9414_v27  ;;  %3878 = vmatpush.bf16.msra.mxu1 %v7850_v30  ;;  %v11298_v10 = vld [vmem:[#allocation5 + $0xc4] sm:$0xf]  ;;  %v8234_v27 = vor.u32 %v11426_v15, %v8231_v16 }
  0xc4   :  { %v11838_v33 = vld [vmem:[#allocation5 + $0x119c] sm:$0xf0]  ;;  %3847 = vmatmul.bf16.vlgmr.msrb.gmra.mxu2 %v12756_v39  ;;  %v7722_v18 = vor.u32 %v11298_v10, %v7719_v12  ;;  %v7943_v30 = vld [vmem:[#allocation5 + $0x2a0] sm:$0xf0] }
  0xc5   :  { %3865 = vmatpush.bf16.msra.mxu0 %v9894_v28  ;;  %v9862_v44 = vor.u32 %v11838_v33, %v9861_v32  ;;  %3891 = vmatpush.bf16.msra.mxu2 %v8106_v31  ;;  %v9829_v48 = vld [vmem:[#allocation5 + $0x1140] sm:$0xf]  ;;  %v7687_v28 = vld [vmem:[#allocation5 + $0xa0] sm:$0xf0]  ;;  %v7946_v36 = vor.u32 %v11354_v29, %v7943_v30 }
  0xc6   :  { %v11830_v49 = vld [vmem:[#allocation5 + $0x115c] sm:$0xf0]  ;;  %3860 = vmatmul.bf16.vlgmr.msrb.gmra.mxu3 %v12760_v43  ;;  %v11418_v31 = vld [vmem:[#allocation5 + $0x484] sm:$0xf] }
  0xc7   :  { %3904 = vmatpush.bf16.msra.mxu3 %v8362_v35  ;;  %v9830_v57 = vor.u32 %v11830_v49, %v9829_v48  ;;  %3879 = vmatpush.bf16.msra.mxu1 %v7818_v46  ;;  %v9797_v60 = vld [vmem:[#allocation5 + $0x1100] sm:$0xf]  ;;  %v8199_v32 = vld [vmem:[#allocation5 + $0x4a0] sm:$0xf0]  ;;  %v7690_v35 = vor.u32 %v11290_v26, %v7687_v28 }
  0xc8   :  { %v11822_v61 = vld [vmem:[#allocation5 + $0x111c] sm:$0xf0]  ;;  %v8202_v41 = vor.u32 %v11418_v31, %v8199_v32  ;;  %v7911_v46 = vld [vmem:[#allocation5 + $0x260] sm:$0xf0] }
  0xc9   :  { %3866 = vmatpush.bf16.msra.mxu0 %v9862_v44  ;;  %3892 = vmatpush.bf16.msra.mxu2 %v8074_v47  ;;  %v9798_v5 = vor.u32 %v11822_v61, %v9797_v60  ;;  %v9765_v8 = vld [vmem:[#allocation5 + $0x10c0] sm:$0xf]  ;;  %v11346_v44 = vld [vmem:[#allocation5 + $0x244] sm:$0xf] }
  0xca   :  { %v11814_v9 = vld [vmem:[#allocation5 + $0x10dc] sm:$0xf0]  ;;  %v11410_v47 = vld [vmem:[#allocation5 + $0x444] sm:$0xf]  ;;  %v7914_v54 = vor.u32 %v11346_v44, %v7911_v46 }
  0xcb   :  { %3905 = vmatpush.bf16.msra.mxu3 %v8330_v51  ;;  %3880 = vmatpush.bf16.msra.mxu1 %v7786_v58  ;;  %v9766_v17 = vor.u32 %v11814_v9, %v9765_v8  ;;  %v9733_v24 = vld [vmem:[#allocation5 + $0x1080] sm:$0xf]  ;;  %v8167_v48 = vld [vmem:[#allocation5 + $0x460] sm:$0xf0] }
  0xcc   :  { %v11806_v25 = vld [vmem:[#allocation5 + $0x109c] sm:$0xf0]  ;;  %v8170_v58 = vor.u32 %v11410_v47, %v8167_v48  ;;  %v11402_v60 = vld [vmem:[#allocation5 + $0x404] sm:$0xf] }
  0xcd   :  { %3867 = vmatpush.bf16.msra.mxu0 %v9830_v57  ;;  %3893 = vmatpush.bf16.msra.mxu2 %v8042_v59  ;;  %v9734_v33 = vor.u32 %v11806_v25, %v9733_v24  ;;  %v9701_v34 = vld [vmem:[#allocation5 + $0x1040] sm:$0xf]  ;;  %v254_v57 = vld [vmem:[#allocation3 + $0x20] sm:$0xf]  ;;  %v7879_v59 = vld [vmem:[#allocation5 + $0x220] sm:$0xf0] }
  0xce   :  { %v11798_v37 = vld [vmem:[#allocation5 + $0x105c] sm:$0xf0]  ;;  %v8135_v61 = vld [vmem:[#allocation5 + $0x420] sm:$0xf0] }
  0xcf   :  { %3906 = vmatpush.bf16.msra.mxu3 %v8298_v63  ;;  %3881 = vmatpush.bf16.msra.mxu1 %v7754_v6  ;;  %v9702_v49 = vor.u32 %v11798_v37, %v9701_v34  ;;  %v9669_v50 = vld [vmem:[#allocation5 + $0x1000] sm:$0xf]  ;;  %v11522_v62 = vld [vmem:[#allocation5 + $0x7c4] sm:$0xf]  ;;  %v7626_v6 = vor.u32 %v11274_v52, %v7623_v55  ;;  %v8138_v10 = vor.u32 %v11402_v60, %v8135_v61 }
  0xd0   :  { %v11790_v51 = vld [vmem:[#allocation5 + $0x101c] sm:$0xf0]  ;;  %v8615_v63 = vld [vmem:[#allocation5 + $0x7e0] sm:$0xf0] }
  0xd1   :  { %3868 = vmatpush.bf16.msra.mxu0 %v9798_v5  ;;  %3894 = vmatpush.bf16.msra.mxu2 %v8010_v7  ;;  %v11586_v0 = vld [vmem:[#allocation5 + $0x9c4] sm:$0xf]  ;;  %v9670_v1 = vor.u32 %v11790_v51, %v9669_v50  ;;  %v862_v5 = vunpack.c.l.b16 %v254_v57  ;;  %v7882_v7 = vor.u32 %v11338_v56, %v7879_v59 }
  0xd2   :  { %v8871_v2 = vld [vmem:[#allocation5 + $0x9e0] sm:$0xf0] }
  0xd3   :  { %3907 = vmatpush.bf16.msra.mxu3 %v8266_v11  ;;  %3882 = vmatpush.bf16.msra.mxu1 %v7722_v18  ;;  %v11650_v3 = vld [vmem:[#allocation5 + $0xbc4] sm:$0xf]  ;;  %v8618_v11 = vor.u32 %v11522_v62, %v8615_v63  ;;  %v8874_v12 = vor.u32 %v11586_v0, %v8871_v2  ;;  %v12768_v18 = vpack.c.b16 %v862_v5, %v862_v5 }
  0xd4   :  { %v9127_v4 = vld [vmem:[#allocation5 + $0xbe0] sm:$0xf0] }
  0xd5   :  { %3869 = vmatpush.bf16.msra.mxu0 %v9766_v17  ;;  %3895 = vmatpush.bf16.msra.mxu2 %v7978_v22  ;;  %v11714_v8 = vld [vmem:[#allocation5 + $0xdc4] sm:$0xf]  ;;  %v9130_v13 = vor.u32 %v11650_v3, %v9127_v4 }
  0xd6   :  { %v9383_v9 = vld [vmem:[#allocation5 + $0xde0] sm:$0xf0] }
  0xd7   :  { %3908 = vmatpush.bf16.msra.mxu3 %v8234_v27  ;;  %3883 = vmatpush.bf16.msra.mxu1 %v7690_v35  ;;  %v11514_v14 = vld [vmem:[#allocation5 + $0x784] sm:$0xf]  ;;  %v9386_v17 = vor.u32 %v11714_v8, %v9383_v9 }
  0xd8   :  { %v8583_v15 = vld [vmem:[#allocation5 + $0x7a0] sm:$0xf0] }
  0xd9   :  { %3870 = vmatpush.bf16.msra.mxu0 %v9734_v33  ;;  %3896 = vmatpush.bf16.msra.mxu2 %v7946_v36  ;;  %v11578_v16 = vld [vmem:[#allocation5 + $0x984] sm:$0xf]  ;;  %v8586_v28 = vor.u32 %v11514_v14, %v8583_v15 }
  0xda   :  { %v8839_v22 = vld [vmem:[#allocation5 + $0x9a0] sm:$0xf0] }
  0xdb   :  { %3909 = vmatpush.bf16.msra.mxu3 %v8202_v41  ;;  %3884 = vmatpush.bf16.msra.mxu1 %v7658_v53  ;;  %v11642_v24 = vld [vmem:[#allocation5 + $0xb84] sm:$0xf]  ;;  %v8842_v29 = vor.u32 %v11578_v16, %v8839_v22 }
  0xdc   :  { %v9095_v25 = vld [vmem:[#allocation5 + $0xba0] sm:$0xf0] }
  0xdd   :  { %3871 = vmatpush.bf16.msra.mxu0 %v9702_v49  ;;  %3897 = vmatpush.bf16.msra.mxu2 %v7914_v54  ;;  %v11706_v26 = vld [vmem:[#allocation5 + $0xd84] sm:$0xf]  ;;  %v9098_v30 = vor.u32 %v11642_v24, %v9095_v25 }
  0xde   :  { %v9351_v27 = vld [vmem:[#allocation5 + $0xda0] sm:$0xf0] }
  0xdf   :  { %3910 = vmatpush.bf16.msra.mxu3 %v8170_v58  ;;  %3885 = vmatpush.bf16.msra.mxu1 %v7626_v6  ;;  %v11506_v31 = vld [vmem:[#allocation5 + $0x744] sm:$0xf]  ;;  %v9354_v34 = vor.u32 %v11706_v26, %v9351_v27 }
  0xe0   :  { %v8551_v32 = vld [vmem:[#allocation5 + $0x760] sm:$0xf0] }
  0xe1   :  { %3872 = vmatpush.bf16.msra.mxu0 %v9670_v1  ;;  %3898 = vmatpush.bf16.msra.mxu2 %v7882_v7  ;;  %v11570_v33 = vld [vmem:[#allocation5 + $0x944] sm:$0xf]  ;;  %v8554_v41 = vor.u32 %v11506_v31, %v8551_v32 }
  0xe2   :  { %v8807_v35 = vld [vmem:[#allocation5 + $0x960] sm:$0xf0]  ;;  %3886 = vmatmul.bf16.vlgmr.msra.gmra.mxu1 %v12746_v20 }
  0xe3   :  { %3911 = vmatpush.bf16.msra.mxu3 %v8138_v10  ;;  %3930 = vmatpush.bf16.msrb.mxu1 %v8874_v12  ;;  %v11634_v36 = vld [vmem:[#allocation5 + $0xb44] sm:$0xf]  ;;  %v8810_v44 = vor.u32 %v11570_v33, %v8807_v35 }
  0xe4   :  { %3873 = vmatmul.bf16.vlgmr.msra.gmra.mxu0 %v12768_v18  ;;  %v9063_v37 = vld [vmem:[#allocation5 + $0xb60] sm:$0xf0]  ;;  %3899 = vmatmul.bf16.vlgmr.msra.gmra.mxu2 %v12750_v23 }
  0xe5   :  { %3917 = vmatpush.bf16.msrb.mxu0 %v8618_v11  ;;  %3943 = vmatpush.bf16.msrb.mxu2 %v9130_v13  ;;  %v11698_v38 = vld [vmem:[#allocation5 + $0xd44] sm:$0xf]  ;;  %v9066_v46 = vor.u32 %v11634_v36, %v9063_v37 }
  0xe6   :  { %v9319_v40 = vld [vmem:[#allocation5 + $0xd60] sm:$0xf0]  ;;  %3912 = vmatmul.bf16.vlgmr.msra.gmra.mxu3 %v12744_v19 }
  0xe7   :  { %3956 = vmatpush.bf16.msrb.mxu3 %v9386_v17  ;;  %3931 = vmatpush.bf16.msrb.mxu1 %v8842_v29  ;;  %v11498_v47 = vld [vmem:[#allocation5 + $0x704] sm:$0xf]  ;;  %v9322_v50 = vor.u32 %v11698_v38, %v9319_v40 }
  0xe8   :  { %v8519_v48 = vld [vmem:[#allocation5 + $0x720] sm:$0xf0] }
  0xe9   :  { %3918 = vmatpush.bf16.msrb.mxu0 %v8586_v28  ;;  %3944 = vmatpush.bf16.msrb.mxu2 %v9098_v30  ;;  %v11562_v49 = vld [vmem:[#allocation5 + $0x904] sm:$0xf]  ;;  %v8522_v56 = vor.u32 %v11498_v47, %v8519_v48 }
  0xea   :  { %v8775_v51 = vld [vmem:[#allocation5 + $0x920] sm:$0xf0] }
  0xeb   :  { %3957 = vmatpush.bf16.msrb.mxu3 %v9354_v34  ;;  %v11626_v52 = vld [vmem:[#allocation5 + $0xb04] sm:$0xf]  ;;  %3932 = vmatpush.bf16.msrb.mxu1 %v8810_v44  ;;  %v8778_v57 = vor.u32 %v11562_v49, %v8775_v51 }
  0xec   :  { %v9031_v53 = vld [vmem:[#allocation5 + $0xb20] sm:$0xf0] }
  0xed   :  { %v11690_v54 = vld [vmem:[#allocation5 + $0xd04] sm:$0xf]  ;;  %3919 = vmatpush.bf16.msrb.mxu0 %v8554_v41  ;;  %3945 = vmatpush.bf16.msrb.mxu2 %v9066_v46  ;;  %v9034_v58 = vor.u32 %v11626_v52, %v9031_v53 }
  0xee   :  { %v9287_v55 = vld [vmem:[#allocation5 + $0xd20] sm:$0xf0] }
  0xef   :  { %v11490_v59 = vld [vmem:[#allocation5 + $0x6c4] sm:$0xf]  ;;  %3958 = vmatpush.bf16.msrb.mxu3 %v9322_v50  ;;  %v9290_v62 = vor.u32 %v11690_v54, %v9287_v55  ;;  %3933 = vmatpush.bf16.msrb.mxu1 %v8778_v57  ;;  %v7853_v54 = vld [vmem:[#allocation5 + $0x1c8] sm:$0xf] }
  0xf0   :  { %v8487_v60 = vld [vmem:[#allocation5 + $0x6e0] sm:$0xf0]  ;;  %v11335_v55 = vld [vmem:[#allocation5 + $0x1e4] sm:$0xf0] }
  0xf1   :  { %v11554_v61 = vld [vmem:[#allocation5 + $0x8c4] sm:$0xf]  ;;  %3920 = vmatpush.bf16.msrb.mxu0 %v8522_v56  ;;  %v8490_v4 = vor.u32 %v11490_v59, %v8487_v60  ;;  %3946 = vmatpush.bf16.msrb.mxu2 %v9034_v58  ;;  %v8109_v58 = vld [vmem:[#allocation5 + $0x3c8] sm:$0xf] }
  0xf2   :  { %v8743_v63 = vld [vmem:[#allocation5 + $0x8e0] sm:$0xf0]  ;;  %v11399_v59 = vld [vmem:[#allocation5 + $0x3e4] sm:$0xf0] }
  0xf3   :  { %v11618_v0 = vld [vmem:[#allocation5 + $0xac4] sm:$0xf]  ;;  %v8746_v5 = vor.u32 %v11554_v61, %v8743_v63  ;;  %3959 = vmatpush.bf16.msrb.mxu3 %v9290_v62  ;;  %v7854_v63 = vor.u32 %v11335_v55, %v7853_v54 }
  0xf4   :  { %v8999_v1 = vld [vmem:[#allocation5 + $0xae0] sm:$0xf0] }
  0xf5   :  { %v11682_v2 = vld [vmem:[#allocation5 + $0xcc4] sm:$0xf]  ;;  %v9002_v6 = vor.u32 %v11618_v0, %v8999_v1  ;;  %3921 = vmatpush.bf16.msrb.mxu0 %v8490_v4  ;;  %3934 = vmatpush.bf16.msrb.mxu1 %v8746_v5  ;;  %v7821_v5 = vld [vmem:[#allocation5 + $0x188] sm:$0xf] }
  0xf6   :  { %v9255_v3 = vld [vmem:[#allocation5 + $0xce0] sm:$0xf0] }
  0xf7   :  { %v11482_v7 = vld [vmem:[#allocation5 + $0x684] sm:$0xf]  ;;  %v9258_v10 = vor.u32 %v11682_v2, %v9255_v3  ;;  %3947 = vmatpush.bf16.msrb.mxu2 %v9002_v6  ;;  %v8110_v3 = vor.u32 %v11399_v59, %v8109_v58  ;;  %v11327_v6 = vld [vmem:[#allocation5 + $0x1a4] sm:$0xf0] }
  0xf8   :  { %v8455_v8 = vld [vmem:[#allocation5 + $0x6a0] sm:$0xf0] }
  0xf9   :  { %v11546_v9 = vld [vmem:[#allocation5 + $0x884] sm:$0xf]  ;;  %v8458_v16 = vor.u32 %v11482_v7, %v8455_v8  ;;  %3960 = vmatpush.bf16.msrb.mxu3 %v9258_v10  ;;  %v8077_v7 = vld [vmem:[#allocation5 + $0x388] sm:$0xf] }
  0xfa   :  { %v8711_v11 = vld [vmem:[#allocation5 + $0x8a0] sm:$0xf0]  ;;  %v11391_v8 = vld [vmem:[#allocation5 + $0x3a4] sm:$0xf0] }
  0xfb   :  { %v11610_v12 = vld [vmem:[#allocation5 + $0xa84] sm:$0xf]  ;;  %v8714_v17 = vor.u32 %v11546_v9, %v8711_v11  ;;  %3922 = vmatpush.bf16.msrb.mxu0 %v8458_v16  ;;  %v7822_v11 = vor.u32 %v11327_v6, %v7821_v5 }
  0xfc   :  { %v8967_v13 = vld [vmem:[#allocation5 + $0xaa0] sm:$0xf0] }
  0xfd   :  { %v11674_v14 = vld [vmem:[#allocation5 + $0xc84] sm:$0xf]  ;;  %v8970_v22 = vor.u32 %v11610_v12, %v8967_v13  ;;  %3935 = vmatpush.bf16.msrb.mxu1 %v8714_v17  ;;  %v7789_v17 = vld [vmem:[#allocation5 + $0x148] sm:$0xf] }
  0xfe   :  { %v9223_v15 = vld [vmem:[#allocation5 + $0xca0] sm:$0xf0] }
  0xff   :  { %v11474_v24 = vld [vmem:[#allocation5 + $0x644] sm:$0xf]  ;;  %v9226_v27 = vor.u32 %v11674_v14, %v9223_v15  ;;  %3948 = vmatpush.bf16.msrb.mxu2 %v8970_v22  ;;  %v8078_v15 = vor.u32 %v11391_v8, %v8077_v7  ;;  %v11319_v22 = vld [vmem:[#allocation5 + $0x164] sm:$0xf0] }
 0x100   :  { %v8423_v25 = vld [vmem:[#allocation5 + $0x660] sm:$0xf0] }
 0x101   :  { %v11538_v26 = vld [vmem:[#allocation5 + $0x844] sm:$0xf]  ;;  %v8426_v33 = vor.u32 %v11474_v24, %v8423_v25  ;;  %3961 = vmatpush.bf16.msrb.mxu3 %v9226_v27  ;;  %v8045_v24 = vld [vmem:[#allocation5 + $0x348] sm:$0xf] }
 0x102   :  { %v8679_v28 = vld [vmem:[#allocation5 + $0x860] sm:$0xf0]  ;;  %v11383_v25 = vld [vmem:[#allocation5 + $0x364] sm:$0xf0] }
 0x103   :  { %v11602_v29 = vld [vmem:[#allocation5 + $0xa44] sm:$0xf]  ;;  %v8682_v36 = vor.u32 %v11538_v26, %v8679_v28  ;;  %3923 = vmatpush.bf16.msrb.mxu0 %v8426_v33  ;;  %v7790_v28 = vor.u32 %v11319_v22, %v7789_v17 }
 0x104   :  { %v8935_v30 = vld [vmem:[#allocation5 + $0xa60] sm:$0xf0] }
 0x105   :  { %v11666_v31 = vld [vmem:[#allocation5 + $0xc44] sm:$0xf]  ;;  %v8938_v37 = vor.u32 %v11602_v29, %v8935_v30  ;;  %3936 = vmatpush.bf16.msrb.mxu1 %v8682_v36  ;;  %v8013_v36 = vld [vmem:[#allocation5 + $0x308] sm:$0xf] }
 0x106   :  { %v9191_v32 = vld [vmem:[#allocation5 + $0xc60] sm:$0xf0] }
 0x107   :  { %v11466_v34 = vld [vmem:[#allocation5 + $0x604] sm:$0xf]  ;;  %v9194_v44 = vor.u32 %v11666_v31, %v9191_v32  ;;  %3949 = vmatpush.bf16.msrb.mxu2 %v8938_v37  ;;  %v8046_v32 = vor.u32 %v11383_v25, %v8045_v24  ;;  %v11375_v37 = vld [vmem:[#allocation5 + $0x324] sm:$0xf0] }
 0x108   :  { %v8391_v35 = vld [vmem:[#allocation5 + $0x620] sm:$0xf0] }
 0x109   :  { %v11530_v38 = vld [vmem:[#allocation5 + $0x804] sm:$0xf]  ;;  %v8394_v52 = vor.u32 %v11466_v34, %v8391_v35  ;;  %3962 = vmatpush.bf16.msrb.mxu3 %v9194_v44  ;;  %v7757_v34 = vld [vmem:[#allocation5 + $0x108] sm:$0xf] }
 0x10a   :  { %v8647_v40 = vld [vmem:[#allocation5 + $0x820] sm:$0xf0]  ;;  %v11311_v35 = vld [vmem:[#allocation5 + $0x124] sm:$0xf0] }
 0x10b   :  { %v11594_v41 = vld [vmem:[#allocation5 + $0xa04] sm:$0xf]  ;;  %v8650_v56 = vor.u32 %v11530_v38, %v8647_v40  ;;  %3924 = vmatpush.bf16.msrb.mxu0 %v8394_v52  ;;  %v7981_v52 = vld [vmem:[#allocation5 + $0x2c8] sm:$0xf] }
 0x10c   :  { %v8903_v46 = vld [vmem:[#allocation5 + $0xa20] sm:$0xf0] }
 0x10d   :  { %v11658_v47 = vld [vmem:[#allocation5 + $0xc04] sm:$0xf]  ;;  %v8906_v57 = vor.u32 %v11594_v41, %v8903_v46  ;;  %3937 = vmatpush.bf16.msrb.mxu1 %v8650_v56  ;;  %v7758_v41 = vor.u32 %v11311_v35, %v7757_v34  ;;  %v11527_v35 = vld [vmem:[#allocation5 + $0x7e4] sm:$0xf0] }
 0x10e   :  { %v9159_v48 = vld [vmem:[#allocation5 + $0xc20] sm:$0xf0]  ;;  %3925 = vmatmul.bf16.vlgmr.msrb.gmra.mxu0 %v12748_v21 }
 0x10f   :  { %v11778_v49 = vld [vmem:[#allocation5 + $0xfc4] sm:$0xf]  ;;  %v9162_v60 = vor.u32 %v11658_v47, %v9159_v48  ;;  %3950 = vmatpush.bf16.msrb.mxu2 %v8906_v57  ;;  %v8014_v48 = vor.u32 %v11375_v37, %v8013_v36  ;;  %v8877_v36 = vld [vmem:[#allocation5 + $0x9c8] sm:$0xf] }
 0x110   :  { %v9639_v50 = vld [vmem:[#allocation5 + $0xfe0] sm:$0xf0]  ;;  %3938 = vmatmul.bf16.vlgmr.msrb.gmra.mxu1 %v12758_v42  ;;  %v11591_v37 = vld [vmem:[#allocation5 + $0x9e4] sm:$0xf0] }
 0x111   :  { %v11842_v51 = vld [vmem:[#allocation5 + $0x11c4] sm:$0xf]  ;;  %v9642_v61 = vor.u32 %v11778_v49, %v9639_v50  ;;  %3963 = vmatpush.bf16.msrb.mxu3 %v9162_v60  ;;  %v7725_v50 = vld [vmem:[#allocation5 + $0xc8] sm:$0xf] }
 0x112   :  { %v9895_v53 = vld [vmem:[#allocation5 + $0x11e0] sm:$0xf0]  ;;  %3951 = vmatmul.bf16.vlgmr.msrb.gmra.mxu2 %v12762_v45 }
 0x113   :  { %v9898_v62 = vor.u32 %v11842_v51, %v9895_v53  ;;  %v11770_v0 = vld [vmem:[#allocation5 + $0xf84] sm:$0xf]  ;;  %3969 = vmatpush.bf16.msra.mxu0 %v9642_v61  ;;  %3995 = vmatpush.bf16.msra.mxu2 %v7854_v63  ;;  %v11303_v51 = vld [vmem:[#allocation5 + $0xe4] sm:$0xf0] }
 0x114   :  { %v9607_v1 = vld [vmem:[#allocation5 + $0xfa0] sm:$0xf0]  ;;  %3964 = vmatmul.bf16.vlgmr.msrb.gmra.mxu3 %v12756_v39  ;;  %v11367_v53 = vld [vmem:[#allocation5 + $0x2e4] sm:$0xf0]  ;;  %v7726_v56 = vor.u32 %v11303_v51, %v7725_v50 }
 0x115   :  { %v11834_v2 = vld [vmem:[#allocation5 + $0x1184] sm:$0xf]  ;;  %v9610_v9 = vor.u32 %v11770_v0, %v9607_v1  ;;  %3982 = vmatpush.bf16.msra.mxu1 %v9898_v62  ;;  %4008 = vmatpush.bf16.msra.mxu3 %v8110_v3  ;;  %v7982_v60 = vor.u32 %v11367_v53, %v7981_v52  ;;  %v7693_v62 = vld [vmem:[#allocation5 + $0x88] sm:$0xf] }
 0x116   :  { %v9863_v4 = vld [vmem:[#allocation5 + $0x11a0] sm:$0xf0]  ;;  %v11295_v63 = vld [vmem:[#allocation5 + $0xa4] sm:$0xf0] }
 0x117   :  { %v9866_v10 = vor.u32 %v11834_v2, %v9863_v4  ;;  %v11762_v12 = vld [vmem:[#allocation5 + $0xf44] sm:$0xf]  ;;  %3970 = vmatpush.bf16.msra.mxu0 %v9610_v9  ;;  %3996 = vmatpush.bf16.msra.mxu2 %v7822_v11  ;;  %v7949_v0 = vld [vmem:[#allocation5 + $0x288] sm:$0xf]  ;;  %v7694_v4 = vor.u32 %v11295_v63, %v7693_v62 }
 0x118   :  { %v9575_v13 = vld [vmem:[#allocation5 + $0xf60] sm:$0xf0]  ;;  %v11359_v1 = vld [vmem:[#allocation5 + $0x2a4] sm:$0xf0] }
 0x119   :  { %v11826_v14 = vld [vmem:[#allocation5 + $0x1144] sm:$0xf]  ;;  %v9578_v26 = vor.u32 %v11762_v12, %v9575_v13  ;;  %3983 = vmatpush.bf16.msra.mxu1 %v9866_v10  ;;  %4009 = vmatpush.bf16.msra.mxu3 %v8078_v15  ;;  %v7950_v8 = vor.u32 %v11359_v1, %v7949_v0  ;;  %v7661_v10 = vld [vmem:[#allocation5 + $0x48] sm:$0xf] }
 0x11a   :  { %v9831_v16 = vld [vmem:[#allocation5 + $0x1160] sm:$0xf0]  ;;  %v11287_v11 = vld [vmem:[#allocation5 + $0x64] sm:$0xf0] }
 0x11b   :  { %v9834_v27 = vor.u32 %v11826_v14, %v9831_v16  ;;  %v11754_v29 = vld [vmem:[#allocation5 + $0xf04] sm:$0xf]  ;;  %3971 = vmatpush.bf16.msra.mxu0 %v9578_v26  ;;  %3997 = vmatpush.bf16.msra.mxu2 %v7790_v28  ;;  %v7917_v12 = vld [vmem:[#allocation5 + $0x248] sm:$0xf]  ;;  %v7662_v22 = vor.u32 %v11287_v11, %v7661_v10 }
 0x11c   :  { %v9543_v30 = vld [vmem:[#allocation5 + $0xf20] sm:$0xf0]  ;;  %v11351_v13 = vld [vmem:[#allocation5 + $0x264] sm:$0xf0] }
 0x11d   :  { %v11818_v31 = vld [vmem:[#allocation5 + $0x1104] sm:$0xf]  ;;  %v9546_v38 = vor.u32 %v11754_v29, %v9543_v30  ;;  %3984 = vmatpush.bf16.msra.mxu1 %v9834_v27  ;;  %4010 = vmatpush.bf16.msra.mxu3 %v8046_v32  ;;  %v7629_v26 = vld [vmem:[#allocation5 + $0x8] sm:$0xf]  ;;  %v7918_v27 = vor.u32 %v11351_v13, %v7917_v12 }
 0x11e   :  { %v9799_v33 = vld [vmem:[#allocation5 + $0x1120] sm:$0xf0]  ;;  %v11279_v28 = vld [vmem:[#allocation5 + $0x24] sm:$0xf0] }
 0x11f   :  { %v9802_v40 = vor.u32 %v11818_v31, %v9799_v33  ;;  %v11746_v44 = vld [vmem:[#allocation5 + $0xec4] sm:$0xf]  ;;  %3972 = vmatpush.bf16.msra.mxu0 %v9546_v38  ;;  %3998 = vmatpush.bf16.msra.mxu2 %v7758_v41  ;;  %v7885_v29 = vld [vmem:[#allocation5 + $0x208] sm:$0xf] }
 0x120   :  { %v9511_v46 = vld [vmem:[#allocation5 + $0xee0] sm:$0xf0]  ;;  %v11343_v30 = vld [vmem:[#allocation5 + $0x224] sm:$0xf0] }
 0x121   :  { %v11810_v47 = vld [vmem:[#allocation5 + $0x10c4] sm:$0xf]  ;;  %v9514_v54 = vor.u32 %v11746_v44, %v9511_v46  ;;  %3985 = vmatpush.bf16.msra.mxu1 %v9802_v40  ;;  %4011 = vmatpush.bf16.msra.mxu3 %v8014_v48  ;;  %v8365_v31 = vld [vmem:[#allocation5 + $0x5c8] sm:$0xf]  ;;  %v7630_v40 = vor.u32 %v11279_v28, %v7629_v26  ;;  %v7886_v46 = vor.u32 %v11343_v30, %v7885_v29 }
 0x122   :  { %v9767_v49 = vld [vmem:[#allocation5 + $0x10e0] sm:$0xf0]  ;;  %v11463_v32 = vld [vmem:[#allocation5 + $0x5e4] sm:$0xf0] }
 0x123   :  { %v9770_v55 = vor.u32 %v11810_v47, %v9767_v49  ;;  %v11738_v57 = vld [vmem:[#allocation5 + $0xe84] sm:$0xf]  ;;  %3973 = vmatpush.bf16.msra.mxu0 %v9514_v54  ;;  %3999 = vmatpush.bf16.msra.mxu2 %v7726_v56  ;;  %v8621_v33 = vld [vmem:[#allocation5 + $0x7c8] sm:$0xf]  ;;  %v8366_v47 = vor.u32 %v11463_v32, %v8365_v31  ;;  %v8878_v49 = vor.u32 %v11591_v37, %v8877_v36 }
 0x124   :  { %v9479_v58 = vld [vmem:[#allocation5 + $0xea0] sm:$0xf0]  ;;  %v9133_v41 = vld [vmem:[#allocation5 + $0xbc8] sm:$0xf]  ;;  %v8622_v48 = vor.u32 %v11527_v35, %v8621_v33 }
 0x125   :  { %v11802_v59 = vld [vmem:[#allocation5 + $0x1084] sm:$0xf]  ;;  %v9482_v2 = vor.u32 %v11738_v57, %v9479_v58  ;;  %3986 = vmatpush.bf16.msra.mxu1 %v9770_v55  ;;  %4012 = vmatpush.bf16.msra.mxu3 %v7982_v60  ;;  %v11655_v44 = vld [vmem:[#allocation5 + $0xbe4] sm:$0xf0] }
 0x126   :  { %v9735_v61 = vld [vmem:[#allocation5 + $0x10a0] sm:$0xf0]  ;;  %v8333_v50 = vld [vmem:[#allocation5 + $0x588] sm:$0xf]  ;;  %v9134_v53 = vor.u32 %v11655_v44, %v9133_v41 }
 0x127   :  { %v9738_v3 = vor.u32 %v11802_v59, %v9735_v61  ;;  %v11730_v5 = vld [vmem:[#allocation5 + $0xe44] sm:$0xf]  ;;  %3974 = vmatpush.bf16.msra.mxu0 %v9482_v2  ;;  %4000 = vmatpush.bf16.msra.mxu2 %v7694_v4  ;;  %v11455_v51 = vld [vmem:[#allocation5 + $0x5a4] sm:$0xf0] }
 0x128   :  { %v9447_v6 = vld [vmem:[#allocation5 + $0xe60] sm:$0xf0]  ;;  %v8589_v52 = vld [vmem:[#allocation5 + $0x788] sm:$0xf]  ;;  %v8334_v59 = vor.u32 %v11455_v51, %v8333_v50 }
 0x129   :  { %v11794_v7 = vld [vmem:[#allocation5 + $0x1044] sm:$0xf]  ;;  %v9450_v14 = vor.u32 %v11730_v5, %v9447_v6  ;;  %3987 = vmatpush.bf16.msra.mxu1 %v9738_v3  ;;  %4013 = vmatpush.bf16.msra.mxu3 %v7950_v8  ;;  %v11519_v54 = vld [vmem:[#allocation5 + $0x7a4] sm:$0xf0] }
 0x12a   :  { %v9703_v9 = vld [vmem:[#allocation5 + $0x1060] sm:$0xf0]  ;;  %v8845_v55 = vld [vmem:[#allocation5 + $0x988] sm:$0xf]  ;;  %v8590_v60 = vor.u32 %v11519_v54, %v8589_v52 }
 0x12b   :  { %v11722_v15 = vld [vmem:[#allocation5 + $0xe04] sm:$0xf]  ;;  %v9706_v17 = vor.u32 %v11794_v7, %v9703_v9  ;;  %3975 = vmatpush.bf16.msra.mxu0 %v9450_v14  ;;  %4001 = vmatpush.bf16.msra.mxu2 %v7662_v22  ;;  %v11583_v56 = vld [vmem:[#allocation5 + $0x9a4] sm:$0xf0] }
 0x12c   :  { %v9415_v16 = vld [vmem:[#allocation5 + $0xe20] sm:$0xf0]  ;;  %v9101_v57 = vld [vmem:[#allocation5 + $0xb88] sm:$0xf]  ;;  %v8846_v61 = vor.u32 %v11583_v56, %v8845_v55  ;;  %v3770_v55 = vpop.f32.mrf.mxu0 }
 0x12d   :  { %v11786_v24 = vld [vmem:[#allocation5 + $0x1004] sm:$0xf]  ;;  %v9418_v34 = vor.u32 %v11722_v15, %v9415_v16  ;;  %3988 = vmatpush.bf16.msra.mxu1 %v9706_v17  ;;  %4014 = vmatpush.bf16.msra.mxu3 %v7918_v27  ;;  %v11647_v58 = vld [vmem:[#allocation5 + $0xba4] sm:$0xf0] }
 0x12e   :  { %v9671_v25 = vld [vmem:[#allocation5 + $0x1020] sm:$0xf0]  ;;  %v8301_v62 = vld [vmem:[#allocation5 + $0x548] sm:$0xf]  ;;  %v9102_v1 = vor.u32 %v11647_v58, %v9101_v57 }
 0x12f   :  { %v9674_v38 = vor.u32 %v11786_v24, %v9671_v25  ;;  %3976 = vmatpush.bf16.msra.mxu0 %v9418_v34  ;;  %4002 = vmatpush.bf16.msra.mxu2 %v7630_v40  ;;  %v11447_v63 = vld [vmem:[#allocation5 + $0x564] sm:$0xf0]  ;;  %v12782_v34 = vld [vmem:[#allocation7] sm:$0xff] }
 0x130   :  { %v8557_v0 = vld [vmem:[#allocation5 + $0x748] sm:$0xf]  ;;  %v8302_v7 = vor.u32 %v11447_v63, %v8301_v62  ;;  %v3783_v62 = vpop.f32.mrf.mxu1 }
 0x131   :  { %3989 = vmatpush.bf16.msra.mxu1 %v9674_v38  ;;  %4015 = vmatpush.bf16.msra.mxu3 %v7886_v46  ;;  %v11511_v2 = vld [vmem:[#allocation5 + $0x764] sm:$0xf0] }
 0x132   :  { %3977 = vmatmul.bf16.vlgmr.msra.gmra.mxu0 %v12760_v43  ;;  %v8813_v3 = vld [vmem:[#allocation5 + $0x948] sm:$0xf]  ;;  %4003 = vmatmul.bf16.vlgmr.msra.gmra.mxu2 %v12746_v20  ;;  %v8558_v8 = vor.u32 %v11511_v2, %v8557_v0 }
 0x133   :  { %4021 = vmatpush.bf16.msrb.mxu0 %v8366_v47  ;;  %4047 = vmatpush.bf16.msrb.mxu2 %v8878_v49  ;;  %v11575_v4 = vld [vmem:[#allocation5 + $0x964] sm:$0xf0]  ;;  %v833_v47 = vperm.slane %v12782_v34, 0 }
 0x134   :  { %3990 = vmatmul.bf16.vlgmr.msra.gmra.mxu1 %v12768_v18  ;;  %v9069_v5 = vld [vmem:[#allocation5 + $0xb48] sm:$0xf]  ;;  %4016 = vmatmul.bf16.vlgmr.msra.gmra.mxu3 %v12750_v23  ;;  %v8814_v9 = vor.u32 %v11575_v4, %v8813_v3 }
 0x135   :  { %4034 = vmatpush.bf16.msrb.mxu1 %v8622_v48  ;;  %4060 = vmatpush.bf16.msrb.mxu3 %v9134_v53  ;;  %v11639_v6 = vld [vmem:[#allocation5 + $0xb64] sm:$0xf0] }
 0x136   :  { %v8269_v10 = vld [vmem:[#allocation5 + $0x508] sm:$0xf]  ;;  %v9070_v13 = vor.u32 %v11639_v6, %v9069_v5 }
 0x137   :  { %4022 = vmatpush.bf16.msrb.mxu0 %v8334_v59  ;;  %4048 = vmatpush.bf16.msrb.mxu2 %v8846_v61  ;;  %v11439_v11 = vld [vmem:[#allocation5 + $0x524] sm:$0xf0]  ;;  %v3771_v61 = vadd.f32 %v3770_v55, %v833_v47 }
 0x138   :  { %v8525_v12 = vld [vmem:[#allocation5 + $0x708] sm:$0xf]  ;;  %v8270_v24 = vor.u32 %v11439_v11, %v8269_v10 }
 0x139   :  { %4035 = vmatpush.bf16.msrb.mxu1 %v8590_v60  ;;  %4061 = vmatpush.bf16.msrb.mxu3 %v9102_v1  ;;  %v11503_v14 = vld [vmem:[#allocation5 + $0x724] sm:$0xf0]  ;;  %v3784_v5 = vadd.f32 %v3783_v62, %v3771_v61 }
 0x13a   :  { %v8781_v15 = vld [vmem:[#allocation5 + $0x908] sm:$0xf]  ;;  %v8526_v26 = vor.u32 %v11503_v14, %v8525_v12  ;;  %v3796_v14 = vpop.f32.mrf.mxu2 }
 0x13b   :  { %v11567_v16 = vld [vmem:[#allocation5 + $0x924] sm:$0xf0]  ;;  %4023 = vmatpush.bf16.msrb.mxu0 %v8302_v7  ;;  %4049 = vmatpush.bf16.msrb.mxu2 %v8814_v9 }
 0x13c   :  { %v9037_v17 = vld [vmem:[#allocation5 + $0xb08] sm:$0xf]  ;;  %v8782_v27 = vor.u32 %v11567_v16, %v8781_v15 }
 0x13d   :  { %v11631_v22 = vld [vmem:[#allocation5 + $0xb24] sm:$0xf0]  ;;  %4036 = vmatpush.bf16.msrb.mxu1 %v8558_v8  ;;  %4062 = vmatpush.bf16.msrb.mxu3 %v9070_v13 }
 0x13e   :  { %v8237_v25 = vld [vmem:[#allocation5 + $0x4c8] sm:$0xf]  ;;  %v9038_v31 = vor.u32 %v11631_v22, %v9037_v17 }
 0x13f   :  { %v11431_v28 = vld [vmem:[#allocation5 + $0x4e4] sm:$0xf0]  ;;  %4024 = vmatpush.bf16.msrb.mxu0 %v8270_v24  ;;  %4050 = vmatpush.bf16.msrb.mxu2 %v8782_v27  ;;  %v3797_v24 = vadd.f32 %v3796_v14, %v3784_v5 }
 0x140   :  { %v8493_v29 = vld [vmem:[#allocation5 + $0x6c8] sm:$0xf]  ;;  %v8238_v37 = vor.u32 %v11431_v28, %v8237_v25  ;;  %v3809_v25 = vpop.f32.mrf.mxu3 }
 0x141   :  { %v11495_v30 = vld [vmem:[#allocation5 + $0x6e4] sm:$0xf0]  ;;  %4037 = vmatpush.bf16.msrb.mxu1 %v8526_v26  ;;  %4063 = vmatpush.bf16.msrb.mxu3 %v9038_v31 }
 0x142   :  { %v8749_v32 = vld [vmem:[#allocation5 + $0x8c8] sm:$0xf]  ;;  %v8494_v40 = vor.u32 %v11495_v30, %v8493_v29 }
 0x143   :  { %v11559_v33 = vld [vmem:[#allocation5 + $0x8e4] sm:$0xf0]  ;;  %4025 = vmatpush.bf16.msrb.mxu0 %v8238_v37 }
 0x144   :  { %v9005_v35 = vld [vmem:[#allocation5 + $0xac8] sm:$0xf]  ;;  %v8750_v41 = vor.u32 %v11559_v33, %v8749_v32  ;;  %v12785_v33 = vadd.f32 %v3809_v25, %v3797_v24  ;;  %v7759_v24 = vld [vmem:[#allocation5 + $0x128] sm:$0xf0] }
 0x145   :  { %v11623_v36 = vld [vmem:[#allocation5 + $0xae4] sm:$0xf0]  ;;  %4038 = vmatpush.bf16.msrb.mxu1 %v8494_v40  ;;  %v7855_v40 = vld [vmem:[#allocation5 + $0x1e8] sm:$0xf0] }
 0x146   :  { %v8205_v38 = vld [vmem:[#allocation5 + $0x488] sm:$0xf]  ;;  %v9006_v48 = vor.u32 %v11623_v36, %v9005_v35  ;;  %4051 = vmatpush.bf16.msrb.mxu2 %v8750_v41  ;;  %v3772_v35 = vpop.f32.mrf.mxu0  ;;  %v3785_v41 = vpop.f32.mrf.mxu1 }
 0x147   :  { %v11423_v44 = vld [vmem:[#allocation5 + $0x4a4] sm:$0xf0]  ;;  %v11299_v41 = vld [vmem:[#allocation5 + $0xcc] sm:$0xf] }
 0x148   :  { %v8461_v46 = vld [vmem:[#allocation5 + $0x688] sm:$0xf]  ;;  %v8206_v54 = vor.u32 %v11423_v44, %v8205_v38  ;;  %4064 = vmatpush.bf16.msrb.mxu3 %v9006_v48  ;;  %v11331_v38 = vld [vmem:[#allocation5 + $0x1cc] sm:$0xf] }
 0x149   :  { %v11487_v49 = vld [vmem:[#allocation5 + $0x6a4] sm:$0xf0] }
 0x14a   :  { %v8717_v50 = vld [vmem:[#allocation5 + $0x888] sm:$0xf]  ;;  %v8462_v56 = vor.u32 %v11487_v49, %v8461_v46  ;;  %4026 = vmatpush.bf16.msrb.mxu0 %v8206_v54 }
 0x14b   :  { %v11551_v51 = vld [vmem:[#allocation5 + $0x8a4] sm:$0xf0] }
 0x14c   :  { %v8973_v52 = vld [vmem:[#allocation5 + $0xa88] sm:$0xf]  ;;  %v8718_v57 = vor.u32 %v11551_v51, %v8717_v50  ;;  %4039 = vmatpush.bf16.msrb.mxu1 %v8462_v56  ;;  %v11323_v56 = vld [vmem:[#allocation5 + $0x18c] sm:$0xf] }
 0x14d   :  { %v11615_v53 = vld [vmem:[#allocation5 + $0xaa4] sm:$0xf0] }
 0x14e   :  { %v8173_v58 = vld [vmem:[#allocation5 + $0x448] sm:$0xf]  ;;  %v8974_v63 = vor.u32 %v11615_v53, %v8973_v52  ;;  %4052 = vmatpush.bf16.msrb.mxu2 %v8718_v57  ;;  %v7858_v52 = vor.u32 %v11331_v38, %v7855_v40  ;;  %v7823_v57 = vld [vmem:[#allocation5 + $0x1a8] sm:$0xf0]  ;;  %v3835_v35 = vpop.f32.mrf.mxu1 }
 0x14f   :  { %v11415_v59 = vld [vmem:[#allocation5 + $0x464] sm:$0xf0] }
 0x150   :  { %v8429_v60 = vld [vmem:[#allocation5 + $0x648] sm:$0xf]  ;;  %v8174_v6 = vor.u32 %v11415_v59, %v8173_v58  ;;  %4065 = vmatpush.bf16.msrb.mxu3 %v8974_v63  ;;  %v3798_v58 = vpop.f32.mrf.mxu2 }
 0x151   :  { %v11479_v0 = vld [vmem:[#allocation5 + $0x664] sm:$0xf0] }
 0x152   :  { %v8685_v1 = vld [vmem:[#allocation5 + $0x848] sm:$0xf]  ;;  %v8430_v9 = vor.u32 %v11479_v0, %v8429_v60  ;;  %4027 = vmatpush.bf16.msrb.mxu0 %v8174_v6  ;;  %v3811_v60 = vpop.f32.mrf.mxu3  ;;  %v11315_v6 = vld [vmem:[#allocation5 + $0x14c] sm:$0xf] }
 0x153   :  { %v11543_v2 = vld [vmem:[#allocation5 + $0x864] sm:$0xf0]  ;;  %v7695_v60 = vld [vmem:[#allocation5 + $0xa8] sm:$0xf0] }
 0x154   :  { %v8941_v3 = vld [vmem:[#allocation5 + $0xa48] sm:$0xf]  ;;  %v8686_v10 = vor.u32 %v11543_v2, %v8685_v1  ;;  %4040 = vmatpush.bf16.msrb.mxu1 %v8430_v9  ;;  %v7826_v2 = vor.u32 %v11323_v56, %v7823_v57 }
 0x155   :  { %v11607_v4 = vld [vmem:[#allocation5 + $0xa64] sm:$0xf0] }
 0x156   :  { %v8141_v7 = vld [vmem:[#allocation5 + $0x408] sm:$0xf]  ;;  %v8942_v15 = vor.u32 %v11607_v4, %v8941_v3  ;;  %4053 = vmatpush.bf16.msrb.mxu2 %v8686_v10 }
 0x157   :  { %v11407_v8 = vld [vmem:[#allocation5 + $0x424] sm:$0xf0] }
 0x158   :  { %v8397_v11 = vld [vmem:[#allocation5 + $0x608] sm:$0xf]  ;;  %v8142_v29 = vor.u32 %v11407_v8, %v8141_v7  ;;  %4066 = vmatpush.bf16.msrb.mxu3 %v8942_v15  ;;  %v7791_v7 = vld [vmem:[#allocation5 + $0x168] sm:$0xf0] }
 0x159   :  { %v11471_v12 = vld [vmem:[#allocation5 + $0x624] sm:$0xf0]  ;;  %v7794_v14 = vor.u32 %v11315_v6, %v7791_v7 }
 0x15a   :  { %v8653_v13 = vld [vmem:[#allocation5 + $0x808] sm:$0xf]  ;;  %v8398_v36 = vor.u32 %v11471_v12, %v8397_v11  ;;  %4028 = vmatpush.bf16.msrb.mxu0 %v8142_v29  ;;  %v3861_v58 = vpop.f32.mrf.mxu3 }
 0x15b   :  { %v11535_v16 = vld [vmem:[#allocation5 + $0x824] sm:$0xf0] }
 0x15c   :  { %v8909_v17 = vld [vmem:[#allocation5 + $0xa08] sm:$0xf]  ;;  %v8654_v37 = vor.u32 %v11535_v16, %v8653_v13  ;;  %4041 = vmatpush.bf16.msrb.mxu1 %v8398_v36 }
 0x15d   :  { %v11599_v22 = vld [vmem:[#allocation5 + $0xa24] sm:$0xf0]  ;;  %4029 = vmatmul.bf16.vlgmr.msrb.gmra.mxu0 %v12744_v19 }
 0x15e   :  { %v9389_v26 = vld [vmem:[#allocation5 + $0xdc8] sm:$0xf]  ;;  %v8910_v44 = vor.u32 %v11599_v22, %v8909_v17  ;;  %4054 = vmatpush.bf16.msrb.mxu2 %v8654_v37  ;;  %v11307_v22 = vld [vmem:[#allocation5 + $0x10c] sm:$0xf] }
 0x15f   :  { %v11719_v27 = vld [vmem:[#allocation5 + $0xde4] sm:$0xf0]  ;;  %4042 = vmatmul.bf16.vlgmr.msrb.gmra.mxu1 %v12748_v21  ;;  %v7762_v36 = vor.u32 %v11307_v22, %v7759_v24 }
 0x160   :  { %v9645_v28 = vld [vmem:[#allocation5 + $0xfc8] sm:$0xf]  ;;  %v9390_v46 = vor.u32 %v11719_v27, %v9389_v26  ;;  %4067 = vmatpush.bf16.msrb.mxu3 %v8910_v44  ;;  %v3822_v26 = vpop.f32.mrf.mxu0  ;;  %v7727_v44 = vld [vmem:[#allocation5 + $0xe8] sm:$0xf0] }
 0x161   :  { %v11783_v30 = vld [vmem:[#allocation5 + $0xfe4] sm:$0xf0]  ;;  %4055 = vmatmul.bf16.vlgmr.msrb.gmra.mxu2 %v12758_v42 }
 0x162   :  { %v9901_v31 = vld [vmem:[#allocation5 + $0x11c8] sm:$0xf]  ;;  %v9646_v47 = vor.u32 %v11783_v30, %v9645_v28  ;;  %4073 = vmatpush.bf16.msra.mxu0 %v9390_v46 }
 0x163   :  { %v11847_v32 = vld [vmem:[#allocation5 + $0x11e4] sm:$0xf0]  ;;  %4068 = vmatmul.bf16.vlgmr.msrb.gmra.mxu3 %v12762_v45 }
 0x164   :  { %v9902_v48 = vor.u32 %v11847_v32, %v9901_v31  ;;  %v9357_v49 = vld [vmem:[#allocation5 + $0xd88] sm:$0xf]  ;;  %4086 = vmatpush.bf16.msra.mxu1 %v9646_v47  ;;  %4112 = vmatpush.bf16.msra.mxu3 %v7858_v52  ;;  %v3823_v32 = vadd.f32 %v3822_v26, %v12785_v33  ;;  %v7730_v33 = vor.u32 %v11299_v41, %v7727_v44 }
 0x165   :  { %v11711_v50 = vld [vmem:[#allocation5 + $0xda4] sm:$0xf0] }
 0x166   :  { %v9613_v51 = vld [vmem:[#allocation5 + $0xf88] sm:$0xf]  ;;  %v9358_v59 = vor.u32 %v11711_v50, %v9357_v49  ;;  %4099 = vmatpush.bf16.msra.mxu2 %v9902_v48  ;;  %v3836_v46 = vadd.f32 %v3835_v35, %v3823_v32  ;;  %v8111_v32 = vld [vmem:[#allocation5 + $0x3e8] sm:$0xf0] }
 0x167   :  { %v11775_v53 = vld [vmem:[#allocation5 + $0xfa4] sm:$0xf0]  ;;  %v11459_v35 = vld [vmem:[#allocation5 + $0x5cc] sm:$0xf] }
 0x168   :  { %v9869_v54 = vld [vmem:[#allocation5 + $0x1188] sm:$0xf]  ;;  %v9614_v61 = vor.u32 %v11775_v53, %v9613_v51  ;;  %4074 = vmatpush.bf16.msra.mxu0 %v9358_v59  ;;  %4113 = vmatpush.bf16.msra.mxu3 %v7826_v2  ;;  %v3848_v53 = vpop.f32.mrf.mxu2  ;;  %v11291_v59 = vld [vmem:[#allocation5 + $0x8c] sm:$0xf] }
 0x169   :  { %v11839_v55 = vld [vmem:[#allocation5 + $0x11a4] sm:$0xf0]  ;;  %v3849_v57 = vadd.f32 %v3848_v53, %v3836_v46  ;;  %v7698_v6 = vor.u32 %v11291_v59, %v7695_v60  ;;  %v11587_v46 = vld [vmem:[#allocation5 + $0x9cc] sm:$0xf] }
 0x16a   :  { %v9870_v62 = vor.u32 %v11839_v55, %v9869_v54  ;;  %v9325_v63 = vld [vmem:[#allocation5 + $0xd48] sm:$0xf]  ;;  %4087 = vmatpush.bf16.msra.mxu1 %v9614_v61  ;;  %v8079_v53 = vld [vmem:[#allocation5 + $0x3a8] sm:$0xf0] }
 0x16b   :  { %v11703_v0 = vld [vmem:[#allocation5 + $0xd64] sm:$0xf0]  ;;  %v8847_v59 = vld [vmem:[#allocation5 + $0x9a8] sm:$0xf0] }
 0x16c   :  { %v9581_v1 = vld [vmem:[#allocation5 + $0xf48] sm:$0xf]  ;;  %v9326_v8 = vor.u32 %v11703_v0, %v9325_v63  ;;  %4100 = vmatpush.bf16.msra.mxu2 %v9870_v62  ;;  %4114 = vmatpush.bf16.msra.mxu3 %v7794_v14  ;;  %v12792_v62 = vadd.f32 %v3861_v58, %v3849_v57  ;;  %v3824_v63 = vpop.f32.mrf.mxu0  ;;  %v8591_v57 = vld [vmem:[#allocation5 + $0x7a8] sm:$0xf0] }
 0x16d   :  { %v11767_v3 = vld [vmem:[#allocation5 + $0xf64] sm:$0xf0]  ;;  %v11579_v58 = vld [vmem:[#allocation5 + $0x98c] sm:$0xf] }
 0x16e   :  { %v9837_v4 = vld [vmem:[#allocation5 + $0x1148] sm:$0xf]  ;;  %v9582_v9 = vor.u32 %v11767_v3, %v9581_v1  ;;  %4075 = vmatpush.bf16.msra.mxu0 %v9326_v8 }
 0x16f   :  { %v11831_v5 = vld [vmem:[#allocation5 + $0x1164] sm:$0xf0] }
 0x170   :  { %v9838_v10 = vor.u32 %v11831_v5, %v9837_v4  ;;  %v9293_v11 = vld [vmem:[#allocation5 + $0xd08] sm:$0xf]  ;;  %4088 = vmatpush.bf16.msra.mxu1 %v9582_v9  ;;  %4115 = vmatpush.bf16.msra.mxu3 %v7762_v36  ;;  %v3837_v5 = vpop.f32.mrf.mxu1 }
 0x171   :  { %v11695_v12 = vld [vmem:[#allocation5 + $0xd24] sm:$0xf0]  ;;  %v11507_v5 = vld [vmem:[#allocation5 + $0x74c] sm:$0xf] }
 0x172   :  { %v9549_v13 = vld [vmem:[#allocation5 + $0xf08] sm:$0xf]  ;;  %v9294_v25 = vor.u32 %v11695_v12, %v9293_v11  ;;  %4101 = vmatpush.bf16.msra.mxu2 %v9838_v10  ;;  %v11283_v10 = vld [vmem:[#allocation5 + $0x4c] sm:$0xf] }
 0x173   :  { %v11759_v15 = vld [vmem:[#allocation5 + $0xf24] sm:$0xf0]  ;;  %v7663_v11 = vld [vmem:[#allocation5 + $0x68] sm:$0xf0] }
 0x174   :  { %v9805_v16 = vld [vmem:[#allocation5 + $0x1108] sm:$0xf]  ;;  %v9550_v27 = vor.u32 %v11759_v15, %v9549_v13  ;;  %4076 = vmatpush.bf16.msra.mxu0 %v9294_v25  ;;  %4116 = vmatpush.bf16.msra.mxu3 %v7730_v33  ;;  %v3850_v25 = vpop.f32.mrf.mxu2  ;;  %v7666_v26 = vor.u32 %v11283_v10, %v7663_v11  ;;  %v11451_v33 = vld [vmem:[#allocation5 + $0x58c] sm:$0xf] }
 0x175   :  { %v11823_v17 = vld [vmem:[#allocation5 + $0x1124] sm:$0xf0]  ;;  %v11563_v25 = vld [vmem:[#allocation5 + $0x90c] sm:$0xf] }
 0x176   :  { %v9806_v28 = vor.u32 %v11823_v17, %v9805_v16  ;;  %v9261_v29 = vld [vmem:[#allocation5 + $0xcc8] sm:$0xf]  ;;  %4089 = vmatpush.bf16.msra.mxu1 %v9550_v27 }
 0x177   :  { %v11687_v30 = vld [vmem:[#allocation5 + $0xce4] sm:$0xf0] }
 0x178   :  { %v9517_v31 = vld [vmem:[#allocation5 + $0xec8] sm:$0xf]  ;;  %v9262_v47 = vor.u32 %v11687_v30, %v9261_v29  ;;  %4102 = vmatpush.bf16.msra.mxu2 %v9806_v28  ;;  %4117 = vmatpush.bf16.msra.mxu3 %v7698_v6  ;;  %v11275_v28 = vld [vmem:[#allocation5 + $0xc] sm:$0xf]  ;;  %v3863_v30 = vpop.f32.mrf.mxu3 }
 0x179   :  { %v11751_v37 = vld [vmem:[#allocation5 + $0xee4] sm:$0xf0]  ;;  %v7631_v29 = vld [vmem:[#allocation5 + $0x28] sm:$0xf0] }
 0x17a   :  { %v9773_v38 = vld [vmem:[#allocation5 + $0x10c8] sm:$0xf]  ;;  %v9518_v48 = vor.u32 %v11751_v37, %v9517_v31  ;;  %4077 = vmatpush.bf16.msra.mxu0 %v9262_v47  ;;  %v11395_v31 = vld [vmem:[#allocation5 + $0x3cc] sm:$0xf] }
 0x17b   :  { %v11815_v40 = vld [vmem:[#allocation5 + $0x10e4] sm:$0xf0]  ;;  %v8367_v37 = vld [vmem:[#allocation5 + $0x5e8] sm:$0xf0] }
 0x17c   :  { %v9774_v49 = vor.u32 %v11815_v40, %v9773_v38  ;;  %v9229_v50 = vld [vmem:[#allocation5 + $0xc88] sm:$0xf]  ;;  %4090 = vmatpush.bf16.msra.mxu1 %v9518_v48  ;;  %v11523_v38 = vld [vmem:[#allocation5 + $0x7cc] sm:$0xf]  ;;  %4118 = vmatpush.bf16.msra.mxu3 %v7666_v26  ;;  %v7634_v48 = vor.u32 %v11275_v28, %v7631_v29 }
 0x17d   :  { %v11679_v51 = vld [vmem:[#allocation5 + $0xca4] sm:$0xf0]  ;;  %v8623_v40 = vld [vmem:[#allocation5 + $0x7e8] sm:$0xf0] }
 0x17e   :  { %v9485_v52 = vld [vmem:[#allocation5 + $0xe88] sm:$0xf]  ;;  %v9230_v61 = vor.u32 %v11679_v51, %v9229_v50  ;;  %4103 = vmatpush.bf16.msra.mxu2 %v9774_v49  ;;  %v8879_v47 = vld [vmem:[#allocation5 + $0x9e8] sm:$0xf0]  ;;  %v8114_v49 = vor.u32 %v11395_v31, %v8111_v32  ;;  %v8370_v50 = vor.u32 %v11459_v35, %v8367_v37  ;;  %v8626_v51 = vor.u32 %v11523_v38, %v8623_v40  ;;  %v3887_v37 = vpop.f32.mrf.mxu1 }
 0x17f   :  { %v11743_v54 = vld [vmem:[#allocation5 + $0xea4] sm:$0xf0]  ;;  %v8559_v6 = vld [vmem:[#allocation5 + $0x768] sm:$0xf0] }
 0x180   :  { %v9741_v55 = vld [vmem:[#allocation5 + $0x1088] sm:$0xf]  ;;  %v9486_v0 = vor.u32 %v11743_v54, %v9485_v52  ;;  %4078 = vmatpush.bf16.msra.mxu0 %v9230_v61  ;;  %v11387_v52 = vld [vmem:[#allocation5 + $0x38c] sm:$0xf]  ;;  %v8882_v54 = vor.u32 %v11587_v46, %v8879_v47  ;;  %4119 = vmatpush.bf16.msra.mxu3 %v7634_v48  ;;  %v8562_v11 = vor.u32 %v11507_v5, %v8559_v6 }
 0x181   :  { %v11807_v56 = vld [vmem:[#allocation5 + $0x10a4] sm:$0xf0]  ;;  %v8082_v60 = vor.u32 %v11387_v52, %v8079_v53  ;;  %v8783_v26 = vld [vmem:[#allocation5 + $0x928] sm:$0xf0] }
 0x182   :  { %v9742_v1 = vor.u32 %v11807_v56, %v9741_v55  ;;  %v9197_v2 = vld [vmem:[#allocation5 + $0xc48] sm:$0xf]  ;;  %4091 = vmatpush.bf16.msra.mxu1 %v9486_v0  ;;  %v8335_v55 = vld [vmem:[#allocation5 + $0x5a8] sm:$0xf0]  ;;  %v8786_v38 = vor.u32 %v11563_v25, %v8783_v26 }
 0x183   :  { %v11671_v3 = vld [vmem:[#allocation5 + $0xc64] sm:$0xf0]  ;;  %v11515_v56 = vld [vmem:[#allocation5 + $0x78c] sm:$0xf]  ;;  %v8338_v61 = vor.u32 %v11451_v33, %v8335_v55  ;;  %4120 = vmatmul.bf16.vlgmr.msra.gmra.mxu3 %v12746_v20 }
 0x184   :  { %v9453_v4 = vld [vmem:[#allocation5 + $0xe48] sm:$0xf]  ;;  %v9198_v12 = vor.u32 %v11671_v3, %v9197_v2  ;;  %4104 = vmatpush.bf16.msra.mxu2 %v9742_v1  ;;  %v8594_v63 = vor.u32 %v11515_v56, %v8591_v57  ;;  %v11379_v0 = vld [vmem:[#allocation5 + $0x34c] sm:$0xf]  ;;  %4164 = vmatpush.bf16.msrb.mxu3 %v8882_v54  ;;  %v8850_v3 = vor.u32 %v11579_v58, %v8847_v59  ;;  %v3900_v56 = vpop.f32.mrf.mxu2  ;;  %v3913_v57 = vpop.f32.mrf.mxu3 }
 0x185   :  { %v11735_v7 = vld [vmem:[#allocation5 + $0xe64] sm:$0xf0]  ;;  %v8047_v1 = vld [vmem:[#allocation5 + $0x368] sm:$0xf0] }
 0x186   :  { %v9709_v8 = vld [vmem:[#allocation5 + $0x1048] sm:$0xf]  ;;  %v9454_v15 = vor.u32 %v11735_v7, %v9453_v4  ;;  %4079 = vmatpush.bf16.msra.mxu0 %v9198_v12  ;;  %v11443_v2 = vld [vmem:[#allocation5 + $0x54c] sm:$0xf]  ;;  %v3889_v6 = vpop.f32.mrf.mxu1 }
 0x187   :  { %v11799_v9 = vld [vmem:[#allocation5 + $0x1064] sm:$0xf0]  ;;  %v8303_v4 = vld [vmem:[#allocation5 + $0x568] sm:$0xf0] }
 0x188   :  { %v9165_v13 = vld [vmem:[#allocation5 + $0xc08] sm:$0xf]  ;;  %v9710_v16 = vor.u32 %v11799_v9, %v9709_v8  ;;  %4092 = vmatpush.bf16.msra.mxu1 %v9454_v15  ;;  %v11571_v7 = vld [vmem:[#allocation5 + $0x94c] sm:$0xf]  ;;  %v8050_v9 = vor.u32 %v11379_v0, %v8047_v1  ;;  %v8306_v10 = vor.u32 %v11443_v2, %v8303_v4  ;;  %4165 = vmatpush.bf16.msrb.mxu3 %v8850_v3 }
 0x189   :  { %v11663_v14 = vld [vmem:[#allocation5 + $0xc24] sm:$0xf0]  ;;  %v8815_v8 = vld [vmem:[#allocation5 + $0x968] sm:$0xf0] }
 0x18a   :  { %v9421_v17 = vld [vmem:[#allocation5 + $0xe08] sm:$0xf]  ;;  %v9166_v36 = vor.u32 %v11663_v14, %v9165_v13  ;;  %4105 = vmatpush.bf16.msra.mxu2 %v9710_v16  ;;  %v11371_v12 = vld [vmem:[#allocation5 + $0x30c] sm:$0xf]  ;;  %v8818_v15 = vor.u32 %v11571_v7, %v8815_v8 }
 0x18b   :  { %v11727_v22 = vld [vmem:[#allocation5 + $0xe24] sm:$0xf0]  ;;  %v8015_v13 = vld [vmem:[#allocation5 + $0x328] sm:$0xf0] }
 0x18c   :  { %v9677_v24 = vld [vmem:[#allocation5 + $0x1008] sm:$0xf]  ;;  %v9422_v41 = vor.u32 %v11727_v22, %v9421_v17  ;;  %4080 = vmatpush.bf16.msra.mxu0 %v9166_v36  ;;  %v11435_v14 = vld [vmem:[#allocation5 + $0x50c] sm:$0xf]  ;;  %v8018_v29 = vor.u32 %v11371_v12, %v8015_v13  ;;  %4166 = vmatpush.bf16.msrb.mxu3 %v8818_v15 }
 0x18d   :  { %v11791_v27 = vld [vmem:[#allocation5 + $0x1024] sm:$0xf0]  ;;  %v8271_v16 = vld [vmem:[#allocation5 + $0x528] sm:$0xf0] }
 0x18e   :  { %v9678_v44 = vor.u32 %v11791_v27, %v9677_v24  ;;  %4093 = vmatpush.bf16.msra.mxu1 %v9422_v41  ;;  %v11499_v17 = vld [vmem:[#allocation5 + $0x70c] sm:$0xf]  ;;  %v3874_v24 = vpop.f32.mrf.mxu0  ;;  %v834_v27 = vperm.slane %v12782_v34, 1  ;;  %v8274_v30 = vor.u32 %v11435_v14, %v8271_v16 }
 0x18f   :  { %4081 = vmatmul.bf16.vlgmr.msra.gmra.mxu0 %v12756_v39  ;;  %v8527_v22 = vld [vmem:[#allocation5 + $0x728] sm:$0xf0]  ;;  %v12800_v28 = vadd.f32 %v3874_v24, %v12792_v62 }
 0x190   :  { %4106 = vmatpush.bf16.msra.mxu2 %v9678_v44  ;;  %4125 = vmatpush.bf16.msrb.mxu0 %v8114_v49  ;;  %v8530_v31 = vor.u32 %v11499_v17, %v8527_v22  ;;  %v11363_v32 = vld [vmem:[#allocation5 + $0x2cc] sm:$0xf]  ;;  %v3888_v47 = vadd.f32 %v3887_v37, %v834_v27 }
 0x191   :  { %4094 = vmatmul.bf16.vlgmr.msra.gmra.mxu1 %v12760_v43  ;;  %v7983_v35 = vld [vmem:[#allocation5 + $0x2e8] sm:$0xf0]  ;;  %4167 = vmatpush.bf16.msrb.mxu3 %v8786_v38 }
 0x192   :  { %4138 = vmatpush.bf16.msrb.mxu1 %v8370_v50  ;;  %v11427_v36 = vld [vmem:[#allocation5 + $0x4cc] sm:$0xf]  ;;  %v7986_v62 = vor.u32 %v11363_v32, %v7983_v35  ;;  %v3915_v32 = vpop.f32.mrf.mxu3 }
 0x193   :  { %4107 = vmatmul.bf16.vlgmr.msra.gmra.mxu2 %v12768_v18  ;;  %v8239_v40 = vld [vmem:[#allocation5 + $0x4e8] sm:$0xf0] }
 0x194   :  { %4151 = vmatpush.bf16.msrb.mxu2 %v8626_v51  ;;  %4126 = vmatpush.bf16.msrb.mxu0 %v8082_v60  ;;  %v11491_v41 = vld [vmem:[#allocation5 + $0x6cc] sm:$0xf]  ;;  %v8242_v48 = vor.u32 %v11427_v36, %v8239_v40  ;;  %v3901_v60 = vadd.f32 %v3900_v56, %v3888_v47 }
 0x195   :  { %v8495_v44 = vld [vmem:[#allocation5 + $0x6e8] sm:$0xf0] }
 0x196   :  { %4139 = vmatpush.bf16.msrb.mxu1 %v8338_v61  ;;  %v11555_v46 = vld [vmem:[#allocation5 + $0x8cc] sm:$0xf]  ;;  %v8498_v49 = vor.u32 %v11491_v41, %v8495_v44  ;;  %v3876_v61 = vpop.f32.mrf.mxu0  ;;  %v12802_v5 = vadd.f32 %v3913_v57, %v3901_v60 }
 0x197   :  { %v8751_v34 = vld [vmem:[#allocation5 + $0x8e8] sm:$0xf0] }
 0x198   :  { %4152 = vmatpush.bf16.msrb.mxu2 %v8594_v63  ;;  %4127 = vmatpush.bf16.msrb.mxu0 %v8050_v9  ;;  %v11355_v50 = vld [vmem:[#allocation5 + $0x28c] sm:$0xf]  ;;  %v8754_v53 = vor.u32 %v11555_v46, %v8751_v34 }
 0x199   :  { %v7951_v51 = vld [vmem:[#allocation5 + $0x2a8] sm:$0xf0] }
 0x19a   :  { %4140 = vmatpush.bf16.msrb.mxu1 %v8306_v10  ;;  %v11419_v52 = vld [vmem:[#allocation5 + $0x48c] sm:$0xf]  ;;  %v7954_v63 = vor.u32 %v11355_v50, %v7951_v51  ;;  %4168 = vmatpush.bf16.msrb.mxu3 %v8754_v53 }
 0x19b   :  { %v8207_v33 = vld [vmem:[#allocation5 + $0x4a8] sm:$0xf0] }
 0x19c   :  { %4153 = vmatpush.bf16.msrb.mxu2 %v8562_v11  ;;  %4128 = vmatpush.bf16.msrb.mxu0 %v8018_v29  ;;  %v11483_v54 = vld [vmem:[#allocation5 + $0x68c] sm:$0xf]  ;;  %v8210_v0 = vor.u32 %v11419_v52, %v8207_v33 }
 0x19d   :  { %v8463_v55 = vld [vmem:[#allocation5 + $0x6a8] sm:$0xf0] }
 0x19e   :  { %4141 = vmatpush.bf16.msrb.mxu1 %v8274_v30  ;;  %v11547_v58 = vld [vmem:[#allocation5 + $0x88c] sm:$0xf]  ;;  %v8466_v1 = vor.u32 %v11483_v54, %v8463_v55 }
 0x19f   :  { %v8719_v59 = vld [vmem:[#allocation5 + $0x8a8] sm:$0xf0] }
 0x1a0   :  { %4154 = vmatpush.bf16.msrb.mxu2 %v8530_v31  ;;  %4129 = vmatpush.bf16.msrb.mxu0 %v7986_v62  ;;  %v11347_v2 = vld [vmem:[#allocation5 + $0x24c] sm:$0xf]  ;;  %v8722_v7 = vor.u32 %v11547_v58, %v8719_v59  ;;  %v3902_v31 = vpop.f32.mrf.mxu2 }
 0x1a1   :  { %v7919_v3 = vld [vmem:[#allocation5 + $0x268] sm:$0xf0] }
 0x1a2   :  { %4142 = vmatpush.bf16.msrb.mxu1 %v8242_v48  ;;  %v11411_v4 = vld [vmem:[#allocation5 + $0x44c] sm:$0xf]  ;;  %v7922_v13 = vor.u32 %v11347_v2, %v7919_v3  ;;  %4169 = vmatpush.bf16.msrb.mxu3 %v8722_v7 }
 0x1a3   :  { %v8175_v8 = vld [vmem:[#allocation5 + $0x468] sm:$0xf0] }
 0x1a4   :  { %4155 = vmatpush.bf16.msrb.mxu2 %v8498_v49  ;;  %v11475_v9 = vld [vmem:[#allocation5 + $0x64c] sm:$0xf]  ;;  %4130 = vmatpush.bf16.msrb.mxu0 %v7954_v63  ;;  %v8178_v16 = vor.u32 %v11411_v4, %v8175_v8 }
 0x1a5   :  { %v8431_v10 = vld [vmem:[#allocation5 + $0x668] sm:$0xf0] }
 0x1a6   :  { %v11539_v11 = vld [vmem:[#allocation5 + $0x84c] sm:$0xf]  ;;  %4143 = vmatpush.bf16.msrb.mxu1 %v8210_v0  ;;  %v8434_v17 = vor.u32 %v11475_v9, %v8431_v10 }
 0x1a7   :  { %v8687_v12 = vld [vmem:[#allocation5 + $0x868] sm:$0xf0] }
 0x1a8   :  { %v11339_v14 = vld [vmem:[#allocation5 + $0x20c] sm:$0xf]  ;;  %4156 = vmatpush.bf16.msrb.mxu2 %v8466_v1  ;;  %v8690_v26 = vor.u32 %v11539_v11, %v8687_v12  ;;  %4131 = vmatpush.bf16.msrb.mxu0 %v7922_v13 }
 0x1a9   :  { %v7887_v15 = vld [vmem:[#allocation5 + $0x228] sm:$0xf0] }
 0x1aa   :  { %v11403_v22 = vld [vmem:[#allocation5 + $0x40c] sm:$0xf]  ;;  %v7890_v38 = vor.u32 %v11339_v14, %v7887_v15  ;;  %4144 = vmatpush.bf16.msrb.mxu1 %v8178_v16  ;;  %4170 = vmatpush.bf16.msrb.mxu3 %v8690_v26 }
 0x1ab   :  { %v8143_v24 = vld [vmem:[#allocation5 + $0x428] sm:$0xf0] }
 0x1ac   :  { %v11467_v25 = vld [vmem:[#allocation5 + $0x60c] sm:$0xf]  ;;  %4157 = vmatpush.bf16.msrb.mxu2 %v8434_v17  ;;  %v8146_v46 = vor.u32 %v11403_v22, %v8143_v24  ;;  %4132 = vmatpush.bf16.msrb.mxu0 %v7890_v38  ;;  %v3939_v38 = vpop.f32.mrf.mxu1 }
 0x1ad   :  { %v8399_v27 = vld [vmem:[#allocation5 + $0x628] sm:$0xf0] }
 0x1ae   :  { %v11531_v29 = vld [vmem:[#allocation5 + $0x80c] sm:$0xf]  ;;  %v8402_v34 = vor.u32 %v11467_v25, %v8399_v27  ;;  %4145 = vmatpush.bf16.msrb.mxu1 %v8146_v46 }
 0x1af   :  { %v8655_v30 = vld [vmem:[#allocation5 + $0x828] sm:$0xf0]  ;;  %4133 = vmatmul.bf16.vlgmr.msrb.gmra.mxu0 %v12750_v23 }
 0x1b0   :  { %v11651_v35 = vld [vmem:[#allocation5 + $0xbcc] sm:$0xf]  ;;  %v8658_v48 = vor.u32 %v11531_v29, %v8655_v30  ;;  %4158 = vmatpush.bf16.msrb.mxu2 %v8402_v34  ;;  %v3926_v29 = vpop.f32.mrf.mxu0 }
 0x1b1   :  { %v9135_v36 = vld [vmem:[#allocation5 + $0xbe8] sm:$0xf0]  ;;  %4146 = vmatmul.bf16.vlgmr.msrb.gmra.mxu1 %v12744_v19 }
 0x1b2   :  { %v11715_v37 = vld [vmem:[#allocation5 + $0xdcc] sm:$0xf]  ;;  %v9138_v49 = vor.u32 %v11651_v35, %v9135_v36  ;;  %4171 = vmatpush.bf16.msrb.mxu3 %v8658_v48 }
 0x1b3   :  { %v9391_v40 = vld [vmem:[#allocation5 + $0xde8] sm:$0xf0]  ;;  %4159 = vmatmul.bf16.vlgmr.msrb.gmra.mxu2 %v12748_v21 }
 0x1b4   :  { %v11779_v41 = vld [vmem:[#allocation5 + $0xfcc] sm:$0xf]  ;;  %v9394_v50 = vor.u32 %v11715_v37, %v9391_v40  ;;  %4177 = vmatpush.bf16.msra.mxu0 %v9138_v49  ;;  %v3927_v37 = vadd.f32 %v3926_v29, %v12802_v5 }
 0x1b5   :  { %v9647_v44 = vld [vmem:[#allocation5 + $0xfe8] sm:$0xf0]  ;;  %4172 = vmatmul.bf16.vlgmr.msrb.gmra.mxu3 %v12758_v42 }
 0x1b6   :  { %v11843_v47 = vld [vmem:[#allocation5 + $0x11cc] sm:$0xf]  ;;  %v9650_v51 = vor.u32 %v11779_v41, %v9647_v44  ;;  %4190 = vmatpush.bf16.msra.mxu1 %v9394_v50 }
 0x1b7   :  { %v9903_v62 = vld [vmem:[#allocation5 + $0x11e8] sm:$0xf0] }
 0x1b8   :  { %v11643_v52 = vld [vmem:[#allocation5 + $0xb8c] sm:$0xf]  ;;  %v9906_v54 = vor.u32 %v11843_v47, %v9903_v62  ;;  %4203 = vmatpush.bf16.msra.mxu2 %v9650_v51  ;;  %v3940_v62 = vadd.f32 %v3939_v38, %v3927_v37  ;;  %v11336_v37 = vld [vmem:[#allocation5 + $0x1ec] sm:$0xf0] }
 0x1b9   :  { %v9103_v53 = vld [vmem:[#allocation5 + $0xba8] sm:$0xf0]  ;;  %v8117_v38 = vld [vmem:[#allocation5 + $0x3d0] sm:$0xf] }
 0x1ba   :  { %v11707_v33 = vld [vmem:[#allocation5 + $0xd8c] sm:$0xf]  ;;  %v9106_v60 = vor.u32 %v11643_v52, %v9103_v53  ;;  %4216 = vmatpush.bf16.msra.mxu3 %v9906_v54 }
 0x1bb   :  { %v9359_v55 = vld [vmem:[#allocation5 + $0xda8] sm:$0xf0] }
 0x1bc   :  { %v11771_v56 = vld [vmem:[#allocation5 + $0xf8c] sm:$0xf]  ;;  %v9362_v61 = vor.u32 %v11707_v33, %v9359_v55  ;;  %4178 = vmatpush.bf16.msra.mxu0 %v9106_v60  ;;  %v3952_v33 = vpop.f32.mrf.mxu2 }
 0x1bd   :  { %v9615_v57 = vld [vmem:[#allocation5 + $0xfa8] sm:$0xf0] }
 0x1be   :  { %v11835_v58 = vld [vmem:[#allocation5 + $0x118c] sm:$0xf]  ;;  %v9618_v63 = vor.u32 %v11771_v56, %v9615_v57  ;;  %4191 = vmatpush.bf16.msra.mxu1 %v9362_v61  ;;  %v3953_v57 = vadd.f32 %v3952_v33, %v3940_v62  ;;  %v8629_v62 = vld [vmem:[#allocation5 + $0x7d0] sm:$0xf] }
 0x1bf   :  { %v9871_v59 = vld [vmem:[#allocation5 + $0x11a8] sm:$0xf0]  ;;  %v11328_v33 = vld [vmem:[#allocation5 + $0x1ac] sm:$0xf0] }
 0x1c0   :  { %v11635_v0 = vld [vmem:[#allocation5 + $0xb4c] sm:$0xf]  ;;  %v9874_v3 = vor.u32 %v11835_v58, %v9871_v59  ;;  %4204 = vmatpush.bf16.msra.mxu2 %v9618_v63  ;;  %v3965_v58 = vpop.f32.mrf.mxu3 }
 0x1c1   :  { %v9071_v1 = vld [vmem:[#allocation5 + $0xb68] sm:$0xf0]  ;;  %v12809_v63 = vadd.f32 %v3965_v58, %v3953_v57  ;;  %v11456_v57 = vld [vmem:[#allocation5 + $0x5ac] sm:$0xf0] }
 0x1c2   :  { %v11699_v2 = vld [vmem:[#allocation5 + $0xd4c] sm:$0xf]  ;;  %v9074_v10 = vor.u32 %v11635_v0, %v9071_v1  ;;  %4217 = vmatpush.bf16.msra.mxu3 %v9874_v3  ;;  %v3928_v0 = vpop.f32.mrf.mxu0  ;;  %v8597_v58 = vld [vmem:[#allocation5 + $0x790] sm:$0xf] }
 0x1c3   :  { %v9327_v4 = vld [vmem:[#allocation5 + $0xd68] sm:$0xf0] }
 0x1c4   :  { %v11763_v6 = vld [vmem:[#allocation5 + $0xf4c] sm:$0xf]  ;;  %v9330_v11 = vor.u32 %v11699_v2, %v9327_v4  ;;  %4179 = vmatpush.bf16.msra.mxu0 %v9074_v10 }
 0x1c5   :  { %v9583_v7 = vld [vmem:[#allocation5 + $0xf68] sm:$0xf0] }
 0x1c6   :  { %v11827_v8 = vld [vmem:[#allocation5 + $0x114c] sm:$0xf]  ;;  %v9586_v12 = vor.u32 %v11763_v6, %v9583_v7  ;;  %4192 = vmatpush.bf16.msra.mxu1 %v9330_v11  ;;  %v3941_v7 = vpop.f32.mrf.mxu1 }
 0x1c7   :  { %v9839_v9 = vld [vmem:[#allocation5 + $0x1168] sm:$0xf0]  ;;  %v8309_v7 = vld [vmem:[#allocation5 + $0x550] sm:$0xf] }
 0x1c8   :  { %v11627_v13 = vld [vmem:[#allocation5 + $0xb0c] sm:$0xf]  ;;  %v9842_v16 = vor.u32 %v11827_v8, %v9839_v9  ;;  %4205 = vmatpush.bf16.msra.mxu2 %v9586_v12 }
 0x1c9   :  { %v9039_v14 = vld [vmem:[#allocation5 + $0xb28] sm:$0xf0] }
 0x1ca   :  { %v11691_v15 = vld [vmem:[#allocation5 + $0xd0c] sm:$0xf]  ;;  %v9042_v27 = vor.u32 %v11627_v13, %v9039_v14  ;;  %4218 = vmatpush.bf16.msra.mxu3 %v9842_v16 }
 0x1cb   :  { %v9295_v17 = vld [vmem:[#allocation5 + $0xd28] sm:$0xf0] }
 0x1cc   :  { %v11755_v22 = vld [vmem:[#allocation5 + $0xf0c] sm:$0xf]  ;;  %v9298_v30 = vor.u32 %v11691_v15, %v9295_v17  ;;  %4180 = vmatpush.bf16.msra.mxu0 %v9042_v27  ;;  %v3954_v27 = vpop.f32.mrf.mxu2 }
 0x1cd   :  { %v9551_v24 = vld [vmem:[#allocation5 + $0xf28] sm:$0xf0]  ;;  %v8533_v27 = vld [vmem:[#allocation5 + $0x710] sm:$0xf] }
 0x1ce   :  { %v11819_v25 = vld [vmem:[#allocation5 + $0x110c] sm:$0xf]  ;;  %v9554_v31 = vor.u32 %v11755_v22, %v9551_v24  ;;  %4193 = vmatpush.bf16.msra.mxu1 %v9298_v30 }
 0x1cf   :  { %v9807_v26 = vld [vmem:[#allocation5 + $0x1128] sm:$0xf0] }
 0x1d0   :  { %v11619_v32 = vld [vmem:[#allocation5 + $0xacc] sm:$0xf]  ;;  %v9810_v40 = vor.u32 %v11819_v25, %v9807_v26  ;;  %4206 = vmatpush.bf16.msra.mxu2 %v9554_v31 }
 0x1d1   :  { %v9007_v35 = vld [vmem:[#allocation5 + $0xae8] sm:$0xf0] }
 0x1d2   :  { %v11683_v36 = vld [vmem:[#allocation5 + $0xccc] sm:$0xf]  ;;  %v9010_v48 = vor.u32 %v11619_v32, %v9007_v35  ;;  %4219 = vmatpush.bf16.msra.mxu3 %v9810_v40  ;;  %v3967_v35 = vpop.f32.mrf.mxu3 }
 0x1d3   :  { %v9263_v41 = vld [vmem:[#allocation5 + $0xce8] sm:$0xf0] }
 0x1d4   :  { %v11747_v44 = vld [vmem:[#allocation5 + $0xecc] sm:$0xf]  ;;  %v9266_v49 = vor.u32 %v11683_v36, %v9263_v41  ;;  %4181 = vmatpush.bf16.msra.mxu0 %v9010_v48  ;;  %v7861_v36 = vld [vmem:[#allocation5 + $0x1d0] sm:$0xf] }
 0x1d5   :  { %v9519_v46 = vld [vmem:[#allocation5 + $0xee8] sm:$0xf0]  ;;  %v11400_v41 = vld [vmem:[#allocation5 + $0x3ec] sm:$0xf0] }
 0x1d6   :  { %v11811_v34 = vld [vmem:[#allocation5 + $0x10cc] sm:$0xf]  ;;  %v9522_v50 = vor.u32 %v11747_v44, %v9519_v46  ;;  %4194 = vmatpush.bf16.msra.mxu1 %v9266_v49  ;;  %v8373_v44 = vld [vmem:[#allocation5 + $0x5d0] sm:$0xf] }
 0x1d7   :  { %v9775_v47 = vld [vmem:[#allocation5 + $0x10e8] sm:$0xf0]  ;;  %v11464_v46 = vld [vmem:[#allocation5 + $0x5ec] sm:$0xf0] }
 0x1d8   :  { %v11611_v51 = vld [vmem:[#allocation5 + $0xa8c] sm:$0xf]  ;;  %v9778_v5 = vor.u32 %v11811_v34, %v9775_v47  ;;  %4207 = vmatpush.bf16.msra.mxu2 %v9522_v50  ;;  %v11528_v48 = vld [vmem:[#allocation5 + $0x7ec] sm:$0xf0]  ;;  %v7862_v50 = vor.u32 %v11336_v37, %v7861_v36 }
 0x1d9   :  { %v8975_v52 = vld [vmem:[#allocation5 + $0xaa8] sm:$0xf0]  ;;  %v7733_v37 = vld [vmem:[#allocation5 + $0xd0] sm:$0xf] }
 0x1da   :  { %v11675_v53 = vld [vmem:[#allocation5 + $0xc8c] sm:$0xf]  ;;  %v8978_v61 = vor.u32 %v11611_v51, %v8975_v52  ;;  %4220 = vmatpush.bf16.msra.mxu3 %v9778_v5  ;;  %v8118_v51 = vor.u32 %v11400_v41, %v8117_v38  ;;  %v8374_v52 = vor.u32 %v11464_v46, %v8373_v44  ;;  %v8085_v5 = vld [vmem:[#allocation5 + $0x390] sm:$0xf] }
 0x1db   :  { %v9231_v54 = vld [vmem:[#allocation5 + $0xca8] sm:$0xf0]  ;;  %v11304_v38 = vld [vmem:[#allocation5 + $0xec] sm:$0xf0] }
 0x1dc   :  { %v11739_v55 = vld [vmem:[#allocation5 + $0xe8c] sm:$0xf]  ;;  %v9234_v1 = vor.u32 %v11675_v53, %v9231_v54  ;;  %4182 = vmatpush.bf16.msra.mxu0 %v8978_v61  ;;  %v7829_v53 = vld [vmem:[#allocation5 + $0x190] sm:$0xf]  ;;  %v8630_v54 = vor.u32 %v11528_v48, %v8629_v62 }
 0x1dd   :  { %v9487_v56 = vld [vmem:[#allocation5 + $0xea8] sm:$0xf0]  ;;  %v11368_v46 = vld [vmem:[#allocation5 + $0x2ec] sm:$0xf0] }
 0x1de   :  { %v11803_v59 = vld [vmem:[#allocation5 + $0x108c] sm:$0xf]  ;;  %v9490_v2 = vor.u32 %v11739_v55, %v9487_v56  ;;  %4195 = vmatpush.bf16.msra.mxu1 %v9234_v1  ;;  %v11392_v55 = vld [vmem:[#allocation5 + $0x3ac] sm:$0xf0] }
 0x1df   :  { %v9743_v60 = vld [vmem:[#allocation5 + $0x10a8] sm:$0xf0]  ;;  %v8341_v56 = vld [vmem:[#allocation5 + $0x590] sm:$0xf]  ;;  %v8086_v61 = vor.u32 %v11392_v55, %v8085_v5 }
 0x1e0   :  { %v11603_v3 = vld [vmem:[#allocation5 + $0xa4c] sm:$0xf]  ;;  %v9746_v8 = vor.u32 %v11803_v59, %v9743_v60  ;;  %4208 = vmatpush.bf16.msra.mxu2 %v9490_v2  ;;  %v11520_v59 = vld [vmem:[#allocation5 + $0x7ac] sm:$0xf0]  ;;  %v7830_v60 = vor.u32 %v11328_v33, %v7829_v53  ;;  %v8342_v0 = vor.u32 %v11456_v57, %v8341_v56 }
 0x1e1   :  { %v8943_v4 = vld [vmem:[#allocation5 + $0xa68] sm:$0xf0]  ;;  %v7797_v1 = vld [vmem:[#allocation5 + $0x150] sm:$0xf] }
 0x1e2   :  { %v11667_v6 = vld [vmem:[#allocation5 + $0xc4c] sm:$0xf]  ;;  %v8946_v14 = vor.u32 %v11603_v3, %v8943_v4  ;;  %4221 = vmatpush.bf16.msra.mxu3 %v9746_v8  ;;  %v11320_v2 = vld [vmem:[#allocation5 + $0x16c] sm:$0xf0]  ;;  %v8598_v4 = vor.u32 %v11520_v59, %v8597_v58  ;;  %v4004_v58 = vpop.f32.mrf.mxu2 }
 0x1e3   :  { %v9199_v9 = vld [vmem:[#allocation5 + $0xc68] sm:$0xf0]  ;;  %v8053_v3 = vld [vmem:[#allocation5 + $0x350] sm:$0xf] }
 0x1e4   :  { %v11731_v10 = vld [vmem:[#allocation5 + $0xe4c] sm:$0xf]  ;;  %v9202_v17 = vor.u32 %v11667_v6, %v9199_v9  ;;  %4183 = vmatpush.bf16.msra.mxu0 %v8946_v14  ;;  %v11384_v6 = vld [vmem:[#allocation5 + $0x36c] sm:$0xf0] }
 0x1e5   :  { %v9455_v11 = vld [vmem:[#allocation5 + $0xe68] sm:$0xf0]  ;;  %v11448_v8 = vld [vmem:[#allocation5 + $0x56c] sm:$0xf0] }
 0x1e6   :  { %v11795_v12 = vld [vmem:[#allocation5 + $0x104c] sm:$0xf]  ;;  %v9458_v22 = vor.u32 %v11731_v10, %v9455_v11  ;;  %4196 = vmatpush.bf16.msra.mxu1 %v9202_v17  ;;  %v8565_v9 = vld [vmem:[#allocation5 + $0x750] sm:$0xf]  ;;  %v7798_v11 = vor.u32 %v11320_v2, %v7797_v1 }
 0x1e7   :  { %v9711_v13 = vld [vmem:[#allocation5 + $0x1068] sm:$0xf0]  ;;  %v11512_v10 = vld [vmem:[#allocation5 + $0x76c] sm:$0xf0] }
 0x1e8   :  { %v11595_v15 = vld [vmem:[#allocation5 + $0xa0c] sm:$0xf]  ;;  %v9714_v29 = vor.u32 %v11795_v12, %v9711_v13  ;;  %4209 = vmatpush.bf16.msra.mxu2 %v9458_v22  ;;  %v8054_v12 = vor.u32 %v11384_v6, %v8053_v3  ;;  %v8310_v13 = vor.u32 %v11448_v8, %v8309_v7  ;;  %v7765_v14 = vld [vmem:[#allocation5 + $0x110] sm:$0xf]  ;;  %v8566_v17 = vor.u32 %v11512_v10, %v8565_v9 }
 0x1e9   :  { %v8911_v16 = vld [vmem:[#allocation5 + $0xa28] sm:$0xf0]  ;;  %v11376_v22 = vld [vmem:[#allocation5 + $0x32c] sm:$0xf0] }
 0x1ea   :  { %v11659_v24 = vld [vmem:[#allocation5 + $0xc0c] sm:$0xf]  ;;  %v8914_v40 = vor.u32 %v11595_v15, %v8911_v16  ;;  %4222 = vmatpush.bf16.msra.mxu3 %v9714_v29  ;;  %v11312_v15 = vld [vmem:[#allocation5 + $0x12c] sm:$0xf0] }
 0x1eb   :  { %v9167_v25 = vld [vmem:[#allocation5 + $0xc28] sm:$0xf0]  ;;  %v8021_v16 = vld [vmem:[#allocation5 + $0x310] sm:$0xf] }
 0x1ec   :  { %v11723_v26 = vld [vmem:[#allocation5 + $0xe0c] sm:$0xf]  ;;  %v9170_v34 = vor.u32 %v11659_v24, %v9167_v25  ;;  %4184 = vmatpush.bf16.msra.mxu0 %v8914_v40  ;;  %v8277_v24 = vld [vmem:[#allocation5 + $0x510] sm:$0xf]  ;;  %v8022_v35 = vor.u32 %v11376_v22, %v8021_v16 }
 0x1ed   :  { %v9423_v30 = vld [vmem:[#allocation5 + $0xe28] sm:$0xf0]  ;;  %v11440_v25 = vld [vmem:[#allocation5 + $0x52c] sm:$0xf0] }
 0x1ee   :  { %v11787_v31 = vld [vmem:[#allocation5 + $0x100c] sm:$0xf]  ;;  %v9426_v47 = vor.u32 %v11723_v26, %v9423_v30  ;;  %4197 = vmatpush.bf16.msra.mxu1 %v9170_v34  ;;  %v3978_v26 = vpop.f32.mrf.mxu0  ;;  %v11504_v29 = vld [vmem:[#allocation5 + $0x72c] sm:$0xf0]  ;;  %v8278_v36 = vor.u32 %v11440_v25, %v8277_v24 }
 0x1ef   :  { %v9679_v32 = vld [vmem:[#allocation5 + $0x1028] sm:$0xf0]  ;;  %4185 = vmatmul.bf16.vlgmr.msra.gmra.mxu0 %v12762_v45  ;;  %v3979_v30 = vadd.f32 %v3978_v26, %v12809_v63  ;;  %v7989_v40 = vld [vmem:[#allocation5 + $0x2d0] sm:$0xf]  ;;  %v8534_v41 = vor.u32 %v11504_v29, %v8533_v27 }
 0x1f0   :  { %v9682_v49 = vor.u32 %v11787_v31, %v9679_v32  ;;  %4210 = vmatpush.bf16.msra.mxu2 %v9426_v47  ;;  %4229 = vmatpush.bf16.msrb.mxu0 %v7862_v50  ;;  %v7766_v31 = vor.u32 %v11312_v15, %v7765_v14  ;;  %v3991_v32 = vpop.f32.mrf.mxu1  ;;  %v8245_v34 = vld [vmem:[#allocation5 + $0x4d0] sm:$0xf]  ;;  %v7734_v50 = vor.u32 %v11304_v38, %v7733_v37  ;;  %v4006_v37 = vpop.f32.mrf.mxu2 }
 0x1f1   :  { %4198 = vmatmul.bf16.vlgmr.msra.gmra.mxu1 %v12756_v39  ;;  %v12816_v44 = vadd.f32 %v3991_v32, %v3979_v30  ;;  %v11432_v47 = vld [vmem:[#allocation5 + $0x4ec] sm:$0xf0] }
 0x1f2   :  { %4223 = vmatpush.bf16.msra.mxu3 %v9682_v49  ;;  %4242 = vmatpush.bf16.msrb.mxu1 %v8118_v51  ;;  %v8501_v62 = vld [vmem:[#allocation5 + $0x6d0] sm:$0xf]  ;;  %v12818_v49 = vld [vmem:[#allocation7] sm:$0xff]  ;;  %v7990_v51 = vor.u32 %v11368_v46, %v7989_v40 }
 0x1f3   :  { %4211 = vmatmul.bf16.vlgmr.msra.gmra.mxu2 %v12760_v43  ;;  %v11496_v48 = vld [vmem:[#allocation5 + $0x6ec] sm:$0xf0]  ;;  %v835_v63 = vperm.slane %v12818_v49, 2 }
 0x1f4   :  { %4255 = vmatpush.bf16.msrb.mxu2 %v8374_v52  ;;  %4230 = vmatpush.bf16.msrb.mxu0 %v7830_v60  ;;  %v8246_v52 = vor.u32 %v11432_v47, %v8245_v34  ;;  %v7701_v53 = vld [vmem:[#allocation5 + $0x90] sm:$0xf] }
 0x1f5   :  { %4224 = vmatmul.bf16.vlgmr.msra.gmra.mxu3 %v12768_v18  ;;  %v11296_v33 = vld [vmem:[#allocation5 + $0xac] sm:$0xf0] }
 0x1f6   :  { %4268 = vmatpush.bf16.msrb.mxu3 %v8630_v54  ;;  %4243 = vmatpush.bf16.msrb.mxu1 %v8086_v61  ;;  %v7957_v5 = vld [vmem:[#allocation5 + $0x290] sm:$0xf]  ;;  %v8502_v54 = vor.u32 %v11496_v48, %v8501_v62  ;;  %v4005_v61 = vadd.f32 %v4004_v58, %v835_v63  ;;  %v3980_v1 = vpop.f32.mrf.mxu0  ;;  %v7702_v2 = vor.u32 %v11296_v33, %v7701_v53 }
 0x1f7   :  { %v11360_v55 = vld [vmem:[#allocation5 + $0x2ac] sm:$0xf0] }
 0x1f8   :  { %4256 = vmatpush.bf16.msrb.mxu2 %v8342_v0  ;;  %4231 = vmatpush.bf16.msrb.mxu0 %v7798_v11  ;;  %v8213_v56 = vld [vmem:[#allocation5 + $0x490] sm:$0xf]  ;;  %v4017_v0 = vpop.f32.mrf.mxu3  ;;  %v3993_v3 = vpop.f32.mrf.mxu1 }
 0x1f9   :  { %v11424_v57 = vld [vmem:[#allocation5 + $0x4ac] sm:$0xf0]  ;;  %v12821_v10 = vadd.f32 %v4017_v0, %v4005_v61 }
 0x1fa   :  { %4269 = vmatpush.bf16.msrb.mxu3 %v8598_v4  ;;  %4244 = vmatpush.bf16.msrb.mxu1 %v8054_v12  ;;  %v8469_v59 = vld [vmem:[#allocation5 + $0x690] sm:$0xf]  ;;  %v7958_v4 = vor.u32 %v11360_v55, %v7957_v5  ;;  %v8214_v6 = vor.u32 %v11424_v57, %v8213_v56 }
 0x1fb   :  { %v11488_v60 = vld [vmem:[#allocation5 + $0x6ac] sm:$0xf0] }
 0x1fc   :  { %4257 = vmatpush.bf16.msrb.mxu2 %v8310_v13  ;;  %4232 = vmatpush.bf16.msrb.mxu0 %v7766_v31  ;;  %v7669_v7 = vld [vmem:[#allocation5 + $0x50] sm:$0xf]  ;;  %v8470_v11 = vor.u32 %v11488_v60, %v8469_v59 }
 0x1fd   :  { %v11288_v8 = vld [vmem:[#allocation5 + $0x6c] sm:$0xf0] }
 0x1fe   :  { %4270 = vmatpush.bf16.msrb.mxu3 %v8566_v17  ;;  %4245 = vmatpush.bf16.msrb.mxu1 %v8022_v35  ;;  %v7925_v9 = vld [vmem:[#allocation5 + $0x250] sm:$0xf]  ;;  %v7670_v17 = vor.u32 %v11288_v8, %v7669_v7  ;;  %v4030_v37 = vpop.f32.mrf.mxu0 }
 0x1ff   :  { %v11352_v12 = vld [vmem:[#allocation5 + $0x26c] sm:$0xf0] }
 0x200   :  { %4258 = vmatpush.bf16.msrb.mxu2 %v8278_v36  ;;  %4233 = vmatpush.bf16.msrb.mxu0 %v7734_v50  ;;  %v8181_v13 = vld [vmem:[#allocation5 + $0x450] sm:$0xf]  ;;  %v7926_v25 = vor.u32 %v11352_v12, %v7925_v9  ;;  %v4019_v46 = vpop.f32.mrf.mxu3 }
 0x201   :  { %v11416_v14 = vld [vmem:[#allocation5 + $0x46c] sm:$0xf0] }
 0x202   :  { %4271 = vmatpush.bf16.msrb.mxu3 %v8534_v41  ;;  %4246 = vmatpush.bf16.msrb.mxu1 %v7990_v51  ;;  %v8437_v15 = vld [vmem:[#allocation5 + $0x650] sm:$0xf]  ;;  %v8182_v26 = vor.u32 %v11416_v14, %v8181_v13 }
 0x203   :  { %v11480_v16 = vld [vmem:[#allocation5 + $0x66c] sm:$0xf0] }
 0x204   :  { %4259 = vmatpush.bf16.msrb.mxu2 %v8246_v52  ;;  %4234 = vmatpush.bf16.msrb.mxu0 %v7702_v2  ;;  %v7637_v22 = vld [vmem:[#allocation5 + $0x10] sm:$0xf]  ;;  %v8438_v31 = vor.u32 %v11480_v16, %v8437_v15 }
 0x205   :  { %v11280_v24 = vld [vmem:[#allocation5 + $0x2c] sm:$0xf0] }
 0x206   :  { %4272 = vmatpush.bf16.msrb.mxu3 %v8502_v54  ;;  %4247 = vmatpush.bf16.msrb.mxu1 %v7958_v4  ;;  %v7893_v27 = vld [vmem:[#allocation5 + $0x210] sm:$0xf]  ;;  %v7638_v34 = vor.u32 %v11280_v24, %v7637_v22 }
 0x207   :  { %v11344_v29 = vld [vmem:[#allocation5 + $0x22c] sm:$0xf0] }
 0x208   :  { %4260 = vmatpush.bf16.msrb.mxu2 %v8214_v6  ;;  %v8149_v30 = vld [vmem:[#allocation5 + $0x410] sm:$0xf]  ;;  %4235 = vmatpush.bf16.msrb.mxu0 %v7670_v17  ;;  %v7894_v63 = vor.u32 %v11344_v29, %v7893_v27 }
 0x209   :  { %v11408_v32 = vld [vmem:[#allocation5 + $0x42c] sm:$0xf0] }
 0x20a   :  { %4273 = vmatpush.bf16.msrb.mxu3 %v8470_v11  ;;  %v8405_v35 = vld [vmem:[#allocation5 + $0x610] sm:$0xf]  ;;  %4248 = vmatpush.bf16.msrb.mxu1 %v7926_v25  ;;  %v8150_v50 = vor.u32 %v11408_v32, %v8149_v30 }
 0x20b   :  { %v11472_v36 = vld [vmem:[#allocation5 + $0x62c] sm:$0xf0] }
 0x20c   :  { %v8885_v38 = vld [vmem:[#allocation5 + $0x9d0] sm:$0xf]  ;;  %4261 = vmatpush.bf16.msrb.mxu2 %v8182_v26  ;;  %v8406_v53 = vor.u32 %v11472_v36, %v8405_v35  ;;  %4236 = vmatpush.bf16.msrb.mxu0 %v7638_v34 }
 0x20d   :  { %v11592_v40 = vld [vmem:[#allocation5 + $0x9ec] sm:$0xf0] }
 0x20e   :  { %v9141_v41 = vld [vmem:[#allocation5 + $0xbd0] sm:$0xf]  ;;  %4274 = vmatpush.bf16.msrb.mxu3 %v8438_v31  ;;  %v8886_v33 = vor.u32 %v11592_v40, %v8885_v38  ;;  %4249 = vmatpush.bf16.msrb.mxu1 %v7894_v63 }
 0x20f   :  { %v11656_v47 = vld [vmem:[#allocation5 + $0xbec] sm:$0xf0]  ;;  %4237 = vmatmul.bf16.vlgmr.msrb.gmra.mxu0 %v12746_v20 }
 0x210   :  { %v9397_v62 = vld [vmem:[#allocation5 + $0xdd0] sm:$0xf]  ;;  %v9142_v5 = vor.u32 %v11656_v47, %v9141_v41  ;;  %4262 = vmatpush.bf16.msrb.mxu2 %v8150_v50  ;;  %4281 = vmatpush.bf16.msra.mxu0 %v8886_v33  ;;  %v4031_v47 = vadd.f32 %v4030_v37, %v12821_v10 }
 0x211   :  { %v11720_v48 = vld [vmem:[#allocation5 + $0xdec] sm:$0xf0]  ;;  %4250 = vmatmul.bf16.vlgmr.msrb.gmra.mxu1 %v12750_v23 }
 0x212   :  { %v9653_v51 = vld [vmem:[#allocation5 + $0xfd0] sm:$0xf]  ;;  %v9398_v54 = vor.u32 %v11720_v48, %v9397_v62  ;;  %4275 = vmatpush.bf16.msrb.mxu3 %v8406_v53  ;;  %4294 = vmatpush.bf16.msra.mxu1 %v9142_v5  ;;  %v4043_v62 = vpop.f32.mrf.mxu1 }
 0x213   :  { %v11784_v52 = vld [vmem:[#allocation5 + $0xfec] sm:$0xf0]  ;;  %4263 = vmatmul.bf16.vlgmr.msrb.gmra.mxu2 %v12744_v19  ;;  %v4044_v33 = vadd.f32 %v4043_v62, %v4031_v47 }
 0x214   :  { %v8853_v55 = vld [vmem:[#allocation5 + $0x990] sm:$0xf]  ;;  %v9654_v58 = vor.u32 %v11784_v52, %v9653_v51  ;;  %4307 = vmatpush.bf16.msra.mxu2 %v9398_v54 }
 0x215   :  { %v11584_v56 = vld [vmem:[#allocation5 + $0x9ac] sm:$0xf0]  ;;  %4276 = vmatmul.bf16.vlgmr.msrb.gmra.mxu3 %v12748_v21 }
 0x216   :  { %v9109_v57 = vld [vmem:[#allocation5 + $0xb90] sm:$0xf]  ;;  %v8854_v2 = vor.u32 %v11584_v56, %v8853_v55  ;;  %4320 = vmatpush.bf16.msra.mxu3 %v9654_v58 }
 0x217   :  { %v11648_v59 = vld [vmem:[#allocation5 + $0xbac] sm:$0xf0] }
 0x218   :  { %v9365_v60 = vld [vmem:[#allocation5 + $0xd90] sm:$0xf]  ;;  %v9110_v3 = vor.u32 %v11648_v59, %v9109_v57  ;;  %4282 = vmatpush.bf16.msra.mxu0 %v8854_v2  ;;  %v4056_v59 = vpop.f32.mrf.mxu2  ;;  %v4069_v2 = vpop.f32.mrf.mxu3 }
 0x219   :  { %v11712_v61 = vld [vmem:[#allocation5 + $0xdac] sm:$0xf0] }
 0x21a   :  { %v9621_v0 = vld [vmem:[#allocation5 + $0xf90] sm:$0xf]  ;;  %v9366_v4 = vor.u32 %v11712_v61, %v9365_v60  ;;  %4295 = vmatpush.bf16.msra.mxu1 %v9110_v3 }
 0x21b   :  { %v11776_v1 = vld [vmem:[#allocation5 + $0xfac] sm:$0xf0] }
 0x21c   :  { %v8821_v6 = vld [vmem:[#allocation5 + $0x950] sm:$0xf]  ;;  %v9622_v9 = vor.u32 %v11776_v1, %v9621_v0  ;;  %4308 = vmatpush.bf16.msra.mxu2 %v9366_v4  ;;  %v4057_v1 = vadd.f32 %v4056_v59, %v4044_v33 }
 0x21d   :  { %v11576_v7 = vld [vmem:[#allocation5 + $0x96c] sm:$0xf0] }
 0x21e   :  { %v9077_v8 = vld [vmem:[#allocation5 + $0xb50] sm:$0xf]  ;;  %v8822_v16 = vor.u32 %v11576_v7, %v8821_v6  ;;  %4321 = vmatpush.bf16.msra.mxu3 %v9622_v9  ;;  %v12828_v7 = vadd.f32 %v4069_v2, %v4057_v1  ;;  %v7831_v1 = vld [vmem:[#allocation5 + $0x1b0] sm:$0xf0] }
 0x21f   :  { %v11640_v11 = vld [vmem:[#allocation5 + $0xb6c] sm:$0xf0]  ;;  %v11388_v2 = vld [vmem:[#allocation5 + $0x394] sm:$0xf] }
 0x220   :  { %v9333_v12 = vld [vmem:[#allocation5 + $0xd50] sm:$0xf]  ;;  %v9078_v17 = vor.u32 %v11640_v11, %v9077_v8  ;;  %4283 = vmatpush.bf16.msra.mxu0 %v8822_v16  ;;  %v4032_v8 = vpop.f32.mrf.mxu0  ;;  %v4071_v47 = vpop.f32.mrf.mxu3 }
 0x221   :  { %v11704_v13 = vld [vmem:[#allocation5 + $0xd6c] sm:$0xf0] }
 0x222   :  { %v9589_v14 = vld [vmem:[#allocation5 + $0xf50] sm:$0xf]  ;;  %v9334_v22 = vor.u32 %v11704_v13, %v9333_v12  ;;  %4296 = vmatpush.bf16.msra.mxu1 %v9078_v17 }
 0x223   :  { %v11768_v15 = vld [vmem:[#allocation5 + $0xf6c] sm:$0xf0] }
 0x224   :  { %v8789_v24 = vld [vmem:[#allocation5 + $0x910] sm:$0xf]  ;;  %v9590_v27 = vor.u32 %v11768_v15, %v9589_v14  ;;  %4309 = vmatpush.bf16.msra.mxu2 %v9334_v22  ;;  %v4045_v15 = vpop.f32.mrf.mxu1 }
 0x225   :  { %v11568_v25 = vld [vmem:[#allocation5 + $0x92c] sm:$0xf0] }
 0x226   :  { %v9045_v26 = vld [vmem:[#allocation5 + $0xb10] sm:$0xf]  ;;  %v8790_v36 = vor.u32 %v11568_v25, %v8789_v24  ;;  %4322 = vmatpush.bf16.msra.mxu3 %v9590_v27 }
 0x227   :  { %v11632_v29 = vld [vmem:[#allocation5 + $0xb2c] sm:$0xf0] }
 0x228   :  { %v9301_v30 = vld [vmem:[#allocation5 + $0xd10] sm:$0xf]  ;;  %v9046_v38 = vor.u32 %v11632_v29, %v9045_v26  ;;  %4284 = vmatpush.bf16.msra.mxu0 %v8790_v36 }
 0x229   :  { %v11696_v31 = vld [vmem:[#allocation5 + $0xd2c] sm:$0xf0] }
 0x22a   :  { %v9557_v32 = vld [vmem:[#allocation5 + $0xf10] sm:$0xf]  ;;  %v9302_v40 = vor.u32 %v11696_v31, %v9301_v30  ;;  %4297 = vmatpush.bf16.msra.mxu1 %v9046_v38  ;;  %v4058_v38 = vpop.f32.mrf.mxu2 }
 0x22b   :  { %v11760_v35 = vld [vmem:[#allocation5 + $0xf2c] sm:$0xf0]  ;;  %v8023_v38 = vld [vmem:[#allocation5 + $0x330] sm:$0xf0] }
 0x22c   :  { %v8757_v41 = vld [vmem:[#allocation5 + $0x8d0] sm:$0xf]  ;;  %v9558_v48 = vor.u32 %v11760_v35, %v9557_v32  ;;  %4310 = vmatpush.bf16.msra.mxu2 %v9302_v40 }
 0x22d   :  { %v11560_v46 = vld [vmem:[#allocation5 + $0x8ec] sm:$0xf0] }
 0x22e   :  { %v9013_v34 = vld [vmem:[#allocation5 + $0xad0] sm:$0xf]  ;;  %v8758_v5 = vor.u32 %v11560_v46, %v8757_v41  ;;  %4323 = vmatpush.bf16.msra.mxu3 %v9558_v48 }
 0x22f   :  { %v11624_v63 = vld [vmem:[#allocation5 + $0xaec] sm:$0xf0] }
 0x230   :  { %v9269_v50 = vld [vmem:[#allocation5 + $0xcd0] sm:$0xf]  ;;  %v9014_v54 = vor.u32 %v11624_v63, %v9013_v34  ;;  %4285 = vmatpush.bf16.msra.mxu0 %v8758_v5  ;;  %v11332_v63 = vld [vmem:[#allocation5 + $0x1d4] sm:$0xf] }
 0x231   :  { %v11688_v51 = vld [vmem:[#allocation5 + $0xcec] sm:$0xf0] }
 0x232   :  { %v9525_v52 = vld [vmem:[#allocation5 + $0xed0] sm:$0xf]  ;;  %v9270_v55 = vor.u32 %v11688_v51, %v9269_v50  ;;  %4298 = vmatpush.bf16.msra.mxu1 %v9014_v54  ;;  %v7863_v51 = vld [vmem:[#allocation5 + $0x1f0] sm:$0xf0] }
 0x233   :  { %v11752_v53 = vld [vmem:[#allocation5 + $0xeec] sm:$0xf0]  ;;  %v11460_v54 = vld [vmem:[#allocation5 + $0x5d4] sm:$0xf] }
 0x234   :  { %v8725_v56 = vld [vmem:[#allocation5 + $0x890] sm:$0xf]  ;;  %v9526_v10 = vor.u32 %v11752_v53, %v9525_v52  ;;  %4311 = vmatpush.bf16.msra.mxu2 %v9270_v55  ;;  %v11396_v52 = vld [vmem:[#allocation5 + $0x3d4] sm:$0xf] }
 0x235   :  { %v11552_v57 = vld [vmem:[#allocation5 + $0x8ac] sm:$0xf0]  ;;  %v8119_v53 = vld [vmem:[#allocation5 + $0x3f0] sm:$0xf0] }
 0x236   :  { %v8981_v58 = vld [vmem:[#allocation5 + $0xa90] sm:$0xf]  ;;  %v8726_v6 = vor.u32 %v11552_v57, %v8725_v56  ;;  %4324 = vmatpush.bf16.msra.mxu3 %v9526_v10  ;;  %v8375_v55 = vld [vmem:[#allocation5 + $0x5f0] sm:$0xf0]  ;;  %v8122_v59 = vor.u32 %v11396_v52, %v8119_v53 }
 0x237   :  { %v11616_v60 = vld [vmem:[#allocation5 + $0xaac] sm:$0xf0]  ;;  %v11300_v52 = vld [vmem:[#allocation5 + $0xd4] sm:$0xf] }
 0x238   :  { %v9237_v61 = vld [vmem:[#allocation5 + $0xc90] sm:$0xf]  ;;  %v8982_v9 = vor.u32 %v11616_v60, %v8981_v58  ;;  %4286 = vmatpush.bf16.msra.mxu0 %v8726_v6  ;;  %v7866_v58 = vor.u32 %v11332_v63, %v7863_v51  ;;  %v8343_v6 = vld [vmem:[#allocation5 + $0x5b0] sm:$0xf0] }
 0x239   :  { %v11680_v0 = vld [vmem:[#allocation5 + $0xcac] sm:$0xf0] }
 0x23a   :  { %v9493_v3 = vld [vmem:[#allocation5 + $0xe90] sm:$0xf]  ;;  %v9238_v11 = vor.u32 %v11680_v0, %v9237_v61  ;;  %4299 = vmatpush.bf16.msra.mxu1 %v8982_v9  ;;  %v11324_v61 = vld [vmem:[#allocation5 + $0x194] sm:$0xf]  ;;  %v8378_v0 = vor.u32 %v11460_v54, %v8375_v55 }
 0x23b   :  { %v11744_v4 = vld [vmem:[#allocation5 + $0xeac] sm:$0xf0]  ;;  %v7834_v9 = vor.u32 %v11324_v61, %v7831_v1  ;;  %v11364_v54 = vld [vmem:[#allocation5 + $0x2d4] sm:$0xf]  ;;  %v4108_v1 = vpop.f32.mrf.mxu2 }
 0x23c   :  { %v8693_v12 = vld [vmem:[#allocation5 + $0x850] sm:$0xf]  ;;  %v9494_v16 = vor.u32 %v11744_v4, %v9493_v3  ;;  %4312 = vmatpush.bf16.msra.mxu2 %v9238_v11  ;;  %v8087_v3 = vld [vmem:[#allocation5 + $0x3b0] sm:$0xf0] }
 0x23d   :  { %v11544_v13 = vld [vmem:[#allocation5 + $0x86c] sm:$0xf0]  ;;  %v11452_v4 = vld [vmem:[#allocation5 + $0x594] sm:$0xf]  ;;  %v8090_v11 = vor.u32 %v11388_v2, %v8087_v3 }
 0x23e   :  { %v8949_v14 = vld [vmem:[#allocation5 + $0xa50] sm:$0xf]  ;;  %v8694_v27 = vor.u32 %v11544_v13, %v8693_v12  ;;  %4325 = vmatpush.bf16.msra.mxu3 %v9494_v16  ;;  %v8346_v15 = vor.u32 %v11452_v4, %v8343_v6  ;;  %v7799_v16 = vld [vmem:[#allocation5 + $0x170] sm:$0xf0] }
 0x23f   :  { %v11608_v17 = vld [vmem:[#allocation5 + $0xa6c] sm:$0xf0]  ;;  %v7991_v55 = vld [vmem:[#allocation5 + $0x2f0] sm:$0xf0] }
 0x240   :  { %v9205_v22 = vld [vmem:[#allocation5 + $0xc50] sm:$0xf]  ;;  %v8950_v31 = vor.u32 %v11608_v17, %v8949_v14  ;;  %4287 = vmatpush.bf16.msra.mxu0 %v8694_v27  ;;  %v11316_v14 = vld [vmem:[#allocation5 + $0x154] sm:$0xf] }
 0x241   :  { %v11672_v24 = vld [vmem:[#allocation5 + $0xc6c] sm:$0xf0]  ;;  %v11380_v17 = vld [vmem:[#allocation5 + $0x354] sm:$0xf]  ;;  %v7802_v27 = vor.u32 %v11316_v14, %v7799_v16 }
 0x242   :  { %v9461_v25 = vld [vmem:[#allocation5 + $0xe50] sm:$0xf]  ;;  %v9206_v32 = vor.u32 %v11672_v24, %v9205_v22  ;;  %4300 = vmatpush.bf16.msra.mxu1 %v8950_v31  ;;  %v8055_v22 = vld [vmem:[#allocation5 + $0x370] sm:$0xf0] }
 0x243   :  { %v11736_v26 = vld [vmem:[#allocation5 + $0xe6c] sm:$0xf0]  ;;  %v11444_v24 = vld [vmem:[#allocation5 + $0x554] sm:$0xf] }
 0x244   :  { %v8661_v29 = vld [vmem:[#allocation5 + $0x810] sm:$0xf]  ;;  %v9462_v40 = vor.u32 %v11736_v26, %v9461_v25  ;;  %4313 = vmatpush.bf16.msra.mxu2 %v9206_v32  ;;  %v8311_v25 = vld [vmem:[#allocation5 + $0x570] sm:$0xf0] }
 0x245   :  { %v11536_v30 = vld [vmem:[#allocation5 + $0x82c] sm:$0xf0]  ;;  %v11308_v32 = vld [vmem:[#allocation5 + $0x114] sm:$0xf] }
 0x246   :  { %v8917_v35 = vld [vmem:[#allocation5 + $0xa10] sm:$0xf]  ;;  %v8662_v50 = vor.u32 %v11536_v30, %v8661_v29  ;;  %4326 = vmatpush.bf16.msra.mxu3 %v9462_v40  ;;  %v8058_v29 = vor.u32 %v11380_v17, %v8055_v22  ;;  %v4082_v40 = vpop.f32.mrf.mxu0  ;;  %v11292_v61 = vld [vmem:[#allocation5 + $0x94] sm:$0xf] }
 0x247   :  { %v11600_v36 = vld [vmem:[#allocation5 + $0xa2c] sm:$0xf0]  ;;  %v7703_v2 = vld [vmem:[#allocation5 + $0xb0] sm:$0xf0] }
 0x248   :  { %v9173_v37 = vld [vmem:[#allocation5 + $0xc10] sm:$0xf]  ;;  %v8918_v33 = vor.u32 %v11600_v36, %v8917_v35  ;;  %4288 = vmatpush.bf16.msra.mxu0 %v8662_v50  ;;  %v8314_v35 = vor.u32 %v11444_v24, %v8311_v25  ;;  %v7767_v36 = vld [vmem:[#allocation5 + $0x130] sm:$0xf0] }
 0x249   :  { %v11664_v41 = vld [vmem:[#allocation5 + $0xc2c] sm:$0xf0]  ;;  %v11356_v3 = vld [vmem:[#allocation5 + $0x294] sm:$0xf] }
 0x24a   :  { %v9429_v46 = vld [vmem:[#allocation5 + $0xe10] sm:$0xf]  ;;  %v9174_v5 = vor.u32 %v11664_v41, %v9173_v37  ;;  %4301 = vmatpush.bf16.msra.mxu1 %v8918_v33  ;;  %v11372_v37 = vld [vmem:[#allocation5 + $0x314] sm:$0xf] }
 0x24b   :  { %v11728_v34 = vld [vmem:[#allocation5 + $0xe2c] sm:$0xf0]  ;;  %4289 = vmatmul.bf16.vlgmr.msra.gmra.mxu0 %v12758_v42  ;;  %v11436_v41 = vld [vmem:[#allocation5 + $0x514] sm:$0xf]  ;;  %v8026_v63 = vor.u32 %v11372_v37, %v8023_v38 }
 0x24c   :  { %v9909_v62 = vld [vmem:[#allocation5 + $0x11d0] sm:$0xf]  ;;  %v9430_v56 = vor.u32 %v11728_v34, %v9429_v46  ;;  %4314 = vmatpush.bf16.msra.mxu2 %v9174_v5  ;;  %v8279_v46 = vld [vmem:[#allocation5 + $0x530] sm:$0xf0]  ;;  %v4083_v34 = vadd.f32 %v4082_v40, %v12828_v7 }
 0x24d   :  { %v11848_v48 = vld [vmem:[#allocation5 + $0x11ec] sm:$0xf0]  ;;  %4302 = vmatmul.bf16.vlgmr.msra.gmra.mxu1 %v12762_v45  ;;  %v8282_v53 = vor.u32 %v11436_v41, %v8279_v46  ;;  %v7735_v5 = vld [vmem:[#allocation5 + $0xf0] sm:$0xf0] }
 0x24e   :  { %v9910_v57 = vor.u32 %v11848_v48, %v9909_v62  ;;  %v9877_v10 = vld [vmem:[#allocation5 + $0x1190] sm:$0xf]  ;;  %4327 = vmatpush.bf16.msra.mxu3 %v9430_v56  ;;  %4346 = vmatpush.bf16.msrb.mxu1 %v7866_v58  ;;  %v4095_v62 = vpop.f32.mrf.mxu1  ;;  %v7770_v48 = vor.u32 %v11308_v32, %v7767_v36  ;;  %v11428_v56 = vld [vmem:[#allocation5 + $0x4d4] sm:$0xf]  ;;  %v7738_v7 = vor.u32 %v11300_v52, %v7735_v5 }
 0x24f   :  { %v11840_v60 = vld [vmem:[#allocation5 + $0x11ac] sm:$0xf0]  ;;  %4315 = vmatmul.bf16.vlgmr.msra.gmra.mxu2 %v12756_v39  ;;  %v4096_v33 = vadd.f32 %v4095_v62, %v4083_v34  ;;  %v7959_v4 = vld [vmem:[#allocation5 + $0x2b0] sm:$0xf0] }
 0x250   :  { %4333 = vmatpush.bf16.msrb.mxu0 %v9910_v57  ;;  %v9878_v8 = vor.u32 %v11840_v60, %v9877_v10  ;;  %4359 = vmatpush.bf16.msrb.mxu2 %v8122_v59  ;;  %v9845_v12 = vld [vmem:[#allocation5 + $0x1150] sm:$0xf]  ;;  %v8247_v57 = vld [vmem:[#allocation5 + $0x4f0] sm:$0xf0]  ;;  %v7994_v59 = vor.u32 %v11364_v54, %v7991_v55  ;;  %v7962_v16 = vor.u32 %v11356_v3, %v7959_v4 }
 0x251   :  { %v11832_v13 = vld [vmem:[#allocation5 + $0x116c] sm:$0xf0]  ;;  %4328 = vmatmul.bf16.vlgmr.msra.gmra.mxu3 %v12760_v43  ;;  %v12835_v6 = vadd.f32 %v4108_v1, %v4096_v33  ;;  %v11284_v24 = vld [vmem:[#allocation5 + $0x54] sm:$0xf] }
 0x252   :  { %4372 = vmatpush.bf16.msrb.mxu3 %v8378_v0  ;;  %v9846_v26 = vor.u32 %v11832_v13, %v9845_v12  ;;  %4347 = vmatpush.bf16.msrb.mxu1 %v7834_v9  ;;  %v9813_v30 = vld [vmem:[#allocation5 + $0x1110] sm:$0xf]  ;;  %v8250_v0 = vor.u32 %v11428_v56, %v8247_v57  ;;  %v8215_v9 = vld [vmem:[#allocation5 + $0x4b0] sm:$0xf0]  ;;  %v4084_v12 = vpop.f32.mrf.mxu0 }
 0x253   :  { %v11824_v31 = vld [vmem:[#allocation5 + $0x112c] sm:$0xf0]  ;;  %v11276_v40 = vld [vmem:[#allocation5 + $0x14] sm:$0xf] }
 0x254   :  { %4334 = vmatpush.bf16.msrb.mxu0 %v9878_v8  ;;  %4360 = vmatpush.bf16.msrb.mxu2 %v8090_v11  ;;  %v9814_v47 = vor.u32 %v11824_v31, %v9813_v30  ;;  %v9781_v50 = vld [vmem:[#allocation5 + $0x10d0] sm:$0xf]  ;;  %v11420_v8 = vld [vmem:[#allocation5 + $0x494] sm:$0xf]  ;;  %v12837_v11 = vpop.f32.mrf.mxu3 }
 0x255   :  { %v11816_v51 = vld [vmem:[#allocation5 + $0x10ec] sm:$0xf0]  ;;  %v8218_v25 = vor.u32 %v11420_v8, %v8215_v9  ;;  %v11412_v30 = vld [vmem:[#allocation5 + $0x454] sm:$0xf] }
 0x256   :  { %4373 = vmatpush.bf16.msrb.mxu3 %v8346_v15  ;;  %4348 = vmatpush.bf16.msrb.mxu1 %v7802_v27  ;;  %v9782_v58 = vor.u32 %v11816_v51, %v9781_v50  ;;  %v9749_v10 = vld [vmem:[#allocation5 + $0x1090] sm:$0xf]  ;;  %v4097_v14 = vpop.f32.mrf.mxu1  ;;  %v7706_v15 = vor.u32 %v11292_v61, %v7703_v2  ;;  %v11348_v27 = vld [vmem:[#allocation5 + $0x254] sm:$0xf] }
 0x257   :  { %v11808_v60 = vld [vmem:[#allocation5 + $0x10ac] sm:$0xf0]  ;;  %v8183_v31 = vld [vmem:[#allocation5 + $0x470] sm:$0xf0] }
 0x258   :  { %4335 = vmatpush.bf16.msrb.mxu0 %v9846_v26  ;;  %4361 = vmatpush.bf16.msrb.mxu2 %v8058_v29  ;;  %v9750_v13 = vor.u32 %v11808_v60, %v9749_v10  ;;  %v9717_v17 = vld [vmem:[#allocation5 + $0x1050] sm:$0xf]  ;;  %v7671_v26 = vld [vmem:[#allocation5 + $0x70] sm:$0xf0]  ;;  %v8186_v34 = vor.u32 %v11412_v30, %v8183_v31 }
 0x259   :  { %v11800_v22 = vld [vmem:[#allocation5 + $0x106c] sm:$0xf0]  ;;  %v7927_v29 = vld [vmem:[#allocation5 + $0x270] sm:$0xf0]  ;;  %v7674_v37 = vor.u32 %v11284_v24, %v7671_v26 }
 0x25a   :  { %4374 = vmatpush.bf16.msrb.mxu3 %v8314_v35  ;;  %4349 = vmatpush.bf16.msrb.mxu1 %v7770_v48  ;;  %v9718_v32 = vor.u32 %v11800_v22, %v9717_v17  ;;  %v9685_v35 = vld [vmem:[#allocation5 + $0x1010] sm:$0xf]  ;;  %v7930_v38 = vor.u32 %v11348_v27, %v7927_v29  ;;  %v7639_v41 = vld [vmem:[#allocation5 + $0x30] sm:$0xf0] }
 0x25b   :  { %v11792_v36 = vld [vmem:[#allocation5 + $0x102c] sm:$0xf0]  ;;  %v11340_v46 = vld [vmem:[#allocation5 + $0x214] sm:$0xf]  ;;  %v7642_v56 = vor.u32 %v11276_v40, %v7639_v41 }
 0x25c   :  { %4336 = vmatpush.bf16.msrb.mxu0 %v9814_v47  ;;  %4362 = vmatpush.bf16.msrb.mxu2 %v8026_v63  ;;  %v7895_v47 = vld [vmem:[#allocation5 + $0x230] sm:$0xf0]  ;;  %v4110_v63 = vpop.f32.mrf.mxu2  ;;  %v9686_v33 = vor.u32 %v11792_v36, %v9685_v35 }
 0x25d   :  { %v11404_v62 = vld [vmem:[#allocation5 + $0x414] sm:$0xf]  ;;  %v7898_v57 = vor.u32 %v11340_v46, %v7895_v47 }
 0x25e   :  { %4375 = vmatpush.bf16.msrb.mxu3 %v8282_v53  ;;  %4350 = vmatpush.bf16.msrb.mxu1 %v7738_v7  ;;  %v8151_v48 = vld [vmem:[#allocation5 + $0x430] sm:$0xf0]  ;;  %v4123_v53 = vpop.f32.mrf.mxu3 }
 0x25f   :  { %v11524_v50 = vld [vmem:[#allocation5 + $0x7d4] sm:$0xf] }
 0x260   :  { %4337 = vmatpush.bf16.msrb.mxu0 %v9782_v58  ;;  %4363 = vmatpush.bf16.msrb.mxu2 %v7994_v59  ;;  %v8631_v51 = vld [vmem:[#allocation5 + $0x7f0] sm:$0xf0]  ;;  %v8154_v59 = vor.u32 %v11404_v62, %v8151_v48 }
 0x261   :  { %v11588_v52 = vld [vmem:[#allocation5 + $0x9d4] sm:$0xf]  ;;  %v8634_v10 = vor.u32 %v11524_v50, %v8631_v51  ;;  %v4134_v51 = vpop.f32.mrf.mxu0 }
 0x262   :  { %4376 = vmatpush.bf16.msrb.mxu3 %v8250_v0  ;;  %4351 = vmatpush.bf16.msrb.mxu1 %v7706_v15  ;;  %v8887_v5 = vld [vmem:[#allocation5 + $0x9f0] sm:$0xf0] }
 0x263   :  { %v11652_v54 = vld [vmem:[#allocation5 + $0xbd4] sm:$0xf]  ;;  %v8890_v60 = vor.u32 %v11588_v52, %v8887_v5 }
 0x264   :  { %4338 = vmatpush.bf16.msrb.mxu0 %v9750_v13  ;;  %4364 = vmatpush.bf16.msrb.mxu2 %v7962_v16  ;;  %v9143_v55 = vld [vmem:[#allocation5 + $0xbf0] sm:$0xf0] }
 0x265   :  { %v11716_v58 = vld [vmem:[#allocation5 + $0xdd4] sm:$0xf]  ;;  %v9146_v61 = vor.u32 %v11652_v54, %v9143_v55  ;;  %v4147_v55 = vpop.f32.mrf.mxu1 }
 0x266   :  { %4377 = vmatpush.bf16.msrb.mxu3 %v8218_v25  ;;  %4352 = vmatpush.bf16.msrb.mxu1 %v7674_v37  ;;  %v9399_v7 = vld [vmem:[#allocation5 + $0xdf0] sm:$0xf0]  ;;  %v836_v25 = vperm.slane %v12818_v49, 3 }
 0x267   :  { %v11516_v0 = vld [vmem:[#allocation5 + $0x794] sm:$0xf]  ;;  %v9402_v3 = vor.u32 %v11716_v58, %v9399_v7 }
 0x268   :  { %4339 = vmatpush.bf16.msrb.mxu0 %v9718_v32  ;;  %4365 = vmatpush.bf16.msrb.mxu2 %v7930_v38  ;;  %v8599_v1 = vld [vmem:[#allocation5 + $0x7b0] sm:$0xf0]  ;;  %v4122_v37 = vadd.f32 %v12837_v11, %v836_v25 }
 0x269   :  { %v11580_v2 = vld [vmem:[#allocation5 + $0x994] sm:$0xf]  ;;  %v8602_v14 = vor.u32 %v11516_v0, %v8599_v1 }
 0x26a   :  { %4378 = vmatpush.bf16.msrb.mxu3 %v8186_v34  ;;  %v8855_v4 = vld [vmem:[#allocation5 + $0x9b0] sm:$0xf0]  ;;  %4353 = vmatpush.bf16.msrb.mxu1 %v7642_v56  ;;  %v4135_v54 = vadd.f32 %v4134_v51, %v4122_v37 }
 0x26b   :  { %v11644_v8 = vld [vmem:[#allocation5 + $0xb94] sm:$0xf]  ;;  %v8858_v16 = vor.u32 %v11580_v2, %v8855_v4 }
 0x26c   :  { %4340 = vmatpush.bf16.msrb.mxu0 %v9686_v33  ;;  %v9111_v9 = vld [vmem:[#allocation5 + $0xbb0] sm:$0xf0]  ;;  %4366 = vmatpush.bf16.msrb.mxu2 %v7898_v57 }
 0x26d   :  { %v11708_v12 = vld [vmem:[#allocation5 + $0xd94] sm:$0xf]  ;;  %v9114_v17 = vor.u32 %v11644_v8, %v9111_v9  ;;  %4354 = vmatmul.bf16.vlgmr.msrb.gmra.mxu1 %v12746_v20  ;;  %v4160_v8 = vpop.f32.mrf.mxu2 }
 0x26e   :  { %v9367_v13 = vld [vmem:[#allocation5 + $0xdb0] sm:$0xf0]  ;;  %4379 = vmatpush.bf16.msrb.mxu3 %v8154_v59  ;;  %4398 = vmatpush.bf16.msra.mxu1 %v8890_v60  ;;  %v4148_v60 = vadd.f32 %v4147_v55, %v4135_v54 }
 0x26f   :  { %v11508_v15 = vld [vmem:[#allocation5 + $0x754] sm:$0xf]  ;;  %4341 = vmatmul.bf16.vlgmr.msrb.gmra.mxu0 %v12768_v18  ;;  %v9370_v26 = vor.u32 %v11708_v12, %v9367_v13  ;;  %4367 = vmatmul.bf16.vlgmr.msrb.gmra.mxu2 %v12750_v23 }
 0x270   :  { %4385 = vmatpush.bf16.msra.mxu0 %v8634_v10  ;;  %4411 = vmatpush.bf16.msra.mxu2 %v9146_v61  ;;  %v8567_v22 = vld [vmem:[#allocation5 + $0x770] sm:$0xf0] }
 0x271   :  { %v11572_v24 = vld [vmem:[#allocation5 + $0x954] sm:$0xf]  ;;  %4380 = vmatmul.bf16.vlgmr.msrb.gmra.mxu3 %v12744_v19  ;;  %v8570_v35 = vor.u32 %v11508_v15, %v8567_v22  ;;  %v4161_v15 = vadd.f32 %v4160_v8, %v4148_v60 }
 0x272   :  { %4424 = vmatpush.bf16.msra.mxu3 %v9402_v3  ;;  %v8823_v27 = vld [vmem:[#allocation5 + $0x970] sm:$0xf0]  ;;  %4399 = vmatpush.bf16.msra.mxu1 %v8858_v16  ;;  %v4173_v16 = vpop.f32.mrf.mxu3 }
 0x273   :  { %v11636_v29 = vld [vmem:[#allocation5 + $0xb54] sm:$0xf]  ;;  %v8826_v49 = vor.u32 %v11572_v24, %v8823_v27  ;;  %v12845_v25 = vadd.f32 %v4173_v16, %v4161_v15  ;;  %v7837_v16 = vld [vmem:[#allocation5 + $0x198] sm:$0xf] }
 0x274   :  { %v9079_v30 = vld [vmem:[#allocation5 + $0xb70] sm:$0xf0]  ;;  %4386 = vmatpush.bf16.msra.mxu0 %v8602_v14  ;;  %4412 = vmatpush.bf16.msra.mxu2 %v9114_v17 }
 0x275   :  { %v11700_v31 = vld [vmem:[#allocation5 + $0xd54] sm:$0xf]  ;;  %v9082_v36 = vor.u32 %v11636_v29, %v9079_v30 }
 0x276   :  { %v9335_v32 = vld [vmem:[#allocation5 + $0xd70] sm:$0xf0]  ;;  %4425 = vmatpush.bf16.msra.mxu3 %v9370_v26  ;;  %4400 = vmatpush.bf16.msra.mxu1 %v8826_v49  ;;  %v4136_v26 = vpop.f32.mrf.mxu0 }
 0x277   :  { %v11500_v38 = vld [vmem:[#allocation5 + $0x714] sm:$0xf]  ;;  %v9338_v46 = vor.u32 %v11700_v31, %v9335_v32 }
 0x278   :  { %v8535_v40 = vld [vmem:[#allocation5 + $0x730] sm:$0xf0]  ;;  %4387 = vmatpush.bf16.msra.mxu0 %v8570_v35  ;;  %4413 = vmatpush.bf16.msra.mxu2 %v9082_v36  ;;  %v4149_v35 = vpop.f32.mrf.mxu1 }
 0x279   :  { %v11564_v41 = vld [vmem:[#allocation5 + $0x914] sm:$0xf]  ;;  %v8538_v50 = vor.u32 %v11500_v38, %v8535_v40 }
 0x27a   :  { %v8791_v34 = vld [vmem:[#allocation5 + $0x930] sm:$0xf0]  ;;  %4426 = vmatpush.bf16.msra.mxu3 %v9338_v46  ;;  %v4175_v54 = vpop.f32.mrf.mxu3 }
 0x27b   :  { %v11628_v47 = vld [vmem:[#allocation5 + $0xb14] sm:$0xf]  ;;  %v8794_v52 = vor.u32 %v11564_v41, %v8791_v34 }
 0x27c   :  { %v9047_v62 = vld [vmem:[#allocation5 + $0xb30] sm:$0xf0]  ;;  %4388 = vmatpush.bf16.msra.mxu0 %v8538_v50 }
 0x27d   :  { %v11692_v48 = vld [vmem:[#allocation5 + $0xd14] sm:$0xf]  ;;  %v9050_v53 = vor.u32 %v11628_v47, %v9047_v62  ;;  %4401 = vmatpush.bf16.msra.mxu1 %v8794_v52  ;;  %v4162_v52 = vpop.f32.mrf.mxu2 }
 0x27e   :  { %v9303_v63 = vld [vmem:[#allocation5 + $0xd30] sm:$0xf0]  ;;  %v11313_v52 = vld [vmem:[#allocation5 + $0x134] sm:$0xf0] }
 0x27f   :  { %v11492_v33 = vld [vmem:[#allocation5 + $0x6d4] sm:$0xf]  ;;  %v9306_v56 = vor.u32 %v11692_v48, %v9303_v63  ;;  %4414 = vmatpush.bf16.msra.mxu2 %v9050_v53 }
 0x280   :  { %v8503_v5 = vld [vmem:[#allocation5 + $0x6f0] sm:$0xf0] }
 0x281   :  { %v11556_v11 = vld [vmem:[#allocation5 + $0x8d4] sm:$0xf]  ;;  %v8506_v61 = vor.u32 %v11492_v33, %v8503_v5  ;;  %4427 = vmatpush.bf16.msra.mxu3 %v9306_v56 }
 0x282   :  { %v8759_v57 = vld [vmem:[#allocation5 + $0x8f0] sm:$0xf0] }
 0x283   :  { %v11620_v58 = vld [vmem:[#allocation5 + $0xad4] sm:$0xf]  ;;  %v8762_v0 = vor.u32 %v11556_v11, %v8759_v57  ;;  %4389 = vmatpush.bf16.msra.mxu0 %v8506_v61 }
 0x284   :  { %v9015_v7 = vld [vmem:[#allocation5 + $0xaf0] sm:$0xf0] }
 0x285   :  { %v11684_v59 = vld [vmem:[#allocation5 + $0xcd4] sm:$0xf]  ;;  %v9018_v1 = vor.u32 %v11620_v58, %v9015_v7  ;;  %4402 = vmatpush.bf16.msra.mxu1 %v8762_v0  ;;  %v8125_v0 = vld [vmem:[#allocation5 + $0x3d8] sm:$0xf] }
 0x286   :  { %v9271_v10 = vld [vmem:[#allocation5 + $0xcf0] sm:$0xf0] }
 0x287   :  { %v11484_v2 = vld [vmem:[#allocation5 + $0x694] sm:$0xf]  ;;  %v9274_v9 = vor.u32 %v11684_v59, %v9271_v10  ;;  %4415 = vmatpush.bf16.msra.mxu2 %v9018_v1  ;;  %v7869_v59 = vld [vmem:[#allocation5 + $0x1d8] sm:$0xf] }
 0x288   :  { %v8471_v3 = vld [vmem:[#allocation5 + $0x6b0] sm:$0xf0]  ;;  %v11337_v10 = vld [vmem:[#allocation5 + $0x1f4] sm:$0xf0] }
 0x289   :  { %v11548_v4 = vld [vmem:[#allocation5 + $0x894] sm:$0xf]  ;;  %v8474_v24 = vor.u32 %v11484_v2, %v8471_v3  ;;  %4428 = vmatpush.bf16.msra.mxu3 %v9274_v9  ;;  %v11401_v1 = vld [vmem:[#allocation5 + $0x3f4] sm:$0xf0]  ;;  %v7870_v8 = vor.u32 %v11337_v10, %v7869_v59 }
 0x28a   :  { %v8727_v12 = vld [vmem:[#allocation5 + $0x8b0] sm:$0xf0] }
 0x28b   :  { %v11612_v13 = vld [vmem:[#allocation5 + $0xa94] sm:$0xf]  ;;  %v8730_v27 = vor.u32 %v11548_v4, %v8727_v12  ;;  %4390 = vmatpush.bf16.msra.mxu0 %v8474_v24  ;;  %v11393_v24 = vld [vmem:[#allocation5 + $0x3b4] sm:$0xf0] }
 0x28c   :  { %v8983_v14 = vld [vmem:[#allocation5 + $0xab0] sm:$0xf0] }
 0x28d   :  { %v11676_v17 = vld [vmem:[#allocation5 + $0xc94] sm:$0xf]  ;;  %v8986_v29 = vor.u32 %v11612_v13, %v8983_v14  ;;  %4403 = vmatpush.bf16.msra.mxu1 %v8730_v27  ;;  %v8126_v14 = vor.u32 %v11401_v1, %v8125_v0  ;;  %v7741_v0 = vld [vmem:[#allocation5 + $0xd8] sm:$0xf] }
 0x28e   :  { %v9239_v22 = vld [vmem:[#allocation5 + $0xcb0] sm:$0xf0]  ;;  %v11305_v1 = vld [vmem:[#allocation5 + $0xf4] sm:$0xf0] }
 0x28f   :  { %v11476_v30 = vld [vmem:[#allocation5 + $0x654] sm:$0xf]  ;;  %v9242_v49 = vor.u32 %v11676_v17, %v9239_v22  ;;  %4416 = vmatpush.bf16.msra.mxu2 %v8986_v29  ;;  %v11329_v17 = vld [vmem:[#allocation5 + $0x1b4] sm:$0xf0] }
 0x290   :  { %v8439_v31 = vld [vmem:[#allocation5 + $0x670] sm:$0xf0]  ;;  %v8093_v22 = vld [vmem:[#allocation5 + $0x398] sm:$0xf]  ;;  %v7838_v29 = vor.u32 %v11329_v17, %v7837_v16 }
 0x291   :  { %v11540_v32 = vld [vmem:[#allocation5 + $0x854] sm:$0xf]  ;;  %v8442_v46 = vor.u32 %v11476_v30, %v8439_v31  ;;  %4429 = vmatpush.bf16.msra.mxu3 %v9242_v49  ;;  %v8094_v35 = vor.u32 %v11393_v24, %v8093_v22  ;;  %v7709_v17 = vld [vmem:[#allocation5 + $0x98] sm:$0xf] }
 0x292   :  { %v8695_v36 = vld [vmem:[#allocation5 + $0x870] sm:$0xf0]  ;;  %v11297_v22 = vld [vmem:[#allocation5 + $0xb4] sm:$0xf0] }
 0x293   :  { %v11604_v37 = vld [vmem:[#allocation5 + $0xa54] sm:$0xf]  ;;  %v8698_v62 = vor.u32 %v11540_v32, %v8695_v36  ;;  %4391 = vmatpush.bf16.msra.mxu0 %v8442_v46  ;;  %v7805_v36 = vld [vmem:[#allocation5 + $0x158] sm:$0xf] }
 0x294   :  { %v8951_v38 = vld [vmem:[#allocation5 + $0xa70] sm:$0xf0] }
 0x295   :  { %v11668_v40 = vld [vmem:[#allocation5 + $0xc54] sm:$0xf]  ;;  %v8954_v48 = vor.u32 %v11604_v37, %v8951_v38  ;;  %4404 = vmatpush.bf16.msra.mxu1 %v8698_v62  ;;  %v11321_v37 = vld [vmem:[#allocation5 + $0x174] sm:$0xf0] }
 0x296   :  { %v9207_v41 = vld [vmem:[#allocation5 + $0xc70] sm:$0xf0]  ;;  %v8061_v38 = vld [vmem:[#allocation5 + $0x358] sm:$0xf] }
 0x297   :  { %v11468_v34 = vld [vmem:[#allocation5 + $0x614] sm:$0xf]  ;;  %v9210_v53 = vor.u32 %v11668_v40, %v9207_v41  ;;  %4417 = vmatpush.bf16.msra.mxu2 %v8954_v48  ;;  %v11385_v40 = vld [vmem:[#allocation5 + $0x374] sm:$0xf0] }
 0x298   :  { %v8407_v47 = vld [vmem:[#allocation5 + $0x630] sm:$0xf0] }
 0x299   :  { %v11532_v63 = vld [vmem:[#allocation5 + $0x814] sm:$0xf]  ;;  %v8410_v58 = vor.u32 %v11468_v34, %v8407_v47  ;;  %4430 = vmatpush.bf16.msra.mxu3 %v9210_v53  ;;  %v7806_v34 = vor.u32 %v11321_v37, %v7805_v36  ;;  %v4186_v53 = vpop.f32.mrf.mxu0  ;;  %v7710_v36 = vor.u32 %v11297_v22, %v7709_v17  ;;  %v8605_v17 = vld [vmem:[#allocation5 + $0x798] sm:$0xf] }
 0x29a   :  { %v8663_v50 = vld [vmem:[#allocation5 + $0x830] sm:$0xf0] }
 0x29b   :  { %v11596_v51 = vld [vmem:[#allocation5 + $0xa14] sm:$0xf]  ;;  %v8666_v60 = vor.u32 %v11532_v63, %v8663_v50  ;;  %4392 = vmatpush.bf16.msra.mxu0 %v8410_v58  ;;  %v8062_v63 = vor.u32 %v11385_v40, %v8061_v38 }
 0x29c   :  { %v8919_v33 = vld [vmem:[#allocation5 + $0xa30] sm:$0xf0] }
 0x29d   :  { %v11660_v5 = vld [vmem:[#allocation5 + $0xc14] sm:$0xf]  ;;  %v8922_v61 = vor.u32 %v11596_v51, %v8919_v33  ;;  %4405 = vmatpush.bf16.msra.mxu1 %v8666_v60  ;;  %v7773_v51 = vld [vmem:[#allocation5 + $0x118] sm:$0xf] }
 0x29e   :  { %v9175_v11 = vld [vmem:[#allocation5 + $0xc30] sm:$0xf0]  ;;  %4393 = vmatmul.bf16.vlgmr.msra.gmra.mxu0 %v12748_v21  ;;  %v8029_v33 = vld [vmem:[#allocation5 + $0x318] sm:$0xf] }
 0x29f   :  { %v11780_v55 = vld [vmem:[#allocation5 + $0xfd4] sm:$0xf]  ;;  %v9178_v2 = vor.u32 %v11660_v5, %v9175_v11  ;;  %4418 = vmatpush.bf16.msra.mxu2 %v8922_v61  ;;  %v11377_v5 = vld [vmem:[#allocation5 + $0x334] sm:$0xf0]  ;;  %v4187_v11 = vadd.f32 %v4186_v53, %v12845_v25 }
 0x2a0   :  { %v9655_v56 = vld [vmem:[#allocation5 + $0xff0] sm:$0xf0]  ;;  %4406 = vmatmul.bf16.vlgmr.msra.gmra.mxu1 %v12758_v42  ;;  %v8030_v10 = vor.u32 %v11377_v5, %v8029_v33 }
 0x2a1   :  { %v11844_v57 = vld [vmem:[#allocation5 + $0x11d4] sm:$0xf]  ;;  %v9658_v3 = vor.u32 %v11780_v55, %v9655_v56  ;;  %4431 = vmatpush.bf16.msra.mxu3 %v9178_v2  ;;  %v4199_v55 = vpop.f32.mrf.mxu1  ;;  %v7997_v2 = vld [vmem:[#allocation5 + $0x2d8] sm:$0xf] }
 0x2a2   :  { %v9911_v7 = vld [vmem:[#allocation5 + $0x11f0] sm:$0xf0]  ;;  %4419 = vmatmul.bf16.vlgmr.msra.gmra.mxu2 %v12762_v45  ;;  %v4200_v60 = vadd.f32 %v4199_v55, %v4187_v11  ;;  %v7645_v11 = vld [vmem:[#allocation5 + $0x18] sm:$0xf] }
 0x2a3   :  { %v9914_v4 = vor.u32 %v11844_v57, %v9911_v7  ;;  %v11772_v9 = vld [vmem:[#allocation5 + $0xf94] sm:$0xf]  ;;  %4437 = vmatpush.bf16.msrb.mxu0 %v9658_v3  ;;  %4463 = vmatpush.bf16.msrb.mxu2 %v7870_v8  ;;  %v7774_v57 = vor.u32 %v11313_v52, %v7773_v51  ;;  %v11369_v3 = vld [vmem:[#allocation5 + $0x2f4] sm:$0xf0]  ;;  %v7742_v8 = vor.u32 %v11305_v1, %v7741_v0 }
 0x2a4   :  { %v9623_v12 = vld [vmem:[#allocation5 + $0xfb0] sm:$0xf0]  ;;  %4432 = vmatmul.bf16.vlgmr.msra.gmra.mxu3 %v12756_v39  ;;  %v11281_v55 = vld [vmem:[#allocation5 + $0x34] sm:$0xf0] }
 0x2a5   :  { %v11836_v13 = vld [vmem:[#allocation5 + $0x1194] sm:$0xf]  ;;  %v9626_v26 = vor.u32 %v11772_v9, %v9623_v12  ;;  %4450 = vmatpush.bf16.msrb.mxu1 %v9914_v4  ;;  %4476 = vmatpush.bf16.msrb.mxu3 %v8126_v14  ;;  %v7998_v14 = vor.u32 %v11369_v3, %v7997_v2  ;;  %v11529_v0 = vld [vmem:[#allocation5 + $0x7f4] sm:$0xf0] }
 0x2a6   :  { %v9879_v15 = vld [vmem:[#allocation5 + $0x11b0] sm:$0xf0]  ;;  %v8893_v1 = vld [vmem:[#allocation5 + $0x9d8] sm:$0xf] }
 0x2a7   :  { %v9882_v27 = vor.u32 %v11836_v13, %v9879_v15  ;;  %v11764_v30 = vld [vmem:[#allocation5 + $0xf54] sm:$0xf]  ;;  %4438 = vmatpush.bf16.msrb.mxu0 %v9626_v26  ;;  %4464 = vmatpush.bf16.msrb.mxu2 %v7838_v29  ;;  %v4212_v15 = vpop.f32.mrf.mxu2  ;;  %v4225_v26 = vpop.f32.mrf.mxu3  ;;  %v11361_v29 = vld [vmem:[#allocation5 + $0x2b4] sm:$0xf0] }
 0x2a8   :  { %v9591_v31 = vld [vmem:[#allocation5 + $0xf70] sm:$0xf0]  ;;  %v4213_v24 = vadd.f32 %v4212_v15, %v4200_v60  ;;  %v11593_v2 = vld [vmem:[#allocation5 + $0x9f4] sm:$0xf0] }
 0x2a9   :  { %v11828_v32 = vld [vmem:[#allocation5 + $0x1154] sm:$0xf]  ;;  %v9594_v41 = vor.u32 %v11764_v30, %v9591_v31  ;;  %4451 = vmatpush.bf16.msrb.mxu1 %v9882_v27  ;;  %4477 = vmatpush.bf16.msrb.mxu3 %v8094_v35  ;;  %v7965_v27 = vld [vmem:[#allocation5 + $0x298] sm:$0xf]  ;;  %v4188_v30 = vpop.f32.mrf.mxu0 }
 0x2aa   :  { %v9847_v49 = vld [vmem:[#allocation5 + $0x1170] sm:$0xf0]  ;;  %v12852_v35 = vadd.f32 %v4225_v26, %v4213_v24  ;;  %v8349_v15 = vld [vmem:[#allocation5 + $0x598] sm:$0xf] }
 0x2ab   :  { %v9850_v46 = vor.u32 %v11828_v32, %v9847_v49  ;;  %v11756_v47 = vld [vmem:[#allocation5 + $0xf14] sm:$0xf]  ;;  %4439 = vmatpush.bf16.msrb.mxu0 %v9594_v41  ;;  %4465 = vmatpush.bf16.msrb.mxu2 %v7806_v34  ;;  %v4201_v32 = vpop.f32.mrf.mxu1  ;;  %v7966_v41 = vor.u32 %v11361_v29, %v7965_v27  ;;  %v7677_v34 = vld [vmem:[#allocation5 + $0x58] sm:$0xf] }
 0x2ac   :  { %v9559_v62 = vld [vmem:[#allocation5 + $0xf30] sm:$0xf0]  ;;  %v11521_v24 = vld [vmem:[#allocation5 + $0x7b4] sm:$0xf0] }
 0x2ad   :  { %v11820_v48 = vld [vmem:[#allocation5 + $0x1114] sm:$0xf]  ;;  %v9562_v54 = vor.u32 %v11756_v47, %v9559_v62  ;;  %4452 = vmatpush.bf16.msrb.mxu1 %v9850_v46  ;;  %4478 = vmatpush.bf16.msrb.mxu3 %v8062_v63  ;;  %v11289_v47 = vld [vmem:[#allocation5 + $0x74] sm:$0xf0]  ;;  %v8606_v32 = vor.u32 %v11521_v24, %v8605_v17 }
 0x2ae   :  { %v9815_v50 = vld [vmem:[#allocation5 + $0x1130] sm:$0xf0]  ;;  %v7933_v62 = vld [vmem:[#allocation5 + $0x258] sm:$0xf]  ;;  %v7678_v53 = vor.u32 %v11289_v47, %v7677_v34 }
 0x2af   :  { %v9818_v56 = vor.u32 %v11820_v48, %v9815_v50  ;;  %v11748_v58 = vld [vmem:[#allocation5 + $0xed4] sm:$0xf]  ;;  %4440 = vmatpush.bf16.msrb.mxu0 %v9562_v54  ;;  %4466 = vmatpush.bf16.msrb.mxu2 %v7774_v57  ;;  %v11353_v48 = vld [vmem:[#allocation5 + $0x274] sm:$0xf0]  ;;  %v4227_v60 = vpop.f32.mrf.mxu3 }
 0x2b0   :  { %v9527_v7 = vld [vmem:[#allocation5 + $0xef0] sm:$0xf0]  ;;  %v7934_v54 = vor.u32 %v11353_v48, %v7933_v62  ;;  %v11345_v57 = vld [vmem:[#allocation5 + $0x234] sm:$0xf0] }
 0x2b1   :  { %v11812_v59 = vld [vmem:[#allocation5 + $0x10d4] sm:$0xf]  ;;  %v9530_v4 = vor.u32 %v11748_v58, %v9527_v7  ;;  %4453 = vmatpush.bf16.msrb.mxu1 %v9818_v56  ;;  %4479 = vmatpush.bf16.msrb.mxu3 %v8030_v10  ;;  %v7901_v56 = vld [vmem:[#allocation5 + $0x218] sm:$0xf]  ;;  %v4214_v58 = vpop.f32.mrf.mxu2 }
 0x2b2   :  { %v9783_v61 = vld [vmem:[#allocation5 + $0x10f0] sm:$0xf0]  ;;  %v8381_v7 = vld [vmem:[#allocation5 + $0x5d8] sm:$0xf] }
 0x2b3   :  { %v9786_v25 = vor.u32 %v11812_v59, %v9783_v61  ;;  %v11740_v9 = vld [vmem:[#allocation5 + $0xe94] sm:$0xf]  ;;  %4441 = vmatpush.bf16.msrb.mxu0 %v9530_v4  ;;  %4467 = vmatpush.bf16.msrb.mxu2 %v7742_v8  ;;  %v11465_v59 = vld [vmem:[#allocation5 + $0x5f4] sm:$0xf0]  ;;  %v7646_v4 = vor.u32 %v11281_v55, %v7645_v11 }
 0x2b4   :  { %v9495_v12 = vld [vmem:[#allocation5 + $0xeb0] sm:$0xf0]  ;;  %v8637_v10 = vld [vmem:[#allocation5 + $0x7d8] sm:$0xf] }
 0x2b5   :  { %v11804_v13 = vld [vmem:[#allocation5 + $0x1094] sm:$0xf]  ;;  %v9498_v31 = vor.u32 %v11740_v9, %v9495_v12  ;;  %4454 = vmatpush.bf16.msrb.mxu1 %v9786_v25  ;;  %4480 = vmatpush.bf16.msrb.mxu3 %v7998_v14  ;;  %v9149_v25 = vld [vmem:[#allocation5 + $0xbd8] sm:$0xf]  ;;  %v7902_v9 = vor.u32 %v11345_v57, %v7901_v56  ;;  %v8382_v12 = vor.u32 %v11465_v59, %v8381_v7  ;;  %v4238_v59 = vpop.f32.mrf.mxu0 }
 0x2b6   :  { %v9751_v16 = vld [vmem:[#allocation5 + $0x10b0] sm:$0xf0]  ;;  %v11657_v8 = vld [vmem:[#allocation5 + $0xbf4] sm:$0xf0]  ;;  %v8894_v14 = vor.u32 %v11593_v2, %v8893_v1 }
 0x2b7   :  { %v9754_v49 = vor.u32 %v11804_v13, %v9751_v16  ;;  %v11732_v37 = vld [vmem:[#allocation5 + $0xe54] sm:$0xf]  ;;  %4442 = vmatpush.bf16.msrb.mxu0 %v9498_v31  ;;  %4468 = vmatpush.bf16.msrb.mxu2 %v7710_v36  ;;  %v8638_v13 = vor.u32 %v11529_v0, %v8637_v10  ;;  %v11457_v16 = vld [vmem:[#allocation5 + $0x5b4] sm:$0xf0]  ;;  %v9150_v22 = vor.u32 %v11657_v8, %v9149_v25 }
 0x2b8   :  { %v9463_v38 = vld [vmem:[#allocation5 + $0xe70] sm:$0xf0]  ;;  %v8861_v26 = vld [vmem:[#allocation5 + $0x998] sm:$0xf]  ;;  %v8350_v31 = vor.u32 %v11457_v16, %v8349_v15 }
 0x2b9   :  { %v11796_v40 = vld [vmem:[#allocation5 + $0x1054] sm:$0xf]  ;;  %v9466_v63 = vor.u32 %v11732_v37, %v9463_v38  ;;  %4455 = vmatpush.bf16.msrb.mxu1 %v9754_v49  ;;  %4481 = vmatpush.bf16.msrb.mxu3 %v7966_v41  ;;  %v11585_v27 = vld [vmem:[#allocation5 + $0x9b4] sm:$0xf0] }
 0x2ba   :  { %v9719_v46 = vld [vmem:[#allocation5 + $0x1070] sm:$0xf0]  ;;  %v9117_v29 = vld [vmem:[#allocation5 + $0xb98] sm:$0xf]  ;;  %v8862_v49 = vor.u32 %v11585_v27, %v8861_v26  ;;  %v4264_v27 = vpop.f32.mrf.mxu2 }
 0x2bb   :  { %v11724_v50 = vld [vmem:[#allocation5 + $0xe14] sm:$0xf]  ;;  %v9722_v52 = vor.u32 %v11796_v40, %v9719_v46  ;;  %4443 = vmatpush.bf16.msrb.mxu0 %v9466_v63  ;;  %4469 = vmatpush.bf16.msrb.mxu2 %v7678_v53  ;;  %v11649_v30 = vld [vmem:[#allocation5 + $0xbb4] sm:$0xf0] }
 0x2bc   :  { %v9431_v51 = vld [vmem:[#allocation5 + $0xe30] sm:$0xf0]  ;;  %v8317_v36 = vld [vmem:[#allocation5 + $0x558] sm:$0xf]  ;;  %v9118_v40 = vor.u32 %v11649_v30, %v9117_v29 }
 0x2bd   :  { %v11788_v33 = vld [vmem:[#allocation5 + $0x1014] sm:$0xf]  ;;  %v9434_v61 = vor.u32 %v11724_v50, %v9431_v51  ;;  %4456 = vmatpush.bf16.msrb.mxu1 %v9722_v52  ;;  %4482 = vmatpush.bf16.msrb.mxu3 %v7934_v54  ;;  %v11449_v37 = vld [vmem:[#allocation5 + $0x574] sm:$0xf0] }
 0x2be   :  { %v9687_v5 = vld [vmem:[#allocation5 + $0x1030] sm:$0xf0]  ;;  %v8573_v38 = vld [vmem:[#allocation5 + $0x758] sm:$0xf]  ;;  %v8318_v48 = vor.u32 %v11449_v37, %v8317_v36  ;;  %v4277_v36 = vpop.f32.mrf.mxu3 }
 0x2bf   :  { %v9690_v3 = vor.u32 %v11788_v33, %v9687_v5  ;;  %4444 = vmatpush.bf16.msrb.mxu0 %v9434_v61  ;;  %4470 = vmatpush.bf16.msrb.mxu2 %v7646_v4  ;;  %v11513_v41 = vld [vmem:[#allocation5 + $0x774] sm:$0xf0]  ;;  %v12858_v33 = vld [vmem:[#allocation7] sm:$0xff] }
 0x2c0   :  { %v8829_v46 = vld [vmem:[#allocation5 + $0x958] sm:$0xf]  ;;  %v8574_v50 = vor.u32 %v11513_v41, %v8573_v38  ;;  %v837_v5 = vperm.slane %v12858_v33, 4 }
 0x2c1   :  { %4457 = vmatpush.bf16.msrb.mxu1 %v9690_v3  ;;  %4483 = vmatpush.bf16.msrb.mxu3 %v7902_v9  ;;  %v11577_v34 = vld [vmem:[#allocation5 + $0x974] sm:$0xf0]  ;;  %v4251_v3 = vpop.f32.mrf.mxu1 }
 0x2c2   :  { %4445 = vmatmul.bf16.vlgmr.msrb.gmra.mxu0 %v12760_v43  ;;  %v9085_v47 = vld [vmem:[#allocation5 + $0xb58] sm:$0xf]  ;;  %4471 = vmatmul.bf16.vlgmr.msrb.gmra.mxu2 %v12746_v20  ;;  %v8830_v51 = vor.u32 %v11577_v34, %v8829_v46  ;;  %v4239_v2 = vadd.f32 %v4238_v59, %v837_v5  ;;  %v4240_v46 = vpop.f32.mrf.mxu0 }
 0x2c3   :  { %4489 = vmatpush.bf16.msra.mxu0 %v8382_v12  ;;  %4515 = vmatpush.bf16.msra.mxu2 %v8894_v14  ;;  %v11641_v62 = vld [vmem:[#allocation5 + $0xb74] sm:$0xf0]  ;;  %v11325_v46 = vld [vmem:[#allocation5 + $0x19c] sm:$0xf] }
 0x2c4   :  { %4458 = vmatmul.bf16.vlgmr.msrb.gmra.mxu1 %v12768_v18  ;;  %v8285_v63 = vld [vmem:[#allocation5 + $0x518] sm:$0xf]  ;;  %4484 = vmatmul.bf16.vlgmr.msrb.gmra.mxu3 %v12750_v23  ;;  %v9086_v11 = vor.u32 %v11641_v62, %v9085_v47  ;;  %v4252_v14 = vadd.f32 %v4251_v3, %v4239_v2 }
 0x2c5   :  { %4502 = vmatpush.bf16.msra.mxu1 %v8638_v13  ;;  %4528 = vmatpush.bf16.msra.mxu3 %v9150_v22  ;;  %v11441_v52 = vld [vmem:[#allocation5 + $0x534] sm:$0xf0] }
 0x2c6   :  { %v8541_v53 = vld [vmem:[#allocation5 + $0x718] sm:$0xf]  ;;  %v8286_v7 = vor.u32 %v11441_v52, %v8285_v63 }
 0x2c7   :  { %4490 = vmatpush.bf16.msra.mxu0 %v8350_v31  ;;  %4516 = vmatpush.bf16.msra.mxu2 %v8862_v49  ;;  %v11505_v54 = vld [vmem:[#allocation5 + $0x734] sm:$0xf0]  ;;  %v4265_v49 = vadd.f32 %v4264_v27, %v4252_v14 }
 0x2c8   :  { %v8797_v55 = vld [vmem:[#allocation5 + $0x918] sm:$0xf]  ;;  %v8542_v10 = vor.u32 %v11505_v54, %v8541_v53 }
 0x2c9   :  { %4503 = vmatpush.bf16.msra.mxu1 %v8606_v32  ;;  %4529 = vmatpush.bf16.msra.mxu3 %v9118_v40  ;;  %v11569_v56 = vld [vmem:[#allocation5 + $0x934] sm:$0xf0]  ;;  %v12861_v41 = vadd.f32 %v4277_v36, %v4265_v49 }
 0x2ca   :  { %v9053_v57 = vld [vmem:[#allocation5 + $0xb18] sm:$0xf]  ;;  %v8798_v60 = vor.u32 %v11569_v56, %v8797_v55 }
 0x2cb   :  { %v11633_v58 = vld [vmem:[#allocation5 + $0xb34] sm:$0xf0]  ;;  %4491 = vmatpush.bf16.msra.mxu0 %v8318_v48  ;;  %4517 = vmatpush.bf16.msra.mxu2 %v8830_v51 }
 0x2cc   :  { %v8253_v61 = vld [vmem:[#allocation5 + $0x4d8] sm:$0xf]  ;;  %v9054_v4 = vor.u32 %v11633_v58, %v9053_v57 }
 0x2cd   :  { %4504 = vmatpush.bf16.msra.mxu1 %v8574_v50  ;;  %v11433_v0 = vld [vmem:[#allocation5 + $0x4f4] sm:$0xf0]  ;;  %4530 = vmatpush.bf16.msra.mxu3 %v9086_v11  ;;  %v4253_v50 = vpop.f32.mrf.mxu1 }
 0x2ce   :  { %v8509_v1 = vld [vmem:[#allocation5 + $0x6d8] sm:$0xf]  ;;  %v8254_v15 = vor.u32 %v11433_v0, %v8253_v61  ;;  %v4266_v61 = vpop.f32.mrf.mxu2 }
 0x2cf   :  { %v11497_v25 = vld [vmem:[#allocation5 + $0x6f4] sm:$0xf0]  ;;  %4492 = vmatpush.bf16.msra.mxu0 %v8286_v7  ;;  %4518 = vmatpush.bf16.msra.mxu2 %v8798_v60 }
 0x2d0   :  { %v8765_v8 = vld [vmem:[#allocation5 + $0x8d8] sm:$0xf]  ;;  %v8510_v16 = vor.u32 %v11497_v25, %v8509_v1 }
 0x2d1   :  { %v11561_v9 = vld [vmem:[#allocation5 + $0x8f4] sm:$0xf0]  ;;  %4505 = vmatpush.bf16.msra.mxu1 %v8542_v10  ;;  %4531 = vmatpush.bf16.msra.mxu3 %v9054_v4  ;;  %v4279_v4 = vpop.f32.mrf.mxu3 }
 0x2d2   :  { %v9021_v12 = vld [vmem:[#allocation5 + $0xad8] sm:$0xf]  ;;  %v8766_v17 = vor.u32 %v11561_v9, %v8765_v8 }
 0x2d3   :  { %v11625_v13 = vld [vmem:[#allocation5 + $0xaf4] sm:$0xf0]  ;;  %4493 = vmatpush.bf16.msra.mxu0 %v8254_v15 }
 0x2d4   :  { %v8221_v22 = vld [vmem:[#allocation5 + $0x498] sm:$0xf]  ;;  %v9022_v29 = vor.u32 %v11625_v13, %v9021_v12  ;;  %4519 = vmatpush.bf16.msra.mxu2 %v8766_v17 }
 0x2d5   :  { %v11425_v24 = vld [vmem:[#allocation5 + $0x4b4] sm:$0xf0]  ;;  %4506 = vmatpush.bf16.msra.mxu1 %v8510_v16 }
 0x2d6   :  { %v8477_v26 = vld [vmem:[#allocation5 + $0x698] sm:$0xf]  ;;  %v8222_v40 = vor.u32 %v11425_v24, %v8221_v22  ;;  %4532 = vmatpush.bf16.msra.mxu3 %v9022_v29  ;;  %v11333_v22 = vld [vmem:[#allocation5 + $0x1dc] sm:$0xf] }
 0x2d7   :  { %v11489_v30 = vld [vmem:[#allocation5 + $0x6b4] sm:$0xf0]  ;;  %v7871_v24 = vld [vmem:[#allocation5 + $0x1f8] sm:$0xf0] }
 0x2d8   :  { %v8733_v31 = vld [vmem:[#allocation5 + $0x898] sm:$0xf]  ;;  %v8478_v34 = vor.u32 %v11489_v30, %v8477_v26  ;;  %4494 = vmatpush.bf16.msra.mxu0 %v8222_v40  ;;  %v7874_v36 = vor.u32 %v11333_v22, %v7871_v24 }
 0x2d9   :  { %v11553_v32 = vld [vmem:[#allocation5 + $0x8b4] sm:$0xf0] }
 0x2da   :  { %v8989_v37 = vld [vmem:[#allocation5 + $0xa98] sm:$0xf]  ;;  %v8734_v47 = vor.u32 %v11553_v32, %v8733_v31  ;;  %4507 = vmatpush.bf16.msra.mxu1 %v8478_v34  ;;  %v7839_v34 = vld [vmem:[#allocation5 + $0x1b8] sm:$0xf0] }
 0x2db   :  { %v11617_v38 = vld [vmem:[#allocation5 + $0xab4] sm:$0xf0] }
 0x2dc   :  { %v8189_v62 = vld [vmem:[#allocation5 + $0x458] sm:$0xf]  ;;  %v8990_v51 = vor.u32 %v11617_v38, %v8989_v37  ;;  %4520 = vmatpush.bf16.msra.mxu2 %v8734_v47 }
 0x2dd   :  { %v11417_v48 = vld [vmem:[#allocation5 + $0x474] sm:$0xf0] }
 0x2de   :  { %v8445_v63 = vld [vmem:[#allocation5 + $0x658] sm:$0xf]  ;;  %v8190_v55 = vor.u32 %v11417_v48, %v8189_v62  ;;  %4533 = vmatpush.bf16.msra.mxu3 %v8990_v51 }
 0x2df   :  { %v11481_v52 = vld [vmem:[#allocation5 + $0x674] sm:$0xf0] }
 0x2e0   :  { %v8701_v53 = vld [vmem:[#allocation5 + $0x858] sm:$0xf]  ;;  %v8446_v58 = vor.u32 %v11481_v52, %v8445_v63  ;;  %4495 = vmatpush.bf16.msra.mxu0 %v8190_v55  ;;  %v7842_v52 = vor.u32 %v11325_v46, %v7839_v34  ;;  %v7807_v55 = vld [vmem:[#allocation5 + $0x178] sm:$0xf0] }
 0x2e1   :  { %v11545_v5 = vld [vmem:[#allocation5 + $0x874] sm:$0xf0] }
 0x2e2   :  { %v8957_v11 = vld [vmem:[#allocation5 + $0xa58] sm:$0xf]  ;;  %v8702_v7 = vor.u32 %v11545_v5, %v8701_v53  ;;  %4508 = vmatpush.bf16.msra.mxu1 %v8446_v58 }
 0x2e3   :  { %v11609_v54 = vld [vmem:[#allocation5 + $0xa74] sm:$0xf0] }
 0x2e4   :  { %v8157_v56 = vld [vmem:[#allocation5 + $0x418] sm:$0xf]  ;;  %v8958_v0 = vor.u32 %v11609_v54, %v8957_v11  ;;  %4521 = vmatpush.bf16.msra.mxu2 %v8702_v7  ;;  %v11317_v54 = vld [vmem:[#allocation5 + $0x15c] sm:$0xf] }
 0x2e5   :  { %v11409_v57 = vld [vmem:[#allocation5 + $0x434] sm:$0xf0] }
 0x2e6   :  { %v8413_v59 = vld [vmem:[#allocation5 + $0x618] sm:$0xf]  ;;  %v8158_v12 = vor.u32 %v11409_v57, %v8157_v56  ;;  %4534 = vmatpush.bf16.msra.mxu3 %v8958_v0 }
 0x2e7   :  { %v11473_v10 = vld [vmem:[#allocation5 + $0x634] sm:$0xf0] }
 0x2e8   :  { %v8669_v60 = vld [vmem:[#allocation5 + $0x818] sm:$0xf]  ;;  %v8414_v16 = vor.u32 %v11473_v10, %v8413_v59  ;;  %4496 = vmatpush.bf16.msra.mxu0 %v8158_v12 }
 0x2e9   :  { %v11537_v1 = vld [vmem:[#allocation5 + $0x834] sm:$0xf0] }
 0x2ea   :  { %v8925_v2 = vld [vmem:[#allocation5 + $0xa18] sm:$0xf]  ;;  %v8670_v17 = vor.u32 %v11537_v1, %v8669_v60  ;;  %4509 = vmatpush.bf16.msra.mxu1 %v8414_v16  ;;  %v7810_v60 = vor.u32 %v11317_v54, %v7807_v55  ;;  %v4303_v16 = vpop.f32.mrf.mxu1 }
 0x2eb   :  { %v11601_v3 = vld [vmem:[#allocation5 + $0xa34] sm:$0xf0]  ;;  %4497 = vmatmul.bf16.vlgmr.msra.gmra.mxu0 %v12744_v19 }
 0x2ec   :  { %v9405_v25 = vld [vmem:[#allocation5 + $0xdd8] sm:$0xf]  ;;  %v8926_v26 = vor.u32 %v11601_v3, %v8925_v2  ;;  %4522 = vmatpush.bf16.msra.mxu2 %v8670_v17  ;;  %v11309_v2 = vld [vmem:[#allocation5 + $0x11c] sm:$0xf] }
 0x2ed   :  { %v11721_v8 = vld [vmem:[#allocation5 + $0xdf4] sm:$0xf0]  ;;  %4510 = vmatmul.bf16.vlgmr.msra.gmra.mxu1 %v12748_v21  ;;  %v7775_v3 = vld [vmem:[#allocation5 + $0x138] sm:$0xf0] }
 0x2ee   :  { %v9661_v9 = vld [vmem:[#allocation5 + $0xfd8] sm:$0xf]  ;;  %v9406_v27 = vor.u32 %v11721_v8, %v9405_v25  ;;  %4535 = vmatpush.bf16.msra.mxu3 %v8926_v26  ;;  %v4290_v25 = vpop.f32.mrf.mxu0  ;;  %v7778_v17 = vor.u32 %v11309_v2, %v7775_v3 }
 0x2ef   :  { %v11785_v13 = vld [vmem:[#allocation5 + $0xff4] sm:$0xf0]  ;;  %4523 = vmatmul.bf16.vlgmr.msra.gmra.mxu2 %v12758_v42 }
 0x2f0   :  { %v9917_v14 = vld [vmem:[#allocation5 + $0x11d8] sm:$0xf]  ;;  %v9662_v29 = vor.u32 %v11785_v13, %v9661_v9  ;;  %4541 = vmatpush.bf16.msrb.mxu0 %v9406_v27  ;;  %v11301_v27 = vld [vmem:[#allocation5 + $0xdc] sm:$0xf] }
 0x2f1   :  { %v11849_v15 = vld [vmem:[#allocation5 + $0x11f4] sm:$0xf0]  ;;  %4536 = vmatmul.bf16.vlgmr.msra.gmra.mxu3 %v12762_v45 }
 0x2f2   :  { %v9918_v30 = vor.u32 %v11849_v15, %v9917_v14  ;;  %v9373_v31 = vld [vmem:[#allocation5 + $0xd98] sm:$0xf]  ;;  %4554 = vmatpush.bf16.msrb.mxu1 %v9662_v29  ;;  %4580 = vmatpush.bf16.msrb.mxu3 %v7874_v36  ;;  %v4291_v15 = vadd.f32 %v4290_v25, %v12861_v41  ;;  %v7743_v29 = vld [vmem:[#allocation5 + $0xf8] sm:$0xf0] }
 0x2f3   :  { %v11713_v32 = vld [vmem:[#allocation5 + $0xdb4] sm:$0xf0]  ;;  %v7746_v41 = vor.u32 %v11301_v27, %v7743_v29  ;;  %v8383_v29 = vld [vmem:[#allocation5 + $0x5f8] sm:$0xf0] }
 0x2f4   :  { %v9629_v49 = vld [vmem:[#allocation5 + $0xf98] sm:$0xf]  ;;  %v9374_v47 = vor.u32 %v11713_v32, %v9373_v31  ;;  %4567 = vmatpush.bf16.msrb.mxu2 %v9918_v30  ;;  %v4304_v30 = vadd.f32 %v4303_v16, %v4291_v15  ;;  %v11277_v15 = vld [vmem:[#allocation5 + $0x1c] sm:$0xf] }
 0x2f5   :  { %v11777_v37 = vld [vmem:[#allocation5 + $0xfb4] sm:$0xf0]  ;;  %v7647_v16 = vld [vmem:[#allocation5 + $0x38] sm:$0xf0] }
 0x2f6   :  { %v9885_v38 = vld [vmem:[#allocation5 + $0x1198] sm:$0xf]  ;;  %v9630_v62 = vor.u32 %v11777_v37, %v9629_v49  ;;  %4542 = vmatpush.bf16.msrb.mxu0 %v9374_v47  ;;  %4581 = vmatpush.bf16.msrb.mxu3 %v7842_v52 }
 0x2f7   :  { %v11841_v40 = vld [vmem:[#allocation5 + $0x11b4] sm:$0xf0] }
 0x2f8   :  { %v9886_v48 = vor.u32 %v11841_v40, %v9885_v38  ;;  %v9341_v63 = vld [vmem:[#allocation5 + $0xd58] sm:$0xf]  ;;  %4555 = vmatpush.bf16.msrb.mxu1 %v9630_v62  ;;  %v4316_v40 = vpop.f32.mrf.mxu2 }
 0x2f9   :  { %v11705_v50 = vld [vmem:[#allocation5 + $0xd74] sm:$0xf0]  ;;  %v4317_v62 = vadd.f32 %v4316_v40, %v4304_v30  ;;  %v11525_v30 = vld [vmem:[#allocation5 + $0x7dc] sm:$0xf] }
 0x2fa   :  { %v9597_v51 = vld [vmem:[#allocation5 + $0xf58] sm:$0xf]  ;;  %v9342_v56 = vor.u32 %v11705_v50, %v9341_v63  ;;  %4568 = vmatpush.bf16.msrb.mxu2 %v9886_v48  ;;  %4582 = vmatpush.bf16.msrb.mxu3 %v7810_v60  ;;  %v4329_v48 = vpop.f32.mrf.mxu3  ;;  %v11293_v63 = vld [vmem:[#allocation5 + $0x9c] sm:$0xf] }
 0x2fb   :  { %v11769_v53 = vld [vmem:[#allocation5 + $0xf74] sm:$0xf0]  ;;  %v7711_v50 = vld [vmem:[#allocation5 + $0xb8] sm:$0xf0]  ;;  %v12868_v52 = vadd.f32 %v4329_v48, %v4317_v62 }
 0x2fc   :  { %v9853_v5 = vld [vmem:[#allocation5 + $0x1158] sm:$0xf]  ;;  %v9598_v57 = vor.u32 %v11769_v53, %v9597_v51  ;;  %4543 = vmatpush.bf16.msrb.mxu0 %v9342_v56  ;;  %v4292_v53 = vpop.f32.mrf.mxu0  ;;  %v11285_v60 = vld [vmem:[#allocation5 + $0x5c] sm:$0xf] }
 0x2fd   :  { %v11833_v11 = vld [vmem:[#allocation5 + $0x1174] sm:$0xf0]  ;;  %v11453_v62 = vld [vmem:[#allocation5 + $0x59c] sm:$0xf] }
 0x2fe   :  { %v9854_v58 = vor.u32 %v11833_v11, %v9853_v5  ;;  %v9309_v7 = vld [vmem:[#allocation5 + $0xd18] sm:$0xf]  ;;  %4556 = vmatpush.bf16.msrb.mxu1 %v9598_v57  ;;  %4583 = vmatpush.bf16.msrb.mxu3 %v7778_v17  ;;  %v4305_v57 = vpop.f32.mrf.mxu1  ;;  %v11581_v53 = vld [vmem:[#allocation5 + $0x99c] sm:$0xf] }
 0x2ff   :  { %v11697_v59 = vld [vmem:[#allocation5 + $0xd34] sm:$0xf0]  ;;  %v8063_v57 = vld [vmem:[#allocation5 + $0x378] sm:$0xf0] }
 0x300   :  { %v9565_v10 = vld [vmem:[#allocation5 + $0xf18] sm:$0xf]  ;;  %v9310_v4 = vor.u32 %v11697_v59, %v9309_v7  ;;  %4569 = vmatpush.bf16.msrb.mxu2 %v9854_v58  ;;  %v7714_v58 = vor.u32 %v11293_v63, %v7711_v50  ;;  %v8351_v63 = vld [vmem:[#allocation5 + $0x5b8] sm:$0xf0] }
 0x301   :  { %v11761_v61 = vld [vmem:[#allocation5 + $0xf34] sm:$0xf0]  ;;  %v11517_v50 = vld [vmem:[#allocation5 + $0x79c] sm:$0xf] }
 0x302   :  { %v9821_v0 = vld [vmem:[#allocation5 + $0x1118] sm:$0xf]  ;;  %v9566_v8 = vor.u32 %v11761_v61, %v9565_v10  ;;  %4544 = vmatpush.bf16.msrb.mxu0 %v9310_v4  ;;  %4584 = vmatpush.bf16.msrb.mxu3 %v7746_v41  ;;  %v7679_v61 = vld [vmem:[#allocation5 + $0x78] sm:$0xf0]  ;;  %v4331_v17 = vpop.f32.mrf.mxu3 }
 0x303   :  { %v11825_v1 = vld [vmem:[#allocation5 + $0x1134] sm:$0xf0]  ;;  %v8799_v17 = vld [vmem:[#allocation5 + $0x938] sm:$0xf0] }
 0x304   :  { %v9822_v9 = vor.u32 %v11825_v1, %v9821_v0  ;;  %v9277_v12 = vld [vmem:[#allocation5 + $0xcd8] sm:$0xf]  ;;  %4557 = vmatpush.bf16.msrb.mxu1 %v9566_v8 }
 0x305   :  { %v11689_v13 = vld [vmem:[#allocation5 + $0xcf4] sm:$0xf0] }
 0x306   :  { %v9533_v14 = vld [vmem:[#allocation5 + $0xed8] sm:$0xf]  ;;  %v9278_v31 = vor.u32 %v11689_v13, %v9277_v12  ;;  %4570 = vmatpush.bf16.msrb.mxu2 %v9822_v9  ;;  %v4318_v12 = vpop.f32.mrf.mxu2  ;;  %4585 = vmatpush.bf16.msrb.mxu3 %v7714_v58  ;;  %v7682_v13 = vor.u32 %v11285_v60, %v7679_v61  ;;  %v11445_v58 = vld [vmem:[#allocation5 + $0x55c] sm:$0xf] }
 0x307   :  { %v11753_v22 = vld [vmem:[#allocation5 + $0xef4] sm:$0xf0]  ;;  %v8575_v60 = vld [vmem:[#allocation5 + $0x778] sm:$0xf0] }
 0x308   :  { %v9789_v24 = vld [vmem:[#allocation5 + $0x10d8] sm:$0xf]  ;;  %v9534_v32 = vor.u32 %v11753_v22, %v9533_v14  ;;  %4545 = vmatpush.bf16.msrb.mxu0 %v9278_v31  ;;  %v11397_v22 = vld [vmem:[#allocation5 + $0x3dc] sm:$0xf] }
 0x309   :  { %v11817_v26 = vld [vmem:[#allocation5 + $0x10f4] sm:$0xf0]  ;;  %v8639_v31 = vld [vmem:[#allocation5 + $0x7f8] sm:$0xf0] }
 0x30a   :  { %v9790_v49 = vor.u32 %v11817_v26, %v9789_v24  ;;  %v9245_v36 = vld [vmem:[#allocation5 + $0xc98] sm:$0xf]  ;;  %4558 = vmatpush.bf16.msrb.mxu1 %v9534_v32  ;;  %v8127_v24 = vld [vmem:[#allocation5 + $0x3f8] sm:$0xf0]  ;;  %4586 = vmatpush.bf16.msrb.mxu3 %v7682_v13 }
 0x30b   :  { %v11681_v37 = vld [vmem:[#allocation5 + $0xcb4] sm:$0xf0]  ;;  %v11461_v26 = vld [vmem:[#allocation5 + $0x5dc] sm:$0xf]  ;;  %v8130_v40 = vor.u32 %v11397_v22, %v8127_v24  ;;  %v838_v22 = vperm.slane %v12858_v33, 5 }
 0x30c   :  { %v9501_v38 = vld [vmem:[#allocation5 + $0xe98] sm:$0xf]  ;;  %v9246_v51 = vor.u32 %v11681_v37, %v9245_v36  ;;  %4571 = vmatpush.bf16.msrb.mxu2 %v9790_v49  ;;  %v11589_v36 = vld [vmem:[#allocation5 + $0x9dc] sm:$0xf]  ;;  %v8386_v41 = vor.u32 %v11461_v26, %v8383_v29 }
 0x30d   :  { %v11745_v46 = vld [vmem:[#allocation5 + $0xeb4] sm:$0xf0]  ;;  %v8895_v37 = vld [vmem:[#allocation5 + $0x9f8] sm:$0xf0] }
 0x30e   :  { %v9757_v34 = vld [vmem:[#allocation5 + $0x1098] sm:$0xf]  ;;  %v9502_v5 = vor.u32 %v11745_v46, %v9501_v38  ;;  %4546 = vmatpush.bf16.msrb.mxu0 %v9246_v51  ;;  %v7650_v38 = vor.u32 %v11277_v15, %v7647_v16  ;;  %v8642_v46 = vor.u32 %v11525_v30, %v8639_v31  ;;  %v8898_v48 = vor.u32 %v11589_v36, %v8895_v37  ;;  %v8607_v51 = vld [vmem:[#allocation5 + $0x7b8] sm:$0xf0]  ;;  %v4342_v15 = vpop.f32.mrf.mxu0 }
 0x30f   :  { %v11809_v47 = vld [vmem:[#allocation5 + $0x10b4] sm:$0xf0]  ;;  %v11573_v61 = vld [vmem:[#allocation5 + $0x95c] sm:$0xf] }
 0x310   :  { %v9758_v11 = vor.u32 %v11809_v47, %v9757_v34  ;;  %v9213_v54 = vld [vmem:[#allocation5 + $0xc58] sm:$0xf]  ;;  %4559 = vmatpush.bf16.msrb.mxu1 %v9502_v5  ;;  %v11389_v34 = vld [vmem:[#allocation5 + $0x39c] sm:$0xf]  ;;  %4587 = vmatpush.bf16.msrb.mxu3 %v7650_v38 }
 0x311   :  { %v11673_v55 = vld [vmem:[#allocation5 + $0xc74] sm:$0xf0]  ;;  %v8095_v47 = vld [vmem:[#allocation5 + $0x3b8] sm:$0xf0] }
 0x312   :  { %v9469_v56 = vld [vmem:[#allocation5 + $0xe58] sm:$0xf]  ;;  %v9214_v0 = vor.u32 %v11673_v55, %v9213_v54  ;;  %4572 = vmatpush.bf16.msrb.mxu2 %v9758_v11  ;;  %v8863_v5 = vld [vmem:[#allocation5 + $0x9b8] sm:$0xf0]  ;;  %v8098_v11 = vor.u32 %v11389_v34, %v8095_v47  ;;  %v8354_v54 = vor.u32 %v11453_v62, %v8351_v63  ;;  %v8610_v55 = vor.u32 %v11517_v50, %v8607_v51 }
 0x313   :  { %v11737_v7 = vld [vmem:[#allocation5 + $0xe74] sm:$0xf0]  ;;  %4588 = vmatmul.bf16.vlgmr.msrb.gmra.mxu3 %v12746_v20  ;;  %v8287_v12 = vld [vmem:[#allocation5 + $0x538] sm:$0xf0]  ;;  %v12876_v20 = vadd.f32 %v4342_v15, %v12868_v52 }
 0x314   :  { %v9725_v59 = vld [vmem:[#allocation5 + $0x1058] sm:$0xf]  ;;  %v9470_v3 = vor.u32 %v11737_v7, %v9469_v56  ;;  %4547 = vmatpush.bf16.msrb.mxu0 %v9214_v0  ;;  %v11381_v56 = vld [vmem:[#allocation5 + $0x35c] sm:$0xf]  ;;  %4632 = vmatpush.bf16.msra.mxu3 %v8898_v48  ;;  %v8866_v7 = vor.u32 %v11581_v53, %v8863_v5  ;;  %v4368_v5 = vpop.f32.mrf.mxu2 }
 0x315   :  { %v11801_v10 = vld [vmem:[#allocation5 + $0x1074] sm:$0xf0]  ;;  %v8831_v0 = vld [vmem:[#allocation5 + $0x978] sm:$0xf0] }
 0x316   :  { %v9181_v1 = vld [vmem:[#allocation5 + $0xc18] sm:$0xf]  ;;  %v9726_v4 = vor.u32 %v11801_v10, %v9725_v59  ;;  %4560 = vmatpush.bf16.msrb.mxu1 %v9470_v3  ;;  %v8319_v59 = vld [vmem:[#allocation5 + $0x578] sm:$0xf0] }
 0x317   :  { %v11665_v2 = vld [vmem:[#allocation5 + $0xc34] sm:$0xf0]  ;;  %v11509_v10 = vld [vmem:[#allocation5 + $0x75c] sm:$0xf] }
 0x318   :  { %v9437_v25 = vld [vmem:[#allocation5 + $0xe18] sm:$0xf]  ;;  %v9182_v27 = vor.u32 %v11665_v2, %v9181_v1  ;;  %4573 = vmatpush.bf16.msrb.mxu2 %v9726_v4  ;;  %v8066_v1 = vor.u32 %v11381_v56, %v8063_v57  ;;  %v8322_v2 = vor.u32 %v11445_v58, %v8319_v59  ;;  %v8578_v3 = vor.u32 %v11509_v10, %v8575_v60  ;;  %v11373_v4 = vld [vmem:[#allocation5 + $0x31c] sm:$0xf]  ;;  %v4344_v57 = vpop.f32.mrf.mxu0 }
 0x319   :  { %v11729_v8 = vld [vmem:[#allocation5 + $0xe34] sm:$0xf0]  ;;  %4633 = vmatpush.bf16.msra.mxu3 %v8866_v7  ;;  %v11501_v13 = vld [vmem:[#allocation5 + $0x71c] sm:$0xf] }
 0x31a   :  { %v9693_v9 = vld [vmem:[#allocation5 + $0x1018] sm:$0xf]  ;;  %v9438_v32 = vor.u32 %v11729_v8, %v9437_v25  ;;  %4548 = vmatpush.bf16.msrb.mxu0 %v9182_v27  ;;  %v8031_v25 = vld [vmem:[#allocation5 + $0x338] sm:$0xf0] }
 0x31b   :  { %v11793_v14 = vld [vmem:[#allocation5 + $0x1034] sm:$0xf0]  ;;  %v11437_v8 = vld [vmem:[#allocation5 + $0x51c] sm:$0xf]  ;;  %v8034_v24 = vor.u32 %v11373_v4, %v8031_v25 }
 0x31c   :  { %v9694_v49 = vor.u32 %v11793_v14, %v9693_v9  ;;  %4561 = vmatpush.bf16.msrb.mxu1 %v9438_v32  ;;  %v8834_v9 = vor.u32 %v11573_v61, %v8831_v0  ;;  %v8543_v14 = vld [vmem:[#allocation5 + $0x738] sm:$0xf0]  ;;  %v8290_v26 = vor.u32 %v11437_v8, %v8287_v12  ;;  %v4355_v32 = vpop.f32.mrf.mxu1 }
 0x31d   :  { %4549 = vmatmul.bf16.vlgmr.msrb.gmra.mxu0 %v12756_v39  ;;  %v11565_v16 = vld [vmem:[#allocation5 + $0x91c] sm:$0xf]  ;;  %v8546_v27 = vor.u32 %v11501_v13, %v8543_v14 }
 0x31e   :  { %4574 = vmatpush.bf16.msrb.mxu2 %v9694_v49  ;;  %4593 = vmatpush.bf16.msra.mxu0 %v8130_v40  ;;  %v11365_v29 = vld [vmem:[#allocation5 + $0x2dc] sm:$0xf]  ;;  %v8802_v49 = vor.u32 %v11565_v16, %v8799_v17 }
 0x31f   :  { %4562 = vmatmul.bf16.vlgmr.msrb.gmra.mxu1 %v12760_v43  ;;  %v7999_v30 = vld [vmem:[#allocation5 + $0x2f8] sm:$0xf0]  ;;  %4634 = vmatpush.bf16.msra.mxu3 %v8834_v9 }
 0x320   :  { %4606 = vmatpush.bf16.msra.mxu1 %v8386_v41  ;;  %v11429_v31 = vld [vmem:[#allocation5 + $0x4dc] sm:$0xf]  ;;  %v4356_v41 = vadd.f32 %v4355_v32, %v838_v22  ;;  %v8002_v52 = vor.u32 %v11365_v29, %v7999_v30 }
 0x321   :  { %4575 = vmatmul.bf16.vlgmr.msrb.gmra.mxu2 %v12768_v18  ;;  %v8255_v36 = vld [vmem:[#allocation5 + $0x4f8] sm:$0xf0] }
 0x322   :  { %4619 = vmatpush.bf16.msra.mxu2 %v8642_v46  ;;  %4594 = vmatpush.bf16.msra.mxu0 %v8098_v11  ;;  %v11493_v37 = vld [vmem:[#allocation5 + $0x6dc] sm:$0xf]  ;;  %v8258_v46 = vor.u32 %v11429_v31, %v8255_v36  ;;  %v4381_v11 = vpop.f32.mrf.mxu3  ;;  %v4369_v56 = vadd.f32 %v4368_v5, %v4356_v41  ;;  %v4370_v31 = vpop.f32.mrf.mxu2 }
 0x323   :  { %v8511_v38 = vld [vmem:[#allocation5 + $0x6f8] sm:$0xf0]  ;;  %4635 = vmatpush.bf16.msra.mxu3 %v8802_v49 }
 0x324   :  { %4607 = vmatpush.bf16.msra.mxu1 %v8354_v54  ;;  %v11557_v40 = vld [vmem:[#allocation5 + $0x8dc] sm:$0xf]  ;;  %v8514_v34 = vor.u32 %v11493_v37, %v8511_v38  ;;  %v12878_v0 = vadd.f32 %v4381_v11, %v4369_v56 }
 0x325   :  { %v8767_v33 = vld [vmem:[#allocation5 + $0x8f8] sm:$0xf0] }
 0x326   :  { %4620 = vmatpush.bf16.msra.mxu2 %v8610_v55  ;;  %4595 = vmatpush.bf16.msra.mxu0 %v8066_v1  ;;  %v11357_v47 = vld [vmem:[#allocation5 + $0x29c] sm:$0xf]  ;;  %v8770_v63 = vor.u32 %v11557_v40, %v8767_v33  ;;  %v4357_v1 = vpop.f32.mrf.mxu1 }
 0x327   :  { %v7967_v62 = vld [vmem:[#allocation5 + $0x2b8] sm:$0xf0] }
 0x328   :  { %4608 = vmatpush.bf16.msra.mxu1 %v8322_v2  ;;  %v11421_v48 = vld [vmem:[#allocation5 + $0x49c] sm:$0xf]  ;;  %v7970_v58 = vor.u32 %v11357_v47, %v7967_v62  ;;  %4636 = vmatpush.bf16.msra.mxu3 %v8770_v63 }
 0x329   :  { %v8223_v50 = vld [vmem:[#allocation5 + $0x4b8] sm:$0xf0] }
 0x32a   :  { %4621 = vmatpush.bf16.msra.mxu2 %v8578_v3  ;;  %4596 = vmatpush.bf16.msra.mxu0 %v8034_v24  ;;  %v11485_v51 = vld [vmem:[#allocation5 + $0x69c] sm:$0xf]  ;;  %v8226_v7 = vor.u32 %v11421_v48, %v8223_v50  ;;  %v4383_v32 = vpop.f32.mrf.mxu3 }
 0x32b   :  { %v8479_v53 = vld [vmem:[#allocation5 + $0x6b8] sm:$0xf0] }
 0x32c   :  { %4609 = vmatpush.bf16.msra.mxu1 %v8290_v26  ;;  %v11549_v54 = vld [vmem:[#allocation5 + $0x89c] sm:$0xf]  ;;  %v8482_v59 = vor.u32 %v11485_v51, %v8479_v53 }
 0x32d   :  { %v8735_v55 = vld [vmem:[#allocation5 + $0x8b8] sm:$0xf0] }
 0x32e   :  { %4622 = vmatpush.bf16.msra.mxu2 %v8546_v27  ;;  %4597 = vmatpush.bf16.msra.mxu0 %v8002_v52  ;;  %v11349_v10 = vld [vmem:[#allocation5 + $0x25c] sm:$0xf]  ;;  %v8738_v2 = vor.u32 %v11549_v54, %v8735_v55 }
 0x32f   :  { %v7935_v60 = vld [vmem:[#allocation5 + $0x278] sm:$0xf0] }
 0x330   :  { %4610 = vmatpush.bf16.msra.mxu1 %v8258_v46  ;;  %v11413_v61 = vld [vmem:[#allocation5 + $0x45c] sm:$0xf]  ;;  %v7938_v12 = vor.u32 %v11349_v10, %v7935_v60  ;;  %4637 = vmatpush.bf16.msra.mxu3 %v8738_v2 }
 0x331   :  { %v8191_v3 = vld [vmem:[#allocation5 + $0x478] sm:$0xf0] }
 0x332   :  { %4623 = vmatpush.bf16.msra.mxu2 %v8514_v34  ;;  %v11477_v4 = vld [vmem:[#allocation5 + $0x65c] sm:$0xf]  ;;  %4598 = vmatpush.bf16.msra.mxu0 %v7970_v58  ;;  %v8194_v15 = vor.u32 %v11413_v61, %v8191_v3 }
 0x333   :  { %v8447_v25 = vld [vmem:[#allocation5 + $0x678] sm:$0xf0] }
 0x334   :  { %v11541_v8 = vld [vmem:[#allocation5 + $0x85c] sm:$0xf]  ;;  %4611 = vmatpush.bf16.msra.mxu1 %v8226_v7  ;;  %v8450_v16 = vor.u32 %v11477_v4, %v8447_v25 }
 0x335   :  { %v8703_v9 = vld [vmem:[#allocation5 + $0x878] sm:$0xf0] }
 0x336   :  { %v11341_v13 = vld [vmem:[#allocation5 + $0x21c] sm:$0xf]  ;;  %4624 = vmatpush.bf16.msra.mxu2 %v8482_v59  ;;  %v8706_v26 = vor.u32 %v11541_v8, %v8703_v9  ;;  %4599 = vmatpush.bf16.msra.mxu0 %v7938_v12 }
 0x337   :  { %v7903_v14 = vld [vmem:[#allocation5 + $0x238] sm:$0xf0] }
 0x338   :  { %v11405_v17 = vld [vmem:[#allocation5 + $0x41c] sm:$0xf]  ;;  %v7906_v38 = vor.u32 %v11341_v13, %v7903_v14  ;;  %4612 = vmatpush.bf16.msra.mxu1 %v8194_v15  ;;  %4638 = vmatpush.bf16.msra.mxu3 %v8706_v26 }
 0x339   :  { %v8159_v22 = vld [vmem:[#allocation5 + $0x438] sm:$0xf0] }
 0x33a   :  { %v11469_v24 = vld [vmem:[#allocation5 + $0x61c] sm:$0xf]  ;;  %4625 = vmatpush.bf16.msra.mxu2 %v8450_v16  ;;  %v8162_v52 = vor.u32 %v11405_v17, %v8159_v22  ;;  %4600 = vmatpush.bf16.msra.mxu0 %v7906_v38 }
 0x33b   :  { %v8415_v27 = vld [vmem:[#allocation5 + $0x638] sm:$0xf0] }
 0x33c   :  { %v11533_v29 = vld [vmem:[#allocation5 + $0x81c] sm:$0xf]  ;;  %v8418_v46 = vor.u32 %v11469_v24, %v8415_v27  ;;  %4613 = vmatpush.bf16.msra.mxu1 %v8162_v52 }
 0x33d   :  { %v8671_v30 = vld [vmem:[#allocation5 + $0x838] sm:$0xf0]  ;;  %4601 = vmatmul.bf16.vlgmr.msra.gmra.mxu0 %v12750_v23 }
 0x33e   :  { %v11653_v49 = vld [vmem:[#allocation5 + $0xbdc] sm:$0xf]  ;;  %v8674_v62 = vor.u32 %v11533_v29, %v8671_v30  ;;  %4626 = vmatpush.bf16.msra.mxu2 %v8418_v46  ;;  %v4394_v29 = vpop.f32.mrf.mxu0 }
 0x33f   :  { %v9151_v36 = vld [vmem:[#allocation5 + $0xbf8] sm:$0xf0]  ;;  %4614 = vmatmul.bf16.vlgmr.msra.gmra.mxu1 %v12744_v19 }
 0x340   :  { %v11717_v37 = vld [vmem:[#allocation5 + $0xddc] sm:$0xf]  ;;  %v9154_v48 = vor.u32 %v11653_v49, %v9151_v36  ;;  %4639 = vmatpush.bf16.msra.mxu3 %v8674_v62  ;;  %v4395_v36 = vadd.f32 %v4394_v29, %v12878_v0 }
 0x341   :  { %v9407_v40 = vld [vmem:[#allocation5 + $0xdf8] sm:$0xf0]  ;;  %4627 = vmatmul.bf16.vlgmr.msra.gmra.mxu2 %v12748_v21 }
 0x342   :  { %v11781_v33 = vld [vmem:[#allocation5 + $0xfdc] sm:$0xf]  ;;  %v9410_v63 = vor.u32 %v11717_v37, %v9407_v40  ;;  %4645 = vmatpush.bf16.msrb.mxu0 %v9154_v48  ;;  %v4407_v37 = vpop.f32.mrf.mxu1 }
 0x343   :  { %v9663_v41 = vld [vmem:[#allocation5 + $0xff8] sm:$0xf0]  ;;  %4640 = vmatmul.bf16.vlgmr.msra.gmra.mxu3 %v12758_v42 }
 0x344   :  { %v11845_v34 = vld [vmem:[#allocation5 + $0x11dc] sm:$0xf]  ;;  %v9666_v50 = vor.u32 %v11781_v33, %v9663_v41  ;;  %4658 = vmatpush.bf16.msrb.mxu1 %v9410_v63 }
 0x345   :  { %v9919_v47 = vld [vmem:[#allocation5 + $0x11f8] sm:$0xf0] }
 0x346   :  { %v11645_v51 = vld [vmem:[#allocation5 + $0xb9c] sm:$0xf]  ;;  %v9922_v11 = vor.u32 %v11845_v34, %v9919_v47  ;;  %4671 = vmatpush.bf16.msrb.mxu2 %v9666_v50  ;;  %v4408_v34 = vadd.f32 %v4407_v37, %v4395_v36  ;;  %v10165_v36 = vld [vmem:[#allocation8 + $0x1e0] sm:$0xf] }
 0x347   :  { %v9119_v53 = vld [vmem:[#allocation5 + $0xbb8] sm:$0xf0] }
 0x348   :  { %v11709_v5 = vld [vmem:[#allocation5 + $0xd9c] sm:$0xf]  ;;  %v9122_v7 = vor.u32 %v11645_v51, %v9119_v53  ;;  %4684 = vmatpush.bf16.msrb.mxu3 %v9922_v11  ;;  %v4420_v53 = vpop.f32.mrf.mxu2 }
 0x349   :  { %v9375_v54 = vld [vmem:[#allocation5 + $0xdb8] sm:$0xf0] }
 0x34a   :  { %v11773_v55 = vld [vmem:[#allocation5 + $0xf9c] sm:$0xf]  ;;  %v9378_v59 = vor.u32 %v11709_v5, %v9375_v54  ;;  %4646 = vmatpush.bf16.msrb.mxu0 %v9122_v7 }
 0x34b   :  { %v9631_v56 = vld [vmem:[#allocation5 + $0xfb8] sm:$0xf0] }
 0x34c   :  { %v11837_v57 = vld [vmem:[#allocation5 + $0x119c] sm:$0xf]  ;;  %v9634_v10 = vor.u32 %v11773_v55, %v9631_v56  ;;  %4659 = vmatpush.bf16.msrb.mxu1 %v9378_v59  ;;  %v4421_v55 = vadd.f32 %v4420_v53, %v4408_v34  ;;  %v4433_v56 = vpop.f32.mrf.mxu3  ;;  %v11976_v34 = vld [vmem:[#allocation8 + $0x3ec] sm:$0xf0]  ;;  %v10149_v53 = vld [vmem:[#allocation8 + $0x1c0] sm:$0xf] }
 0x34d   :  { %v9887_v58 = vld [vmem:[#allocation5 + $0x11b8] sm:$0xf0] }
 0x34e   :  { %v11637_v60 = vld [vmem:[#allocation5 + $0xb5c] sm:$0xf]  ;;  %v9890_v2 = vor.u32 %v11837_v57, %v9887_v58  ;;  %4672 = vmatpush.bf16.msrb.mxu2 %v9634_v10  ;;  %v12885_v59 = vadd.f32 %v4433_v56, %v4421_v55  ;;  %v4396_v10 = vpop.f32.mrf.mxu0  ;;  %v10405_v55 = vld [vmem:[#allocation8 + $0x3c0] sm:$0xf]  ;;  %v11972_v56 = vld [vmem:[#allocation8 + $0x3cc] sm:$0xf0] }
 0x34f   :  { %v9087_v61 = vld [vmem:[#allocation5 + $0xb78] sm:$0xf0]  ;;  %v10005_v10 = vld [vmem:[#allocation8 + $0xa0] sm:$0xf] }
 0x350   :  { %v11701_v1 = vld [vmem:[#allocation5 + $0xd5c] sm:$0xf]  ;;  %v9090_v12 = vor.u32 %v11637_v60, %v9087_v61  ;;  %4685 = vmatpush.bf16.msrb.mxu3 %v9890_v2 }
 0x351   :  { %v9343_v3 = vld [vmem:[#allocation5 + $0xd78] sm:$0xf0] }
 0x352   :  { %v11765_v4 = vld [vmem:[#allocation5 + $0xf5c] sm:$0xf]  ;;  %v9346_v13 = vor.u32 %v11701_v1, %v9343_v3  ;;  %4647 = vmatpush.bf16.msrb.mxu0 %v9090_v12 }
 0x353   :  { %v9599_v25 = vld [vmem:[#allocation5 + $0xf78] sm:$0xf0] }
 0x354   :  { %v11829_v8 = vld [vmem:[#allocation5 + $0x115c] sm:$0xf]  ;;  %v9602_v14 = vor.u32 %v11765_v4, %v9599_v25  ;;  %4660 = vmatpush.bf16.msrb.mxu1 %v9346_v13  ;;  %v4409_v4 = vpop.f32.mrf.mxu1 }
 0x355   :  { %v9855_v9 = vld [vmem:[#allocation5 + $0x1178] sm:$0xf0]  ;;  %v11936_v4 = vld [vmem:[#allocation8 + $0x2ac] sm:$0xf0] }
 0x356   :  { %v11629_v15 = vld [vmem:[#allocation5 + $0xb1c] sm:$0xf]  ;;  %v9858_v17 = vor.u32 %v11829_v8, %v9855_v9  ;;  %4673 = vmatpush.bf16.msrb.mxu2 %v9602_v14 }
 0x357   :  { %v9055_v16 = vld [vmem:[#allocation5 + $0xb38] sm:$0xf0] }
 0x358   :  { %v11693_v21 = vld [vmem:[#allocation5 + $0xd1c] sm:$0xf]  ;;  %v9058_v42 = vor.u32 %v11629_v15, %v9055_v16  ;;  %4686 = vmatpush.bf16.msrb.mxu3 %v9858_v17 }
 0x359   :  { %v9311_v22 = vld [vmem:[#allocation5 + $0xd38] sm:$0xf0] }
 0x35a   :  { %v11757_v24 = vld [vmem:[#allocation5 + $0xf1c] sm:$0xf]  ;;  %v9314_v19 = vor.u32 %v11693_v21, %v9311_v22  ;;  %4648 = vmatpush.bf16.msrb.mxu0 %v9058_v42 }
 0x35b   :  { %v9567_v26 = vld [vmem:[#allocation5 + $0xf38] sm:$0xf0] }
 0x35c   :  { %v11821_v27 = vld [vmem:[#allocation5 + $0x111c] sm:$0xf]  ;;  %v9570_v30 = vor.u32 %v11757_v24, %v9567_v26  ;;  %4661 = vmatpush.bf16.msrb.mxu1 %v9314_v19 }
 0x35d   :  { %v9823_v23 = vld [vmem:[#allocation5 + $0x1138] sm:$0xf0] }
 0x35e   :  { %v11621_v31 = vld [vmem:[#allocation5 + $0xadc] sm:$0xf]  ;;  %v9826_v38 = vor.u32 %v11821_v27, %v9823_v23  ;;  %4674 = vmatpush.bf16.msrb.mxu2 %v9570_v30  ;;  %v4422_v23 = vpop.f32.mrf.mxu2 }
 0x35f   :  { %v9023_v32 = vld [vmem:[#allocation5 + $0xaf8] sm:$0xf0] }
 0x360   :  { %v11685_v49 = vld [vmem:[#allocation5 + $0xcdc] sm:$0xf]  ;;  %v9026_v47 = vor.u32 %v11621_v31, %v9023_v32  ;;  %4687 = vmatpush.bf16.msrb.mxu3 %v9826_v38  ;;  %v4435_v31 = vpop.f32.mrf.mxu3  ;;  %v10037_v32 = vld [vmem:[#allocation8 + $0xe0] sm:$0xf]  ;;  %v11912_v38 = vld [vmem:[#allocation8 + $0x1ec] sm:$0xf0] }
 0x361   :  { %v9279_v40 = vld [vmem:[#allocation5 + $0xcf8] sm:$0xf0]  ;;  %v11896_v31 = vld [vmem:[#allocation8 + $0x16c] sm:$0xf0] }
 0x362   :  { %v11749_v33 = vld [vmem:[#allocation5 + $0xedc] sm:$0xf]  ;;  %v9282_v62 = vor.u32 %v11685_v49, %v9279_v40  ;;  %4649 = vmatpush.bf16.msrb.mxu0 %v9026_v47  ;;  %v11880_v49 = vld [vmem:[#allocation8 + $0xec] sm:$0xf0]  ;;  %v10293_v40 = vld [vmem:[#allocation8 + $0x2e0] sm:$0xf] }
 0x363   :  { %v9535_v41 = vld [vmem:[#allocation5 + $0xef8] sm:$0xf0] }
 0x364   :  { %v11813_v52 = vld [vmem:[#allocation5 + $0x10dc] sm:$0xf]  ;;  %v9538_v48 = vor.u32 %v11749_v33, %v9535_v41  ;;  %4662 = vmatpush.bf16.msrb.mxu1 %v9282_v62  ;;  %v11944_v33 = vld [vmem:[#allocation8 + $0x2ec] sm:$0xf0]  ;;  %v10038_v62 = vor.u32 %v11880_v49, %v10037_v32  ;;  %v10229_v32 = vld [vmem:[#allocation8 + $0x260] sm:$0xf] }
 0x365   :  { %v9791_v46 = vld [vmem:[#allocation5 + $0x10f8] sm:$0xf0]  ;;  %v11928_v49 = vld [vmem:[#allocation8 + $0x26c] sm:$0xf0] }
 0x366   :  { %v11613_v63 = vld [vmem:[#allocation5 + $0xa9c] sm:$0xf]  ;;  %v9794_v0 = vor.u32 %v11813_v52, %v9791_v46  ;;  %4675 = vmatpush.bf16.msrb.mxu2 %v9538_v48  ;;  %v10421_v46 = vld [vmem:[#allocation8 + $0x3e0] sm:$0xf]  ;;  %v10166_v48 = vor.u32 %v11912_v38, %v10165_v36 }
 0x367   :  { %v8991_v50 = vld [vmem:[#allocation5 + $0xab8] sm:$0xf0]  ;;  %v10357_v36 = vld [vmem:[#allocation8 + $0x360] sm:$0xf] }
 0x368   :  { %v11677_v51 = vld [vmem:[#allocation5 + $0xc9c] sm:$0xf]  ;;  %v8994_v7 = vor.u32 %v11613_v63, %v8991_v50  ;;  %4688 = vmatpush.bf16.msrb.mxu3 %v9794_v0  ;;  %v10294_v63 = vor.u32 %v11944_v33, %v10293_v40  ;;  %v10021_v50 = vld [vmem:[#allocation8 + $0xc0] sm:$0xf]  ;;  %v10422_v0 = vor.u32 %v11976_v34, %v10421_v46  ;;  %v10230_v33 = vor.u32 %v11928_v49, %v10229_v32 }
 0x369   :  { %v9247_v5 = vld [vmem:[#allocation5 + $0xcb8] sm:$0xf0]  ;;  %v10085_v46 = vld [vmem:[#allocation8 + $0x140] sm:$0xf] }
 0x36a   :  { %v11741_v11 = vld [vmem:[#allocation5 + $0xe9c] sm:$0xf]  ;;  %v9250_v60 = vor.u32 %v11677_v51, %v9247_v5  ;;  %4650 = vmatpush.bf16.msrb.mxu0 %v8994_v7  ;;  %v11876_v51 = vld [vmem:[#allocation8 + $0xcc] sm:$0xf0] }
 0x36b   :  { %v9503_v54 = vld [vmem:[#allocation5 + $0xeb8] sm:$0xf0]  ;;  %v11908_v5 = vld [vmem:[#allocation8 + $0x1cc] sm:$0xf0] }
 0x36c   :  { %v11805_v57 = vld [vmem:[#allocation5 + $0x109c] sm:$0xf]  ;;  %v9506_v61 = vor.u32 %v11741_v11, %v9503_v54  ;;  %4663 = vmatpush.bf16.msrb.mxu1 %v9250_v60  ;;  %v10277_v11 = vld [vmem:[#allocation8 + $0x2c0] sm:$0xf]  ;;  %v11940_v54 = vld [vmem:[#allocation8 + $0x2cc] sm:$0xf0] }
 0x36d   :  { %v9759_v58 = vld [vmem:[#allocation5 + $0x10b8] sm:$0xf0]  ;;  %v10278_v7 = vor.u32 %v11940_v54, %v10277_v11  ;;  %v11872_v60 = vld [vmem:[#allocation8 + $0xac] sm:$0xf0] }
 0x36e   :  { %v11605_v1 = vld [vmem:[#allocation5 + $0xa5c] sm:$0xf]  ;;  %v9762_v25 = vor.u32 %v11805_v57, %v9759_v58  ;;  %4676 = vmatpush.bf16.msrb.mxu2 %v9506_v61  ;;  %v10022_v57 = vor.u32 %v11876_v51, %v10021_v50  ;;  %v10150_v58 = vor.u32 %v11908_v5, %v10149_v53  ;;  %v10133_v61 = vld [vmem:[#allocation8 + $0x1a0] sm:$0xf]  ;;  %v11956_v51 = vld [vmem:[#allocation8 + $0x34c] sm:$0xf0]  ;;  %v12897_v53 = vpop.f32.mrf.mxu3 }
 0x36f   :  { %v8959_v2 = vld [vmem:[#allocation5 + $0xa78] sm:$0xf0]  ;;  %v10341_v50 = vld [vmem:[#allocation8 + $0x340] sm:$0xf] }
 0x370   :  { %v11669_v3 = vld [vmem:[#allocation5 + $0xc5c] sm:$0xf]  ;;  %v8962_v15 = vor.u32 %v11605_v1, %v8959_v2  ;;  %4689 = vmatpush.bf16.msrb.mxu3 %v9762_v25  ;;  %v10406_v1 = vor.u32 %v11972_v56, %v10405_v55  ;;  %v11904_v2 = vld [vmem:[#allocation8 + $0x1ac] sm:$0xf0]  ;;  %v10389_v25 = vld [vmem:[#allocation8 + $0x3a0] sm:$0xf] }
 0x371   :  { %v9215_v8 = vld [vmem:[#allocation5 + $0xc78] sm:$0xf0]  ;;  %v9941_v56 = vld [vmem:[#allocation8 + $0x20] sm:$0xf] }
 0x372   :  { %v11733_v9 = vld [vmem:[#allocation5 + $0xe5c] sm:$0xf]  ;;  %v9218_v17 = vor.u32 %v11669_v3, %v9215_v8  ;;  %4651 = vmatpush.bf16.msrb.mxu0 %v8962_v15  ;;  %v10261_v3 = vld [vmem:[#allocation8 + $0x2a0] sm:$0xf]  ;;  %v11968_v8 = vld [vmem:[#allocation8 + $0x3ac] sm:$0xf0] }
 0x373   :  { %v9471_v12 = vld [vmem:[#allocation5 + $0xe78] sm:$0xf0]  ;;  %v10117_v15 = vld [vmem:[#allocation8 + $0x180] sm:$0xf] }
 0x374   :  { %v11797_v13 = vld [vmem:[#allocation5 + $0x105c] sm:$0xf]  ;;  %v9474_v22 = vor.u32 %v11733_v9, %v9471_v12  ;;  %4664 = vmatpush.bf16.msrb.mxu1 %v9218_v17  ;;  %v10006_v9 = vor.u32 %v11872_v60, %v10005_v10  ;;  %v10134_v12 = vor.u32 %v11904_v2, %v10133_v61  ;;  %v10245_v17 = vld [vmem:[#allocation8 + $0x280] sm:$0xf]  ;;  %v11888_v10 = vld [vmem:[#allocation8 + $0x12c] sm:$0xf0] }
 0x375   :  { %v9727_v14 = vld [vmem:[#allocation5 + $0x1078] sm:$0xf0]  ;;  %v10197_v60 = vld [vmem:[#allocation8 + $0x220] sm:$0xf]  ;;  %v11920_v61 = vld [vmem:[#allocation8 + $0x22c] sm:$0xf0] }
 0x376   :  { %v11597_v16 = vld [vmem:[#allocation5 + $0xa1c] sm:$0xf]  ;;  %v9730_v42 = vor.u32 %v11797_v13, %v9727_v14  ;;  %4677 = vmatpush.bf16.msrb.mxu2 %v9474_v22  ;;  %v10262_v13 = vor.u32 %v11936_v4, %v10261_v3  ;;  %v9989_v14 = vld [vmem:[#allocation8 + $0x80] sm:$0xf]  ;;  %v12891_v22 = vpop.f32.mrf.mxu0  ;;  %v11952_v2 = vld [vmem:[#allocation8 + $0x32c] sm:$0xf0] }
 0x377   :  { %v8927_v21 = vld [vmem:[#allocation5 + $0xa38] sm:$0xf0]  ;;  %v9925_v4 = vld [vmem:[#allocation8] sm:$0xf] }
 0x378   :  { %v11661_v24 = vld [vmem:[#allocation5 + $0xc1c] sm:$0xf]  ;;  %v8930_v37 = vor.u32 %v11597_v16, %v8927_v21  ;;  %4690 = vmatpush.bf16.msrb.mxu3 %v9730_v42  ;;  %v10390_v16 = vor.u32 %v11968_v8, %v10389_v25  ;;  %v11900_v21 = vld [vmem:[#allocation8 + $0x18c] sm:$0xf0]  ;;  %v9973_v42 = vld [vmem:[#allocation8 + $0x60] sm:$0xf] }
 0x379   :  { %v9183_v26 = vld [vmem:[#allocation5 + $0xc38] sm:$0xf0]  ;;  %v11852_v25 = vld [vmem:[#allocation8 + $0xc] sm:$0xf0] }
 0x37a   :  { %v11725_v27 = vld [vmem:[#allocation5 + $0xe1c] sm:$0xf]  ;;  %v9186_v41 = vor.u32 %v11661_v24, %v9183_v26  ;;  %4652 = vmatpush.bf16.msrb.mxu0 %v8930_v37  ;;  %v11964_v24 = vld [vmem:[#allocation8 + $0x38c] sm:$0xf0]  ;;  %v12893_v26 = vpop.f32.mrf.mxu1 }
 0x37b   :  { %v9439_v29 = vld [vmem:[#allocation5 + $0xe38] sm:$0xf0]  ;;  %v11960_v37 = vld [vmem:[#allocation8 + $0x36c] sm:$0xf0] }
 0x37c   :  { %v11789_v19 = vld [vmem:[#allocation5 + $0x101c] sm:$0xf]  ;;  %v9442_v52 = vor.u32 %v11725_v27, %v9439_v29  ;;  %4665 = vmatpush.bf16.msrb.mxu1 %v9186_v41  ;;  %v10118_v27 = vor.u32 %v11900_v21, %v10117_v15  ;;  %v11864_v29 = vld [vmem:[#allocation8 + $0x6c] sm:$0xf0]  ;;  %v9957_v41 = vld [vmem:[#allocation8 + $0x40] sm:$0xf]  ;;  %v10358_v34 = vor.u32 %v11960_v37, %v10357_v36 }
 0x37d   :  { %v9695_v30 = vld [vmem:[#allocation5 + $0x1038] sm:$0xf0]  ;;  %4653 = vmatmul.bf16.vlgmr.msrb.gmra.mxu0 %v12762_v45  ;;  %v11868_v45 = vld [vmem:[#allocation8 + $0x8c] sm:$0xf0]  ;;  %v9974_v38 = vor.u32 %v11864_v29, %v9973_v42  ;;  %v10805_v42 = vld [vmem:[#allocation8 + $0x6e0] sm:$0xf] }
 0x37e   :  { %v9698_v47 = vor.u32 %v11789_v19, %v9695_v30  ;;  %4678 = vmatpush.bf16.msrb.mxu2 %v9442_v52  ;;  %6251 = vmatpush.bf16.msra.mxu0 %v10038_v62  ;;  %v10101_v19 = vld [vmem:[#allocation8 + $0x160] sm:$0xf]  ;;  %v11860_v52 = vld [vmem:[#allocation8 + $0x4c] sm:$0xf0] }
 0x37f   :  { %4666 = vmatmul.bf16.vlgmr.msrb.gmra.mxu1 %v12756_v39  ;;  %v11932_v39 = vld [vmem:[#allocation8 + $0x28c] sm:$0xf0]  ;;  %v10102_v40 = vor.u32 %v11896_v31, %v10101_v19  ;;  %v10213_v62 = vld [vmem:[#allocation8 + $0x240] sm:$0xf]  ;;  %v9958_v5 = vor.u32 %v11860_v52, %v9957_v41 }
 0x380   :  { %4691 = vmatpush.bf16.msrb.mxu3 %v9698_v47  ;;  %6264 = vmatpush.bf16.msra.mxu1 %v10166_v48  ;;  %v10246_v23 = vor.u32 %v11932_v39, %v10245_v17  ;;  %v11892_v47 = vld [vmem:[#allocation8 + $0x14c] sm:$0xf0]  ;;  %v10549_v39 = vld [vmem:[#allocation8 + $0x4e0] sm:$0xf] }
 0x381   :  { %4679 = vmatmul.bf16.vlgmr.msrb.gmra.mxu2 %v12760_v43  ;;  %v10373_v43 = vld [vmem:[#allocation8 + $0x380] sm:$0xf]  ;;  %v11924_v48 = vld [vmem:[#allocation8 + $0x24c] sm:$0xf0]  ;;  %v10086_v54 = vor.u32 %v11892_v47, %v10085_v46  ;;  %v12901_v46 = vpack.c.bf16 %v12800_v28, %v12800_v28  ;;  %v12909_v47 = vpack.c.bf16 %v12835_v6, %v12835_v6 }
 0x382   :  { %6277 = vmatpush.bf16.msra.mxu2 %v10294_v63  ;;  %6252 = vmatpush.bf16.msra.mxu0 %v10022_v57  ;;  %v10374_v30 = vor.u32 %v11964_v24, %v10373_v43  ;;  %v12895_v63 = vpop.f32.mrf.mxu2  ;;  %v4461_v11 = vpop.f32.mrf.mxu1  ;;  %v10214_v55 = vor.u32 %v11924_v48, %v10213_v62  ;;  %v11856_v57 = vld [vmem:[#allocation8 + $0x2c] sm:$0xf0]  ;;  %v10677_v24 = vld [vmem:[#allocation8 + $0x5e0] sm:$0xf]  ;;  %v12913_v48 = vpack.c.bf16 %v12852_v35, %v12852_v35 }
 0x383   :  { %4692 = vmatmul.bf16.vlgmr.msrb.gmra.mxu3 %v12768_v18  ;;  %v9990_v18 = vor.u32 %v11868_v45, %v9989_v14  ;;  %v9942_v3 = vor.u32 %v11856_v57, %v9941_v56  ;;  %v10181_v14 = vld [vmem:[#allocation8 + $0x200] sm:$0xf]  ;;  %v11916_v15 = vld [vmem:[#allocation8 + $0x20c] sm:$0xf0] }
 0x384   :  { %6290 = vmatpush.bf16.msra.mxu3 %v10422_v0  ;;  %6265 = vmatpush.bf16.msra.mxu1 %v10150_v58  ;;  %v4448_v0 = vpop.f32.mrf.mxu0  ;;  %v10069_v58 = vld [vmem:[#allocation8 + $0x120] sm:$0xf]  ;;  %v11948_v21 = vld [vmem:[#allocation8 + $0x30c] sm:$0xf0] }
 0x385   :  { %v10070_v8 = vor.u32 %v11888_v10, %v10069_v58  ;;  %v12008_v43 = vld [vmem:[#allocation8 + $0x4ec] sm:$0xf0]  ;;  %v10533_v37 = vld [vmem:[#allocation8 + $0x4c0] sm:$0xf] }
 0x386   :  { %6278 = vmatpush.bf16.msra.mxu2 %v10278_v7  ;;  %6253 = vmatpush.bf16.msra.mxu0 %v10006_v9  ;;  %v10342_v7 = vor.u32 %v11956_v51, %v10341_v50  ;;  %v10198_v9 = vor.u32 %v11920_v61, %v10197_v60  ;;  %v12072_v29 = vld [vmem:[#allocation8 + $0x6ec] sm:$0xf0]  ;;  %v10550_v32 = vor.u32 %v12008_v43, %v10549_v39  ;;  %v10789_v41 = vld [vmem:[#allocation8 + $0x6c0] sm:$0xf] }
 0x387   :  { %v10806_v36 = vor.u32 %v12072_v29, %v10805_v42  ;;  %v12068_v52 = vld [vmem:[#allocation8 + $0x6cc] sm:$0xf0]  ;;  %v10517_v51 = vld [vmem:[#allocation8 + $0x4a0] sm:$0xf] }
 0x388   :  { %6291 = vmatpush.bf16.msra.mxu3 %v10406_v1  ;;  %6266 = vmatpush.bf16.msra.mxu1 %v10134_v12  ;;  %v10325_v1 = vld [vmem:[#allocation8 + $0x320] sm:$0xf]  ;;  %v10790_v50 = vor.u32 %v12068_v52, %v10789_v41  ;;  %v12000_v0 = vld [vmem:[#allocation8 + $0x4ac] sm:$0xf0] }
 0x389   :  { %v10053_v12 = vld [vmem:[#allocation8 + $0x100] sm:$0xf]  ;;  %v10326_v45 = vor.u32 %v11952_v2, %v10325_v1  ;;  %v12064_v11 = vld [vmem:[#allocation8 + $0x6ac] sm:$0xf0]  ;;  %v10518_v35 = vor.u32 %v12000_v0, %v10517_v51 }
 0x38a   :  { %6279 = vmatpush.bf16.msra.mxu2 %v10262_v13  ;;  %6254 = vmatpush.bf16.msra.mxu0 %v9990_v18  ;;  %v11884_v13 = vld [vmem:[#allocation8 + $0x10c] sm:$0xf0]  ;;  %v4474_v17 = vpop.f32.mrf.mxu2  ;;  %v4487_v18 = vpop.f32.mrf.mxu3  ;;  %v10773_v6 = vld [vmem:[#allocation8 + $0x6a0] sm:$0xf] }
 0x38b   :  { %v10054_v19 = vor.u32 %v11884_v13, %v10053_v12  ;;  %v10501_v56 = vld [vmem:[#allocation8 + $0x480] sm:$0xf]  ;;  %v11996_v57 = vld [vmem:[#allocation8 + $0x48c] sm:$0xf0] }
 0x38c   :  { %6292 = vmatpush.bf16.msra.mxu3 %v10390_v16  ;;  %6267 = vmatpush.bf16.msra.mxu1 %v10118_v27  ;;  %v10309_v16 = vld [vmem:[#allocation8 + $0x300] sm:$0xf]  ;;  %v9926_v27 = vor.u32 %v11852_v25, %v9925_v4  ;;  %v12060_v60 = vld [vmem:[#allocation8 + $0x68c] sm:$0xf0]  ;;  %v10502_v61 = vor.u32 %v11996_v57, %v10501_v56  ;;  %v12919_v1 = vpop.f32.mrf.mxu0  ;;  %v4447_v57 = vadd.f32 %v12891_v22, %v12885_v59 }
 0x38d   :  { %v10310_v31 = vor.u32 %v11948_v21, %v10309_v16  ;;  %v10629_v58 = vld [vmem:[#allocation8 + $0x580] sm:$0xf]  ;;  %v11992_v25 = vld [vmem:[#allocation8 + $0x46c] sm:$0xf0] }
 0x38e   :  { %6280 = vmatpush.bf16.msra.mxu2 %v10246_v23  ;;  %6255 = vmatpush.bf16.msra.mxu0 %v9974_v38  ;;  %v12040_v23 = vld [vmem:[#allocation8 + $0x5ec] sm:$0xf0]  ;;  %v10757_v10 = vld [vmem:[#allocation8 + $0x680] sm:$0xf]  ;;  %v4460_v59 = vadd.f32 %v12893_v26, %v4447_v57 }
 0x38f   :  { %v10678_v49 = vor.u32 %v12040_v23, %v10677_v24  ;;  %v12004_v38 = vld [vmem:[#allocation8 + $0x4cc] sm:$0xf0]  ;;  %v10485_v4 = vld [vmem:[#allocation8 + $0x460] sm:$0xf] }
 0x390   :  { %6293 = vmatpush.bf16.msra.mxu3 %v10374_v30  ;;  %6268 = vmatpush.bf16.msra.mxu1 %v10102_v40  ;;  %v10182_v30 = vor.u32 %v11916_v15, %v10181_v14  ;;  %v10661_v40 = vld [vmem:[#allocation8 + $0x5c0] sm:$0xf]  ;;  %v10534_v62 = vor.u32 %v12004_v38, %v10533_v37  ;;  %v12024_v12 = vld [vmem:[#allocation8 + $0x56c] sm:$0xf0]  ;;  %v10486_v16 = vor.u32 %v11992_v25, %v10485_v4  ;;  %v11942_v4 = vld [vmem:[#allocation8 + $0x2e4] sm:$0xf] }
 0x391   :  { %v10741_v13 = vld [vmem:[#allocation8 + $0x660] sm:$0xf]  ;;  %v12056_v14 = vld [vmem:[#allocation8 + $0x66c] sm:$0xf0]  ;;  %v10295_v25 = vld [vmem:[#allocation8 + $0x2f0] sm:$0xf0] }
 0x392   :  { %6281 = vmatpush.bf16.msra.mxu2 %v10230_v33  ;;  %6256 = vmatpush.bf16.msra.mxu0 %v9958_v5  ;;  %v12036_v33 = vld [vmem:[#allocation8 + $0x5cc] sm:$0xf0]  ;;  %v10645_v5 = vld [vmem:[#allocation8 + $0x5a0] sm:$0xf]  ;;  %v10742_v17 = vor.u32 %v12056_v14, %v10741_v13  ;;  %v12926_v18 = vpop.f32.mrf.mxu2  ;;  %v12928_v29 = vpop.f32.mrf.mxu3 }
 0x393   :  { %v10662_v28 = vor.u32 %v12036_v33, %v10661_v40  ;;  %v10469_v39 = vld [vmem:[#allocation8 + $0x440] sm:$0xf]  ;;  %v11988_v43 = vld [vmem:[#allocation8 + $0x44c] sm:$0xf0] }
 0x394   :  { %6294 = vmatpush.bf16.msra.mxu3 %v10358_v34  ;;  %6269 = vmatpush.bf16.msra.mxu1 %v10086_v54  ;;  %v12905_v34 = vpack.c.bf16 %v12816_v44, %v12816_v44  ;;  %v12032_v44 = vld [vmem:[#allocation8 + $0x5ac] sm:$0xf0]  ;;  %v10597_v24 = vld [vmem:[#allocation8 + $0x540] sm:$0xf] }
 0x395   :  { %v10646_v54 = vor.u32 %v12032_v44, %v10645_v5  ;;  %v10725_v23 = vld [vmem:[#allocation8 + $0x640] sm:$0xf]  ;;  %v12052_v42 = vld [vmem:[#allocation8 + $0x64c] sm:$0xf0] }
 0x396   :  { %6282 = vmatpush.bf16.msra.mxu2 %v10214_v55  ;;  %6257 = vmatpush.bf16.msra.mxu0 %v9942_v3  ;;  %v10774_v55 = vor.u32 %v12064_v11, %v10773_v6  ;;  %v10758_v3 = vor.u32 %v12060_v60, %v10757_v10  ;;  %v11984_v37 = vld [vmem:[#allocation8 + $0x42c] sm:$0xf0]  ;;  %v10581_v38 = vld [vmem:[#allocation8 + $0x520] sm:$0xf]  ;;  %v11910_v10 = vld [vmem:[#allocation8 + $0x1e4] sm:$0xf] }
 0x397   :  { %v12016_v33 = vld [vmem:[#allocation8 + $0x52c] sm:$0xf0]  ;;  %v10709_v41 = vld [vmem:[#allocation8 + $0x620] sm:$0xf] }
 0x398   :  { %6295 = vmatpush.bf16.msra.mxu3 %v10342_v7  ;;  %6270 = vmatpush.bf16.msra.mxu1 %v10070_v8  ;;  %v12028_v7 = vld [vmem:[#allocation8 + $0x58c] sm:$0xf0]  ;;  %v10613_v8 = vld [vmem:[#allocation8 + $0x560] sm:$0xf]  ;;  %v10582_v6 = vor.u32 %v12016_v33, %v10581_v38  ;;  %v11902_v38 = vld [vmem:[#allocation8 + $0x1a4] sm:$0xf] }
 0x399   :  { %v10630_v2 = vor.u32 %v12028_v7, %v10629_v58  ;;  %v10614_v21 = vor.u32 %v12024_v12, %v10613_v8  ;;  %v12048_v52 = vld [vmem:[#allocation8 + $0x62c] sm:$0xf0]  ;;  %v10437_v51 = vld [vmem:[#allocation8 + $0x400] sm:$0xf]  ;;  %v11878_v58 = vld [vmem:[#allocation8 + $0xe4] sm:$0xf] }
 0x39a   :  { %6283 = vmatpush.bf16.msra.mxu2 %v10198_v9  ;;  %6258 = vmatpush.bf16.msra.mxu0 %v9926_v27  ;;  %v12921_v9 = vpop.f32.mrf.mxu1  ;;  %v12020_v27 = vld [vmem:[#allocation8 + $0x54c] sm:$0xf0]  ;;  %v10565_v5 = vld [vmem:[#allocation8 + $0x500] sm:$0xf]  ;;  %v10710_v11 = vor.u32 %v12048_v52, %v10709_v41  ;;  %v4526_v56 = vpop.f32.mrf.mxu2  ;;  %v10039_v7 = vld [vmem:[#allocation8 + $0xf0] sm:$0xf0] }
 0x39b   :  { %v11980_v0 = vld [vmem:[#allocation8 + $0x40c] sm:$0xf0]  ;;  %v4539_v60 = vpop.f32.mrf.mxu3  ;;  %v10042_v22 = vor.u32 %v11878_v58, %v10039_v7  ;;  %v10885_v33 = vld [vmem:[#allocation8 + $0x780] sm:$0xf] }
 0x39c   :  { %6296 = vmatpush.bf16.msra.mxu3 %v10326_v45  ;;  %6271 = vmatpush.bf16.msra.mxu1 %v10054_v19  ;;  %v12923_v45 = vld [vmem:[#allocation7] sm:$0xff]  ;;  %v10470_v19 = vor.u32 %v11988_v43, %v10469_v39  ;;  %v11906_v39 = vld [vmem:[#allocation8 + $0x1c4] sm:$0xf]  ;;  %v10151_v43 = vld [vmem:[#allocation8 + $0x1d0] sm:$0xf0] }
 0x39d   :  { %6259 = vmatmul.bf16.vlgmr.msra.gmra.mxu0 %v12901_v46  ;;  %v839_v15 = vperm.slane %v12923_v45, 6  ;;  %v12092_v41 = vld [vmem:[#allocation8 + $0x78c] sm:$0xf0]  ;;  %v9975_v60 = vld [vmem:[#allocation8 + $0x70] sm:$0xf0] }
 0x39e   :  { %6284 = vmatpush.bf16.msra.mxu2 %v10182_v30  ;;  %6303 = vmatpush.bf16.msrb.mxu0 %v10550_v32  ;;  %v4500_v30 = vpop.f32.mrf.mxu0  ;;  %v10598_v32 = vor.u32 %v12020_v27, %v10597_v24  ;;  %v11938_v24 = vld [vmem:[#allocation8 + $0x2c4] sm:$0xf]  ;;  %v10279_v27 = vld [vmem:[#allocation8 + $0x2d0] sm:$0xf0] }
 0x39f   :  { %6272 = vmatmul.bf16.vlgmr.msra.gmra.mxu1 %v12905_v34  ;;  %v12941_v30 = vpack.c.bf16 %v4460_v59, %v4460_v59  ;;  %v11858_v59 = vld [vmem:[#allocation8 + $0x44] sm:$0xf] }
 0x3a0   :  { %6297 = vmatpush.bf16.msra.mxu3 %v10310_v31  ;;  %6316 = vmatpush.bf16.msrb.mxu1 %v10678_v49  ;;  %v4473_v31 = vadd.f32 %v12895_v63, %v839_v15  ;;  %v10726_v49 = vor.u32 %v12052_v42, %v10725_v23  ;;  %v10901_v23 = vld [vmem:[#allocation8 + $0x7a0] sm:$0xf]  ;;  %v12096_v42 = vld [vmem:[#allocation8 + $0x7ac] sm:$0xf0] }
 0x3a1   :  { %6285 = vmatmul.bf16.vlgmr.msra.gmra.mxu2 %v12909_v47  ;;  %v10902_v26 = vor.u32 %v12096_v42, %v10901_v23  ;;  %v12080_v23 = vld [vmem:[#allocation8 + $0x72c] sm:$0xf0] }
 0x3a2   :  { %6329 = vmatpush.bf16.msrb.mxu2 %v10806_v36  ;;  %6304 = vmatpush.bf16.msrb.mxu0 %v10534_v62  ;;  %v10453_v36 = vld [vmem:[#allocation8 + $0x420] sm:$0xf]  ;;  %v4513_v40 = vpop.f32.mrf.mxu1  ;;  %v4486_v63 = vadd.f32 %v12897_v53, %v4473_v31  ;;  %v10438_v53 = vor.u32 %v11980_v0, %v10437_v51  ;;  %v11866_v51 = vld [vmem:[#allocation8 + $0x84] sm:$0xf]  ;;  %v9991_v0 = vld [vmem:[#allocation8 + $0x90] sm:$0xf0] }
 0x3a3   :  { %6298 = vmatmul.bf16.vlgmr.msra.gmra.mxu3 %v12913_v48  ;;  %v10933_v62 = vld [vmem:[#allocation8 + $0x7e0] sm:$0xf]  ;;  %v11934_v40 = vld [vmem:[#allocation8 + $0x2a4] sm:$0xf]  ;;  %v9994_v57 = vor.u32 %v11866_v51, %v9991_v0  ;;  %v9927_v0 = vld [vmem:[#allocation8 + $0x10] sm:$0xf0] }
 0x3a4   :  { %6317 = vmatpush.bf16.msrb.mxu1 %v10662_v28  ;;  %v12104_v28 = vld [vmem:[#allocation8 + $0x7ec] sm:$0xf0]  ;;  %v4499_v12 = vadd.f32 %v12919_v1, %v4486_v63  ;;  %v12938_v1 = vpack.c.bf16 %v12876_v20, %v12876_v20  ;;  %v10135_v20 = vld [vmem:[#allocation8 + $0x1b0] sm:$0xf0]  ;;  %v11850_v51 = vld [vmem:[#allocation8 + $0x4] sm:$0xf] }
 0x3a5   :  { %v10934_v44 = vor.u32 %v12104_v28, %v10933_v62  ;;  %v10886_v62 = vor.u32 %v12092_v41, %v10885_v33  ;;  %v10119_v63 = vld [vmem:[#allocation8 + $0x190] sm:$0xf0]  ;;  %v11918_v41 = vld [vmem:[#allocation8 + $0x224] sm:$0xf] }
 0x3a6   :  { %6330 = vmatpush.bf16.msrb.mxu2 %v10790_v50  ;;  %6305 = vmatpush.bf16.msrb.mxu0 %v10518_v35  ;;  %v10454_v50 = vor.u32 %v11984_v37, %v10453_v36  ;;  %v12012_v35 = vld [vmem:[#allocation8 + $0x50c] sm:$0xf0]  ;;  %v10007_v36 = vld [vmem:[#allocation8 + $0xb0] sm:$0xf0]  ;;  %v10282_v37 = vor.u32 %v11938_v24, %v10279_v27  ;;  %v4550_v56 = vpop.f32.mrf.mxu0  ;;  %v10837_v27 = vld [vmem:[#allocation8 + $0x720] sm:$0xf] }
 0x3a7   :  { %6342 = vmatpush.bf16.msrb.mxu3 %v10934_v44  ;;  %v10566_v13 = vor.u32 %v12012_v35, %v10565_v5  ;;  %v11898_v44 = vld [vmem:[#allocation8 + $0x184] sm:$0xf]  ;;  %v10869_v35 = vld [vmem:[#allocation8 + $0x760] sm:$0xf]  ;;  %v10215_v24 = vld [vmem:[#allocation8 + $0x250] sm:$0xf0] }
 0x3a8   :  { %6318 = vmatpush.bf16.msrb.mxu1 %v10646_v54  ;;  %v10693_v54 = vld [vmem:[#allocation8 + $0x600] sm:$0xf]  ;;  %v10122_v58 = vor.u32 %v11898_v44, %v10119_v63  ;;  %v10071_v33 = vld [vmem:[#allocation8 + $0x130] sm:$0xf0] }
 0x3a9   :  { %v10423_v44 = vld [vmem:[#allocation8 + $0x3f0] sm:$0xf0] }
 0x3aa   :  { %6331 = vmatpush.bf16.msrb.mxu2 %v10774_v55  ;;  %6306 = vmatpush.bf16.msrb.mxu0 %v10502_v61  ;;  %v12044_v55 = vld [vmem:[#allocation8 + $0x60c] sm:$0xf0]  ;;  %v10167_v61 = vld [vmem:[#allocation8 + $0x1f0] sm:$0xf0]  ;;  %v4563_v7 = vpop.f32.mrf.mxu1 }
 0x3ab   :  { %v10694_v14 = vor.u32 %v12044_v55, %v10693_v54  ;;  %v10170_v15 = vor.u32 %v11910_v10, %v10167_v61  ;;  %v12088_v54 = vld [vmem:[#allocation8 + $0x76c] sm:$0xf0]  ;;  %v11862_v10 = vld [vmem:[#allocation8 + $0x64] sm:$0xf] }
 0x3ac   :  { %6319 = vmatpush.bf16.msrb.mxu1 %v10630_v2  ;;  %v10917_v2 = vld [vmem:[#allocation8 + $0x7c0] sm:$0xf] }
 0x3ae   :  { %6332 = vmatpush.bf16.msrb.mxu2 %v10758_v3  ;;  %6307 = vmatpush.bf16.msrb.mxu0 %v10486_v16  ;;  %v12100_v3 = vld [vmem:[#allocation8 + $0x7cc] sm:$0xf0]  ;;  %v11874_v16 = vld [vmem:[#allocation8 + $0xc4] sm:$0xf] }
 0x3af   :  { %v10918_v8 = vor.u32 %v12100_v3, %v10917_v2  ;;  %v11894_v3 = vld [vmem:[#allocation8 + $0x164] sm:$0xf] }
 0x3b0   :  { %6320 = vmatpush.bf16.msrb.mxu1 %v10614_v21  ;;  %v10023_v21 = vld [vmem:[#allocation8 + $0xd0] sm:$0xf0] }
 0x3b1   :  { %6343 = vmatpush.bf16.msrb.mxu3 %v10918_v8  ;;  %v10026_v31 = vor.u32 %v11874_v16, %v10023_v21  ;;  %v10853_v8 = vld [vmem:[#allocation8 + $0x740] sm:$0xf]  ;;  %v11890_v21 = vld [vmem:[#allocation8 + $0x144] sm:$0xf] }
 0x3b2   :  { %6333 = vmatpush.bf16.msrb.mxu2 %v10742_v17  ;;  %6308 = vmatpush.bf16.msrb.mxu0 %v10470_v19  ;;  %v10298_v17 = vor.u32 %v11942_v4, %v10295_v25  ;;  %v4512_v19 = vadd.f32 %v12921_v9, %v4499_v12  ;;  %v10263_v9 = vld [vmem:[#allocation8 + $0x2b0] sm:$0xf0]  ;;  %v11926_v4 = vld [vmem:[#allocation8 + $0x264] sm:$0xf]  ;;  %v12084_v12 = vld [vmem:[#allocation8 + $0x74c] sm:$0xf0] }
 0x3b3   :  { %v10266_v5 = vor.u32 %v11934_v40, %v10263_v9  ;;  %v10231_v25 = vld [vmem:[#allocation8 + $0x270] sm:$0xf0] }
 0x3b4   :  { %6321 = vmatpush.bf16.msrb.mxu1 %v10598_v32  ;;  %v10154_v32 = vor.u32 %v11906_v39, %v10151_v43  ;;  %v4525_v52 = vadd.f32 %v12926_v18, %v4512_v19  ;;  %v10870_v18 = vor.u32 %v12088_v54, %v10869_v35  ;;  %v10234_v16 = vor.u32 %v11926_v4, %v10231_v25  ;;  %v11922_v39 = vld [vmem:[#allocation8 + $0x244] sm:$0xf]  ;;  %v4576_v43 = vpop.f32.mrf.mxu2  ;;  %v12947_v19 = vpop.f32.mrf.mxu3  ;;  %v10055_v35 = vld [vmem:[#allocation8 + $0x110] sm:$0xf0] }
 0x3b5   :  { %6344 = vmatpush.bf16.msrb.mxu3 %v10902_v26  ;;  %v4552_v26 = vpop.f32.mrf.mxu0  ;;  %v10218_v9 = vor.u32 %v11922_v39, %v10215_v24  ;;  %v11914_v54 = vld [vmem:[#allocation8 + $0x204] sm:$0xf]  ;;  %v10791_v39 = vld [vmem:[#allocation8 + $0x6d0] sm:$0xf0] }
 0x3b6   :  { %6334 = vmatpush.bf16.msrb.mxu2 %v10726_v49  ;;  %6309 = vmatpush.bf16.msrb.mxu0 %v10454_v50  ;;  %v11870_v49 = vld [vmem:[#allocation8 + $0xa4] sm:$0xf]  ;;  %v10138_v50 = vor.u32 %v11902_v38, %v10135_v20  ;;  %v4538_v55 = vadd.f32 %v12928_v29, %v4525_v52  ;;  %v10854_v29 = vor.u32 %v12084_v12, %v10853_v8  ;;  %v4565_v20 = vpop.f32.mrf.mxu1  ;;  %v10199_v52 = vld [vmem:[#allocation8 + $0x230] sm:$0xf0] }
 0x3b7   :  { %v10010_v28 = vor.u32 %v11870_v49, %v10007_v36  ;;  %v11854_v36 = vld [vmem:[#allocation8 + $0x24] sm:$0xf]  ;;  %v9930_v8 = vor.u32 %v11850_v51, %v9927_v0  ;;  %v10391_v24 = vld [vmem:[#allocation8 + $0x3b0] sm:$0xf0] }
 0x3b8   :  { %6322 = vmatpush.bf16.msrb.mxu1 %v10582_v6  ;;  %v11930_v6 = vld [vmem:[#allocation8 + $0x284] sm:$0xf]  ;;  %v4551_v61 = vadd.f32 %v4550_v56, %v4538_v55  ;;  %v10202_v56 = vor.u32 %v11918_v41, %v10199_v52  ;;  %v10631_v0 = vld [vmem:[#allocation8 + $0x590] sm:$0xf0] }
 0x3b9   :  { %6345 = vmatpush.bf16.msrb.mxu3 %v10886_v62  ;;  %v11886_v38 = vld [vmem:[#allocation8 + $0x124] sm:$0xf]  ;;  %v10821_v62 = vld [vmem:[#allocation8 + $0x700] sm:$0xf] }
 0x3ba   :  { %6335 = vmatpush.bf16.msrb.mxu2 %v10710_v11  ;;  %6310 = vmatpush.bf16.msrb.mxu0 %v10438_v53  ;;  %v10247_v11 = vld [vmem:[#allocation8 + $0x290] sm:$0xf0]  ;;  %v11962_v20 = vld [vmem:[#allocation8 + $0x384] sm:$0xf] }
 0x3bb   :  { %v10250_v2 = vor.u32 %v11930_v6, %v10247_v11  ;;  %v10103_v53 = vld [vmem:[#allocation8 + $0x170] sm:$0xf0]  ;;  %v10074_v6 = vor.u32 %v11886_v38, %v10071_v33  ;;  %v11882_v11 = vld [vmem:[#allocation8 + $0x104] sm:$0xf] }
 0x3bc   :  { %6323 = vmatpush.bf16.msrb.mxu1 %v10566_v13  ;;  %v9978_v13 = vor.u32 %v11862_v10, %v9975_v60  ;;  %v4578_v10 = vpop.f32.mrf.mxu2  ;;  %v11970_v60 = vld [vmem:[#allocation8 + $0x3c4] sm:$0xf]  ;;  %v4591_v4 = vpop.f32.mrf.mxu3  ;;  %v10058_v12 = vor.u32 %v11882_v11, %v10055_v35  ;;  %v10775_v38 = vld [vmem:[#allocation8 + $0x6b0] sm:$0xf0] }
 0x3bd   :  { %6311 = vmatmul.bf16.vlgmr.msrb.gmra.mxu0 %v12938_v1  ;;  %6346 = vmatpush.bf16.msrb.mxu3 %v10870_v18  ;;  %v10183_v18 = vld [vmem:[#allocation8 + $0x210] sm:$0xf0]  ;;  %v12026_v51 = vld [vmem:[#allocation8 + $0x584] sm:$0xf] }
 0x3be   :  { %6336 = vmatpush.bf16.msrb.mxu2 %v10694_v14  ;;  %6355 = vmatpush.bf16.msra.mxu0 %v10042_v22  ;;  %v10106_v14 = vor.u32 %v11894_v3, %v10103_v53  ;;  %v9959_v22 = vld [vmem:[#allocation8 + $0x50] sm:$0xf0]  ;;  %v12070_v3 = vld [vmem:[#allocation8 + $0x6e4] sm:$0xf] }
 0x3bf   :  { %6324 = vmatmul.bf16.vlgmr.msrb.gmra.mxu1 %v12941_v30  ;;  %v10807_v53 = vld [vmem:[#allocation8 + $0x6f0] sm:$0xf0]  ;;  %v12054_v10 = vld [vmem:[#allocation8 + $0x664] sm:$0xf] }
 0x3c0   :  { %6368 = vmatpush.bf16.msra.mxu1 %v10170_v15  ;;  %v4564_v15 = vadd.f32 %v4563_v7, %v4551_v61  ;;  %v12038_v7 = vld [vmem:[#allocation8 + $0x5e4] sm:$0xf]  ;;  %v10407_v61 = vld [vmem:[#allocation8 + $0x3d0] sm:$0xf0] }
 0x3c1   :  { %6347 = vmatpush.bf16.msrb.mxu3 %v10854_v29  ;;  %v10410_v25 = vor.u32 %v11970_v60, %v10407_v61  ;;  %v10186_v29 = vor.u32 %v11914_v54, %v10183_v18  ;;  %v10634_v54 = vor.u32 %v12026_v51, %v10631_v0  ;;  %v10487_v18 = vld [vmem:[#allocation8 + $0x470] sm:$0xf0]  ;;  %v12957_v61 = vpop.f32.mrf.mxu1 }
 0x3c2   :  { %6381 = vmatpush.bf16.msra.mxu2 %v10298_v17  ;;  %6356 = vmatpush.bf16.msra.mxu0 %v10026_v31  ;;  %v10087_v17 = vld [vmem:[#allocation8 + $0x150] sm:$0xf0]  ;;  %v4577_v42 = vadd.f32 %v4576_v43, %v4564_v15  ;;  %v10838_v31 = vor.u32 %v12080_v23, %v10837_v27  ;;  %v11966_v43 = vld [vmem:[#allocation8 + $0x3a4] sm:$0xf] }
 0x3c3   :  { %v10090_v49 = vor.u32 %v11890_v21, %v10087_v17  ;;  %v10535_v15 = vld [vmem:[#allocation8 + $0x4d0] sm:$0xf0]  ;;  %v12066_v17 = vld [vmem:[#allocation8 + $0x6c4] sm:$0xf]  ;;  %v10394_v23 = vor.u32 %v11966_v43, %v10391_v24 }
 0x3c4   :  { %6369 = vmatpush.bf16.msra.mxu1 %v10154_v32  ;;  %v9962_v32 = vor.u32 %v11858_v59, %v9959_v22  ;;  %v12949_v40 = vpack.c.bf16 %v4577_v42, %v4577_v42  ;;  %v10810_v59 = vor.u32 %v12070_v3, %v10807_v53  ;;  %v12002_v22 = vld [vmem:[#allocation8 + $0x4c4] sm:$0xf]  ;;  %v10663_v21 = vld [vmem:[#allocation8 + $0x5d0] sm:$0xf0]  ;;  %v10794_v26 = vor.u32 %v12066_v17, %v10791_v39 }
 0x3c5   :  { %6348 = vmatpush.bf16.msrb.mxu3 %v10838_v31  ;;  %v10538_v27 = vor.u32 %v12002_v22, %v10535_v15  ;;  %v11998_v31 = vld [vmem:[#allocation8 + $0x4a4] sm:$0xf]  ;;  %v10743_v60 = vld [vmem:[#allocation8 + $0x670] sm:$0xf0]  ;;  %v12959_v15 = vpop.f32.mrf.mxu2  ;;  %v840_v39 = vperm.slane %v12923_v45, 7 }
 0x3c6   :  { %6382 = vmatpush.bf16.msra.mxu2 %v10282_v37  ;;  %6357 = vmatpush.bf16.msra.mxu0 %v10010_v28  ;;  %v9943_v37 = vld [vmem:[#allocation8 + $0x30] sm:$0xf0]  ;;  %v12076_v28 = vld [vmem:[#allocation8 + $0x70c] sm:$0xf0] }
 0x3c7   :  { %6337 = vmatmul.bf16.vlgmr.msrb.gmra.mxu2 %v12949_v40  ;;  %v9946_v63 = vor.u32 %v11854_v36, %v9943_v37  ;;  %v10647_v36 = vld [vmem:[#allocation8 + $0x5b0] sm:$0xf0]  ;;  %v12062_v37 = vld [vmem:[#allocation8 + $0x6a4] sm:$0xf]  ;;  %v4590_v0 = vadd.f32 %v12947_v19, %v840_v39  ;;  %v11905_v39 = vld [vmem:[#allocation8 + $0x1b4] sm:$0xf0] }
 0x3c8   :  { %6370 = vmatpush.bf16.msra.mxu1 %v10138_v50  ;;  %v11974_v50 = vld [vmem:[#allocation8 + $0x3e4] sm:$0xf]  ;;  %v10343_v3 = vld [vmem:[#allocation8 + $0x350] sm:$0xf0] }
 0x3c9   :  { %v10426_v55 = vor.u32 %v11974_v50, %v10423_v44  ;;  %v10503_v50 = vld [vmem:[#allocation8 + $0x490] sm:$0xf0] }
 0x3ca   :  { %6383 = vmatpush.bf16.msra.mxu2 %v10266_v5  ;;  %6358 = vmatpush.bf16.msra.mxu0 %v9994_v57  ;;  %v10822_v5 = vor.u32 %v12076_v28, %v10821_v62  ;;  %v12006_v57 = vld [vmem:[#allocation8 + $0x4e4] sm:$0xf]  ;;  %v10778_v62 = vor.u32 %v12062_v37, %v10775_v38  ;;  %v10759_v44 = vld [vmem:[#allocation8 + $0x690] sm:$0xf0]  ;;  %v4617_v38 = vpop.f32.mrf.mxu1 }
 0x3cb   :  { %v11994_v28 = vld [vmem:[#allocation8 + $0x484] sm:$0xf]  ;;  %v10727_v22 = vld [vmem:[#allocation8 + $0x650] sm:$0xf0] }
 0x3cc   :  { %6371 = vmatpush.bf16.msra.mxu1 %v10122_v58  ;;  %v10551_v58 = vld [vmem:[#allocation8 + $0x4f0] sm:$0xf0]  ;;  %6349 = vmatpush.bf16.msrb.mxu3 %v10822_v5  ;;  %v12058_v5 = vld [vmem:[#allocation8 + $0x684] sm:$0xf]  ;;  %v10506_v11 = vor.u32 %v11994_v28, %v10503_v50 }
 0x3cd   :  { %v10327_v17 = vld [vmem:[#allocation8 + $0x330] sm:$0xf0]  ;;  %v12010_v50 = vld [vmem:[#allocation8 + $0x504] sm:$0xf] }
 0x3ce   :  { %6384 = vmatpush.bf16.msra.mxu2 %v10250_v2  ;;  %6359 = vmatpush.bf16.msra.mxu0 %v9978_v13  ;;  %v10679_v2 = vld [vmem:[#allocation8 + $0x5f0] sm:$0xf0]  ;;  %v10554_v13 = vor.u32 %v12006_v57, %v10551_v58  ;;  %v12022_v57 = vld [vmem:[#allocation8 + $0x564] sm:$0xf]  ;;  %v12955_v58 = vpop.f32.mrf.mxu0 }
 0x3cf   :  { %v10711_v37 = vld [vmem:[#allocation8 + $0x630] sm:$0xf0] }
 0x3d0   :  { %6372 = vmatpush.bf16.msra.mxu1 %v10106_v14  ;;  %6394 = vmatpush.bf16.msra.mxu3 %v10426_v55  ;;  %v10682_v14 = vor.u32 %v12038_v7, %v10679_v2  ;;  %v10762_v55 = vor.u32 %v12058_v5, %v10759_v44  ;;  %v10615_v7 = vld [vmem:[#allocation8 + $0x570] sm:$0xf0]  ;;  %v11954_v2 = vld [vmem:[#allocation8 + $0x344] sm:$0xf] }
 0x3d1   :  { %v10346_v4 = vor.u32 %v11954_v2, %v10343_v3  ;;  %v10439_v28 = vld [vmem:[#allocation8 + $0x410] sm:$0xf0]  ;;  %v12042_v5 = vld [vmem:[#allocation8 + $0x604] sm:$0xf]  ;;  %v10029_v3 = vld [vmem:[#allocation8 + $0xc8] sm:$0xf] }
 0x3d2   :  { %6385 = vmatpush.bf16.msra.mxu2 %v10234_v16  ;;  %6360 = vmatpush.bf16.msra.mxu0 %v9962_v32  ;;  %v12034_v16 = vld [vmem:[#allocation8 + $0x5c4] sm:$0xf]  ;;  %v10519_v32 = vld [vmem:[#allocation8 + $0x4b0] sm:$0xf0] }
 0x3d3   :  { %v10666_v42 = vor.u32 %v12034_v16, %v10663_v21  ;;  %v10522_v33 = vor.u32 %v11998_v31, %v10519_v32  ;;  %v12961_v16 = vpop.f32.mrf.mxu3  ;;  %v11950_v21 = vld [vmem:[#allocation8 + $0x324] sm:$0xf]  ;;  %v10567_v51 = vld [vmem:[#allocation8 + $0x510] sm:$0xf0] }
 0x3d4   :  { %6373 = vmatpush.bf16.msra.mxu1 %v10090_v49  ;;  %6395 = vmatpush.bf16.msra.mxu3 %v10410_v25  ;;  %v12030_v49 = vld [vmem:[#allocation8 + $0x5a4] sm:$0xf]  ;;  %v10618_v25 = vor.u32 %v12022_v57, %v10615_v7  ;;  %v10330_v24 = vor.u32 %v11950_v21, %v10327_v17  ;;  %v10695_v44 = vld [vmem:[#allocation8 + $0x610] sm:$0xf0]  ;;  %v11945_v57 = vld [vmem:[#allocation8 + $0x2f4] sm:$0xf0]  ;;  %v10570_v7 = vor.u32 %v12010_v50, %v10567_v51 }
 0x3d5   :  { %v10650_v52 = vor.u32 %v12030_v49, %v10647_v36  ;;  %v12014_v31 = vld [vmem:[#allocation8 + $0x524] sm:$0xf]  ;;  %v10583_v49 = vld [vmem:[#allocation8 + $0x530] sm:$0xf0]  ;;  %v11873_v21 = vld [vmem:[#allocation8 + $0xb4] sm:$0xf0] }
 0x3d6   :  { %6386 = vmatpush.bf16.msra.mxu2 %v10218_v9  ;;  %6361 = vmatpush.bf16.msra.mxu0 %v9946_v63  ;;  %v10375_v9 = vld [vmem:[#allocation8 + $0x390] sm:$0xf0]  ;;  %v11958_v63 = vld [vmem:[#allocation8 + $0x364] sm:$0xf]  ;;  %v4604_v32 = vpop.f32.mrf.mxu0  ;;  %v10141_v17 = vld [vmem:[#allocation8 + $0x1a8] sm:$0xf] }
 0x3d7   :  { %v10378_v41 = vor.u32 %v11962_v20, %v10375_v9  ;;  %v12046_v36 = vld [vmem:[#allocation8 + $0x624] sm:$0xf]  ;;  %v10311_v9 = vld [vmem:[#allocation8 + $0x310] sm:$0xf0]  ;;  %v10125_v32 = vld [vmem:[#allocation8 + $0x188] sm:$0xf] }
 0x3d8   :  { %6374 = vmatpush.bf16.msra.mxu1 %v10074_v6  ;;  %6396 = vmatpush.bf16.msra.mxu3 %v10394_v23  ;;  %v10359_v6 = vld [vmem:[#allocation8 + $0x370] sm:$0xf0]  ;;  %v11946_v20 = vld [vmem:[#allocation8 + $0x304] sm:$0xf]  ;;  %v10237_v51 = vld [vmem:[#allocation8 + $0x268] sm:$0xf] }
 0x3d9   :  { %v10362_v35 = vor.u32 %v11958_v63, %v10359_v6  ;;  %v10045_v63 = vld [vmem:[#allocation8 + $0xe8] sm:$0xf]  ;;  %v4630_v6 = vpop.f32.mrf.mxu2 }
 0x3da   :  { %6387 = vmatpush.bf16.msra.mxu2 %v10202_v56  ;;  %6362 = vmatpush.bf16.msra.mxu0 %v9930_v8  ;;  %v11990_v56 = vld [vmem:[#allocation8 + $0x464] sm:$0xf]  ;;  %v10746_v8 = vor.u32 %v12054_v10, %v10743_v60  ;;  %v10698_v10 = vor.u32 %v12042_v5, %v10695_v44  ;;  %v4603_v60 = vadd.f32 %v12955_v58, %v4590_v0  ;;  %v11929_v0 = vld [vmem:[#allocation8 + $0x274] sm:$0xf0] }
 0x3db   :  { %v10490_v53 = vor.u32 %v11990_v56, %v10487_v18  ;;  %v10301_v18 = vld [vmem:[#allocation8 + $0x2e8] sm:$0xf]  ;;  %v11861_v6 = vld [vmem:[#allocation8 + $0x54] sm:$0xf0] }
 0x3dc   :  { %6375 = vmatpush.bf16.msra.mxu1 %v10058_v12  ;;  %6397 = vmatpush.bf16.msra.mxu3 %v10378_v41  ;;  %v11986_v12 = vld [vmem:[#allocation8 + $0x444] sm:$0xf]  ;;  %v10314_v41 = vor.u32 %v11946_v20, %v10311_v9 }
 0x3dd   :  { %6363 = vmatmul.bf16.vlgmr.msra.gmra.mxu0 %v12901_v46 }
 0x3de   :  { %6388 = vmatpush.bf16.msra.mxu2 %v10186_v29  ;;  %6407 = vmatpush.bf16.msrb.mxu0 %v10554_v13  ;;  %v10471_v29 = vld [vmem:[#allocation8 + $0x450] sm:$0xf0]  ;;  %v12018_v13 = vld [vmem:[#allocation8 + $0x544] sm:$0xf] }
 0x3df   :  { %6376 = vmatmul.bf16.vlgmr.msra.gmra.mxu1 %v12905_v34  ;;  %v10474_v43 = vor.u32 %v11986_v12, %v10471_v29  ;;  %v10285_v12 = vld [vmem:[#allocation8 + $0x2c8] sm:$0xf]  ;;  %v11941_v29 = vld [vmem:[#allocation8 + $0x2d4] sm:$0xf0] }
 0x3e0   :  { %6420 = vmatpush.bf16.msrb.mxu1 %v10682_v14  ;;  %6398 = vmatpush.bf16.msra.mxu3 %v10362_v35  ;;  %v10599_v14 = vld [vmem:[#allocation8 + $0x550] sm:$0xf0]  ;;  %v10173_v35 = vld [vmem:[#allocation8 + $0x1e8] sm:$0xf]  ;;  %v10286_v58 = vor.u32 %v11941_v29, %v10285_v12  ;;  %v11889_v29 = vld [vmem:[#allocation8 + $0x134] sm:$0xf0] }
 0x3e1   :  { %6389 = vmatmul.bf16.vlgmr.msra.gmra.mxu2 %v12909_v47  ;;  %v10077_v12 = vld [vmem:[#allocation8 + $0x128] sm:$0xf] }
 0x3e2   :  { %6433 = vmatpush.bf16.msrb.mxu2 %v10810_v59  ;;  %6408 = vmatpush.bf16.msrb.mxu0 %v10538_v27  ;;  %v12050_v59 = vld [vmem:[#allocation8 + $0x644] sm:$0xf]  ;;  %v10602_v27 = vor.u32 %v12018_v13, %v10599_v14  ;;  %v4616_v13 = vadd.f32 %v12957_v61, %v4603_v60 }
 0x3e3   :  { %v10730_v23 = vor.u32 %v12050_v59, %v10727_v22  ;;  %v10013_v22 = vld [vmem:[#allocation8 + $0xa8] sm:$0xf] }
 0x3e4   :  { %6421 = vmatpush.bf16.msrb.mxu1 %v10666_v42  ;;  %6399 = vmatpush.bf16.msra.mxu3 %v10346_v4  ;;  %v11982_v42 = vld [vmem:[#allocation8 + $0x424] sm:$0xf]  ;;  %v11877_v4 = vld [vmem:[#allocation8 + $0xd4] sm:$0xf0]  ;;  %v4629_v61 = vadd.f32 %v12959_v15, %v4616_v13  ;;  %v9981_v15 = vld [vmem:[#allocation8 + $0x68] sm:$0xf] }
 0x3e5   :  { %v10030_v14 = vor.u32 %v11877_v4, %v10029_v3  ;;  %v10935_v3 = vld [vmem:[#allocation8 + $0x7f0] sm:$0xf0] }
 0x3e6   :  { %6434 = vmatpush.bf16.msrb.mxu2 %v10794_v26  ;;  %6409 = vmatpush.bf16.msrb.mxu0 %v10522_v33  ;;  %v10455_v26 = vld [vmem:[#allocation8 + $0x430] sm:$0xf0]  ;;  %v11978_v33 = vld [vmem:[#allocation8 + $0x404] sm:$0xf]  ;;  %v4642_v38 = vadd.f32 %v12961_v16, %v4629_v61  ;;  %v9965_v16 = vld [vmem:[#allocation8 + $0x48] sm:$0xf] }
 0x3e7   :  { %v10458_v45 = vor.u32 %v11982_v42, %v10455_v26  ;;  %v10442_v56 = vor.u32 %v11978_v33, %v10439_v28  ;;  %v9997_v42 = vld [vmem:[#allocation8 + $0x88] sm:$0xf]  ;;  %v11897_v28 = vld [vmem:[#allocation8 + $0x174] sm:$0xf0]  ;;  %v9966_v60 = vor.u32 %v11861_v6, %v9965_v16 }
 0x3e8   :  { %6422 = vmatpush.bf16.msrb.mxu1 %v10650_v52  ;;  %6400 = vmatpush.bf16.msra.mxu3 %v10330_v24  ;;  %v10586_v52 = vor.u32 %v12014_v31, %v10583_v49  ;;  %v11937_v24 = vld [vmem:[#allocation8 + $0x2b4] sm:$0xf0]  ;;  %v10669_v16 = vld [vmem:[#allocation8 + $0x5c8] sm:$0xf] }
 0x3e9   :  { %v11869_v31 = vld [vmem:[#allocation8 + $0x94] sm:$0xf0]  ;;  %v10797_v6 = vld [vmem:[#allocation8 + $0x6c8] sm:$0xf] }
 0x3ea   :  { %6435 = vmatpush.bf16.msrb.mxu2 %v10778_v62  ;;  %6410 = vmatpush.bf16.msrb.mxu0 %v10506_v11  ;;  %v10714_v62 = vor.u32 %v12046_v36, %v10711_v37  ;;  %v11881_v11 = vld [vmem:[#allocation8 + $0xf4] sm:$0xf0]  ;;  %v10253_v36 = vld [vmem:[#allocation8 + $0x288] sm:$0xf]  ;;  %v9998_v9 = vor.u32 %v11869_v31, %v9997_v42 }
 0x3eb   :  { %v10046_v19 = vor.u32 %v11881_v11, %v10045_v63  ;;  %v11901_v49 = vld [vmem:[#allocation8 + $0x194] sm:$0xf0]  ;;  %v10238_v63 = vor.u32 %v11929_v0, %v10237_v51  ;;  %v10093_v11 = vld [vmem:[#allocation8 + $0x148] sm:$0xf] }
 0x3ec   :  { %6423 = vmatpush.bf16.msrb.mxu1 %v10634_v54  ;;  %v11913_v54 = vld [vmem:[#allocation8 + $0x1f4] sm:$0xf0]  ;;  %6401 = vmatpush.bf16.msra.mxu3 %v10314_v41 }
 0x3ed   :  { %v10174_v2 = vor.u32 %v11913_v54, %v10173_v35  ;;  %v11933_v37 = vld [vmem:[#allocation8 + $0x294] sm:$0xf0] }
 0x3ee   :  { %6436 = vmatpush.bf16.msrb.mxu2 %v10762_v55  ;;  %6411 = vmatpush.bf16.msrb.mxu0 %v10490_v53  ;;  %v4643_v55 = vpop.f32.mrf.mxu3  ;;  %v10302_v53 = vor.u32 %v11945_v57, %v10301_v18  ;;  %v10254_v41 = vor.u32 %v11933_v37, %v10253_v36  ;;  %v11893_v35 = vld [vmem:[#allocation8 + $0x154] sm:$0xf0]  ;;  %v10685_v36 = vld [vmem:[#allocation8 + $0x5e8] sm:$0xf] }
 0x3ef   :  { %v10221_v55 = vld [vmem:[#allocation8 + $0x248] sm:$0xf]  ;;  %v11853_v61 = vld [vmem:[#allocation8 + $0x14] sm:$0xf0] }
 0x3f0   :  { %6424 = vmatpush.bf16.msrb.mxu1 %v10618_v25  ;;  %v10157_v25 = vld [vmem:[#allocation8 + $0x1c8] sm:$0xf]  ;;  %v11885_v42 = vld [vmem:[#allocation8 + $0x114] sm:$0xf0] }
 0x3f1   :  { %v11917_v31 = vld [vmem:[#allocation8 + $0x214] sm:$0xf0] }
 0x3f2   :  { %6437 = vmatpush.bf16.msrb.mxu2 %v10746_v8  ;;  %6412 = vmatpush.bf16.msrb.mxu0 %v10474_v43  ;;  %v11909_v8 = vld [vmem:[#allocation8 + $0x1d4] sm:$0xf0]  ;;  %v10269_v43 = vld [vmem:[#allocation8 + $0x2a8] sm:$0xf] }
 0x3f3   :  { %v10158_v59 = vor.u32 %v11909_v8, %v10157_v25  ;;  %v10270_v26 = vor.u32 %v11937_v24, %v10269_v43  ;;  %v11857_v8 = vld [vmem:[#allocation8 + $0x34] sm:$0xf0]  ;;  %v10078_v43 = vor.u32 %v11889_v29, %v10077_v12  ;;  %v9933_v24 = vld [vmem:[#allocation8 + $0x8] sm:$0xf]  ;;  %v12086_v12 = vld [vmem:[#allocation8 + $0x764] sm:$0xf] }
 0x3f4   :  { %6425 = vmatpush.bf16.msrb.mxu1 %v10602_v27  ;;  %v10014_v27 = vor.u32 %v11873_v21, %v10013_v22  ;;  %v10919_v21 = vld [vmem:[#allocation8 + $0x7d0] sm:$0xf0] }
 0x3f5   :  { %v10871_v29 = vld [vmem:[#allocation8 + $0x770] sm:$0xf0] }
 0x3f6   :  { %6438 = vmatpush.bf16.msrb.mxu2 %v10730_v23  ;;  %6413 = vmatpush.bf16.msrb.mxu0 %v10458_v45  ;;  %v10142_v23 = vor.u32 %v11905_v39, %v10141_v17  ;;  %v10126_v45 = vor.u32 %v11901_v49, %v10125_v32  ;;  %v10557_v32 = vld [vmem:[#allocation8 + $0x4e8] sm:$0xf]  ;;  %v12009_v49 = vld [vmem:[#allocation8 + $0x4f4] sm:$0xf0] }
 0x3f8   :  { %6426 = vmatpush.bf16.msrb.mxu1 %v10586_v52  ;;  %v11865_v52 = vld [vmem:[#allocation8 + $0x74] sm:$0xf0] }
 0x3f9   :  { %v9982_v5 = vor.u32 %v11865_v52, %v9981_v15 }
 0x3fa   :  { %6439 = vmatpush.bf16.msrb.mxu2 %v10714_v62  ;;  %6414 = vmatpush.bf16.msrb.mxu0 %v10442_v56  ;;  %v4654_v20 = vpop.f32.mrf.mxu0  ;;  %v10109_v62 = vld [vmem:[#allocation8 + $0x168] sm:$0xf]  ;;  %v11925_v56 = vld [vmem:[#allocation8 + $0x254] sm:$0xf0] }
 0x3fb   :  { %v4655_v50 = vadd.f32 %v4654_v20, %v4642_v38  ;;  %v10110_v44 = vor.u32 %v11897_v28, %v10109_v62  ;;  %v10222_v25 = vor.u32 %v11925_v56, %v10221_v55  ;;  %v12041_v20 = vld [vmem:[#allocation8 + $0x5f4] sm:$0xf0]  ;;  %v10558_v62 = vor.u32 %v12009_v49, %v10557_v32  ;;  %v12094_v28 = vld [vmem:[#allocation8 + $0x7a4] sm:$0xf]  ;;  %v10887_v56 = vld [vmem:[#allocation8 + $0x790] sm:$0xf0] }
 0x3fc   :  { %6427 = vmatpush.bf16.msrb.mxu1 %v10570_v7  ;;  %v4667_v33 = vpop.f32.mrf.mxu1  ;;  %v10686_v51 = vor.u32 %v12041_v20, %v10685_v36  ;;  %v12090_v55 = vld [vmem:[#allocation8 + $0x784] sm:$0xf]  ;;  %v10493_v49 = vld [vmem:[#allocation8 + $0x468] sm:$0xf]  ;;  %v11993_v36 = vld [vmem:[#allocation8 + $0x474] sm:$0xf0] }
 0x3fd   :  { %6415 = vmatmul.bf16.vlgmr.msrb.gmra.mxu0 %v12938_v1  ;;  %v4668_v54 = vadd.f32 %v4667_v33, %v4655_v50  ;;  %v9934_v33 = vor.u32 %v11853_v61, %v9933_v24  ;;  %v10903_v50 = vld [vmem:[#allocation8 + $0x7b0] sm:$0xf0]  ;;  %v10874_v24 = vor.u32 %v12086_v12, %v10871_v29  ;;  %v12025_v20 = vld [vmem:[#allocation8 + $0x574] sm:$0xf0]  ;;  %v10717_v12 = vld [vmem:[#allocation8 + $0x628] sm:$0xf] }
 0x3fe   :  { %6440 = vmatpush.bf16.msrb.mxu2 %v10698_v10  ;;  %6459 = vmatpush.bf16.msra.mxu0 %v10046_v19  ;;  %v10094_v19 = vor.u32 %v11893_v35, %v10093_v11  ;;  %v12069_v11 = vld [vmem:[#allocation8 + $0x6d4] sm:$0xf0]  ;;  %v10906_v35 = vor.u32 %v12094_v28, %v10903_v50 }
 0x3ff   :  { %6428 = vmatmul.bf16.vlgmr.msrb.gmra.mxu1 %v12941_v30  ;;  %v12049_v29 = vld [vmem:[#allocation8 + $0x634] sm:$0xf0] }
 0x400   :  { %6472 = vmatpush.bf16.msra.mxu1 %v10174_v2  ;;  %v12102_v2 = vld [vmem:[#allocation8 + $0x7e4] sm:$0xf] }
 0x401   :  { %6441 = vmatmul.bf16.vlgmr.msrb.gmra.mxu2 %v12949_v40  ;;  %v10938_v22 = vor.u32 %v12102_v2, %v10935_v3  ;;  %v12033_v2 = vld [vmem:[#allocation8 + $0x5b4] sm:$0xf0]  ;;  %v10781_v3 = vld [vmem:[#allocation8 + $0x6a8] sm:$0xf] }
 0x402   :  { %6485 = vmatpush.bf16.msra.mxu2 %v10302_v53  ;;  %6460 = vmatpush.bf16.msra.mxu0 %v10030_v14  ;;  %v4656_v10 = vpop.f32.mrf.mxu0  ;;  %v9949_v53 = vld [vmem:[#allocation8 + $0x28] sm:$0xf] }
 0x403   :  { %v10205_v14 = vld [vmem:[#allocation8 + $0x228] sm:$0xf]  ;;  %v9950_v39 = vor.u32 %v11857_v8, %v9949_v53  ;;  %v12001_v10 = vld [vmem:[#allocation8 + $0x4b4] sm:$0xf0] }
 0x404   :  { %6473 = vmatpush.bf16.msra.mxu1 %v10158_v59  ;;  %v4680_v18 = vpop.f32.mrf.mxu2  ;;  %v4669_v4 = vpop.f32.mrf.mxu1  ;;  %v11921_v59 = vld [vmem:[#allocation8 + $0x234] sm:$0xf0] }
 0x405   :  { %v4681_v57 = vadd.f32 %v4680_v18, %v4668_v54  ;;  %v10525_v18 = vld [vmem:[#allocation8 + $0x4a8] sm:$0xf]  ;;  %v12065_v53 = vld [vmem:[#allocation8 + $0x6b4] sm:$0xf0]  ;;  %v10890_v4 = vor.u32 %v12090_v55, %v10887_v56  ;;  %v10823_v56 = vld [vmem:[#allocation8 + $0x710] sm:$0xf0] }
 0x406   :  { %6486 = vmatpush.bf16.msra.mxu2 %v10286_v58  ;;  %6461 = vmatpush.bf16.msra.mxu0 %v10014_v27  ;;  %v4693_v7 = vpop.f32.mrf.mxu3  ;;  %v12098_v58 = vld [vmem:[#allocation8 + $0x7c4] sm:$0xf]  ;;  %v10061_v27 = vld [vmem:[#allocation8 + $0x108] sm:$0xf] }
 0x407   :  { %v4694_v13 = vadd.f32 %v4693_v7, %v4681_v57  ;;  %v10922_v38 = vor.u32 %v12098_v58, %v10919_v21  ;;  %v10798_v7 = vor.u32 %v12069_v11, %v10797_v6  ;;  %v10637_v58 = vld [vmem:[#allocation8 + $0x588] sm:$0xf]  ;;  %v12029_v21 = vld [vmem:[#allocation8 + $0x594] sm:$0xf0]  ;;  %v12074_v11 = vld [vmem:[#allocation8 + $0x704] sm:$0xf] }
 0x408   :  { %6474 = vmatpush.bf16.msra.mxu1 %v10142_v23  ;;  %v10206_v23 = vor.u32 %v11921_v59, %v10205_v14  ;;  %v10782_v14 = vor.u32 %v12065_v53, %v10781_v3  ;;  %v10509_v59 = vld [vmem:[#allocation8 + $0x488] sm:$0xf] }
 0x409   :  { %v12972_v17 = vpack.c.bf16 %v4694_v13, %v4694_v13  ;;  %v10461_v53 = vld [vmem:[#allocation8 + $0x428] sm:$0xf] }
 0x40a   :  { %6487 = vmatpush.bf16.msra.mxu2 %v10270_v26  ;;  %6462 = vmatpush.bf16.msra.mxu0 %v9998_v9  ;;  %v10189_v26 = vld [vmem:[#allocation8 + $0x208] sm:$0xf] }
 0x40b   :  { %6350 = vmatmul.bf16.vlgmr.msrb.gmra.mxu3 %v12972_v17  ;;  %v10813_v9 = vld [vmem:[#allocation8 + $0x6e8] sm:$0xf]  ;;  %v10190_v52 = vor.u32 %v11917_v31, %v10189_v26  ;;  %v10638_v31 = vor.u32 %v12029_v21, %v10637_v58  ;;  %v11973_v21 = vld [vmem:[#allocation8 + $0x3d4] sm:$0xf0] }
 0x40c   :  { %6475 = vmatpush.bf16.msra.mxu1 %v10126_v45  ;;  %6446 = vmatpush.bf16.msrb.mxu3 %v10938_v22  ;;  %v4682_v37 = vpop.f32.mrf.mxu2  ;;  %v12073_v45 = vld [vmem:[#allocation8 + $0x6f4] sm:$0xf0]  ;;  %v10413_v58 = vld [vmem:[#allocation8 + $0x3c8] sm:$0xf] }
 0x40d   :  { %v10814_v0 = vor.u32 %v12073_v45, %v10813_v9  ;;  %v11997_v22 = vld [vmem:[#allocation8 + $0x494] sm:$0xf0]  ;;  %v10621_v37 = vld [vmem:[#allocation8 + $0x568] sm:$0xf] }
 0x40e   :  { %6488 = vmatpush.bf16.msra.mxu2 %v10254_v41  ;;  %6463 = vmatpush.bf16.msra.mxu0 %v9982_v5  ;;  %v4695_v15 = vpop.f32.mrf.mxu3  ;;  %v10062_v41 = vor.u32 %v11885_v42, %v10061_v27  ;;  %v10541_v5 = vld [vmem:[#allocation8 + $0x4c8] sm:$0xf]  ;;  %v10510_v61 = vor.u32 %v11997_v22, %v10509_v59  ;;  %v12082_v27 = vld [vmem:[#allocation8 + $0x744] sm:$0xf]  ;;  %v12057_v45 = vld [vmem:[#allocation8 + $0x674] sm:$0xf0]  ;;  %v10622_v28 = vor.u32 %v12025_v20, %v10621_v37 }
 0x40f   :  { %v10749_v9 = vld [vmem:[#allocation8 + $0x668] sm:$0xf]  ;;  %v10414_v20 = vor.u32 %v11973_v21, %v10413_v58  ;;  %v10127_v58 = vld [vmem:[#allocation8 + $0x198] sm:$0xf0]  ;;  %v11931_v21 = vld [vmem:[#allocation8 + $0x28c] sm:$0xf] }
 0x410   :  { %6476 = vmatpush.bf16.msra.mxu1 %v10110_v44  ;;  %v12005_v44 = vld [vmem:[#allocation8 + $0x4d4] sm:$0xf0]  ;;  %6447 = vmatpush.bf16.msrb.mxu3 %v10922_v38  ;;  %v10750_v50 = vor.u32 %v12057_v45, %v10749_v9  ;;  %v11943_v45 = vld [vmem:[#allocation8 + $0x2ec] sm:$0xf] }
 0x411   :  { %v10542_v54 = vor.u32 %v12005_v44, %v10541_v5  ;;  %v10605_v5 = vld [vmem:[#allocation8 + $0x548] sm:$0xf]  ;;  %v12021_v44 = vld [vmem:[#allocation8 + $0x554] sm:$0xf0] }
 0x412   :  { %6489 = vmatpush.bf16.msra.mxu2 %v10238_v63  ;;  %6464 = vmatpush.bf16.msra.mxu0 %v9966_v60  ;;  %v12037_v63 = vld [vmem:[#allocation8 + $0x5d4] sm:$0xf0]  ;;  %v10653_v60 = vld [vmem:[#allocation8 + $0x5a8] sm:$0xf] }
 0x413   :  { %v10670_v57 = vor.u32 %v12037_v63, %v10669_v16  ;;  %v10654_v13 = vor.u32 %v12033_v2, %v10653_v60  ;;  %v10733_v16 = vld [vmem:[#allocation8 + $0x648] sm:$0xf]  ;;  %v12053_v63 = vld [vmem:[#allocation8 + $0x654] sm:$0xf0]  ;;  %v10606_v2 = vor.u32 %v12021_v44, %v10605_v5  ;;  %v10031_v5 = vld [vmem:[#allocation8 + $0xd8] sm:$0xf0] }
 0x414   :  { %6477 = vmatpush.bf16.msra.mxu1 %v10094_v19  ;;  %v12975_v19 = vld [vmem:[#allocation10] sm:$0xf]  ;;  %6448 = vmatpush.bf16.msrb.mxu3 %v10906_v35  ;;  %v10734_v3 = vor.u32 %v12053_v63, %v10733_v16  ;;  %v11907_v44 = vld [vmem:[#allocation8 + $0x1cc] sm:$0xf]  ;;  %v10159_v16 = vld [vmem:[#allocation8 + $0x1d8] sm:$0xf0] }
 0x415   :  { %v4963_v8 = vperm.slane %v12975_v19, 0  ;;  %v11939_v63 = vld [vmem:[#allocation8 + $0x2cc] sm:$0xf] }
 0x416   :  { %6490 = vmatpush.bf16.msra.mxu2 %v10222_v25  ;;  %6465 = vmatpush.bf16.msra.mxu0 %v9950_v39  ;;  %v10526_v25 = vor.u32 %v12001_v10, %v10525_v18  ;;  %v10765_v39 = vld [vmem:[#allocation8 + $0x688] sm:$0xf] }
 0x417   :  { %v10429_v18 = vld [vmem:[#allocation8 + $0x3e8] sm:$0xf] }
 0x418   :  { %6478 = vmatpush.bf16.msra.mxu1 %v10078_v43  ;;  %v12061_v43 = vld [vmem:[#allocation8 + $0x694] sm:$0xf0]  ;;  %6449 = vmatpush.bf16.msrb.mxu3 %v10890_v4 }
 0x419   :  { %v10766_v32 = vor.u32 %v12061_v43, %v10765_v39  ;;  %v11985_v4 = vld [vmem:[#allocation8 + $0x434] sm:$0xf0]  ;;  %v10445_v39 = vld [vmem:[#allocation8 + $0x408] sm:$0xf] }
 0x41a   :  { %6491 = vmatpush.bf16.msra.mxu2 %v10206_v23  ;;  %6466 = vmatpush.bf16.msra.mxu0 %v9934_v33  ;;  %v10855_v23 = vld [vmem:[#allocation8 + $0x750] sm:$0xf0]  ;;  %v6260_v42 = vpop.f32.mrf.mxu0  ;;  %v10462_v22 = vor.u32 %v11985_v4, %v10461_v53 }
 0x41b   :  { %v6261_v38 = vadd.f32 %v6260_v42, %v4963_v8  ;;  %6402 = vmatmul.bf16.vlgmr.msra.gmra.mxu3 %v12913_v48  ;;  %v10858_v15 = vor.u32 %v12082_v27, %v10855_v23  ;;  %v12017_v8 = vld [vmem:[#allocation8 + $0x534] sm:$0xf0]  ;;  %v10573_v27 = vld [vmem:[#allocation8 + $0x508] sm:$0xf] }
 0x41c   :  { %6479 = vmatpush.bf16.msra.mxu1 %v10062_v41  ;;  %v6273_v26 = vpop.f32.mrf.mxu1  ;;  %6450 = vmatpush.bf16.msrb.mxu3 %v10874_v24  ;;  %v10494_v41 = vor.u32 %v11993_v36, %v10493_v49  ;;  %v10718_v24 = vor.u32 %v12049_v29, %v10717_v12  ;;  %v12013_v23 = vld [vmem:[#allocation8 + $0x514] sm:$0xf0]  ;;  %v10701_v42 = vld [vmem:[#allocation8 + $0x608] sm:$0xf]  ;;  %v11911_v49 = vld [vmem:[#allocation8 + $0x1ec] sm:$0xf] }
 0x41d   :  { %6467 = vmatmul.bf16.vlgmr.msra.gmra.mxu0 %v12901_v46  ;;  %v6274_v33 = vadd.f32 %v6273_v26, %v6261_v38  ;;  %v12045_v26 = vld [vmem:[#allocation8 + $0x614] sm:$0xf0]  ;;  %v10175_v36 = vld [vmem:[#allocation8 + $0x1f8] sm:$0xf0]  ;;  %v11867_v29 = vld [vmem:[#allocation8 + $0x8c] sm:$0xf] }
 0x41e   :  { %6492 = vmatpush.bf16.msra.mxu2 %v10190_v52  ;;  %6511 = vmatpush.bf16.msrb.mxu0 %v10558_v62  ;;  %v12078_v52 = vld [vmem:[#allocation8 + $0x724] sm:$0xf]  ;;  %v10839_v62 = vld [vmem:[#allocation8 + $0x730] sm:$0xf0]  ;;  %v11961_v12 = vld [vmem:[#allocation8 + $0x374] sm:$0xf0] }
 0x41f   :  { %6480 = vmatmul.bf16.vlgmr.msra.gmra.mxu1 %v12905_v34  ;;  %v10842_v6 = vor.u32 %v12078_v52, %v10839_v62  ;;  %v10178_v62 = vor.u32 %v11911_v49, %v10175_v36  ;;  %v9983_v36 = vld [vmem:[#allocation8 + $0x78] sm:$0xf0] }
 0x420   :  { %6524 = vmatpush.bf16.msrb.mxu1 %v10686_v51  ;;  %v10477_v51 = vld [vmem:[#allocation8 + $0x448] sm:$0xf]  ;;  %6451 = vmatpush.bf16.msrb.mxu3 %v10858_v15  ;;  %v10303_v15 = vld [vmem:[#allocation8 + $0x2f8] sm:$0xf0] }
 0x421   :  { %6493 = vmatmul.bf16.vlgmr.msra.gmra.mxu2 %v12909_v47 }
 0x422   :  { %6537 = vmatpush.bf16.msrb.mxu2 %v10814_v0  ;;  %6512 = vmatpush.bf16.msrb.mxu0 %v10542_v54  ;;  %v11989_v0 = vld [vmem:[#allocation8 + $0x454] sm:$0xf0]  ;;  %v6262_v10 = vpop.f32.mrf.mxu0 }
 0x423   :  { %v10478_v55 = vor.u32 %v11989_v0, %v10477_v51  ;;  %v11875_v51 = vld [vmem:[#allocation8 + $0xcc] sm:$0xf]  ;;  %v10306_v0 = vor.u32 %v11943_v45, %v10303_v15 }
 0x424   :  { %6525 = vmatpush.bf16.msrb.mxu1 %v10670_v57  ;;  %v6286_v35 = vpop.f32.mrf.mxu2  ;;  %v11977_v57 = vld [vmem:[#allocation8 + $0x3f4] sm:$0xf0]  ;;  %v6275_v60 = vpop.f32.mrf.mxu1  ;;  %6452 = vmatpush.bf16.msrb.mxu3 %v10842_v6  ;;  %v10287_v6 = vld [vmem:[#allocation8 + $0x2d8] sm:$0xf0]  ;;  %v11903_v10 = vld [vmem:[#allocation8 + $0x1ac] sm:$0xf] }
 0x425   :  { %v10430_v59 = vor.u32 %v11977_v57, %v10429_v18  ;;  %v11871_v18 = vld [vmem:[#allocation8 + $0xac] sm:$0xf]  ;;  %v10290_v57 = vor.u32 %v11939_v63, %v10287_v6  ;;  %v10143_v60 = vld [vmem:[#allocation8 + $0x1b8] sm:$0xf0]  ;;  %v10317_v63 = vld [vmem:[#allocation8 + $0x308] sm:$0xf] }
 0x426   :  { %6538 = vmatpush.bf16.msrb.mxu2 %v10798_v7  ;;  %6513 = vmatpush.bf16.msrb.mxu0 %v10526_v25  ;;  %v6299_v54 = vpop.f32.mrf.mxu3  ;;  %v6287_v7 = vadd.f32 %v6286_v35, %v6274_v33  ;;  %v10589_v25 = vld [vmem:[#allocation8 + $0x528] sm:$0xf]  ;;  %v10574_v33 = vor.u32 %v12013_v23, %v10573_v27  ;;  %v10034_v35 = vor.u32 %v11875_v51, %v10031_v5  ;;  %v11891_v51 = vld [vmem:[#allocation8 + $0x14c] sm:$0xf] }
 0x427   :  { %v10590_v43 = vor.u32 %v12017_v8, %v10589_v25  ;;  %v10146_v25 = vor.u32 %v11903_v10, %v10143_v60  ;;  %v10365_v8 = vld [vmem:[#allocation8 + $0x368] sm:$0xf]  ;;  %v11923_v5 = vld [vmem:[#allocation8 + $0x24c] sm:$0xf]  ;;  %v9951_v10 = vld [vmem:[#allocation8 + $0x38] sm:$0xf0] }
 0x428   :  { %6526 = vmatpush.bf16.msrb.mxu1 %v10654_v13  ;;  %v12982_v13 = vadd.f32 %v6299_v54, %v6287_v7  ;;  %v10162_v54 = vor.u32 %v11907_v44, %v10159_v16  ;;  %v10015_v7 = vld [vmem:[#allocation8 + $0xb8] sm:$0xf0]  ;;  %v10349_v23 = vld [vmem:[#allocation8 + $0x348] sm:$0xf]  ;;  %v11887_v60 = vld [vmem:[#allocation8 + $0x12c] sm:$0xf] }
 0x429   :  { %v10018_v4 = vor.u32 %v11871_v18, %v10015_v7  ;;  %v10223_v44 = vld [vmem:[#allocation8 + $0x258] sm:$0xf0]  ;;  %v11855_v7 = vld [vmem:[#allocation8 + $0x2c] sm:$0xf] }
 0x42a   :  { %6539 = vmatpush.bf16.msrb.mxu2 %v10782_v14  ;;  %6514 = vmatpush.bf16.msrb.mxu0 %v10510_v61  ;;  %v10826_v14 = vor.u32 %v12074_v11, %v10823_v56  ;;  %v11981_v61 = vld [vmem:[#allocation8 + $0x414] sm:$0xf0] }
 0x42b   :  { %v10446_v9 = vor.u32 %v11981_v61, %v10445_v39  ;;  %v11965_v56 = vld [vmem:[#allocation8 + $0x394] sm:$0xf0]  ;;  %v10255_v39 = vld [vmem:[#allocation8 + $0x298] sm:$0xf0] }
 0x42c   :  { %6527 = vmatpush.bf16.msrb.mxu1 %v10638_v31  ;;  %v11879_v31 = vld [vmem:[#allocation8 + $0xec] sm:$0xf]  ;;  %6453 = vmatpush.bf16.msrb.mxu3 %v10826_v14  ;;  %v6288_v37 = vpop.f32.mrf.mxu2  ;;  %v10258_v49 = vor.u32 %v11931_v21, %v10255_v39  ;;  %v10063_v39 = vld [vmem:[#allocation8 + $0x118] sm:$0xf0] }
 0x42d   :  { %v11895_v37 = vld [vmem:[#allocation8 + $0x16c] sm:$0xf] }
 0x42e   :  { %6540 = vmatpush.bf16.msrb.mxu2 %v10766_v32  ;;  %6515 = vmatpush.bf16.msrb.mxu0 %v10494_v41  ;;  %v10047_v32 = vld [vmem:[#allocation8 + $0xf8] sm:$0xf0]  ;;  %v6301_v38 = vpop.f32.mrf.mxu3  ;;  %v10702_v41 = vor.u32 %v12045_v26, %v10701_v42  ;;  %v11957_v42 = vld [vmem:[#allocation8 + $0x354] sm:$0xf0]  ;;  %v11863_v26 = vld [vmem:[#allocation8 + $0x6c] sm:$0xf] }
 0x42f   :  { %6454 = vmatmul.bf16.vlgmr.msrb.gmra.mxu3 %v12972_v17  ;;  %v10050_v52 = vor.u32 %v11879_v31, %v10047_v32  ;;  %v10111_v38 = vld [vmem:[#allocation8 + $0x178] sm:$0xf0]  ;;  %v10350_v15 = vor.u32 %v11957_v42, %v10349_v23  ;;  %v11883_v21 = vld [vmem:[#allocation8 + $0x10c] sm:$0xf] }
 0x430   :  { %6528 = vmatpush.bf16.msrb.mxu1 %v10622_v28  ;;  %6498 = vmatpush.bf16.msra.mxu3 %v10430_v59  ;;  %v10397_v28 = vld [vmem:[#allocation8 + $0x3a8] sm:$0xf]  ;;  %v9999_v59 = vld [vmem:[#allocation8 + $0x98] sm:$0xf0]  ;;  %v12039_v23 = vld [vmem:[#allocation8 + $0x5ec] sm:$0xf] }
 0x431   :  { %v10002_v61 = vor.u32 %v11867_v29, %v9999_v59  ;;  %v12101_v29 = vld [vmem:[#allocation8 + $0x7d4] sm:$0xf0]  ;;  %v10687_v42 = vld [vmem:[#allocation8 + $0x5f8] sm:$0xf0] }
 0x432   :  { %6541 = vmatpush.bf16.msrb.mxu2 %v10750_v50  ;;  %6516 = vmatpush.bf16.msrb.mxu0 %v10478_v55  ;;  %v11969_v50 = vld [vmem:[#allocation8 + $0x3b4] sm:$0xf0]  ;;  %v10381_v55 = vld [vmem:[#allocation8 + $0x388] sm:$0xf] }
 0x433   :  { %v10398_v11 = vor.u32 %v11969_v50, %v10397_v28  ;;  %v10382_v53 = vor.u32 %v11965_v56, %v10381_v55  ;;  %v11859_v28 = vld [vmem:[#allocation8 + $0x4c] sm:$0xf]  ;;  %v9967_v50 = vld [vmem:[#allocation8 + $0x58] sm:$0xf0]  ;;  %v10941_v55 = vld [vmem:[#allocation8 + $0x7e8] sm:$0xf] }
 0x434   :  { %6529 = vmatpush.bf16.msrb.mxu1 %v10606_v2  ;;  %6499 = vmatpush.bf16.msra.mxu3 %v10414_v20  ;;  %v11935_v2 = vld [vmem:[#allocation8 + $0x2ac] sm:$0xf]  ;;  %v12105_v56 = vld [vmem:[#allocation8 + $0x7f4] sm:$0xf0] }
 0x435   :  { %v11927_v20 = vld [vmem:[#allocation8 + $0x26c] sm:$0xf] }
 0x436   :  { %6542 = vmatpush.bf16.msrb.mxu2 %v10734_v3  ;;  %6517 = vmatpush.bf16.msrb.mxu0 %v10462_v22  ;;  %v10271_v3 = vld [vmem:[#allocation8 + $0x2b8] sm:$0xf0]  ;;  %v11899_v22 = vld [vmem:[#allocation8 + $0x18c] sm:$0xf] }
 0x437   :  { %v10274_v14 = vor.u32 %v11935_v2, %v10271_v3  ;;  %v10130_v27 = vor.u32 %v11899_v22, %v10127_v58  ;;  %v10079_v2 = vld [vmem:[#allocation8 + $0x138] sm:$0xf0]  ;;  %v11919_v3 = vld [vmem:[#allocation8 + $0x22c] sm:$0xf] }
 0x438   :  { %6530 = vmatpush.bf16.msrb.mxu1 %v10590_v43  ;;  %6500 = vmatpush.bf16.msra.mxu3 %v10398_v11  ;;  %v10366_v43 = vor.u32 %v11961_v12, %v10365_v8  ;;  %v9970_v11 = vor.u32 %v11859_v28, %v9967_v50  ;;  %v9954_v8 = vor.u32 %v11855_v7, %v9951_v10  ;;  %v10925_v12 = vld [vmem:[#allocation8 + $0x7c8] sm:$0xf]  ;;  %v9935_v58 = vld [vmem:[#allocation8 + $0x18] sm:$0xf0]  ;;  %v4964_v7 = vperm.slane %v12975_v19, 1 }
 0x439   :  { %v10082_v59 = vor.u32 %v11887_v60, %v10079_v2  ;;  %v10671_v28 = vld [vmem:[#allocation8 + $0x5d8] sm:$0xf0]  ;;  %v10877_v60 = vld [vmem:[#allocation8 + $0x768] sm:$0xf]  ;;  %v12089_v2 = vld [vmem:[#allocation8 + $0x774] sm:$0xf0] }
 0x43a   :  { %6543 = vmatpush.bf16.msrb.mxu2 %v10718_v24  ;;  %6518 = vmatpush.bf16.msrb.mxu0 %v10446_v9  ;;  %v6312_v24 = vpop.f32.mrf.mxu0  ;;  %v10239_v9 = vld [vmem:[#allocation8 + $0x278] sm:$0xf0] }
 0x43b   :  { %v6313_v31 = vadd.f32 %v6312_v24, %v12982_v13  ;;  %v10242_v13 = vor.u32 %v11927_v20, %v10239_v9  ;;  %v10191_v24 = vld [vmem:[#allocation8 + $0x218] sm:$0xf0]  ;;  %v10690_v20 = vor.u32 %v12039_v23, %v10687_v42  ;;  %v10909_v9 = vld [vmem:[#allocation8 + $0x7a8] sm:$0xf] }
 0x43c   :  { %6531 = vmatpush.bf16.msrb.mxu1 %v10574_v33  ;;  %6501 = vmatpush.bf16.msra.mxu3 %v10382_v53  ;;  %v6325_v32 = vpop.f32.mrf.mxu1  ;;  %v9986_v33 = vor.u32 %v11863_v26, %v9983_v36  ;;  %v10207_v53 = vld [vmem:[#allocation8 + $0x238] sm:$0xf0]  ;;  %v10926_v26 = vor.u32 %v12101_v29, %v10925_v12  ;;  %v10066_v36 = vor.u32 %v11883_v21, %v10063_v39  ;;  %v12085_v21 = vld [vmem:[#allocation8 + $0x754] sm:$0xf0]  ;;  %v11991_v39 = vld [vmem:[#allocation8 + $0x46c] sm:$0xf] }
 0x43d   :  { %6519 = vmatmul.bf16.vlgmr.msrb.gmra.mxu0 %v12938_v1  ;;  %v12989_v45 = vadd.f32 %v6325_v32, %v6313_v31  ;;  %v10210_v22 = vor.u32 %v11919_v3, %v10207_v53  ;;  %v12071_v32 = vld [vmem:[#allocation8 + $0x6ec] sm:$0xf]  ;;  %v10799_v50 = vld [vmem:[#allocation8 + $0x6d8] sm:$0xf0]  ;;  %v10878_v12 = vor.u32 %v12089_v2, %v10877_v60 }
 0x43e   :  { %6544 = vmatpush.bf16.msrb.mxu2 %v10702_v41  ;;  %6563 = vmatpush.bf16.msra.mxu0 %v10050_v52  ;;  %v10114_v41 = vor.u32 %v11895_v37, %v10111_v38  ;;  %v10333_v52 = vld [vmem:[#allocation8 + $0x328] sm:$0xf]  ;;  %v11995_v3 = vld [vmem:[#allocation8 + $0x48c] sm:$0xf]  ;;  %v10623_v23 = vld [vmem:[#allocation8 + $0x578] sm:$0xf0] }
 0x43f   :  { %6532 = vmatmul.bf16.vlgmr.msrb.gmra.mxu1 %v12941_v30 }
 0x440   :  { %6576 = vmatpush.bf16.msra.mxu1 %v10178_v62  ;;  %6502 = vmatpush.bf16.msra.mxu3 %v10366_v43  ;;  %v11953_v62 = vld [vmem:[#allocation8 + $0x334] sm:$0xf0]  ;;  %v11915_v43 = vld [vmem:[#allocation8 + $0x20c] sm:$0xf] }
 0x441   :  { %6545 = vmatmul.bf16.vlgmr.msrb.gmra.mxu2 %v12949_v40  ;;  %v10334_v16 = vor.u32 %v11953_v62, %v10333_v52  ;;  %v10194_v37 = vor.u32 %v11915_v43, %v10191_v24  ;;  %v10543_v52 = vld [vmem:[#allocation8 + $0x4d8] sm:$0xf0]  ;;  %v12035_v62 = vld [vmem:[#allocation8 + $0x5cc] sm:$0xf] }
 0x442   :  { %6589 = vmatpush.bf16.msra.mxu2 %v10306_v0  ;;  %6564 = vmatpush.bf16.msra.mxu0 %v10034_v35  ;;  %v10095_v0 = vld [vmem:[#allocation8 + $0x158] sm:$0xf0]  ;;  %v6314_v6 = vpop.f32.mrf.mxu0 }
 0x443   :  { %v10098_v35 = vor.u32 %v11891_v51, %v10095_v0 }
 0x444   :  { %6577 = vmatpush.bf16.msra.mxu1 %v10162_v54  ;;  %6503 = vmatpush.bf16.msra.mxu3 %v10350_v15  ;;  %v11949_v54 = vld [vmem:[#allocation8 + $0x314] sm:$0xf0]  ;;  %v6327_v18 = vpop.f32.mrf.mxu1 }
 0x445   :  { %v12097_v15 = vld [vmem:[#allocation8 + $0x7b4] sm:$0xf0]  ;;  %v10783_v18 = vld [vmem:[#allocation8 + $0x6b8] sm:$0xf0] }
 0x446   :  { %6590 = vmatpush.bf16.msra.mxu2 %v10290_v57  ;;  %6565 = vmatpush.bf16.msra.mxu0 %v10018_v4  ;;  %v10226_v57 = vor.u32 %v11923_v5, %v10223_v44  ;;  %v10318_v4 = vor.u32 %v11949_v54, %v10317_v63  ;;  %v10910_v51 = vor.u32 %v12097_v15, %v10909_v9  ;;  %v10893_v44 = vld [vmem:[#allocation8 + $0x788] sm:$0xf]  ;;  %v11999_v63 = vld [vmem:[#allocation8 + $0x4ac] sm:$0xf]  ;;  %v10655_v54 = vld [vmem:[#allocation8 + $0x5b8] sm:$0xf0] }
 0x447   :  { %v10674_v5 = vor.u32 %v12035_v62, %v10671_v28  ;;  %v11987_v9 = vld [vmem:[#allocation8 + $0x44c] sm:$0xf]  ;;  %v10735_v28 = vld [vmem:[#allocation8 + $0x658] sm:$0xf0] }
 0x448   :  { %6578 = vmatpush.bf16.msra.mxu1 %v10146_v25  ;;  %6504 = vmatpush.bf16.msra.mxu3 %v10334_v16  ;;  %v10942_v25 = vor.u32 %v12105_v56, %v10941_v55  ;;  %v12093_v16 = vld [vmem:[#allocation8 + $0x794] sm:$0xf0]  ;;  %v12063_v56 = vld [vmem:[#allocation8 + $0x6ac] sm:$0xf] }
 0x449   :  { %v10786_v53 = vor.u32 %v12063_v56, %v10783_v18  ;;  %v12051_v62 = vld [vmem:[#allocation8 + $0x64c] sm:$0xf] }
 0x44a   :  { %6591 = vmatpush.bf16.msra.mxu2 %v10274_v14  ;;  %6566 = vmatpush.bf16.msra.mxu0 %v10002_v61  ;;  %v11851_v14 = vld [vmem:[#allocation8 + $0xc] sm:$0xf]  ;;  %v12995_v55 = vpop.f32.mrf.mxu2 }
 0x44b   :  { %v12007_v61 = vld [vmem:[#allocation8 + $0x4ec] sm:$0xf]  ;;  %v9938_v31 = vor.u32 %v11851_v14, %v9935_v58  ;;  %v10861_v58 = vld [vmem:[#allocation8 + $0x748] sm:$0xf] }
 0x44c   :  { %6579 = vmatpush.bf16.msra.mxu1 %v10130_v27  ;;  %6505 = vmatpush.bf16.msra.mxu3 %v10318_v4  ;;  %v10559_v27 = vld [vmem:[#allocation8 + $0x4f8] sm:$0xf0]  ;;  %v12027_v4 = vld [vmem:[#allocation8 + $0x58c] sm:$0xf] }
 0x44d   :  { %v10562_v38 = vor.u32 %v12007_v61, %v10559_v27  ;;  %v10495_v61 = vld [vmem:[#allocation8 + $0x478] sm:$0xf0]  ;;  %v12023_v27 = vld [vmem:[#allocation8 + $0x56c] sm:$0xf] }
 0x44e   :  { %6592 = vmatpush.bf16.msra.mxu2 %v10258_v49  ;;  %6567 = vmatpush.bf16.msra.mxu0 %v9986_v33  ;;  %v10815_v49 = vld [vmem:[#allocation8 + $0x6f8] sm:$0xf0]  ;;  %v12003_v33 = vld [vmem:[#allocation8 + $0x4cc] sm:$0xf] }
 0x44f   :  { %6506 = vmatmul.bf16.vlgmr.msra.gmra.mxu3 %v12913_v48  ;;  %v10546_v0 = vor.u32 %v12003_v33, %v10543_v52  ;;  %v10479_v33 = vld [vmem:[#allocation8 + $0x458] sm:$0xf0]  ;;  %v12015_v56 = vld [vmem:[#allocation8 + $0x52c] sm:$0xf] }
 0x450   :  { %6580 = vmatpush.bf16.msra.mxu1 %v10114_v41  ;;  %6550 = vmatpush.bf16.msrb.mxu3 %v10942_v25  ;;  %v10818_v41 = vor.u32 %v12071_v32, %v10815_v49  ;;  %v12059_v25 = vld [vmem:[#allocation8 + $0x68c] sm:$0xf]  ;;  %v10862_v49 = vor.u32 %v12085_v21, %v10861_v58  ;;  %v10607_v52 = vld [vmem:[#allocation8 + $0x558] sm:$0xf0] }
 0x452   :  { %6593 = vmatpush.bf16.msra.mxu2 %v10242_v13  ;;  %6568 = vmatpush.bf16.msra.mxu0 %v9970_v11  ;;  %v12067_v13 = vld [vmem:[#allocation8 + $0x6cc] sm:$0xf]  ;;  %v10527_v11 = vld [vmem:[#allocation8 + $0x4b8] sm:$0xf0]  ;;  %v6340_v42 = vpop.f32.mrf.mxu2 }
 0x453   :  { %v10802_v6 = vor.u32 %v12067_v13, %v10799_v50  ;;  %v10530_v10 = vor.u32 %v11999_v63, %v10527_v11  ;;  %v10829_v50 = vld [vmem:[#allocation8 + $0x708] sm:$0xf]  ;;  %v11975_v63 = vld [vmem:[#allocation8 + $0x3ec] sm:$0xf]  ;;  %v10738_v11 = vor.u32 %v12051_v62, %v10735_v28  ;;  %v10383_v42 = vld [vmem:[#allocation8 + $0x398] sm:$0xf0] }
 0x454   :  { %6581 = vmatpush.bf16.msra.mxu1 %v10098_v35  ;;  %6551 = vmatpush.bf16.msrb.mxu3 %v10926_v26  ;;  %v12031_v35 = vld [vmem:[#allocation8 + $0x5ac] sm:$0xf]  ;;  %v10319_v62 = vld [vmem:[#allocation8 + $0x318] sm:$0xf0] }
 0x455   :  { %v12055_v26 = vld [vmem:[#allocation8 + $0x66c] sm:$0xf] }
 0x456   :  { %6594 = vmatpush.bf16.msra.mxu2 %v10226_v57  ;;  %6569 = vmatpush.bf16.msra.mxu0 %v9954_v8  ;;  %v10894_v57 = vor.u32 %v12093_v16, %v10893_v44  ;;  %v10767_v8 = vld [vmem:[#allocation8 + $0x698] sm:$0xf0]  ;;  %v12077_v16 = vld [vmem:[#allocation8 + $0x714] sm:$0xf0]  ;;  %v12103_v28 = vld [vmem:[#allocation8 + $0x7ec] sm:$0xf] }
 0x457   :  { %v10770_v24 = vor.u32 %v12059_v25, %v10767_v8  ;;  %v11979_v25 = vld [vmem:[#allocation8 + $0x40c] sm:$0xf]  ;;  %v10447_v8 = vld [vmem:[#allocation8 + $0x418] sm:$0xf0] }
 0x458   :  { %6582 = vmatpush.bf16.msra.mxu1 %v10082_v59  ;;  %6552 = vmatpush.bf16.msrb.mxu3 %v10910_v51  ;;  %v10450_v58 = vor.u32 %v11979_v25, %v10447_v8 }
 0x45a   :  { %6595 = vmatpush.bf16.msra.mxu2 %v10210_v22  ;;  %6570 = vmatpush.bf16.msra.mxu0 %v9938_v31  ;;  %v6364_v29 = vpop.f32.mrf.mxu0  ;;  %v10751_v31 = vld [vmem:[#allocation8 + $0x678] sm:$0xf0] }
 0x45b   :  { %v6365_v43 = vadd.f32 %v6364_v29, %v4964_v7  ;;  %v10754_v15 = vor.u32 %v12055_v26, %v10751_v31  ;;  %v12047_v7 = vld [vmem:[#allocation8 + $0x62c] sm:$0xf]  ;;  %v10575_v29 = vld [vmem:[#allocation8 + $0x518] sm:$0xf0] }
 0x45c   :  { %6583 = vmatpush.bf16.msra.mxu1 %v10066_v36  ;;  %6553 = vmatpush.bf16.msrb.mxu3 %v10894_v57  ;;  %v6377_v14 = vpop.f32.mrf.mxu1  ;;  %v10498_v36 = vor.u32 %v11991_v39, %v10495_v61  ;;  %v10591_v57 = vld [vmem:[#allocation8 + $0x538] sm:$0xf0]  ;;  %v11959_v31 = vld [vmem:[#allocation8 + $0x36c] sm:$0xf] }
 0x45d   :  { %6571 = vmatmul.bf16.vlgmr.msra.gmra.mxu0 %v12901_v46  ;;  %v10658_v46 = vor.u32 %v12031_v35, %v10655_v54  ;;  %v6378_v32 = vadd.f32 %v6377_v14, %v6365_v43  ;;  %v11983_v35 = vld [vmem:[#allocation8 + $0x42c] sm:$0xf]  ;;  %v10463_v54 = vld [vmem:[#allocation8 + $0x438] sm:$0xf0] }
 0x45e   :  { %6596 = vmatpush.bf16.msra.mxu2 %v10194_v37  ;;  %6615 = vmatpush.bf16.msrb.mxu0 %v10562_v38  ;;  %v10626_v37 = vor.u32 %v12023_v27, %v10623_v23  ;;  %v10845_v38 = vld [vmem:[#allocation8 + $0x728] sm:$0xf]  ;;  %v12043_v14 = vld [vmem:[#allocation8 + $0x60c] sm:$0xf]  ;;  %v10399_v61 = vld [vmem:[#allocation8 + $0x3b8] sm:$0xf0] }
 0x45f   :  { %6584 = vmatmul.bf16.vlgmr.msra.gmra.mxu1 %v12905_v34  ;;  %v10511_v34 = vld [vmem:[#allocation8 + $0x498] sm:$0xf0]  ;;  %v11963_v23 = vld [vmem:[#allocation8 + $0x38c] sm:$0xf] }
 0x460   :  { %6628 = vmatpush.bf16.msrb.mxu1 %v10690_v20  ;;  %v10514_v59 = vor.u32 %v11995_v3, %v10511_v34  ;;  %6554 = vmatpush.bf16.msrb.mxu3 %v10878_v12  ;;  %v12081_v20 = vld [vmem:[#allocation8 + $0x734] sm:$0xf0]  ;;  %v10466_v3 = vor.u32 %v11983_v35, %v10463_v54  ;;  %v10415_v34 = vld [vmem:[#allocation8 + $0x3d8] sm:$0xf0]  ;;  %v12011_v12 = vld [vmem:[#allocation8 + $0x50c] sm:$0xf]  ;;  %v10386_v26 = vor.u32 %v11963_v23, %v10383_v42 }
 0x461   :  { %6597 = vmatmul.bf16.vlgmr.msra.gmra.mxu2 %v12909_v47  ;;  %v10639_v47 = vld [vmem:[#allocation8 + $0x598] sm:$0xf0]  ;;  %v10846_v13 = vor.u32 %v12081_v20, %v10845_v38  ;;  %v10578_v21 = vor.u32 %v12011_v12, %v10575_v29  ;;  %v11955_v38 = vld [vmem:[#allocation8 + $0x34c] sm:$0xf] }
 0x462   :  { %6641 = vmatpush.bf16.msrb.mxu2 %v10818_v41  ;;  %6616 = vmatpush.bf16.msrb.mxu0 %v10546_v0  ;;  %v10642_v22 = vor.u32 %v12027_v4, %v10639_v47  ;;  %v12019_v41 = vld [vmem:[#allocation8 + $0x54c] sm:$0xf]  ;;  %v6366_v51 = vpop.f32.mrf.mxu0  ;;  %v10594_v4 = vor.u32 %v12015_v56, %v10591_v57  ;;  %v10351_v20 = vld [vmem:[#allocation8 + $0x358] sm:$0xf0] }
 0x463   :  { %v10610_v44 = vor.u32 %v12019_v41, %v10607_v52  ;;  %v11947_v52 = vld [vmem:[#allocation8 + $0x30c] sm:$0xf]  ;;  %v10863_v29 = vld [vmem:[#allocation8 + $0x758] sm:$0xf0] }
 0x464   :  { %6629 = vmatpush.bf16.msrb.mxu1 %v10674_v5  ;;  %6555 = vmatpush.bf16.msrb.mxu3 %v10862_v49  ;;  %v6379_v0 = vpop.f32.mrf.mxu1  ;;  %v10482_v5 = vor.u32 %v11987_v9, %v10479_v33  ;;  %v6390_v18 = vpop.f32.mrf.mxu2  ;;  %v10354_v9 = vor.u32 %v11955_v38, %v10351_v20  ;;  %v12091_v56 = vld [vmem:[#allocation8 + $0x78c] sm:$0xf] }
 0x465   :  { %v12998_v60 = vadd.f32 %v6390_v18, %v6378_v32  ;;  %v10367_v32 = vld [vmem:[#allocation8 + $0x378] sm:$0xf0]  ;;  %v12099_v0 = vld [vmem:[#allocation8 + $0x7cc] sm:$0xf] }
 0x466   :  { %6642 = vmatpush.bf16.msrb.mxu2 %v10802_v6  ;;  %6617 = vmatpush.bf16.msrb.mxu0 %v10530_v10  ;;  %v10431_v6 = vld [vmem:[#allocation8 + $0x3f8] sm:$0xf0]  ;;  %v12083_v12 = vld [vmem:[#allocation8 + $0x74c] sm:$0xf] }
 0x467   :  { %v10719_v10 = vld [vmem:[#allocation8 + $0x638] sm:$0xf0]  ;;  %v10434_v2 = vor.u32 %v11975_v63, %v10431_v6  ;;  %v12095_v6 = vld [vmem:[#allocation8 + $0x7ac] sm:$0xf] }
 0x468   :  { %6630 = vmatpush.bf16.msrb.mxu1 %v10658_v46  ;;  %6556 = vmatpush.bf16.msrb.mxu3 %v10846_v13  ;;  %v10830_v46 = vor.u32 %v12077_v16, %v10829_v50  ;;  %v10722_v47 = vor.u32 %v12047_v7, %v10719_v10  ;;  %v10943_v13 = vld [vmem:[#allocation8 + $0x7f8] sm:$0xf0]  ;;  %v10322_v50 = vor.u32 %v11947_v52, %v10319_v62  ;;  %v11001_v42 = vld [vmem:[#allocation14 + $0x60] sm:$0xf]  ;;  %v12117_v62 = vld [vmem:[#allocation14 + $0x54] sm:$0xf0] }
 0x469   :  { %v10946_v51 = vor.u32 %v12103_v28, %v10943_v13  ;;  %v10895_v18 = vld [vmem:[#allocation8 + $0x798] sm:$0xf0]  ;;  %v6339_v10 = vadd.f32 %v12995_v55, %v12989_v45  ;;  %v10866_v55 = vor.u32 %v12083_v12, %v10863_v29 }
 0x46a   :  { %6643 = vmatpush.bf16.msrb.mxu2 %v10786_v53  ;;  %6618 = vmatpush.bf16.msrb.mxu0 %v10514_v59  ;;  %v11971_v53 = vld [vmem:[#allocation8 + $0x3cc] sm:$0xf]  ;;  %v10703_v59 = vld [vmem:[#allocation8 + $0x618] sm:$0xf0]  ;;  %v10898_v7 = vor.u32 %v12091_v56, %v10895_v18  ;;  %v12113_v56 = vld [vmem:[#allocation14 + $0x34] sm:$0xf0] }
 0x46b   :  { %v10706_v39 = vor.u32 %v12043_v14, %v10703_v59  ;;  %v10993_v52 = vld [vmem:[#allocation14 + $0x50] sm:$0xf] }
 0x46c   :  { %6631 = vmatpush.bf16.msrb.mxu1 %v10642_v22  ;;  %6557 = vmatpush.bf16.msrb.mxu3 %v10830_v46  ;;  %v10418_v22 = vor.u32 %v11971_v53, %v10415_v34  ;;  %v6392_v43 = vpop.f32.mrf.mxu2  ;;  %v12087_v46 = vld [vmem:[#allocation8 + $0x76c] sm:$0xf]  ;;  %v4965_v34 = vperm.slane %v12975_v19, 2  ;;  %v10847_v19 = vld [vmem:[#allocation8 + $0x738] sm:$0xf0]  ;;  %v10994_v13 = vor.u32 %v12117_v62, %v10993_v52 }
 0x46d   :  { %v10995_v52 = vld [vmem:[#allocation14 + $0x58] sm:$0xf0] }
 0x46e   :  { %6644 = vmatpush.bf16.msrb.mxu2 %v10770_v24  ;;  %6619 = vmatpush.bf16.msrb.mxu0 %v10498_v36  ;;  %v11967_v24 = vld [vmem:[#allocation8 + $0x3ac] sm:$0xf]  ;;  %v10370_v36 = vor.u32 %v11959_v31, %v10367_v32 }
 0x46f   :  { %6558 = vmatmul.bf16.vlgmr.msrb.gmra.mxu3 %v12972_v17  ;;  %v10402_v27 = vor.u32 %v11967_v24, %v10399_v61  ;;  %v12079_v24 = vld [vmem:[#allocation8 + $0x72c] sm:$0xf] }
 0x470   :  { %6632 = vmatpush.bf16.msrb.mxu1 %v10626_v37  ;;  %6602 = vmatpush.bf16.msra.mxu3 %v10434_v2  ;;  %v10879_v2 = vld [vmem:[#allocation8 + $0x778] sm:$0xf0]  ;;  %v10850_v32 = vor.u32 %v12079_v24, %v10847_v19 }
 0x471   :  { %v11073_v24 = vld [vmem:[#allocation14 + $0xf0] sm:$0xf] }
 0x472   :  { %6645 = vmatpush.bf16.msrb.mxu2 %v10754_v15  ;;  %6620 = vmatpush.bf16.msrb.mxu0 %v10482_v5  ;;  %v11951_v15 = vld [vmem:[#allocation8 + $0x32c] sm:$0xf]  ;;  %v10927_v5 = vld [vmem:[#allocation8 + $0x7d8] sm:$0xf0] }
 0x473   :  { %v10930_v63 = vor.u32 %v12099_v0, %v10927_v5  ;;  %v10985_v5 = vld [vmem:[#allocation14 + $0x40] sm:$0xf] }
 0x474   :  { %6633 = vmatpush.bf16.msrb.mxu1 %v10610_v44  ;;  %6603 = vmatpush.bf16.msra.mxu3 %v10418_v22  ;;  %v12618_v44 = vmov 8.0  }
 0x475   :  { %12212 = vrcp.f32 %v12618_v44  ;;  %v12115_v44 = vld [vmem:[#allocation14 + $0x44] sm:$0xf0] }
 0x476   :  { %6646 = vmatpush.bf16.msrb.mxu2 %v10738_v11  ;;  %6621 = vmatpush.bf16.msrb.mxu0 %v10466_v3  ;;  %v10911_v11 = vld [vmem:[#allocation8 + $0x7b8] sm:$0xf0] }
 0x477   :  { %v10914_v54 = vor.u32 %v12095_v6, %v10911_v11 }
 0x478   :  { %6634 = vmatpush.bf16.msrb.mxu1 %v10594_v4  ;;  %6604 = vmatpush.bf16.msra.mxu3 %v10402_v27 }
 0x47a   :  { %6647 = vmatpush.bf16.msrb.mxu2 %v10722_v47  ;;  %6622 = vmatpush.bf16.msrb.mxu0 %v10450_v58  ;;  %v13004_v49 = vpop.f32.mrf.mxu0  ;;  %v11009_v58 = vld [vmem:[#allocation14 + $0x70] sm:$0xf] }
 0x47b   :  { %v12213_v35 = vpop.eup %12212 }
 0x47c   :  { %6635 = vmatpush.bf16.msrb.mxu1 %v10578_v21  ;;  %6605 = vmatpush.bf16.msra.mxu3 %v10386_v26  ;;  %v13006_v37 = vpop.f32.mrf.mxu1  ;;  %v6694_v57 = vmul.f32 8.0, %v12213_v35  ;;  %v12121_v21 = vld [vmem:[#allocation14 + $0x74] sm:$0xf0]  ;;  %vm6698_vm0 = vweird.f32 %v12213_v35  ;;  %v12119_v26 = vld [vmem:[#allocation14 + $0x64] sm:$0xf0] }
 0x47d   :  { %6623 = vmatmul.bf16.vlgmr.msrb.gmra.mxu0 %v12938_v1  ;;  %v10335_v1 = vld [vmem:[#allocation8 + $0x338] sm:$0xf0] }
 0x47e   :  { %6648 = vmatpush.bf16.msrb.mxu2 %v10706_v39  ;;  %v6695_v53 = vsub.f32 1.0, %v6694_v57  ;;  %v11010_v39 = vor.u32 %v12121_v21, %v11009_v58  ;;  %v12120_v21 = vld [vmem:[#allocation14 + $0x74] sm:$0xf] }
 0x47f   :  { %6636 = vmatmul.bf16.vlgmr.msrb.gmra.mxu1 %v12941_v30 }
 0x480   :  { %6606 = vmatpush.bf16.msra.mxu3 %v10370_v36  ;;  %v6696_v14 = vmul.f32 %v12213_v35, %v6695_v53  ;;  %7236 = vmatpush.bf16.msra.mxu0 %v11010_v39  ;;  %v11002_v36 = vor.u32 %v12119_v26, %v11001_v42 }
 0x481   :  { %6649 = vmatmul.bf16.vlgmr.msrb.gmra.mxu2 %v12949_v40  ;;  %v10338_v40 = vor.u32 %v11951_v15, %v10335_v1  ;;  %v12075_v1 = vld [vmem:[#allocation8 + $0x70c] sm:$0xf] }
 0x482   :  { %v6418_v30 = vpop.f32.mrf.mxu0  ;;  %v6697_v61 = vadd.f32 %v12213_v35, %v6696_v14 }
 0x483   :  { %v10831_v30 = vld [vmem:[#allocation8 + $0x718] sm:$0xf0] }
 0x484   :  { %v13008_v33 = vpop.f32.mrf.mxu2  ;;  %6607 = vmatpush.bf16.msra.mxu3 %v10354_v9  ;;  %v6431_v41 = vpop.f32.mrf.mxu1  ;;  %7237 = vmatpush.bf16.msra.mxu0 %v11002_v36  ;;  %v10834_v28 = vor.u32 %v12075_v1, %v10831_v30 }
 0x488   :  { %6608 = vmatpush.bf16.msra.mxu3 %v10338_v40  ;;  %v13016_v40 = vsel %vm6698_vm0, %v12213_v35, %v6697_v61  ;;  %7238 = vmatpush.bf16.msra.mxu0 %v10994_v13 }
 0x48c   :  { %v6444_v16 = vpop.f32.mrf.mxu2  ;;  %6609 = vmatpush.bf16.msra.mxu3 %v10322_v50 }
 0x48e   :  { %v6351_v3 = vpop.f32.mrf.mxu3 }
 0x48f   :  { %6610 = vmatmul.bf16.vlgmr.msra.gmra.mxu3 %v12913_v48  ;;  %v6352_v4 = vadd.f32 %v6351_v3, %v6339_v10  ;;  %v10882_v48 = vor.u32 %v12087_v46, %v10879_v2  ;;  %v10969_v2 = vld [vmem:[#allocation14 + $0x20] sm:$0xf]  ;;  %v12111_v3 = vld [vmem:[#allocation14 + $0x24] sm:$0xf0] }
 0x490   :  { %6654 = vmatpush.bf16.msrb.mxu3 %v10946_v51  ;;  %v10970_v53 = vor.u32 %v12111_v3, %v10969_v2 }
 0x491   :  { %v6669_v47 = vrot.slane %v6352_v4, 4 }
 0x493   :  { %v6670_v22 = vadd.f32 %v6669_v47, %v6352_v4  ;;  %v12109_v47 = vld [vmem:[#allocation14 + $0x14] sm:$0xf0] }
 0x494   :  { %6655 = vmatpush.bf16.msrb.mxu3 %v10930_v63  ;;  %v10986_v63 = vor.u32 %v12115_v44, %v10985_v5  ;;  %v12133_v5 = vld [vmem:[#allocation14 + $0xd4] sm:$0xf0] }
 0x495   :  { %v6671_v43 = vrot.slane %v6670_v22, 2 }
 0x496   :  { %v6353_v27 = vpop.f32.mrf.mxu3  ;;  %7239 = vmatpush.bf16.msra.mxu0 %v10986_v63 }
 0x497   :  { %v6672_v23 = vadd.f32 %v6671_v43, %v6670_v22  ;;  %v12107_v22 = vld [vmem:[#allocation14 + $0x4] sm:$0xf0]  ;;  %v12118_v27 = vld [vmem:[#allocation14 + $0x64] sm:$0xf] }
 0x498   :  { %6656 = vmatpush.bf16.msrb.mxu3 %v10914_v54  ;;  %v10977_v54 = vld [vmem:[#allocation14 + $0x30] sm:$0xf] }
 0x499   :  { %v6673_v38 = vrot.slane %v6672_v23, 1  ;;  %v10978_v18 = vor.u32 %v12113_v56, %v10977_v54 }
 0x49a   :  { %v6468_v25 = vpop.f32.mrf.mxu0 }
 0x49b   :  { %v6469_v59 = vadd.f32 %v6468_v25, %v4965_v34  ;;  %v6674_v41 = vadd.f32 %v6673_v38, %v6672_v23  ;;  %7240 = vmatpush.bf16.msra.mxu0 %v10978_v18  ;;  %v11003_v23 = vld [vmem:[#allocation14 + $0x68] sm:$0xf0] }
 0x49c   :  { %6657 = vmatpush.bf16.msrb.mxu3 %v10898_v7  ;;  %v6481_v8 = vpop.f32.mrf.mxu1  ;;  %v11006_v26 = vor.u32 %v12118_v27, %v11003_v23  ;;  %v10963_v27 = vld [vmem:[#allocation14 + $0x18] sm:$0xf0] }
 0x49d   :  { %v6482_v45 = vadd.f32 %v6481_v8, %v6469_v59  ;;  %v6700_v50 = vmul.f32 %v13016_v40, %v6674_v41  ;;  %v10953_v59 = vld [vmem:[#allocation14] sm:$0xf]  ;;  %v12116_v41 = vld [vmem:[#allocation14 + $0x54] sm:$0xf] }
 0x49e   :  { %v6403_v0 = vpop.f32.mrf.mxu3 }
 0x49f   :  { %v13019_v51 = vsub.f32 %v6352_v4, %v6700_v50  ;;  %v6404_v11 = vadd.f32 %v6403_v0, %v12998_v60  ;;  %7241 = vmatpush.bf16.msra.mxu0 %v10970_v53  ;;  %v11057_v0 = vld [vmem:[#allocation14 + $0xd0] sm:$0xf]  ;;  %v12112_v53 = vld [vmem:[#allocation14 + $0x34] sm:$0xf] }
 0x4a0   :  { %6658 = vmatpush.bf16.msrb.mxu3 %v10882_v48  ;;  %v10961_v48 = vld [vmem:[#allocation14 + $0x10] sm:$0xf]  ;;  %v11058_v63 = vor.u32 %v12133_v5, %v11057_v0 }
 0x4a1   :  { %v6708_v6 = vmul.f32 %v13019_v51, %v13019_v51  ;;  %v6417_v7 = vadd.f32 %v13004_v49, %v6404_v11  ;;  %v10987_v11 = vld [vmem:[#allocation14 + $0x48] sm:$0xf0] }
 0x4a2   :  { %v6470_v9 = vpop.f32.mrf.mxu0 }
 0x4a3   :  { %v6712_v35 = vrot.slane %v6708_v6, 4  ;;  %v6430_v4 = vadd.f32 %v13006_v37, %v6417_v7  ;;  %v10954_v37 = vor.u32 %v12107_v22, %v10953_v59  ;;  %v11065_v9 = vld [vmem:[#allocation14 + $0xe0] sm:$0xf]  ;;  %v12110_v22 = vld [vmem:[#allocation14 + $0x24] sm:$0xf] }
 0x4a4   :  { %6659 = vmatpush.bf16.msrb.mxu3 %v10866_v55  ;;  %v6494_v31 = vpop.f32.mrf.mxu2  ;;  %v6483_v15 = vpop.f32.mrf.mxu1  ;;  %v11049_v7 = vld [vmem:[#allocation14 + $0xc0] sm:$0xf] }
 0x4a5   :  { %v13014_v20 = vadd.f32 %v6494_v31, %v6482_v45  ;;  %v6713_v57 = vadd.f32 %v6712_v35, %v6708_v6  ;;  %v6443_v12 = vadd.f32 %v13008_v33, %v6430_v4  ;;  %v11011_v45 = vld [vmem:[#allocation14 + $0x78] sm:$0xf0]  ;;  %v12137_v33 = vld [vmem:[#allocation14 + $0xf4] sm:$0xf0]  ;;  %v12135_v15 = vld [vmem:[#allocation14 + $0xe4] sm:$0xf0] }
 0x4a6   :  { %v6405_v46 = vpop.f32.mrf.mxu3  ;;  %v11014_v39 = vor.u32 %v12120_v21, %v11011_v45  ;;  %v11074_v61 = vor.u32 %v12137_v33, %v11073_v24  ;;  %v11066_v30 = vor.u32 %v12135_v15, %v11065_v9  ;;  %v12114_v6 = vld [vmem:[#allocation14 + $0x44] sm:$0xf]  ;;  %v12127_v24 = vld [vmem:[#allocation14 + $0xa4] sm:$0xf0] }
 0x4a7   :  { %v6714_v10 = vrot.slane %v6713_v57, 2  ;;  %v10990_v54 = vor.u32 %v12114_v6, %v10987_v11  ;;  %v12136_v11 = vld [vmem:[#allocation14 + $0xf4] sm:$0xf] }
 0x4a8   :  { %6660 = vmatpush.bf16.msrb.mxu3 %v10850_v32  ;;  %7249 = vmatpush.bf16.msra.mxu1 %v11074_v61  ;;  %v12108_v61 = vld [vmem:[#allocation14 + $0x14] sm:$0xf] }
 0x4a9   :  { %v6715_v34 = vadd.f32 %v6714_v10, %v6713_v57  ;;  %v13036_v57 = vld [vmem:[#allocation11] sm:$0xf]  ;;  %v12131_v10 = vld [vmem:[#allocation14 + $0xc4] sm:$0xf0] }
 0x4aa   :  { %v11050_v3 = vor.u32 %v12131_v10, %v11049_v7 }
 0x4ab   :  { %v6716_v60 = vrot.slane %v6715_v34, 1 }
 0x4ac   :  { %6661 = vmatpush.bf16.msrb.mxu3 %v10834_v28  ;;  %v6496_v16 = vpop.f32.mrf.mxu2  ;;  %v10998_v28 = vor.u32 %v12116_v41, %v10995_v52  ;;  %7250 = vmatpush.bf16.msra.mxu1 %v11066_v30  ;;  %v12106_v30 = vld [vmem:[#allocation14 + $0x4] sm:$0xf] }
 0x4ad   :  { %v6717_v25 = vadd.f32 %v6716_v60, %v6715_v34  ;;  %v10979_v34 = vld [vmem:[#allocation14 + $0x38] sm:$0xf0] }
 0x4ae   :  { %v10982_v4 = vor.u32 %v12112_v53, %v10979_v34  ;;  %v13040_v60 = vld [vmem:[#allocation13] sm:$0xf]  ;;  %v12134_v53 = vld [vmem:[#allocation14 + $0xe4] sm:$0xf]  ;;  %v11067_v34 = vld [vmem:[#allocation14 + $0xe8] sm:$0xf0] }
 0x4af   :  { %6662 = vmatmul.bf16.vlgmr.msrb.gmra.mxu3 %v12972_v17  ;;  %v10962_v17 = vor.u32 %v12109_v47, %v10961_v48  ;;  %v6736_v49 = vmul.f32 %v6717_v25, %v13016_v40  ;;  %v11041_v25 = vld [vmem:[#allocation14 + $0xb0] sm:$0xf]  ;;  %v6802_v21 = vperm.slane %v13040_v60, 0 }
 0x4b0   :  { %7251 = vmatpush.bf16.msra.mxu1 %v11058_v63 }
 0x4b1   :  { %7242 = vmatpush.bf16.msra.mxu0 %v10962_v17  ;;  %v6740_v55 = vadd.f32 1e-05, %v6736_v49  ;;  %v6789_v17 = vperm.slane %v13036_v57, 0 }
 0x4b2   :  { %v6455_v14 = vpop.f32.mrf.mxu3 }
 0x4b3   :  { %v6456_v58 = vadd.f32 %v6455_v14, %v6443_v12  ;;  %12214 = vrsqrt.f32 %v6740_v55  ;;  %vm6750_vm2 = vweird.f32 %v6740_v55  ;;  %v12129_v12 = vld [vmem:[#allocation14 + $0xb4] sm:$0xf0] }
 0x4b4   :  { %7252 = vmatpush.bf16.msra.mxu1 %v11050_v3  ;;  %v11042_v59 = vor.u32 %v12129_v12, %v11041_v25  ;;  %v12132_v12 = vld [vmem:[#allocation14 + $0xd4] sm:$0xf] }
 0x4b5   :  { %v6675_v43 = vrot.slane %v6456_v58, 4  ;;  %7243 = vmatpush.bf16.msra.mxu0 %v10954_v37 }
 0x4b7   :  { %v6676_v19 = vadd.f32 %v6675_v43, %v6456_v58  ;;  %v11033_v43 = vld [vmem:[#allocation14 + $0xa0] sm:$0xf] }
 0x4b8   :  { %7253 = vmatpush.bf16.msra.mxu1 %v11042_v59 }
 0x4b9   :  { %7288 = vmatpush.bf16.msrb.mxu0 %v11014_v39  ;;  %v6677_v31 = vrot.slane %v6676_v19, 2  ;;  %v12215_v62 = vpop.eup %12214 }
 0x4ba   :  { %v13027_v8 = vpop.f32.mrf.mxu0  ;;  %v6457_v38 = vpop.f32.mrf.mxu3  ;;  %v6745_v13 = vmul.f32 %v12215_v62, %v6740_v55  ;;  %vm6751_vm1 = vweird.f32 %v12215_v62 }
 0x4bb   :  { %v6678_v1 = vadd.f32 %v6677_v31, %v6676_v19  ;;  %vm6752_vm3 = vmor %vm6750_vm2, %vm6751_vm1  ;;  %v11034_v19 = vor.u32 %v12127_v24, %v11033_v43  ;;  %v11025_v38 = vld [vmem:[#allocation14 + $0x90] sm:$0xf] }
 0x4bc   :  { %v13031_v29 = vpop.f32.mrf.mxu1  ;;  %v6746_v44 = vmul.f32 %v12215_v62, %v6745_v13  ;;  %v10955_v13 = vld [vmem:[#allocation14 + $0x8] sm:$0xf0] }
 0x4bd   :  { %7289 = vmatpush.bf16.msrb.mxu0 %v11006_v26  ;;  %v6679_v50 = vrot.slane %v6678_v1, 1  ;;  %v12243_v26 = vld [vmem:[#allocation10] sm:$0xf]  ;;  %7254 = vmatpush.bf16.msra.mxu1 %v11034_v19  ;;  %v10958_v0 = vor.u32 %v12106_v30, %v10955_v13 }
 0x4be   :  { %v6747_v56 = vmul.f32 0.5, %v6746_v44  ;;  %v4966_v31 = vperm.slane %v12243_v26, 3  ;;  %v11017_v44 = vld [vmem:[#allocation14 + $0x80] sm:$0xf]  ;;  %v12128_v19 = vld [vmem:[#allocation14 + $0xb4] sm:$0xf] }
 0x4bf   :  { %v6680_v16 = vadd.f32 %v6679_v50, %v6678_v1  ;;  %v12125_v1 = vld [vmem:[#allocation14 + $0x94] sm:$0xf0] }
 0x4c0   :  { %v6748_v46 = vsub.f32 1.5, %v6747_v56 }
 0x4c1   :  { %7290 = vmatpush.bf16.msrb.mxu0 %v10998_v28  ;;  %v6701_v18 = vmul.f32 %v13016_v40, %v6680_v16  ;;  %v11026_v28 = vor.u32 %v12125_v1, %v11025_v38  ;;  %v12123_v16 = vld [vmem:[#allocation14 + $0x84] sm:$0xf0] }
 0x4c2   :  { %v6522_v32 = vpop.f32.mrf.mxu0  ;;  %v6749_v48 = vmul.f32 %v12215_v62, %v6748_v46  ;;  %v11018_v6 = vor.u32 %v12123_v16, %v11017_v44  ;;  %v12153_v16 = vld [vmem:[#allocation14 + $0x174] sm:$0xf0] }
 0x4c3   :  { %v13038_v2 = vsub.f32 %v6456_v58, %v6701_v18  ;;  %v10971_v58 = vld [vmem:[#allocation14 + $0x28] sm:$0xf0]  ;;  %v10966_v32 = vor.u32 %v12108_v61, %v10963_v27  ;;  %7255 = vmatpush.bf16.msra.mxu1 %v11026_v28  ;;  %v11043_v61 = vld [vmem:[#allocation14 + $0xb8] sm:$0xf0] }
 0x4c4   :  { %v13033_v42 = vpop.f32.mrf.mxu2  ;;  %v6535_v36 = vpop.f32.mrf.mxu1  ;;  %v6753_v49 = vsel %vm6752_vm3, %v12215_v62, %v6749_v48  ;;  %v10974_v45 = vor.u32 %v12110_v22, %v10971_v58 }
 0x4c5   :  { %7291 = vmatpush.bf16.msrb.mxu0 %v10990_v54  ;;  %v6709_v47 = vmul.f32 %v13038_v2, %v13038_v2  ;;  %v6784_v37 = vmul.f32 %v6753_v49, %v13019_v51  ;;  %v11059_v49 = vld [vmem:[#allocation14 + $0xd8] sm:$0xf0] }
 0x4c6   :  { %v11062_v59 = vor.u32 %v12132_v12, %v11059_v49 }
 0x4c7   :  { %v6718_v14 = vrot.slane %v6709_v47, 4  ;;  %v6797_v39 = vmul.f32 %v6789_v17, %v6784_v37  ;;  %7256 = vmatpush.bf16.msra.mxu1 %v11018_v6 }
 0x4c9   :  { %7292 = vmatpush.bf16.msrb.mxu0 %v10982_v4  ;;  %v6719_v55 = vadd.f32 %v6718_v14, %v6709_v47  ;;  %v6810_v23 = vadd.f32 %v6802_v21, %v6797_v39  ;;  %v11070_v47 = vor.u32 %v12134_v53, %v11067_v34 }
 0x4cb   :  { %v6720_v33 = vrot.slane %v6719_v55, 2  ;;  %v6818_v51 = vmul.f32 1.442695, %v6810_v23  ;;  %vm6814_vm4 = vcmp.gt.f32.partialorder %v6810_v23, 0.0 }
 0x4cc   :  { %v6548_v35 = vpop.f32.mrf.mxu2 }
 0x4cd   :  { %7293 = vmatpush.bf16.msrb.mxu0 %v10974_v45  ;;  %v6721_v36 = vadd.f32 %v6720_v33, %v6719_v55  ;;  %12216 = vpow2.f32 %v6818_v51  ;;  %v11075_v35 = vld [vmem:[#allocation14 + $0xf8] sm:$0xf0]  ;;  %v12130_v45 = vld [vmem:[#allocation14 + $0xc4] sm:$0xf]  ;;  %v11051_v55 = vld [vmem:[#allocation14 + $0xc8] sm:$0xf0] }
 0x4ce   :  { %v11078_v54 = vor.u32 %v12136_v11, %v11075_v35  ;;  %v11054_v43 = vor.u32 %v12130_v45, %v11051_v55  ;;  %v11035_v51 = vld [vmem:[#allocation14 + $0xa8] sm:$0xf0] }
 0x4cf   :  { %v6722_v9 = vrot.slane %v6721_v36, 1 }
 0x4d0   :  { %7301 = vmatpush.bf16.msrb.mxu1 %v11078_v54 }
 0x4d1   :  { %7294 = vmatpush.bf16.msrb.mxu0 %v10966_v32  ;;  %v6723_v50 = vadd.f32 %v6722_v9, %v6721_v36  ;;  %v6790_v32 = vperm.slane %v13036_v57, 1  ;;  %v12126_v36 = vld [vmem:[#allocation14 + $0xa4] sm:$0xf] }
 0x4d2   :  { %v6507_v62 = vpop.f32.mrf.mxu3  ;;  %v11038_v9 = vor.u32 %v12126_v36, %v11035_v51 }
 0x4d3   :  { %v6737_v63 = vmul.f32 %v6723_v50, %v13016_v40  ;;  %v12217_v18 = vpop.eup %12216  ;;  %v6508_v24 = vadd.f32 %v6507_v62, %v13014_v20 }
 0x4d4   :  { %v10947_v3 = vadd.f32 -1.0, %v12217_v18  ;;  %7302 = vmatpush.bf16.msrb.mxu1 %v11070_v47  ;;  %v11121_v47 = vld [vmem:[#allocation14 + $0x150] sm:$0xf] }
 0x4d5   :  { %7295 = vmatpush.bf16.msrb.mxu0 %v10958_v0  ;;  %v6741_v56 = vadd.f32 1e-05, %v6737_v63  ;;  %v6521_v26 = vadd.f32 %v13027_v8, %v6508_v24  ;;  %v11027_v8 = vld [vmem:[#allocation14 + $0x98] sm:$0xf0]  ;;  %v11019_v63 = vld [vmem:[#allocation14 + $0x88] sm:$0xf0] }
 0x4d6   :  { %v6830_v17 = vmul.f32 1.6732632, %v10947_v3 }
 0x4d7   :  { %12218 = vrsqrt.f32 %v6741_v56  ;;  %vm6760_vm6 = vweird.f32 %v6741_v56  ;;  %v6534_v1 = vadd.f32 %v13031_v29, %v6521_v26  ;;  %v12122_v29 = vld [vmem:[#allocation14 + $0x84] sm:$0xf]  ;;  %v11097_v26 = vld [vmem:[#allocation14 + $0x120] sm:$0xf] }
 0x4d8   :  { %v6834_v25 = vsel %vm6814_vm4, %v6810_v23, %v6830_v17  ;;  %7303 = vmatpush.bf16.msrb.mxu1 %v11062_v59  ;;  %v11046_v23 = vor.u32 %v12128_v19, %v11043_v61  ;;  %v11022_v35 = vor.u32 %v12122_v29, %v11019_v63  ;;  %v12149_v17 = vld [vmem:[#allocation14 + $0x154] sm:$0xf0] }
 0x4d9   :  { %v6838_v14 = vmul.f32 1.050701, %v6834_v25  ;;  %v6547_v13 = vadd.f32 %v13033_v42, %v6534_v1  ;;  %v12151_v42 = vld [vmem:[#allocation14 + $0x164] sm:$0xf0]  ;;  %v11122_v12 = vor.u32 %v12149_v17, %v11121_v47  ;;  %v12145_v19 = vld [vmem:[#allocation14 + $0x134] sm:$0xf0] }
 0x4da   :  { %v6572_v15 = vpop.f32.mrf.mxu0  ;;  %v6509_v48 = vpop.f32.mrf.mxu3 }
 0x4db   :  { %v6573_v41 = vadd.f32 %v6572_v15, %v4966_v31  ;;  %v6842_v21 = vpack.c.bf16 %v6838_v14, %v6838_v14  ;;  %v6803_v15 = vperm.slane %v13040_v60, 1 }
 0x4dc   :  { %v6585_v52 = vpop.f32.mrf.mxu1  ;;  %7304 = vmatpush.bf16.msrb.mxu1 %v11054_v43 }
 0x4dd   :  { %v6586_v5 = vadd.f32 %v6585_v52, %v6573_v41  ;;  %v12219_v22 = vpop.eup %12218  ;;  %7244 = vmatmul.bf16.vlgmr.msra.gmra.mxu0 %v6842_v21  ;;  %v12124_v41 = vld [vmem:[#allocation14 + $0x94] sm:$0xf] }
 0x4de   :  { %v6755_v58 = vmul.f32 %v12219_v22, %v6741_v56  ;;  %vm6761_vm5 = vweird.f32 %v12219_v22  ;;  %v11030_v52 = vor.u32 %v12124_v41, %v11027_v8  ;;  %v11129_v56 = vld [vmem:[#allocation14 + $0x160] sm:$0xf]  ;;  %v12139_v41 = vld [vmem:[#allocation14 + $0x104] sm:$0xf0] }
 0x4df   :  { %vm6762_vm7 = vmor %vm6760_vm6, %vm6761_vm5 }
 0x4e0   :  { %v6756_v39 = vmul.f32 %v12219_v22, %v6755_v58  ;;  %7305 = vmatpush.bf16.msrb.mxu1 %v11046_v23  ;;  %v12147_v58 = vld [vmem:[#allocation14 + $0x144] sm:$0xf0] }
 0x4e2   :  { %v6574_v46 = vpop.f32.mrf.mxu0  ;;  %v6757_v33 = vmul.f32 0.5, %v6756_v39 }
 0x4e4   :  { %v6598_v7 = vpop.f32.mrf.mxu2  ;;  %v6587_v4 = vpop.f32.mrf.mxu1  ;;  %v6758_v27 = vsub.f32 1.5, %v6757_v33  ;;  %7306 = vmatpush.bf16.msrb.mxu1 %v11038_v9  ;;  %v11105_v33 = vld [vmem:[#allocation14 + $0x130] sm:$0xf]  ;;  %v12141_v9 = vld [vmem:[#allocation14 + $0x114] sm:$0xf0] }
 0x4e5   :  { %v13048_v10 = vadd.f32 %v6598_v7, %v6586_v5  ;;  %v11130_v7 = vor.u32 %v12151_v42, %v11129_v56  ;;  %v11106_v61 = vor.u32 %v12145_v19, %v11105_v33  ;;  %v12146_v56 = vld [vmem:[#allocation14 + $0x144] sm:$0xf]  ;;  %v11115_v42 = vld [vmem:[#allocation14 + $0x148] sm:$0xf0] }
 0x4e6   :  { %v6759_v31 = vmul.f32 %v12219_v22, %v6758_v27  ;;  %v12138_v19 = vld [vmem:[#allocation14 + $0x104] sm:$0xf] }
 0x4e8   :  { %v6763_v38 = vsel %vm6762_vm7, %v12219_v22, %v6759_v31  ;;  %7307 = vmatpush.bf16.msrb.mxu1 %v11030_v52  ;;  %v11113_v22 = vld [vmem:[#allocation14 + $0x140] sm:$0xf]  ;;  %v12143_v31 = vld [vmem:[#allocation14 + $0x124] sm:$0xf0] }
 0x4e9   :  { %v6785_v20 = vmul.f32 %v6763_v38, %v13038_v2  ;;  %v11137_v2 = vld [vmem:[#allocation14 + $0x170] sm:$0xf]  ;;  %v11114_v45 = vor.u32 %v12147_v58, %v11113_v22  ;;  %v6791_v58 = vperm.slane %v13036_v57, 2 }
 0x4ea   :  { %v11138_v11 = vor.u32 %v12153_v16, %v11137_v2  ;;  %v11089_v38 = vld [vmem:[#allocation14 + $0x110] sm:$0xf]  ;;  %v12150_v2 = vld [vmem:[#allocation14 + $0x164] sm:$0xf]  ;;  %v11131_v16 = vld [vmem:[#allocation14 + $0x168] sm:$0xf0] }
 0x4eb   :  { %v6798_v30 = vmul.f32 %v6790_v32, %v6785_v20  ;;  %v11098_v32 = vor.u32 %v12143_v31, %v11097_v26  ;;  %v11090_v20 = vor.u32 %v12141_v9, %v11089_v38  ;;  %v11134_v63 = vor.u32 %v12150_v2, %v11131_v16  ;;  %v11201_v31 = vld [vmem:[#allocation14 + $0x1f0] sm:$0xf]  ;;  %v12167_v9 = vld [vmem:[#allocation14 + $0x1e4] sm:$0xf0] }
 0x4ec   :  { %v6600_v37 = vpop.f32.mrf.mxu2  ;;  %7262 = vmatpush.bf16.msra.mxu2 %v11138_v11  ;;  %7308 = vmatpush.bf16.msrb.mxu1 %v11022_v35  ;;  %v12148_v11 = vld [vmem:[#allocation14 + $0x154] sm:$0xf]  ;;  %v11123_v35 = vld [vmem:[#allocation14 + $0x158] sm:$0xf0] }
 0x4ed   :  { %v6811_v62 = vadd.f32 %v6803_v15, %v6798_v30  ;;  %7296 = vmatmul.bf16.vlgmr.msrb.gmra.mxu0 %v6842_v21  ;;  %v11081_v30 = vld [vmem:[#allocation14 + $0x100] sm:$0xf] }
 0x4ee   :  { %v11082_v52 = vor.u32 %v12139_v41, %v11081_v30  ;;  %v11185_v30 = vld [vmem:[#allocation14 + $0x1d0] sm:$0xf]  ;;  %v12165_v41 = vld [vmem:[#allocation14 + $0x1d4] sm:$0xf0] }
 0x4ef   :  { %v6820_v5 = vmul.f32 1.442695, %v6811_v62  ;;  %vm6815_vm8 = vcmp.gt.f32.partialorder %v6811_v62, 0.0 }
 0x4f0   :  { %7263 = vmatpush.bf16.msra.mxu2 %v11130_v7 }
 0x4f1   :  { %12220 = vpow2.f32 %v6820_v5 }
 0x4f2   :  { %v6559_v0 = vpop.f32.mrf.mxu3 }
 0x4f3   :  { %v6560_v44 = vadd.f32 %v6559_v0, %v6547_v13  ;;  %v11139_v13 = vld [vmem:[#allocation14 + $0x178] sm:$0xf0] }
 0x4f4   :  { %7264 = vmatpush.bf16.msra.mxu2 %v11122_v12 }
 0x4f5   :  { %v6681_v6 = vrot.slane %v6560_v44, 4 }
 0x4f7   :  { %v6682_v54 = vadd.f32 %v6681_v6, %v6560_v44  ;;  %v12221_v4 = vpop.eup %12220 }
 0x4f8   :  { %v10948_v25 = vadd.f32 -1.0, %v12221_v4  ;;  %7265 = vmatpush.bf16.msra.mxu2 %v11114_v45  ;;  %v12144_v4 = vld [vmem:[#allocation14 + $0x134] sm:$0xf]  ;;  %v11091_v45 = vld [vmem:[#allocation14 + $0x118] sm:$0xf0] }
 0x4f9   :  { %v6683_v46 = vrot.slane %v6682_v54, 2 }
 0x4fa   :  { %v13056_v28 = vpop.f32.mrf.mxu0  ;;  %v6561_v34 = vpop.f32.mrf.mxu3  ;;  %v6831_v14 = vmul.f32 1.6732632, %v10948_v25 }
 0x4fb   :  { %v6684_v48 = vadd.f32 %v6683_v46, %v6682_v54  ;;  %v11126_v54 = vor.u32 %v12148_v11, %v11123_v35  ;;  %v11118_v46 = vor.u32 %v12146_v56, %v11115_v42  ;;  %v11169_v35 = vld [vmem:[#allocation14 + $0x1b0] sm:$0xf] }
 0x4fc   :  { %v13059_v50 = vpop.f32.mrf.mxu1  ;;  %v6835_v21 = vsel %vm6815_vm8, %v6811_v62, %v6831_v14  ;;  %7266 = vmatpush.bf16.msra.mxu2 %v11106_v61  ;;  %v12152_v62 = vld [vmem:[#allocation14 + $0x174] sm:$0xf]  ;;  %v11099_v14 = vld [vmem:[#allocation14 + $0x128] sm:$0xf0] }
 0x4fd   :  { %v6685_v49 = vrot.slane %v6684_v48, 1  ;;  %v6839_v39 = vmul.f32 1.050701, %v6835_v21  ;;  %v11142_v5 = vor.u32 %v12152_v62, %v11139_v13  ;;  %v12140_v21 = vld [vmem:[#allocation14 + $0x114] sm:$0xf] }
 0x4fe   :  { %v11083_v61 = vld [vmem:[#allocation14 + $0x108] sm:$0xf0] }
 0x4ff   :  { %v6686_v59 = vadd.f32 %v6685_v49, %v6684_v48  ;;  %v6843_v24 = vpack.c.bf16 %v6839_v39, %v6839_v39  ;;  %v11107_v48 = vld [vmem:[#allocation14 + $0x138] sm:$0xf0]  ;;  %v12142_v49 = vld [vmem:[#allocation14 + $0x124] sm:$0xf]  ;;  %v6804_v39 = vperm.slane %v13040_v60, 2  ;;  %v11086_v26 = vor.u32 %v12138_v19, %v11083_v61 }
 0x500   :  { %7267 = vmatpush.bf16.msra.mxu2 %v11098_v32  ;;  %v11110_v47 = vor.u32 %v12144_v4, %v11107_v48  ;;  %v12169_v32 = vld [vmem:[#allocation14 + $0x1f4] sm:$0xf0]  ;;  %v11187_v19 = vld [vmem:[#allocation14 + $0x1d8] sm:$0xf0] }
 0x501   :  { %v6702_v55 = vmul.f32 %v13016_v40, %v6686_v59  ;;  %7257 = vmatmul.bf16.vlgmr.msra.gmra.mxu1 %v6843_v24  ;;  %v11102_v59 = vor.u32 %v12142_v49, %v11099_v14  ;;  %v11145_v14 = vld [vmem:[#allocation14 + $0x180] sm:$0xf] }
 0x502   :  { %v6626_v3 = vpop.f32.mrf.mxu0 }
 0x503   :  { %v13064_v43 = vsub.f32 %v6560_v44, %v6702_v55 }
 0x504   :  { %v13061_v18 = vpop.f32.mrf.mxu2  ;;  %v6639_v53 = vpop.f32.mrf.mxu1  ;;  %7268 = vmatpush.bf16.msra.mxu2 %v11090_v20 }
 0x505   :  { %v6710_v27 = vmul.f32 %v13064_v43, %v13064_v43 }
 0x507   :  { %v6724_v23 = vrot.slane %v6710_v27, 4 }
 0x508   :  { %7269 = vmatpush.bf16.msra.mxu2 %v11082_v52  ;;  %v11186_v52 = vor.u32 %v12165_v41, %v11185_v30  ;;  %v11155_v30 = vld [vmem:[#allocation14 + $0x198] sm:$0xf0] }
 0x509   :  { %v6725_v36 = vadd.f32 %v6724_v23, %v6710_v27 }
 0x50b   :  { %v6726_v51 = vrot.slane %v6725_v36, 2 }
 0x50c   :  { %v6652_v37 = vpop.f32.mrf.mxu2  ;;  %7314 = vmatpush.bf16.msrb.mxu2 %v11142_v5  ;;  %v11177_v5 = vld [vmem:[#allocation14 + $0x1c0] sm:$0xf] }
 0x50d   :  { %v6727_v15 = vadd.f32 %v6726_v51, %v6725_v36  ;;  %v11202_v36 = vor.u32 %v12169_v32, %v11201_v31 }
 0x50f   :  { %v6728_v1 = vrot.slane %v6727_v15, 1  ;;  %7275 = vmatpush.bf16.msra.mxu3 %v11202_v36  ;;  %v12160_v36 = vld [vmem:[#allocation14 + $0x1b4] sm:$0xf] }
 0x510   :  { %7315 = vmatpush.bf16.msrb.mxu2 %v11134_v63 }
 0x511   :  { %v6729_v0 = vadd.f32 %v6728_v1, %v6727_v15  ;;  %7309 = vmatmul.bf16.vlgmr.msrb.gmra.mxu1 %v6843_v24 }
 0x512   :  { %v6611_v8 = vpop.f32.mrf.mxu3 }
 0x513   :  { %v6738_v44 = vmul.f32 %v6729_v0, %v13016_v40  ;;  %v6612_v34 = vadd.f32 %v6611_v8, %v13048_v10 }
 0x514   :  { %7316 = vmatpush.bf16.msrb.mxu2 %v11126_v54  ;;  %v12161_v54 = vld [vmem:[#allocation14 + $0x1b4] sm:$0xf0] }
 0x515   :  { %v6742_v29 = vadd.f32 1e-05, %v6738_v44  ;;  %v6625_v12 = vadd.f32 %v13056_v28, %v6612_v34  ;;  %v11094_v28 = vor.u32 %v12140_v21, %v11091_v45  ;;  %v12163_v44 = vld [vmem:[#allocation14 + $0x1c4] sm:$0xf0]  ;;  %v11170_v42 = vor.u32 %v12161_v54, %v11169_v35 }
 0x517   :  { %12222 = vrsqrt.f32 %v6742_v29  ;;  %vm6770_vm10 = vweird.f32 %v6742_v29  ;;  %v6638_v10 = vadd.f32 %v13059_v50, %v6625_v12 }
 0x518   :  { %7317 = vmatpush.bf16.msrb.mxu2 %v11118_v46 }
 0x519   :  { %v6651_v33 = vadd.f32 %v13061_v18, %v6638_v10  ;;  %v11203_v10 = vld [vmem:[#allocation14 + $0x1f8] sm:$0xf0] }
 0x51a   :  { %v6613_v6 = vpop.f32.mrf.mxu3 }
 0x51c   :  { %7318 = vmatpush.bf16.msrb.mxu2 %v11110_v47  ;;  %v11153_v47 = vld [vmem:[#allocation14 + $0x190] sm:$0xf] }
 0x51d   :  { %v12223_v7 = vpop.eup %12222 }
 0x51e   :  { %v6765_v3 = vmul.f32 %v12223_v7, %v6742_v29  ;;  %vm6771_vm9 = vweird.f32 %v12223_v7  ;;  %v11178_v29 = vor.u32 %v12163_v44, %v11177_v5  ;;  %v12154_v5 = vld [vmem:[#allocation14 + $0x184] sm:$0xf]  ;;  %v11147_v44 = vld [vmem:[#allocation14 + $0x188] sm:$0xf0] }
 0x51f   :  { %vm6772_vm11 = vmor %vm6770_vm10, %vm6771_vm9  ;;  %vm7605_vm10 = vcmask 7168  }
 0x520   :  { %v6766_v53 = vmul.f32 %v12223_v7, %v6765_v3  ;;  %7319 = vmatpush.bf16.msrb.mxu2 %v11102_v59  ;;  %v11161_v3 = vld [vmem:[#allocation14 + $0x1a0] sm:$0xf]  ;;  %v12155_v59 = vld [vmem:[#allocation14 + $0x184] sm:$0xf0] }
 0x522   :  { %v6767_v17 = vmul.f32 0.5, %v6766_v53  ;;  %v12159_v53 = vld [vmem:[#allocation14 + $0x1a4] sm:$0xf0] }
 0x523   :  { %v11162_v4 = vor.u32 %v12159_v53, %v11161_v3 }
 0x524   :  { %v6768_v25 = vsub.f32 1.5, %v6767_v17  ;;  %7320 = vmatpush.bf16.msrb.mxu2 %v11094_v28  ;;  %v12157_v17 = vld [vmem:[#allocation14 + $0x194] sm:$0xf0] }
 0x525   :  { %v11154_v12 = vor.u32 %v12157_v17, %v11153_v47 }
 0x526   :  { %v6769_v22 = vmul.f32 %v12223_v7, %v6768_v25 }
 0x528   :  { %v6773_v37 = vsel %vm6772_vm11, %v12223_v7, %v6769_v22  ;;  %7321 = vmatpush.bf16.msrb.mxu2 %v11086_v26  ;;  %v11179_v26 = vld [vmem:[#allocation14 + $0x1c8] sm:$0xf0] }
 0x529   :  { %v6786_v55 = vmul.f32 %v6773_v37, %v13064_v43  ;;  %v11193_v43 = vld [vmem:[#allocation14 + $0x1e0] sm:$0xf]  ;;  %v12168_v37 = vld [vmem:[#allocation14 + $0x1f4] sm:$0xf] }
 0x52a   :  { %v11194_v15 = vor.u32 %v12167_v9, %v11193_v43  ;;  %v11206_v21 = vor.u32 %v12168_v37, %v11203_v10  ;;  %v12158_v9 = vld [vmem:[#allocation14 + $0x1a4] sm:$0xf] }
 0x52b   :  { %v6799_v24 = vmul.f32 %v6791_v58, %v6786_v55  ;;  %v11146_v58 = vor.u32 %v12155_v59, %v11145_v14  ;;  %v12166_v55 = vld [vmem:[#allocation14 + $0x1e4] sm:$0xf] }
 0x52c   :  { %7276 = vmatpush.bf16.msra.mxu3 %v11194_v15 }
 0x52d   :  { %v6812_v27 = vadd.f32 %v6804_v39, %v6799_v24  ;;  %v11195_v39 = vld [vmem:[#allocation14 + $0x1e8] sm:$0xf0] }
 0x52e   :  { %v11198_v28 = vor.u32 %v12166_v55, %v11195_v39 }
 0x52f   :  { %v6822_v51 = vmul.f32 1.442695, %v6812_v27  ;;  %vm6816_vm12 = vcmp.gt.f32.partialorder %v6812_v27, 0.0 }
 0x530   :  { %7277 = vmatpush.bf16.msra.mxu3 %v11186_v52 }
 0x531   :  { %12224 = vpow2.f32 %v6822_v51  ;;  %v11171_v51 = vld [vmem:[#allocation14 + $0x1b8] sm:$0xf0] }
 0x532   :  { %v6663_v23 = vpop.f32.mrf.mxu3  ;;  %v11174_v43 = vor.u32 %v12160_v36, %v11171_v51  ;;  %v12176_v51 = vld [vmem:[#allocation20 + $0x30] sm:$0xff] }
 0x533   :  { %v6664_v50 = vadd.f32 %v6663_v23, %v6651_v33  ;;  %v12164_v33 = vld [vmem:[#allocation14 + $0x1d4] sm:$0xf]  ;;  %v12162_v23 = vld [vmem:[#allocation14 + $0x1c4] sm:$0xf] }
 0x534   :  { %7278 = vmatpush.bf16.msra.mxu3 %v11178_v29  ;;  %v11182_v31 = vor.u32 %v12162_v23, %v11179_v26  ;;  %v11150_v29 = vor.u32 %v12154_v5, %v11147_v44  ;;  %v12177_v23 = vld [vmem:[#allocation20 + $0x38] sm:$0xff] }
 0x535   :  { %v6687_v38 = vrot.slane %v6664_v50, 4  ;;  %7560 = vmatpush.bf16.msra.mxu0 %v12177_v23  ;;  %v12173_v44 = vld [vmem:[#allocation20 + $0x18] sm:$0xff] }
 0x537   :  { %v6688_v20 = vadd.f32 %v6687_v38, %v6664_v50  ;;  %v12225_v62 = vpop.eup %12224 }
 0x538   :  { %v10949_v0 = vadd.f32 -1.0, %v12225_v62  ;;  %7279 = vmatpush.bf16.msra.mxu3 %v11170_v42 }
 0x539   :  { %v6689_v18 = vrot.slane %v6688_v20, 2  ;;  %7561 = vmatpush.bf16.msra.mxu0 %v12176_v51 }
 0x53a   :  { %v6665_v1 = vpop.f32.mrf.mxu3  ;;  %v6832_v16 = vmul.f32 1.6732632, %v10949_v0 }
 0x53b   :  { %v6690_v8 = vadd.f32 %v6689_v18, %v6688_v20  ;;  %v11163_v20 = vld [vmem:[#allocation14 + $0x1a8] sm:$0xf0]  ;;  %v12156_v1 = vld [vmem:[#allocation14 + $0x194] sm:$0xf] }
 0x53c   :  { %v6836_v6 = vsel %vm6816_vm12, %v6812_v27, %v6832_v16  ;;  %7280 = vmatpush.bf16.msra.mxu3 %v11162_v4  ;;  %v11190_v27 = vor.u32 %v12164_v33, %v11187_v19  ;;  %v11166_v18 = vor.u32 %v12158_v9, %v11163_v20  ;;  %v11158_v62 = vor.u32 %v12156_v1, %v11155_v30 }
 0x53d   :  { %v6691_v13 = vrot.slane %v6690_v8, 1  ;;  %v6840_v11 = vmul.f32 1.050701, %v6836_v6  ;;  %v6805_v16 = vperm.slane %v13040_v60, 3 }
 0x53f   :  { %v6692_v2 = vadd.f32 %v6691_v13, %v6690_v8  ;;  %v6844_v7 = vpack.c.bf16 %v6840_v11, %v6840_v11  ;;  %v6792_v13 = vperm.slane %v13036_v57, 3 }
 0x540   :  { %7281 = vmatpush.bf16.msra.mxu3 %v11154_v12 }
 0x541   :  { %v6703_v63 = vmul.f32 %v13016_v40, %v6692_v2  ;;  %7270 = vmatmul.bf16.vlgmr.msra.gmra.mxu2 %v6844_v7 }
 0x543   :  { %v13077_v56 = vsub.f32 %v6664_v50, %v6703_v63 }
 0x544   :  { %7282 = vmatpush.bf16.msra.mxu3 %v11146_v58 }
 0x545   :  { %v6711_v46 = vmul.f32 %v13077_v56, %v13077_v56 }
 0x547   :  { %v6730_v34 = vrot.slane %v6711_v46, 4 }
 0x548   :  { %7327 = vmatpush.bf16.msrb.mxu3 %v11206_v21 }
 0x549   :  { %v6731_v48 = vadd.f32 %v6730_v34, %v6711_v46  ;;  %v6910_v34 = vld [vmem:[#allocation16] sm:$0x3] }
 0x54a   :  { %v6912_v60 = vperm.slane %v6910_v34, 0 }
 0x54b   :  { %v6732_v25 = vrot.slane %v6731_v48, 2 }
 0x54c   :  { %7328 = vmatpush.bf16.msrb.mxu3 %v11198_v28 }
 0x54d   :  { %v6733_v49 = vadd.f32 %v6732_v25, %v6731_v48  ;;  %v6913_v25 = vperm.slane %v6910_v34, 1  ;;  %v12170_v34 = vld [vmem:[#allocation20] sm:$0xff] }
 0x54f   :  { %v6734_v22 = vrot.slane %v6733_v49, 1 }
 0x550   :  { %7329 = vmatpush.bf16.msrb.mxu3 %v11190_v27 }
 0x551   :  { %v6735_v45 = vadd.f32 %v6734_v22, %v6733_v49  ;;  %7322 = vmatmul.bf16.vlgmr.msrb.gmra.mxu2 %v6844_v7 }
 0x553   :  { %v6739_v24 = vmul.f32 %v6735_v45, %v13016_v40 }
 0x554   :  { %7330 = vmatpush.bf16.msrb.mxu3 %v11182_v31 }
 0x555   :  { %v6743_v61 = vadd.f32 1e-05, %v6739_v24 }
 0x557   :  { %12226 = vrsqrt.f32 %v6743_v61  ;;  %vm6780_vm14 = vweird.f32 %v6743_v61 }
 0x558   :  { %7331 = vmatpush.bf16.msrb.mxu3 %v11174_v43 }
 0x55a   :  { %v7245_v52 = vpop.f32.mrf.mxu0 }
 0x55b   :  { %v7246_v4 = vadd.f32 %v7245_v52, %v6912_v60  ;;  %v12174_v52 = vld [vmem:[#allocation20 + $0x20] sm:$0xff] }
 0x55c   :  { %7332 = vmatpush.bf16.msrb.mxu3 %v11166_v18 }
 0x55d   :  { %v12227_v32 = vpop.eup %12226 }
 0x55e   :  { %v6775_v50 = vmul.f32 %v12227_v32, %v6743_v61  ;;  %vm6781_vm13 = vweird.f32 %v12227_v32 }
 0x55f   :  { %vm6782_vm15 = vmor %vm6780_vm14, %vm6781_vm13 }
 0x560   :  { %v6776_v38 = vmul.f32 %v12227_v32, %v6775_v50  ;;  %7333 = vmatpush.bf16.msrb.mxu3 %v11158_v62 }
 0x562   :  { %v6777_v15 = vmul.f32 0.5, %v6776_v38  ;;  %v7247_v11 = vpop.f32.mrf.mxu0 }
 0x563   :  { %v12172_v11 = vld [vmem:[#allocation20 + $0x10] sm:$0xff] }
 0x564   :  { %v6778_v41 = vsub.f32 1.5, %v6777_v15  ;;  %7334 = vmatpush.bf16.msrb.mxu3 %v11150_v29  ;;  %v12175_v15 = vld [vmem:[#allocation20 + $0x28] sm:$0xff] }
 0x565   :  { %7562 = vmatpush.bf16.msra.mxu0 %v12175_v15 }
 0x566   :  { %v6779_v8 = vmul.f32 %v12227_v32, %v6778_v41 }
 0x568   :  { %v6783_v0 = vsel %vm6782_vm15, %v12227_v32, %v6779_v8 }
 0x569   :  { %v6787_v2 = vmul.f32 %v6783_v0, %v13077_v56  ;;  %7563 = vmatpush.bf16.msra.mxu0 %v12174_v52 }
 0x56a   :  { %v7297_v54 = vpop.f32.mrf.mxu0 }
 0x56b   :  { %v6800_v63 = vmul.f32 %v6792_v13, %v6787_v2  ;;  %v7298_v12 = vadd.f32 %v7297_v54, %v6913_v25  ;;  %v12185_v2 = vld [vmem:[#allocation20 + $0x78] sm:$0xff] }
 0x56c   :  { %7573 = vmatpush.bf16.msra.mxu1 %v12185_v2  ;;  %v12181_v25 = vld [vmem:[#allocation20 + $0x58] sm:$0xff] }
 0x56d   :  { %v6813_v6 = vadd.f32 %v6805_v16, %v6800_v63  ;;  %7564 = vmatpush.bf16.msra.mxu0 %v12173_v44 }
 0x56f   :  { %v6824_v35 = vmul.f32 1.442695, %v6813_v6  ;;  %vm6817_vm0 = vcmp.gt.f32.partialorder %v6813_v6, 0.0 }
 0x571   :  { %12228 = vpow2.f32 %v6824_v35  ;;  %v12184_v35 = vld [vmem:[#allocation20 + $0x70] sm:$0xff]  ;;  %7565 = vmatpush.bf16.msra.mxu0 %v12172_v11 }
 0x572   :  { %v7299_v53 = vpop.f32.mrf.mxu0  ;;  %7574 = vmatpush.bf16.msra.mxu1 %v12184_v35 }
 0x577   :  { %v12229_v42 = vpop.eup %12228 }
 0x578   :  { %v10950_v7 = vadd.f32 -1.0, %v12229_v42 }
 0x57a   :  { %v6833_v46 = vmul.f32 1.6732632, %v10950_v7 }
 0x57c   :  { %v6837_v57 = vsel %vm6817_vm0, %v6813_v6, %v6833_v46  ;;  %v12171_v46 = vld [vmem:[#allocation20 + $0x8] sm:$0xff] }
 0x57d   :  { %v6841_v3 = vmul.f32 1.050701, %v6837_v57  ;;  %v12183_v57 = vld [vmem:[#allocation20 + $0x68] sm:$0xff]  ;;  %7566 = vmatpush.bf16.msra.mxu0 %v12171_v46 }
 0x57e   :  { %v7258_v48 = vpop.f32.mrf.mxu1  ;;  %7575 = vmatpush.bf16.msra.mxu1 %v12183_v57 }
 0x57f   :  { %v6845_v56 = vpack.c.bf16 %v6841_v3, %v6841_v3  ;;  %v7259_v47 = vadd.f32 %v7258_v48, %v7246_v4 }
 0x581   :  { %7283 = vmatmul.bf16.vlgmr.msra.gmra.mxu3 %v6845_v56  ;;  %7567 = vmatpush.bf16.msra.mxu0 %v12170_v34 }
 0x586   :  { %v7260_v17 = vpop.f32.mrf.mxu1 }
 0x58e   :  { %v7310_v49 = vpop.f32.mrf.mxu1 }
 0x58f   :  { %v7311_v14 = vadd.f32 %v7310_v49, %v7298_v12 }
 0x591   :  { %7335 = vmatmul.bf16.vlgmr.msrb.gmra.mxu3 %v6845_v56  ;;  %v12182_v56 = vld [vmem:[#allocation20 + $0x60] sm:$0xff] }
 0x592   :  { %7576 = vmatpush.bf16.msra.mxu1 %v12182_v56 }
 0x596   :  { %v7312_v59 = vpop.f32.mrf.mxu1  ;;  %7577 = vmatpush.bf16.msra.mxu1 %v12181_v25 }
 0x5c4   :  { %v7271_v22 = vpop.f32.mrf.mxu2 }
 0x5c5   :  { %v7272_v21 = vadd.f32 %v7271_v22, %v7259_v47  ;;  %v7340_v22 = vld [vmem:[#allocation17] sm:$0x3] }
 0x5cc   :  { %v7273_v58 = vpop.f32.mrf.mxu2 }
 0x5d4   :  { %v7323_v37 = vpop.f32.mrf.mxu2 }
 0x5d5   :  { %v7324_v26 = vadd.f32 %v7323_v37, %v7311_v14  ;;  %v12180_v14 = vld [vmem:[#allocation20 + $0x50] sm:$0xff] }
 0x5d6   :  { %7578 = vmatpush.bf16.msra.mxu1 %v12180_v14 }
 0x5dc   :  { %v7325_v10 = vpop.f32.mrf.mxu2 }
 0x5dd   :  { %v7341_v10 = vld [vmem:[#allocation19] sm:$0x3] }
 0x604   :  { %v7284_v45 = vpop.f32.mrf.mxu3 }
 0x605   :  { %v7285_v55 = vadd.f32 %v7284_v45, %v7272_v21  ;;  %v12179_v45 = vld [vmem:[#allocation20 + $0x48] sm:$0xff] }
 0x606   :  { %7579 = vmatpush.bf16.msra.mxu1 %v12179_v45 }
 0x607   :  { %v7342_v39 = vrot.slane %v7285_v55, 4 }
 0x609   :  { %v7343_v28 = vadd.f32 %v7342_v39, %v7285_v55 }
 0x60b   :  { %v7344_v24 = vrot.slane %v7343_v28, 2 }
 0x60c   :  { %v7286_v33 = vpop.f32.mrf.mxu3 }
 0x60d   :  { %v7345_v19 = vadd.f32 %v7344_v24, %v7343_v28  ;;  %v7406_v24 = vperm.slane %v7341_v10, 0  ;;  %v12178_v33 = vld [vmem:[#allocation20 + $0x40] sm:$0xff] }
 0x60e   :  { %7580 = vmatpush.bf16.msra.mxu1 %v12178_v33 }
 0x60f   :  { %v7346_v61 = vrot.slane %v7345_v19, 1 }
 0x611   :  { %v7347_v27 = vadd.f32 %v7346_v61, %v7345_v19 }
 0x613   :  { %v7354_v31 = vmul.f32 %v7347_v27, %v13016_v40 }
 0x614   :  { %v7336_v32 = vpop.f32.mrf.mxu3 }
 0x615   :  { %v13086_v50 = vsub.f32 %v7285_v55, %v7354_v31  ;;  %v7337_v36 = vadd.f32 %v7336_v32, %v7324_v26  ;;  %v7399_v55 = vperm.slane %v7340_v22, 0 }
 0x617   :  { %v7358_v38 = vmul.f32 %v13086_v50, %v13086_v50  ;;  %v7348_v43 = vrot.slane %v7337_v36, 4 }
 0x619   :  { %v7360_v9 = vrot.slane %v7358_v38, 4  ;;  %v7349_v20 = vadd.f32 %v7348_v43, %v7337_v36 }
 0x61b   :  { %v7361_v18 = vadd.f32 %v7360_v9, %v7358_v38  ;;  %v7350_v1 = vrot.slane %v7349_v20, 2  ;;  %v7400_v38 = vperm.slane %v7340_v22, 1 }
 0x61c   :  { %v7338_v30 = vpop.f32.mrf.mxu3 }
 0x61d   :  { %v7362_v41 = vrot.slane %v7361_v18, 2  ;;  %v7351_v8 = vadd.f32 %v7350_v1, %v7349_v20  ;;  %v7407_v20 = vperm.slane %v7341_v10, 1 }
 0x61f   :  { %v7363_v62 = vadd.f32 %v7362_v41, %v7361_v18  ;;  %v7352_v13 = vrot.slane %v7351_v8, 1 }
 0x621   :  { %v7364_v0 = vrot.slane %v7363_v62, 1  ;;  %v7353_v5 = vadd.f32 %v7352_v13, %v7351_v8 }
 0x623   :  { %v7365_v16 = vadd.f32 %v7364_v0, %v7363_v62  ;;  %v7355_v29 = vmul.f32 %v7353_v5, %v13016_v40 }
 0x625   :  { %v7372_v63 = vmul.f32 %v7365_v16, %v13016_v40  ;;  %v13092_v6 = vsub.f32 %v7337_v36, %v7355_v29 }
 0x627   :  { %v7374_v54 = vadd.f32 1e-05, %v7372_v63  ;;  %v7359_v42 = vmul.f32 %v13092_v6, %v13092_v6  ;;  %v12209_v63 = vld [vmem:[#allocation22] ss:$0 sm:$0xff] }
 0x629   :  { %12230 = vrsqrt.f32 %v7374_v54  ;;  %v7366_v7 = vrot.slane %v7359_v42, 4  ;;  %vm7382_vm2 = vweird.f32 %v7374_v54 }
 0x62b   :  { %v7367_v3 = vadd.f32 %v7366_v7, %v7359_v42 }
 0x62d   :  { %v7368_v53 = vrot.slane %v7367_v3, 2 }
 0x62f   :  { %v12231_v60 = vpop.eup %12230  ;;  %v7369_v4 = vadd.f32 %v7368_v53, %v7367_v3  ;;  %v12210_v3 = vld [vmem:[#allocation23] ss:$0 sm:$0xff] }
 0x630   :  { %v7377_v48 = vmul.f32 %v12231_v60, %v7374_v54  ;;  %vm7383_vm1 = vweird.f32 %v12231_v60 }
 0x631   :  { %v7370_v47 = vrot.slane %v7369_v4, 1  ;;  %vm7384_vm3 = vmor %vm7382_vm2, %vm7383_vm1 }
 0x632   :  { %v7378_v17 = vmul.f32 %v12231_v60, %v7377_v48 }
 0x633   :  { %v7371_v12 = vadd.f32 %v7370_v47, %v7369_v4 }
 0x634   :  { %v7379_v49 = vmul.f32 0.5, %v7378_v17 }
 0x635   :  { %v7373_v59 = vmul.f32 %v7371_v12, %v13016_v40 }
 0x636   :  { %v7380_v58 = vsub.f32 1.5, %v7379_v49 }
 0x637   :  { %v7375_v37 = vadd.f32 1e-05, %v7373_v59 }
 0x638   :  { %v7381_v21 = vmul.f32 %v12231_v60, %v7380_v58 }
 0x639   :  { %12232 = vrsqrt.f32 %v7375_v37  ;;  %vm7392_vm5 = vweird.f32 %v7375_v37 }
 0x63a   :  { %v7385_v39 = vsel %vm7384_vm3, %v12231_v60, %v7381_v21  ;;  %v12211_v60 = vld [vmem:[#allocation2] ss:$0 sm:$0xff] }
 0x63b   :  { %v7396_v28 = vmul.f32 %v7385_v39, %v13086_v50 }
 0x63d   :  { %v7403_v19 = vmul.f32 %v7399_v55, %v7396_v28 }
 0x63f   :  { %v12233_v40 = vpop.eup %12232  ;;  %v7410_v61 = vadd.f32 %v7406_v24, %v7403_v19 }
 0x640   :  { %v7387_v27 = vmul.f32 %v12233_v40, %v7375_v37  ;;  %vm7393_vm4 = vweird.f32 %v12233_v40 }
 0x641   :  { %v7414_v23 = vmul.f32 1.442695, %v7410_v61  ;;  %vm7394_vm6 = vmor %vm7392_vm5, %vm7393_vm4  ;;  %vm7412_vm7 = vcmp.gt.f32.partialorder %v7410_v61, 0.0 }
 0x642   :  { %v7388_v26 = vmul.f32 %v12233_v40, %v7387_v27 }
 0x643   :  { %12234 = vpow2.f32 %v7414_v23 }
 0x644   :  { %v7389_v31 = vmul.f32 0.5, %v7388_v26 }
 0x646   :  { %v7390_v32 = vsub.f32 1.5, %v7389_v31 }
 0x648   :  { %v7391_v36 = vmul.f32 %v12233_v40, %v7390_v32 }
 0x649   :  { %v12235_v51 = vpop.eup %12234 }
 0x64a   :  { %v7395_v50 = vsel %vm7394_vm6, %v12233_v40, %v7391_v36  ;;  %v11207_v43 = vadd.f32 -1.0, %v12235_v51 }
 0x64b   :  { %v7397_v9 = vmul.f32 %v7395_v50, %v13092_v6 }
 0x64c   :  { %v7420_v15 = vmul.f32 1.6732632, %v11207_v43 }
 0x64d   :  { %v7404_v18 = vmul.f32 %v7400_v38, %v7397_v9 }
 0x64e   :  { %v7422_v1 = vsel %vm7412_vm7, %v7410_v61, %v7420_v15 }
 0x64f   :  { %v7411_v30 = vadd.f32 %v7407_v20, %v7404_v18  ;;  %v7424_v41 = vmul.f32 1.050701, %v7422_v1 }
 0x651   :  { %v7416_v8 = vmul.f32 1.442695, %v7411_v30  ;;  %v7426_v52 = vpack.c.bf16 %v7424_v41, %v7424_v41  ;;  %vm7413_vm8 = vcmp.gt.f32.partialorder %v7411_v30, 0.0 }
 0x653   :  { %12236 = vpow2.f32 %v7416_v8  ;;  %7568 = vmatmul.bf16.vlgmr.msra.gmra.mxu0 %v7426_v52 }
 0x659   :  { %v12237_v62 = vpop.eup %12236 }
 0x65a   :  { %v11208_v13 = vadd.f32 -1.0, %v12237_v62 }
 0x65c   :  { %v7421_v0 = vmul.f32 1.6732632, %v11208_v13 }
 0x65e   :  { %v7423_v5 = vsel %vm7413_vm8, %v7411_v30, %v7421_v0 }
 0x65f   :  { %v7425_v44 = vmul.f32 1.050701, %v7423_v5 }
 0x661   :  { %v7427_v2 = vpack.c.bf16 %v7425_v44, %v7425_v44 }
 0x663   :  { %7581 = vmatmul.bf16.vlgmr.msra.gmra.mxu1 %v7427_v2 }
 0x6d0   :  { %v7569_v16 = vpop.f32.mrf.mxu0 }
 0x6d1   :  { %v7570_v6 = vadd.f32 %v12209_v63, %v7569_v16 }
 0x6d8   :  { %v7571_v29 = vpop.f32.mrf.mxu0 }
 0x6e0   :  { %v7582_v11 = vpop.f32.mrf.mxu1 }
 0x6e1   :  { %v7583_v35 = vadd.f32 %v7582_v11, %v7570_v6 }
 0x6e3   :  { %v7587_v54 = vmul.f32 1.442695, %v7583_v35  ;;  %vm7586_vm9 = vcmp.gt.f32.partialorder %v7583_v35, 0.0 }
 0x6e5   :  { %12238 = vpow2.f32 %v7587_v54 }
 0x6e8   :  { %v7584_v42 = vpop.f32.mrf.mxu1 }
 0x6eb   :  { %v12239_v7 = vpop.eup %12238 }
 0x6ec   :  { %v11273_v46 = vadd.f32 -1.0, %v12239_v7 }
 0x6ee   :  { %v7590_v57 = vmul.f32 1.6732632, %v11273_v46 }
 0x6f0   :  { %v7591_v53 = vsel %vm7586_vm9, %v7583_v35, %v7590_v57 }
 0x6f1   :  { %v7592_v34 = vmul.f32 1.050701, %v7591_v53 }
 0x6f3   :  { %v7597_v56 = vmul.f32 %v12210_v3, %v7592_v34 }
 0x6f5   :  { %7598 = vadd.xlane.f32.xlu0 %v7597_v56 }
 0x768   :  { %v7599_v4 = vpop.xlane.xlu0 %7598 }
 0x769   :  { %v7604_v48 = vadd.f32 %v12211_v60, %v7599_v4 }
 0x76b   :  { %7606 = vst.msk [vmem:[%s13117_s15] sm:$0xff] %vm7605_vm10, %v7604_v48 }
 0x76c   :  { %7611 = vsyncpa [#allocation4], 1 }
 0x76d   :  { %7612 = vsyncpa [#allocation6], 1 }
 0x76e   :  { %7613 = vsyncpa [#allocation9], 1 }
 0x76f   :  { %7614 = vsyncpa [#allocation12], 1 }
 0x770   :  { %7615 = vsyncpa [#allocation15], 1 }
 0x771   :  { %7616 = vsyncpa [#allocation18], 1 }
 0x772   :  { %7617 = vsyncpa [#allocation21], 1 }
 0x773   :  { %7618 = vsyncpa [#allocation24], 1 }

</bundles_post_ra>
